<compile_context>
chip_gen: v6e
topology: v6e:2x2x1
jax: 0.10.0
libtpu: 0.0.40
codegen_flags: <defaults>
</compile_context>

<pallas_src>
import functools
import numpy as np
import jax
import jax.numpy as jnp
from jax import lax
from jax.experimental import pallas as pl
from jax.experimental.pallas import tpu as pltpu


# ------------------------------ small helpers -------------------------------

def _pick_tile(dim, target, align):
    """Largest tile <= target that divides dim and is a multiple of align."""
    if dim <= target:
        return dim
    for t in range(min(target, dim), 0, -1):
        if dim % t == 0 and t % align == 0:
            return t
    return dim


def _silu(x):
    return x / (1.0 + jnp.exp(-x))


def _softplus(x):
    return jnp.maximum(x, 0.0) + jnp.log(1.0 + jnp.exp(-jnp.abs(x)))


def _layernorm(x, g, b, eps):
    mu = jnp.mean(x, axis=-1, keepdims=True)
    var = jnp.mean((x - mu) ** 2, axis=-1, keepdims=True)
    return (x - mu) * lax.rsqrt(var + eps) * g + b


# ------------------------- generic tiled linear kernel ----------------------

def _linear_kernel(*refs, act, has_bias, has_res, has_ln, has_pre, eps):
    it = iter(refs)
    x_ref = next(it)
    pn_ref = next(it) if has_pre else None
    w_ref = next(it)
    b_ref = next(it) if has_bias else None
    r_ref = next(it) if has_res else None
    lg_ref = next(it) if has_ln else None
    lb_ref = next(it) if has_ln else None
    o_ref = next(it)
    acc_ref = next(it)

    @pl.when(pl.program_id(2) == 0)
    def _():
        acc_ref[...] = jnp.zeros_like(acc_ref)

    x = x_ref[...].astype(jnp.float32)
    if has_pre:  # fused RMSNorm over the (untiled) K axis
        ms = jnp.mean(x * x, axis=-1, keepdims=True)
        x = x * lax.rsqrt(ms + eps) * pn_ref[...]
    acc_ref[...] += jnp.dot(x.astype(jnp.bfloat16), w_ref[...],
                            preferred_element_type=jnp.float32)

    @pl.when(pl.program_id(2) == pl.num_programs(2) - 1)
    def _():
        y = acc_ref[...]
        if has_bias:
            y = y + b_ref[...]
        if act == "relu":
            y = jnp.maximum(y, 0.0)
        if has_res:
            y = y + r_ref[...]
        if has_ln:  # fused LayerNorm over the (untiled) output axis
            y = _layernorm(y, lg_ref[...], lb_ref[...], eps)
        o_ref[...] = y


def linear(x, w, b=None, act="none", residual=None, ln=None, prenorm=None,
           eps=1e-5, tm=256, tn=256, tk=512):
    """y = [LN]( [relu](rms(x) @ w + b) + residual ), all epilogues optional."""
    orig = x.shape
    K = orig[-1]
    Nout = w.shape[1]
    M = int(np.prod(orig[:-1]))
    x2 = x.reshape(M, K)
    has_bias = b is not None
    has_res = residual is not None
    has_ln = ln is not None
    has_pre = prenorm is not None

    tm_ = _pick_tile(M, tm, 8)
    tn_ = Nout if has_ln else _pick_tile(Nout, tn, 128)
    tk_ = K if has_pre else _pick_tile(K, tk, 128)
    nm, nn, nk = M // tm_, Nout // tn_, K // tk_

    inputs = [x2]
    in_specs = [pl.BlockSpec((tm_, tk_), lambda i, j, k: (i, k))]
    if has_pre:
        inputs.append(prenorm.reshape(1, K).astype(jnp.float32))
        in_specs.append(pl.BlockSpec((1, K), lambda i, j, k: (0, 0)))
    inputs.append(w)
    in_specs.append(pl.BlockSpec((tk_, tn_), lambda i, j, k: (k, j)))
    if has_bias:
        inputs.append(b.reshape(1, Nout).astype(jnp.float32))
        in_specs.append(pl.BlockSpec((1, tn_), lambda i, j, k: (0, j)))
    if has_res:
        inputs.append(residual.reshape(M, Nout).astype(jnp.float32))
        in_specs.append(pl.BlockSpec((tm_, tn_), lambda i, j, k: (i, j)))
    if has_ln:
        inputs.append(ln[0].reshape(1, Nout).astype(jnp.float32))
        inputs.append(ln[1].reshape(1, Nout).astype(jnp.float32))
        in_specs.append(pl.BlockSpec((1, tn_), lambda i, j, k: (0, j)))
        in_specs.append(pl.BlockSpec((1, tn_), lambda i, j, k: (0, j)))

    out = pl.pallas_call(
        functools.partial(_linear_kernel, act=act, has_bias=has_bias,
                          has_res=has_res, has_ln=has_ln, has_pre=has_pre,
                          eps=eps),
        out_shape=jax.ShapeDtypeStruct((M, Nout), jnp.float32),
        grid=(nm, nn, nk),
        in_specs=in_specs,
        out_specs=pl.BlockSpec((tm_, tn_), lambda i, j, k: (i, j)),
        scratch_shapes=[pltpu.VMEM((tm_, tn_), jnp.float32)],
        compiler_params=pltpu.CompilerParams(
            dimension_semantics=("parallel", "parallel", "arbitrary")),
    )(*inputs)
    return out.reshape(orig[:-1] + (Nout,))


# ------------------------- fused two-matmul MLP kernel -----------------------

def _mlp2_kernel(*refs, has_res, has_ln, eps):
    it = iter(refs)
    x_ref, w1_ref, b1_ref, w2_ref, b2_ref = (next(it) for _ in range(5))
    r_ref = next(it) if has_res else None
    lg_ref = next(it) if has_ln else None
    lb_ref = next(it) if has_ln else None
    o_ref = next(it)

    x = x_ref[...]
    h = jnp.dot(x.astype(jnp.bfloat16), w1_ref[...],
                preferred_element_type=jnp.float32)
    h = jnp.maximum(h + b1_ref[...], 0.0)
    y = jnp.dot(h.astype(jnp.bfloat16), w2_ref[...],
                preferred_element_type=jnp.float32)
    y = y + b2_ref[...]
    if has_res:
        y = y + r_ref[...]
    if has_ln:
        y = _layernorm(y, lg_ref[...], lb_ref[...], eps)
    o_ref[...] = y


def mlp2(x, w1, b1, w2, b2, residual=None, ln=None, eps=1e-5, tm=256):
    """relu(x@w1+b1)@w2+b2 [+residual] [-> LayerNorm], one kernel (no dff HBM)."""
    orig = x.shape
    C = orig[-1]
    M = int(np.prod(orig[:-1]))
    dff = w1.shape[1]
    C2 = w2.shape[1]
    x2 = x.reshape(M, C)
    has_res = residual is not None
    has_ln = ln is not None
    tm_ = _pick_tile(M, tm, 8)
    nm = M // tm_

    inputs = [x2, w1, b1.reshape(1, dff).astype(jnp.float32),
              w2, b2.reshape(1, C2).astype(jnp.float32)]
    in_specs = [pl.BlockSpec((tm_, C), lambda i: (i, 0)),
                pl.BlockSpec((C, dff), lambda i: (0, 0)),
                pl.BlockSpec((1, dff), lambda i: (0, 0)),
                pl.BlockSpec((dff, C2), lambda i: (0, 0)),
                pl.BlockSpec((1, C2), lambda i: (0, 0))]
    if has_res:
        inputs.append(residual.reshape(M, C2).astype(jnp.float32))
        in_specs.append(pl.BlockSpec((tm_, C2), lambda i: (i, 0)))
    if has_ln:
        inputs.append(ln[0].reshape(1, C2).astype(jnp.float32))
        inputs.append(ln[1].reshape(1, C2).astype(jnp.float32))
        in_specs.append(pl.BlockSpec((1, C2), lambda i: (0, 0)))
        in_specs.append(pl.BlockSpec((1, C2), lambda i: (0, 0)))

    out = pl.pallas_call(
        functools.partial(_mlp2_kernel, has_res=has_res, has_ln=has_ln, eps=eps),
        out_shape=jax.ShapeDtypeStruct((M, C2), jnp.float32),
        grid=(nm,),
        in_specs=in_specs,
        out_specs=pl.BlockSpec((tm_, C2), lambda i: (i, 0)),
        compiler_params=pltpu.CompilerParams(dimension_semantics=("parallel",)),
    )(*inputs)
    return out.reshape(orig[:-1] + (C2,))


# ----------------------------- fused MoH attention ---------------------------

def _attn_kernel(qkv_ref, mg_ref, qg_ref, qb_ref, kg_ref, kb_ref, o_ref,
                 *, H, Dh, scale, eps):
    qkv = qkv_ref[0].astype(jnp.float32)        # (N, 3*C)
    mg = mg_ref[0]                              # (N, H) head gates
    C = H * Dh
    qg, qb = qg_ref[...], qb_ref[...]
    kg, kb = kg_ref[...], kb_ref[...]
    dims = (((1,), (1,)), ((), ()))             # contract last dims, no transpose
    outs = []
    for h in range(H):                          # static head loop, all in VMEM
        q = qkv[:, h * Dh:(h + 1) * Dh]
        k = qkv[:, C + h * Dh:C + (h + 1) * Dh]
        v = qkv[:, 2 * C + h * Dh:2 * C + (h + 1) * Dh]
        q = _layernorm(q, qg, qb, eps) * scale
        k = _layernorm(k, kg, kb, eps)
        s = lax.dot_general(q.astype(jnp.bfloat16), k.astype(jnp.bfloat16),
                            dims, preferred_element_type=jnp.float32)
        s = s - jnp.max(s, axis=-1, keepdims=True)
        p = jnp.exp(s)
        p = p * pl.reciprocal(jnp.sum(p, axis=-1, keepdims=True), approx=True)
        o = jnp.dot(p.astype(jnp.bfloat16), v.astype(jnp.bfloat16),
                    preferred_element_type=jnp.float32)
        outs.append(o * mg[:, h:h + 1])
    o_ref[0] = jnp.concatenate(outs, axis=-1)   # single lane-dense store


def moh_attention_core(qkv, mg, qn_g, qn_b, kn_g, kn_b, H, Dh, eps=1e-5):
    B, N, threeC = qkv.shape
    C = H * Dh
    scale = float(Dh) ** -0.5
    return pl.pallas_call(
        functools.partial(_attn_kernel, H=H, Dh=Dh, scale=scale, eps=eps),
        out_shape=jax.ShapeDtypeStruct((B, N, C), jnp.float32),
        grid=(B,),
        in_specs=[pl.BlockSpec((1, N, threeC), lambda b: (b, 0, 0)),
                  pl.BlockSpec((1, N, H), lambda b: (b, 0, 0)),
                  pl.BlockSpec((1, Dh), lambda b: (0, 0)),
                  pl.BlockSpec((1, Dh), lambda b: (0, 0)),
                  pl.BlockSpec((1, Dh), lambda b: (0, 0)),
                  pl.BlockSpec((1, Dh), lambda b: (0, 0))],
        out_specs=pl.BlockSpec((1, N, C), lambda b: (b, 0, 0)),
        compiler_params=pltpu.CompilerParams(dimension_semantics=("parallel",)),
    )(qkv, mg, qn_g, qn_b, kn_g, kn_b)


# -------------------------- fused Mamba (SSM) kernel --------------------------

def _mamba_kernel(xz_ref, cwt_ref, cb_ref, xpw_ref, dtw_ref, dtb_ref, a_ref,
                  d_ref, o_ref, da_sc, bx_sc, h_sc, *, ED, Ns, dt_rank, K):
    xz = xz_ref[0]                              # (L, 2*ED) f32
    L = xz.shape[0]
    xin = xz[:, :ED]
    z = xz[:, ED:]

    # depthwise causal conv1d (kernel K) + SiLU
    cw = cwt_ref[...]                           # (K, ED)
    conv = xin * cw[K - 1:K, :]                 # tap j=K-1 -> shift 0
    for j in range(K - 1):
        sh = K - 1 - j
        shifted = jnp.concatenate(
            [jnp.zeros((sh, ED), jnp.float32), xin[:L - sh, :]], axis=0)
        conv = conv + shifted * cw[j:j + 1, :]
    conv = conv + cb_ref[...]
    xc = _silu(conv)                            # (L, ED)

    # x_proj -> (dt_lowrank | B | C); dt_proj -> softplus
    dbc = jnp.dot(xc.astype(jnp.bfloat16), xpw_ref[...],
                  preferred_element_type=jnp.float32)           # (L, dt_rank+2*Ns)
    delta = jnp.dot(dbc[:, :dt_rank], dtw_ref[...],
                    preferred_element_type=jnp.float32) + dtb_ref[...]
    delta = _softplus(delta)                                    # (L, ED)
    Bm = dbc[:, dt_rank:dt_rank + Ns]                           # (L, Ns)
    Cm = dbc[:, dt_rank + Ns:]                                  # (L, Ns)

    # discretize entirely in VMEM (never written to HBM)
    a = a_ref[...]                                              # (ED, Ns)
    da_sc[...] = jnp.exp(delta[:, :, None] * a[None, :, :])     # (L, ED, Ns)
    bx_sc[...] = (delta * xc)[:, :, None] * Bm[:, None, :]      # (L, ED, Ns)

    # sequential recurrence: pure VPU FMA per step, h_t stashed in VMEM
    def body(t, h):
        h = da_sc[t] * h + bx_sc[t]
        h_sc[t] = h
        return h
    lax.fori_loop(0, L, body, jnp.zeros((ED, Ns), jnp.float32), unroll=True)

    # batched C-contraction + skip + SiLU(z) gate; single lane-dense output write
    y = jnp.sum(h_sc[...] * Cm[:, None, :], axis=-1)            # (L, ED)
    y = y + d_ref[...] * xc
    y = y * _silu(z)
    o_ref[0] = y


def mamba_scan(xz, p):
    B, L, two_ed = xz.shape
    ED = two_ed // 2
    Ns = p["A"].shape[1]
    dt_rank = p["dt_w"].shape[0]
    K = p["conv_wt"].shape[0]
    return pl.pallas_call(
        functools.partial(_mamba_kernel, ED=ED, Ns=Ns, dt_rank=dt_rank, K=K),
        out_shape=jax.ShapeDtypeStruct((B, L, ED), jnp.float32),
        grid=(B,),
        in_specs=[pl.BlockSpec((1, L, two_ed), lambda b: (b, 0, 0)),
                  pl.BlockSpec((K, ED), lambda b: (0, 0)),
                  pl.BlockSpec((1, ED), lambda b: (0, 0)),
                  pl.BlockSpec((ED, dt_rank + 2 * Ns), lambda b: (0, 0)),
                  pl.BlockSpec((dt_rank, ED), lambda b: (0, 0)),
                  pl.BlockSpec((1, ED), lambda b: (0, 0)),
                  pl.BlockSpec((ED, Ns), lambda b: (0, 0)),
                  pl.BlockSpec((1, ED), lambda b: (0, 0))],
        out_specs=pl.BlockSpec((1, L, ED), lambda b: (b, 0, 0)),
        scratch_shapes=[pltpu.VMEM((L, ED, Ns), jnp.float32),
                        pltpu.VMEM((L, ED, Ns), jnp.float32),
                        pltpu.VMEM((L, ED, Ns), jnp.float32)],
        compiler_params=pltpu.CompilerParams(dimension_semantics=("parallel",)),
    )(xz, p["conv_wt"], p["conv_b"], p["x_proj_w"], p["dt_w"], p["dt_b"],
      p["A"], p["D"])


# ------------------------------- model pieces --------------------------------

def encoder_layer(x, p, nhead, shared_head=2, routed_head=2):
    B, N, C = x.shape
    H = nhead
    Dh = C // H
    n_routed = H - shared_head

    # MoH gating: one fused gate projection, then tiny top-k glue in plain JAX.
    glog = linear(x, p["gate_w"])                               # (B, N, H+2)
    r_logits = glog[..., :n_routed]
    s_logits = glog[..., n_routed:n_routed + shared_head]
    w0_logits = glog[..., n_routed + shared_head:]
    gates = jax.nn.softmax(r_logits, axis=-1)
    _, topi = lax.top_k(gates, routed_head)
    mask = jax.nn.one_hot(topi, n_routed, dtype=jnp.float32).sum(axis=-2)
    rg = gates * mask
    rg = rg / jnp.maximum(jnp.sum(rg, axis=-1, keepdims=True),
                          jnp.finfo(jnp.float32).eps)
    rg = rg * routed_head
    sg = jax.nn.softmax(s_logits, axis=-1) * shared_head
    w0 = jax.nn.softmax(w0_logits, axis=-1) * 2.0
    sg = w0[..., 0:1] * sg
    rg = w0[..., 1:2] * rg
    mg = jnp.concatenate([sg, rg], axis=-1).astype(jnp.float32)  # (B, N, H)

    # attention + fused (proj + residual + LayerNorm)
    qkv = linear(x, p["qkv_w"], p["qkv_b"])                      # (B, N, 3C)
    attn = moh_attention_core(qkv, mg, p["qn_g"], p["qn_b"],
                              p["kn_g"], p["kn_b"], H, Dh)
    h = linear(attn, p["proj_w"], p["proj_b"], residual=x,
               ln=(p["ln1_g"], p["ln1_b"]))

    # fused FFN + residual + LayerNorm
    return mlp2(h, p["lin1_w"], p["lin1_b"], p["lin2_w"], p["lin2_b"],
                residual=h, ln=(p["ln2_g"], p["ln2_b"]))


def mamba_block(x, p):
    # fused RMSNorm + in_proj, fused SSM kernel, fused (out_proj + residual)
    xz = linear(x, p["in_proj_w"], prenorm=p["norm_w"])          # (B, L, 2*ED)
    y = mamba_scan(xz, p)                                        # (B, L, ED)
    return linear(y, p["out_proj_w"], residual=x)                # (B, L, D)


def forward_encoder(x, params, num_layers, nhead):
    h = linear(x, params["emb_w"], params["emb_b"])
    for _ in range(num_layers):            # shared layer, applied repeatedly
        h = encoder_layer(h, params["layer"], nhead)
    h = mamba_block(h, params["mamba"])
    out = mlp2(h, params["edge_w1"], params["edge_b1"],
               params["edge_w2"], params["edge_b2"])             # (B, N, 2)
    return 0.5 * (out[:, 0::2] + out[:, 1::2])                   # (B, N//2, 2)


# ------------------------------- parameters ----------------------------------

def init_params(key, input_dim, d_model, nhead, hidden_dim):
    H = nhead
    Dh = d_model // H
    shared = 2
    dff = d_model * 4
    ED = 2 * d_model
    Ns = hidden_dim
    dt_rank = max(1, int(np.ceil(d_model / 16)))
    Kc = 4

    keys = iter(jax.random.split(key, 64))

    def w(shape, s=0.02):
        return s * jax.random.normal(next(keys), shape, jnp.float32)

    attn = dict(
        qkv_w=w((d_model, 3 * H * Dh)), qkv_b=jnp.zeros((3 * H * Dh,), jnp.float32),
        qn_g=jnp.ones((Dh,), jnp.float32), qn_b=jnp.zeros((Dh,), jnp.float32),
        kn_g=jnp.ones((Dh,), jnp.float32), kn_b=jnp.zeros((Dh,), jnp.float32),
        proj_w=w((H * Dh, d_model)), proj_b=jnp.zeros((d_model,), jnp.float32),
        wg_w=w((d_model, H - shared)),
        wg0_w=w((d_model, 2)),
        wg1_w=w((d_model, shared)),
    )
    layer = dict(
        attn=attn,
        ln1_g=jnp.ones((d_model,), jnp.float32), ln1_b=jnp.zeros((d_model,), jnp.float32),
        ln2_g=jnp.ones((d_model,), jnp.float32), ln2_b=jnp.zeros((d_model,), jnp.float32),
        lin1_w=w((d_model, dff)), lin1_b=jnp.zeros((dff,), jnp.float32),
        lin2_w=w((dff, d_model)), lin2_b=jnp.zeros((d_model,), jnp.float32),
    )
    mamba = dict(
        norm_w=jnp.ones((d_model,), jnp.float32),
        in_proj_w=w((d_model, 2 * ED)),
        conv_w=w((ED, Kc)), conv_b=jnp.zeros((ED,), jnp.float32),
        x_proj_w=w((ED, dt_rank + 2 * Ns)),
        dt_w=w((dt_rank, ED)), dt_b=jnp.zeros((ED,), jnp.float32),
        A_log=jnp.log(jnp.tile(jnp.arange(1, Ns + 1, dtype=jnp.float32)[None, :],
                               (ED, 1))),
        D=jnp.ones((ED,), jnp.float32),
        out_proj_w=w((ED, d_model)),
    )
    return dict(
        emb_w=w((input_dim, d_model)), emb_b=jnp.zeros((d_model,), jnp.float32),
        layer=layer, mamba=mamba,
        edge_w1=w((d_model, hidden_dim)), edge_b1=jnp.zeros((hidden_dim,), jnp.float32),
        edge_w2=w((hidden_dim, 2)), edge_b2=jnp.zeros((2,), jnp.float32),
    )


def prepare_params(p):
    """One-time preprocessing: bf16 weights for the MXU, (1,n) f32 vectors,
    fused gate weight, pre-transposed conv taps, A = -exp(A_log)."""
    def bf(x):
        return x.astype(jnp.bfloat16)

    def row(x):
        return x.reshape(1, -1).astype(jnp.float32)

    a = p["layer"]["attn"]
    gate_w = jnp.concatenate([a["wg_w"], a["wg1_w"], a["wg0_w"]], axis=1)
    layer = dict(
        qkv_w=bf(a["qkv_w"]), qkv_b=row(a["qkv_b"]),
        qn_g=row(a["qn_g"]), qn_b=row(a["qn_b"]),
        kn_g=row(a["kn_g"]), kn_b=row(a["kn_b"]),
        proj_w=bf(a["proj_w"]), proj_b=row(a["proj_b"]),
        gate_w=bf(gate_w),
        ln1_g=row(p["layer"]["ln1_g"]), ln1_b=row(p["layer"]["ln1_b"]),
        ln2_g=row(p["layer"]["ln2_g"]), ln2_b=row(p["layer"]["ln2_b"]),
        lin1_w=bf(p["layer"]["lin1_w"]), lin1_b=row(p["layer"]["lin1_b"]),
        lin2_w=bf(p["layer"]["lin2_w"]), lin2_b=row(p["layer"]["lin2_b"]),
    )
    m = p["mamba"]
    mamba = dict(
        norm_w=row(m["norm_w"]),
        in_proj_w=bf(m["in_proj_w"]),
        conv_wt=m["conv_w"].T.astype(jnp.float32),      # (K, ED)
        conv_b=row(m["conv_b"]),
        x_proj_w=bf(m["x_proj_w"]),
        dt_w=m["dt_w"].astype(jnp.float32),
        dt_b=row(m["dt_b"]),
        A=(-jnp.exp(m["A_log"])).astype(jnp.float32),   # (ED, Ns)
        D=row(m["D"]),
        out_proj_w=bf(m["out_proj_w"]),
    )
    return dict(
        emb_w=bf(p["emb_w"]), emb_b=row(p["emb_b"]),
        layer=layer, mamba=mamba,
        edge_w1=bf(p["edge_w1"]), edge_b1=row(p["edge_b1"]),
        edge_w2=bf(p["edge_w2"]), edge_b2=row(p["edge_b2"]),
    )


# ---------------------------------- main --------------------------------------

if __name__ == "__main__":
    B, N = 2, 8
    INPUT_DIM, D_MODEL, NHEAD, HIDDEN, NUM_LAYERS = 4, 32, 8, 32, 2

    key = jax.random.PRNGKey(0)
    pkey, xkey = jax.random.split(key)
    raw_params = init_params(pkey, INPUT_DIM, D_MODEL, NHEAD, HIDDEN)
    params = prepare_params(raw_params)        # bf16 weights etc., done ONCE
    x = jax.random.normal(xkey, (B, N, INPUT_DIM), jnp.float32)

    fwd = jax.jit(functools.partial(forward_encoder,
                                    num_layers=NUM_LAYERS, nhead=NHEAD))
    out = jax.block_until_ready(fwd(x, params))
    assert out.shape == (B, N // 2, 2), out.shape
    # TODO(synk): training-only paths (dropout noise, MoH load-balancing loss)
    # are intentionally omitted (eval-mode semantics); at very long L the Mamba
    # kernel should chunk the sequence instead of holding (L,ED,Ns) in VMEM.
    print("KERNEL_OK")
</pallas_src>

<mosaic_0001>
module attributes {stable_mosaic.version = 11 : i64} {
  func.func @_linear_kernel(%arg0: i32, %arg1: i32, %arg2: i32, %arg3: memref<16x32xf32, #tpu.memory_space<vmem>>, %arg4: memref<32x10xbf16, #tpu.memory_space<vmem>>, %arg5: memref<16x10xf32, #tpu.memory_space<vmem>>, %arg6: memref<16x10xf32, #tpu.memory_space<vmem>>) attributes {dimension_semantics = [#tpu.dimension_semantics<parallel>, #tpu.dimension_semantics<parallel>, #tpu.dimension_semantics<arbitrary>], iteration_bounds = array<i64: 1, 1, 1>, scalar_prefetch = 0 : i64, scratch_operands = 1 : i64, tpu.core_type = #tpu.core_type<tc>, window_params = [{transform_indices = @transform_0, window_bounds = array<i64: 16, 32>}, {transform_indices = @transform_1, window_bounds = array<i64: 32, 10>}, {transform_indices = @transform_2, window_bounds = array<i64: 16, 10>}]} {
    %c0_i32 = arith.constant 0 : i32
    %0 = arith.cmpi eq, %arg2, %c0_i32 : i32
    %1 = arith.extui %0 : i1 to i32
    %c0_i32_0 = arith.constant 0 : i32
    %2 = arith.cmpi ne, %1, %c0_i32_0 : i32
    scf.if %2 {
      %cst_10 = arith.constant 0.000000e+00 : f32
      %13 = vector.broadcast %cst_10 : f32 to vector<16x10xf32>
      %c0_11 = arith.constant 0 : index
      %c0_12 = arith.constant 0 : index
      %14 = vector.load %arg6[%c0_11, %c0_12] : memref<16x10xf32, #tpu.memory_space<vmem>>, vector<16x10xf32>
      tpu.vector_store %arg6[%c0_11, %c0_12], %13 {strides = array<i32>} : memref<16x10xf32, #tpu.memory_space<vmem>>, vector<16x10xf32>,
    } else {
    }
    %c0 = arith.constant 0 : index
    %c0_1 = arith.constant 0 : index
    %3 = vector.load %arg3[%c0, %c0_1] : memref<16x32xf32, #tpu.memory_space<vmem>>, vector<16x32xf32>
    %c0_2 = arith.constant 0 : index
    %c0_3 = arith.constant 0 : index
    %4 = vector.load %arg6[%c0_2, %c0_3] : memref<16x10xf32, #tpu.memory_space<vmem>>, vector<16x10xf32>
    %5 = arith.truncf %3 : vector<16x32xf32> to vector<16x32xbf16>
    %c0_4 = arith.constant 0 : index
    %c0_5 = arith.constant 0 : index
    %6 = vector.load %arg4[%c0_4, %c0_5] : memref<32x10xbf16, #tpu.memory_space<vmem>>, vector<32x10xbf16>
    %cst = arith.constant dense<0.000000e+00> : vector<16x10xf32>
    %7 = tpu.matmul %5, %6, %cst {dimension_numbers = #tpu.dot_dimension_numbers<[1], [0], [0], [1], [0, 0, 1, 1], [], []>} : vector<16x32xbf16>, vector<32x10xbf16>, vector<16x10xf32> -> vector<16x10xf32>
    %8 = arith.addf %4, %7 : vector<16x10xf32>
    %c0_6 = arith.constant 0 : index
    %c0_7 = arith.constant 0 : index
    %9 = vector.load %arg6[%c0_6, %c0_7] : memref<16x10xf32, #tpu.memory_space<vmem>>, vector<16x10xf32>
    tpu.vector_store %arg6[%c0_6, %c0_7], %8 {strides = array<i32>} : memref<16x10xf32, #tpu.memory_space<vmem>>, vector<16x10xf32>,
    %c0_i32_8 = arith.constant 0 : i32
    %10 = arith.cmpi eq, %arg2, %c0_i32_8 : i32
    %11 = arith.extui %10 : i1 to i32
    %c0_i32_9 = arith.constant 0 : i32
    %12 = arith.cmpi ne, %11, %c0_i32_9 : i32
    scf.if %12 {
      %c0_10 = arith.constant 0 : index
      %c0_11 = arith.constant 0 : index
      %13 = vector.load %arg6[%c0_10, %c0_11] : memref<16x10xf32, #tpu.memory_space<vmem>>, vector<16x10xf32>
      %c0_12 = arith.constant 0 : index
      %c0_13 = arith.constant 0 : index
      %14 = vector.load %arg5[%c0_12, %c0_13] : memref<16x10xf32, #tpu.memory_space<vmem>>, vector<16x10xf32>
      tpu.vector_store %arg5[%c0_12, %c0_13], %13 {strides = array<i32>} : memref<16x10xf32, #tpu.memory_space<vmem>>, vector<16x10xf32>,
    } else {
    }
    return
  }
  func.func @transform_0(%arg0: i32, %arg1: i32, %arg2: i32) -> (i32, i32) {
    %c0_i32 = arith.constant 0 : i32
    return %arg0, %arg2 : i32, i32
  }
  func.func @transform_1(%arg0: i32, %arg1: i32, %arg2: i32) -> (i32, i32) {
    %c0_i32 = arith.constant 0 : i32
    return %arg2, %arg1 : i32, i32
  }
  func.func @transform_2(%arg0: i32, %arg1: i32, %arg2: i32) -> (i32, i32) {
    %c0_i32 = arith.constant 0 : i32
    return %arg0, %arg1 : i32, i32
  }
}

module attributes {stable_mosaic.version = 11 : i64} {
  func.func @_linear_kernel(%arg0: i32, %arg1: i32, %arg2: i32, %arg3: memref<16x4xf32, #tpu.memory_space<vmem>>, %arg4: memref<4x32xbf16, #tpu.memory_space<vmem>>, %arg5: memref<1x32xf32, #tpu.memory_space<vmem>>, %arg6: memref<16x32xf32, #tpu.memory_space<vmem>>, %arg7: memref<16x32xf32, #tpu.memory_space<vmem>>) attributes {dimension_semantics = [#tpu.dimension_semantics<parallel>, #tpu.dimension_semantics<parallel>, #tpu.dimension_semantics<arbitrary>], iteration_bounds = array<i64: 1, 1, 1>, scalar_prefetch = 0 : i64, scratch_operands = 1 : i64, tpu.core_type = #tpu.core_type<tc>, window_params = [{transform_indices = @transform_0, window_bounds = array<i64: 16, 4>}, {transform_indices = @transform_1, window_bounds = array<i64: 4, 32>}, {transform_indices = @transform_2, window_bounds = array<i64: 1, 32>}, {transform_indices = @transform_3, window_bounds = array<i64: 16, 32>}]} {
    %c0_i32 = arith.constant 0 : i32
    %0 = arith.cmpi eq, %arg2, %c0_i32 : i32
    %1 = arith.extui %0 : i1 to i32
    %c0_i32_0 = arith.constant 0 : i32
    %2 = arith.cmpi ne, %1, %c0_i32_0 : i32
    scf.if %2 {
      %cst_10 = arith.constant 0.000000e+00 : f32
      %13 = vector.broadcast %cst_10 : f32 to vector<16x32xf32>
      %c0_11 = arith.constant 0 : index
      %c0_12 = arith.constant 0 : index
      %14 = vector.load %arg7[%c0_11, %c0_12] : memref<16x32xf32, #tpu.memory_space<vmem>>, vector<16x32xf32>
      tpu.vector_store %arg7[%c0_11, %c0_12], %13 {strides = array<i32>} : memref<16x32xf32, #tpu.memory_space<vmem>>, vector<16x32xf32>,
    } else {
    }
    %c0 = arith.constant 0 : index
    %c0_1 = arith.constant 0 : index
    %3 = vector.load %arg3[%c0, %c0_1] : memref<16x4xf32, #tpu.memory_space<vmem>>, vector<16x4xf32>
    %c0_2 = arith.constant 0 : index
    %c0_3 = arith.constant 0 : index
    %4 = vector.load %arg7[%c0_2, %c0_3] : memref<16x32xf32, #tpu.memory_space<vmem>>, vector<16x32xf32>
    %5 = arith.truncf %3 : vector<16x4xf32> to vector<16x4xbf16>
    %c0_4 = arith.constant 0 : index
    %c0_5 = arith.constant 0 : index
    %6 = vector.load %arg4[%c0_4, %c0_5] : memref<4x32xbf16, #tpu.memory_space<vmem>>, vector<4x32xbf16>
    %cst = arith.constant dense<0.000000e+00> : vector<16x32xf32>
    %7 = tpu.matmul %5, %6, %cst {dimension_numbers = #tpu.dot_dimension_numbers<[1], [0], [0], [1], [0, 0, 1, 1], [], []>} : vector<16x4xbf16>, vector<4x32xbf16>, vector<16x32xf32> -> vector<16x32xf32>
    %8 = arith.addf %4, %7 : vector<16x32xf32>
    %c0_6 = arith.constant 0 : index
    %c0_7 = arith.constant 0 : index
    %9 = vector.load %arg7[%c0_6, %c0_7] : memref<16x32xf32, #tpu.memory_space<vmem>>, vector<16x32xf32>
    tpu.vector_store %arg7[%c0_6, %c0_7], %8 {strides = array<i32>} : memref<16x32xf32, #tpu.memory_space<vmem>>, vector<16x32xf32>,
    %c0_i32_8 = arith.constant 0 : i32
    %10 = arith.cmpi eq, %arg2, %c0_i32_8 : i32
    %11 = arith.extui %10 : i1 to i32
    %c0_i32_9 = arith.constant 0 : i32
    %12 = arith.cmpi ne, %11, %c0_i32_9 : i32
    scf.if %12 {
      %c0_10 = arith.constant 0 : index
      %c0_11 = arith.constant 0 : index
      %13 = vector.load %arg7[%c0_10, %c0_11] : memref<16x32xf32, #tpu.memory_space<vmem>>, vector<16x32xf32>
      %c0_12 = arith.constant 0 : index
      %c0_13 = arith.constant 0 : index
      %14 = vector.load %arg5[%c0_12, %c0_13] : memref<1x32xf32, #tpu.memory_space<vmem>>, vector<1x32xf32>
      %15 = vector.broadcast %14 : vector<1x32xf32> to vector<16x32xf32>
      %16 = arith.addf %13, %15 : vector<16x32xf32>
      %c0_14 = arith.constant 0 : index
      %c0_15 = arith.constant 0 : index
      %17 = vector.load %arg6[%c0_14, %c0_15] : memref<16x32xf32, #tpu.memory_space<vmem>>, vector<16x32xf32>
      tpu.vector_store %arg6[%c0_14, %c0_15], %16 {strides = array<i32>} : memref<16x32xf32, #tpu.memory_space<vmem>>, vector<16x32xf32>,
    } else {
    }
    return
  }
  func.func @transform_0(%arg0: i32, %arg1: i32, %arg2: i32) -> (i32, i32) {
    %c0_i32 = arith.constant 0 : i32
    return %arg0, %arg2 : i32, i32
  }
  func.func @transform_1(%arg0: i32, %arg1: i32, %arg2: i32) -> (i32, i32) {
    %c0_i32 = arith.constant 0 : i32
    return %arg2, %arg1 : i32, i32
  }
  func.func @transform_2(%arg0: i32, %arg1: i32, %arg2: i32) -> (i32, i32) {
    %c0_i32 = arith.constant 0 : i32
    %c0_i32_0 = arith.constant 0 : i32
    return %c0_i32, %arg1 : i32, i32
  }
  func.func @transform_3(%arg0: i32, %arg1: i32, %arg2: i32) -> (i32, i32) {
    %c0_i32 = arith.constant 0 : i32
    return %arg0, %arg1 : i32, i32
  }
}

module attributes {stable_mosaic.version = 11 : i64} {
  func.func @_linear_kernel(%arg0: i32, %arg1: i32, %arg2: i32, %arg3: memref<16x32xf32, #tpu.memory_space<vmem>>, %arg4: memref<32x96xbf16, #tpu.memory_space<vmem>>, %arg5: memref<1x96xf32, #tpu.memory_space<vmem>>, %arg6: memref<16x96xf32, #tpu.memory_space<vmem>>, %arg7: memref<16x96xf32, #tpu.memory_space<vmem>>) attributes {dimension_semantics = [#tpu.dimension_semantics<parallel>, #tpu.dimension_semantics<parallel>, #tpu.dimension_semantics<arbitrary>], iteration_bounds = array<i64: 1, 1, 1>, scalar_prefetch = 0 : i64, scratch_operands = 1 : i64, tpu.core_type = #tpu.core_type<tc>, window_params = [{transform_indices = @transform_0, window_bounds = array<i64: 16, 32>}, {transform_indices = @transform_1, window_bounds = array<i64: 32, 96>}, {transform_indices = @transform_2, window_bounds = array<i64: 1, 96>}, {transform_indices = @transform_3, window_bounds = array<i64: 16, 96>}]} {
    %c0_i32 = arith.constant 0 : i32
    %0 = arith.cmpi eq, %arg2, %c0_i32 : i32
    %1 = arith.extui %0 : i1 to i32
    %c0_i32_0 = arith.constant 0 : i32
    %2 = arith.cmpi ne, %1, %c0_i32_0 : i32
    scf.if %2 {
      %cst_10 = arith.constant 0.000000e+00 : f32
      %13 = vector.broadcast %cst_10 : f32 to vector<16x96xf32>
      %c0_11 = arith.constant 0 : index
      %c0_12 = arith.constant 0 : index
      %14 = vector.load %arg7[%c0_11, %c0_12] : memref<16x96xf32, #tpu.memory_space<vmem>>, vector<16x96xf32>
      tpu.vector_store %arg7[%c0_11, %c0_12], %13 {strides = array<i32>} : memref<16x96xf32, #tpu.memory_space<vmem>>, vector<16x96xf32>,
    } else {
    }
    %c0 = arith.constant 0 : index
    %c0_1 = arith.constant 0 : index
    %3 = vector.load %arg3[%c0, %c0_1] : memref<16x32xf32, #tpu.memory_space<vmem>>, vector<16x32xf32>
    %c0_2 = arith.constant 0 : index
    %c0_3 = arith.constant 0 : index
    %4 = vector.load %arg7[%c0_2, %c0_3] : memref<16x96xf32, #tpu.memory_space<vmem>>, vector<16x96xf32>
    %5 = arith.truncf %3 : vector<16x32xf32> to vector<16x32xbf16>
    %c0_4 = arith.constant 0 : index
    %c0_5 = arith.constant 0 : index
    %6 = vector.load %arg4[%c0_4, %c0_5] : memref<32x96xbf16, #tpu.memory_space<vmem>>, vector<32x96xbf16>
    %cst = arith.constant dense<0.000000e+00> : vector<16x96xf32>
    %7 = tpu.matmul %5, %6, %cst {dimension_numbers = #tpu.dot_dimension_numbers<[1], [0], [0], [1], [0, 0, 1, 1], [], []>} : vector<16x32xbf16>, vector<32x96xbf16>, vector<16x96xf32> -> vector<16x96xf32>
    %8 = arith.addf %4, %7 : vector<16x96xf32>
    %c0_6 = arith.constant 0 : index
    %c0_7 = arith.constant 0 : index
    %9 = vector.load %arg7[%c0_6, %c0_7] : memref<16x96xf32, #tpu.memory_space<vmem>>, vector<16x96xf32>
    tpu.vector_store %arg7[%c0_6, %c0_7], %8 {strides = array<i32>} : memref<16x96xf32, #tpu.memory_space<vmem>>, vector<16x96xf32>,
    %c0_i32_8 = arith.constant 0 : i32
    %10 = arith.cmpi eq, %arg2, %c0_i32_8 : i32
    %11 = arith.extui %10 : i1 to i32
    %c0_i32_9 = arith.constant 0 : i32
    %12 = arith.cmpi ne, %11, %c0_i32_9 : i32
    scf.if %12 {
      %c0_10 = arith.constant 0 : index
      %c0_11 = arith.constant 0 : index
      %13 = vector.load %arg7[%c0_10, %c0_11] : memref<16x96xf32, #tpu.memory_space<vmem>>, vector<16x96xf32>
      %c0_12 = arith.constant 0 : index
      %c0_13 = arith.constant 0 : index
      %14 = vector.load %arg5[%c0_12, %c0_13] : memref<1x96xf32, #tpu.memory_space<vmem>>, vector<1x96xf32>
      %15 = vector.broadcast %14 : vector<1x96xf32> to vector<16x96xf32>
      %16 = arith.addf %13, %15 : vector<16x96xf32>
      %c0_14 = arith.constant 0 : index
      %c0_15 = arith.constant 0 : index
      %17 = vector.load %arg6[%c0_14, %c0_15] : memref<16x96xf32, #tpu.memory_space<vmem>>, vector<16x96xf32>
      tpu.vector_store %arg6[%c0_14, %c0_15], %16 {strides = array<i32>} : memref<16x96xf32, #tpu.memory_space<vmem>>, vector<16x96xf32>,
    } else {
    }
    return
  }
  func.func @transform_0(%arg0: i32, %arg1: i32, %arg2: i32) -> (i32, i32) {
    %c0_i32 = arith.constant 0 : i32
    return %arg0, %arg2 : i32, i32
  }
  func.func @transform_1(%arg0: i32, %arg1: i32, %arg2: i32) -> (i32, i32) {
    %c0_i32 = arith.constant 0 : i32
    return %arg2, %arg1 : i32, i32
  }
  func.func @transform_2(%arg0: i32, %arg1: i32, %arg2: i32) -> (i32, i32) {
    %c0_i32 = arith.constant 0 : i32
    %c0_i32_0 = arith.constant 0 : i32
    return %c0_i32, %arg1 : i32, i32
  }
  func.func @transform_3(%arg0: i32, %arg1: i32, %arg2: i32) -> (i32, i32) {
    %c0_i32 = arith.constant 0 : i32
    return %arg0, %arg1 : i32, i32
  }
}

module attributes {stable_mosaic.version = 11 : i64} {
  func.func @_linear_kernel(%arg0: i32, %arg1: i32, %arg2: i32, %arg3: memref<16x32xf32, #tpu.memory_space<vmem>>, %arg4: memref<32x32xbf16, #tpu.memory_space<vmem>>, %arg5: memref<1x32xf32, #tpu.memory_space<vmem>>, %arg6: memref<16x32xf32, #tpu.memory_space<vmem>>, %arg7: memref<1x32xf32, #tpu.memory_space<vmem>>, %arg8: memref<1x32xf32, #tpu.memory_space<vmem>>, %arg9: memref<16x32xf32, #tpu.memory_space<vmem>>, %arg10: memref<16x32xf32, #tpu.memory_space<vmem>>) attributes {dimension_semantics = [#tpu.dimension_semantics<parallel>, #tpu.dimension_semantics<parallel>, #tpu.dimension_semantics<arbitrary>], iteration_bounds = array<i64: 1, 1, 1>, scalar_prefetch = 0 : i64, scratch_operands = 1 : i64, tpu.core_type = #tpu.core_type<tc>, window_params = [{transform_indices = @transform_0, window_bounds = array<i64: 16, 32>}, {transform_indices = @transform_1, window_bounds = array<i64: 32, 32>}, {transform_indices = @transform_2, window_bounds = array<i64: 1, 32>}, {transform_indices = @transform_3, window_bounds = array<i64: 16, 32>}, {transform_indices = @transform_4, window_bounds = array<i64: 1, 32>}, {transform_indices = @transform_5, window_bounds = array<i64: 1, 32>}, {transform_indices = @transform_6, window_bounds = array<i64: 16, 32>}]} {
    %c0_i32 = arith.constant 0 : i32
    %0 = arith.cmpi eq, %arg2, %c0_i32 : i32
    %1 = arith.extui %0 : i1 to i32
    %c0_i32_0 = arith.constant 0 : i32
    %2 = arith.cmpi ne, %1, %c0_i32_0 : i32
    scf.if %2 {
      %cst_10 = arith.constant 0.000000e+00 : f32
      %13 = vector.broadcast %cst_10 : f32 to vector<16x32xf32>
      %c0_11 = arith.constant 0 : index
      %c0_12 = arith.constant 0 : index
      %14 = vector.load %arg10[%c0_11, %c0_12] : memref<16x32xf32, #tpu.memory_space<vmem>>, vector<16x32xf32>
      tpu.vector_store %arg10[%c0_11, %c0_12], %13 {strides = array<i32>} : memref<16x32xf32, #tpu.memory_space<vmem>>, vector<16x32xf32>,
    } else {
    }
    %c0 = arith.constant 0 : index
    %c0_1 = arith.constant 0 : index
    %3 = vector.load %arg3[%c0, %c0_1] : memref<16x32xf32, #tpu.memory_space<vmem>>, vector<16x32xf32>
    %c0_2 = arith.constant 0 : index
    %c0_3 = arith.constant 0 : index
    %4 = vector.load %arg10[%c0_2, %c0_3] : memref<16x32xf32, #tpu.memory_space<vmem>>, vector<16x32xf32>
    %5 = arith.truncf %3 : vector<16x32xf32> to vector<16x32xbf16>
    %c0_4 = arith.constant 0 : index
    %c0_5 = arith.constant 0 : index
    %6 = vector.load %arg4[%c0_4, %c0_5] : memref<32x32xbf16, #tpu.memory_space<vmem>>, vector<32x32xbf16>
    %cst = arith.constant dense<0.000000e+00> : vector<16x32xf32>
    %7 = tpu.matmul %5, %6, %cst {dimension_numbers = #tpu.dot_dimension_numbers<[1], [0], [0], [1], [0, 0, 1, 1], [], []>} : vector<16x32xbf16>, vector<32x32xbf16>, vector<16x32xf32> -> vector<16x32xf32>
    %8 = arith.addf %4, %7 : vector<16x32xf32>
    %c0_6 = arith.constant 0 : index
    %c0_7 = arith.constant 0 : index
    %9 = vector.load %arg10[%c0_6, %c0_7] : memref<16x32xf32, #tpu.memory_space<vmem>>, vector<16x32xf32>
    tpu.vector_store %arg10[%c0_6, %c0_7], %8 {strides = array<i32>} : memref<16x32xf32, #tpu.memory_space<vmem>>, vector<16x32xf32>,
    %c0_i32_8 = arith.constant 0 : i32
    %10 = arith.cmpi eq, %arg2, %c0_i32_8 : i32
    %11 = arith.extui %10 : i1 to i32
    %c0_i32_9 = arith.constant 0 : i32
    %12 = arith.cmpi ne, %11, %c0_i32_9 : i32
    scf.if %12 {
      %c0_10 = arith.constant 0 : index
      %c0_11 = arith.constant 0 : index
      %13 = vector.load %arg10[%c0_10, %c0_11] : memref<16x32xf32, #tpu.memory_space<vmem>>, vector<16x32xf32>
      %c0_12 = arith.constant 0 : index
      %c0_13 = arith.constant 0 : index
      %14 = vector.load %arg5[%c0_12, %c0_13] : memref<1x32xf32, #tpu.memory_space<vmem>>, vector<1x32xf32>
      %15 = vector.broadcast %14 : vector<1x32xf32> to vector<16x32xf32>
      %16 = arith.addf %13, %15 : vector<16x32xf32>
      %c0_14 = arith.constant 0 : index
      %c0_15 = arith.constant 0 : index
      %17 = vector.load %arg6[%c0_14, %c0_15] : memref<16x32xf32, #tpu.memory_space<vmem>>, vector<16x32xf32>
      %18 = arith.addf %16, %17 : vector<16x32xf32>
      %c0_16 = arith.constant 0 : index
      %c0_17 = arith.constant 0 : index
      %19 = vector.load %arg7[%c0_16, %c0_17] : memref<1x32xf32, #tpu.memory_space<vmem>>, vector<1x32xf32>
      %c0_18 = arith.constant 0 : index
      %c0_19 = arith.constant 0 : index
      %20 = vector.load %arg8[%c0_18, %c0_19] : memref<1x32xf32, #tpu.memory_space<vmem>>, vector<1x32xf32>
      %cst_20 = arith.constant dense<0.000000e+00> : vector<16xf32>
      %21 = vector.multi_reduction <add>, %18, %cst_20 [1] : vector<16x32xf32> to vector<16xf32>
      %22 = vector.shape_cast %21 : vector<16xf32> to vector<16x1xf32>
      %cst_21 = arith.constant 3.200000e+01 : f32
      %23 = vector.broadcast %cst_21 : f32 to vector<16x1xf32>
      %24 = arith.divf %22, %23 : vector<16x1xf32>
      %25 = vector.broadcast %24 : vector<16x1xf32> to vector<16x32xf32>
      %26 = arith.subf %18, %25 : vector<16x32xf32>
      %27 = arith.mulf %26, %26 : vector<16x32xf32>
      %cst_22 = arith.constant dense<0.000000e+00> : vector<16xf32>
      %28 = vector.multi_reduction <add>, %27, %cst_22 [1] : vector<16x32xf32> to vector<16xf32>
      %29 = vector.shape_cast %28 : vector<16xf32> to vector<16x1xf32>
      %cst_23 = arith.constant 3.200000e+01 : f32
      %30 = vector.broadcast %cst_23 : f32 to vector<16x1xf32>
      %31 = arith.divf %29, %30 : vector<16x1xf32>
      %32 = vector.broadcast %24 : vector<16x1xf32> to vector<16x32xf32>
      %33 = arith.subf %18, %32 : vector<16x32xf32>
      %cst_24 = arith.constant 9.99999974E-6 : f32
      %34 = vector.broadcast %cst_24 : f32 to vector<16x1xf32>
      %35 = arith.addf %31, %34 : vector<16x1xf32>
      %36 = math.rsqrt %35 : vector<16x1xf32>
      %37 = vector.broadcast %36 : vector<16x1xf32> to vector<16x32xf32>
      %38 = arith.mulf %33, %37 : vector<16x32xf32>
      %39 = vector.broadcast %19 : vector<1x32xf32> to vector<16x32xf32>
      %40 = arith.mulf %38, %39 : vector<16x32xf32>
      %41 = vector.broadcast %20 : vector<1x32xf32> to vector<16x32xf32>
      %42 = arith.addf %40, %41 : vector<16x32xf32>
      %c0_25 = arith.constant 0 : index
      %c0_26 = arith.constant 0 : index
      %43 = vector.load %arg9[%c0_25, %c0_26] : memref<16x32xf32, #tpu.memory_space<vmem>>, vector<16x32xf32>
      tpu.vector_store %arg9[%c0_25, %c0_26], %42 {strides = array<i32>} : memref<16x32xf32, #tpu.memory_space<vmem>>, vector<16x32xf32>,
    } else {
    }
    return
  }
  func.func @transform_0(%arg0: i32, %arg1: i32, %arg2: i32) -> (i32, i32) {
    %c0_i32 = arith.constant 0 : i32
    return %arg0, %arg2 : i32, i32
  }
  func.func @transform_1(%arg0: i32, %arg1: i32, %arg2: i32) -> (i32, i32) {
    %c0_i32 = arith.constant 0 : i32
    return %arg2, %arg1 : i32, i32
  }
  func.func @transform_2(%arg0: i32, %arg1: i32, %arg2: i32) -> (i32, i32) {
    %c0_i32 = arith.constant 0 : i32
    %c0_i32_0 = arith.constant 0 : i32
    return %c0_i32, %arg1 : i32, i32
  }
  func.func @transform_3(%arg0: i32, %arg1: i32, %arg2: i32) -> (i32, i32) {
    %c0_i32 = arith.constant 0 : i32
    return %arg0, %arg1 : i32, i32
  }
  func.func @transform_4(%arg0: i32, %arg1: i32, %arg2: i32) -> (i32, i32) {
    %c0_i32 = arith.constant 0 : i32
    %c0_i32_0 = arith.constant 0 : i32
    return %c0_i32, %arg1 : i32, i32
  }
  func.func @transform_5(%arg0: i32, %arg1: i32, %arg2: i32) -> (i32, i32) {
    %c0_i32 = arith.constant 0 : i32
    %c0_i32_0 = arith.constant 0 : i32
    return %c0_i32, %arg1 : i32, i32
  }
  func.func @transform_6(%arg0: i32, %arg1: i32, %arg2: i32) -> (i32, i32) {
    %c0_i32 = arith.constant 0 : i32
    return %arg0, %arg1 : i32, i32
  }
}

module attributes {stable_mosaic.version = 11 : i64} {
  func.func @_attn_kernel(%arg0: i32, %arg1: memref<1x8x96xf32, #tpu.memory_space<vmem>>, %arg2: memref<1x8x8xf32, #tpu.memory_space<vmem>>, %arg3: memref<1x4xf32, #tpu.memory_space<vmem>>, %arg4: memref<1x4xf32, #tpu.memory_space<vmem>>, %arg5: memref<1x4xf32, #tpu.memory_space<vmem>>, %arg6: memref<1x4xf32, #tpu.memory_space<vmem>>, %arg7: memref<1x8x32xf32, #tpu.memory_space<vmem>>) attributes {dimension_semantics = [#tpu.dimension_semantics<parallel>], iteration_bounds = array<i64: 2>, scalar_prefetch = 0 : i64, scratch_operands = 0 : i64, tpu.core_type = #tpu.core_type<tc>, window_params = [{transform_indices = @transform_0, window_bounds = array<i64: 1, 8, 96>}, {transform_indices = @transform_1, window_bounds = array<i64: 1, 8, 8>}, {pipeline_mode = #tpu.pipeline_mode<synchronous>, transform_indices = @transform_2, window_bounds = array<i64: 1, 4>}, {pipeline_mode = #tpu.pipeline_mode<synchronous>, transform_indices = @transform_3, window_bounds = array<i64: 1, 4>}, {pipeline_mode = #tpu.pipeline_mode<synchronous>, transform_indices = @transform_4, window_bounds = array<i64: 1, 4>}, {pipeline_mode = #tpu.pipeline_mode<synchronous>, transform_indices = @transform_5, window_bounds = array<i64: 1, 4>}, {transform_indices = @transform_6, window_bounds = array<i64: 1, 8, 32>}]} {
    %c0 = arith.constant 0 : index
    %c0_0 = arith.constant 0 : index
    %c0_1 = arith.constant 0 : index
    %0 = vector.load %arg1[%c0, %c0_0, %c0_1] : memref<1x8x96xf32, #tpu.memory_space<vmem>>, vector<1x8x96xf32>
    %1 = vector.shape_cast %0 : vector<1x8x96xf32> to vector<8x96xf32>
    %c0_2 = arith.constant 0 : index
    %c0_3 = arith.constant 0 : index
    %c0_4 = arith.constant 0 : index
    %2 = vector.load %arg2[%c0_2, %c0_3, %c0_4] : memref<1x8x8xf32, #tpu.memory_space<vmem>>, vector<1x8x8xf32>
    %3 = vector.shape_cast %2 : vector<1x8x8xf32> to vector<8x8xf32>
    %c0_5 = arith.constant 0 : index
    %c0_6 = arith.constant 0 : index
    %4 = vector.load %arg3[%c0_5, %c0_6] : memref<1x4xf32, #tpu.memory_space<vmem>>, vector<1x4xf32>
    %c0_7 = arith.constant 0 : index
    %c0_8 = arith.constant 0 : index
    %5 = vector.load %arg4[%c0_7, %c0_8] : memref<1x4xf32, #tpu.memory_space<vmem>>, vector<1x4xf32>
    %c0_9 = arith.constant 0 : index
    %c0_10 = arith.constant 0 : index
    %6 = vector.load %arg5[%c0_9, %c0_10] : memref<1x4xf32, #tpu.memory_space<vmem>>, vector<1x4xf32>
    %c0_11 = arith.constant 0 : index
    %c0_12 = arith.constant 0 : index
    %7 = vector.load %arg6[%c0_11, %c0_12] : memref<1x4xf32, #tpu.memory_space<vmem>>, vector<1x4xf32>
    %8 = vector.extract_strided_slice %1 {offsets = [0, 0], sizes = [8, 4], strides = [1, 1]} : vector<8x96xf32> to vector<8x4xf32>
    %9 = vector.extract_strided_slice %1 {offsets = [0, 32], sizes = [8, 4], strides = [1, 1]} : vector<8x96xf32> to vector<8x4xf32>
    %10 = vector.extract_strided_slice %1 {offsets = [0, 64], sizes = [8, 4], strides = [1, 1]} : vector<8x96xf32> to vector<8x4xf32>
    %cst = arith.constant dense<0.000000e+00> : vector<8xf32>
    %11 = vector.multi_reduction <add>, %8, %cst [1] : vector<8x4xf32> to vector<8xf32>
    %12 = vector.shape_cast %11 : vector<8xf32> to vector<8x1xf32>
    %cst_13 = arith.constant 4.000000e+00 : f32
    %13 = vector.broadcast %cst_13 : f32 to vector<8x1xf32>
    %14 = arith.divf %12, %13 : vector<8x1xf32>
    %15 = vector.broadcast %14 : vector<8x1xf32> to vector<8x4xf32>
    %16 = arith.subf %8, %15 : vector<8x4xf32>
    %17 = arith.mulf %16, %16 : vector<8x4xf32>
    %cst_14 = arith.constant dense<0.000000e+00> : vector<8xf32>
    %18 = vector.multi_reduction <add>, %17, %cst_14 [1] : vector<8x4xf32> to vector<8xf32>
    %19 = vector.shape_cast %18 : vector<8xf32> to vector<8x1xf32>
    %cst_15 = arith.constant 4.000000e+00 : f32
    %20 = vector.broadcast %cst_15 : f32 to vector<8x1xf32>
    %21 = arith.divf %19, %20 : vector<8x1xf32>
    %22 = vector.broadcast %14 : vector<8x1xf32> to vector<8x4xf32>
    %23 = arith.subf %8, %22 : vector<8x4xf32>
    %cst_16 = arith.constant 9.99999974E-6 : f32
    %24 = vector.broadcast %cst_16 : f32 to vector<8x1xf32>
    %25 = arith.addf %21, %24 : vector<8x1xf32>
    %26 = math.rsqrt %25 : vector<8x1xf32>
    %27 = vector.broadcast %26 : vector<8x1xf32> to vector<8x4xf32>
    %28 = arith.mulf %23, %27 : vector<8x4xf32>
    %29 = vector.broadcast %4 : vector<1x4xf32> to vector<8x4xf32>
    %30 = arith.mulf %28, %29 : vector<8x4xf32>
    %31 = vector.broadcast %5 : vector<1x4xf32> to vector<8x4xf32>
    %32 = arith.addf %30, %31 : vector<8x4xf32>
    %cst_17 = arith.constant 5.000000e-01 : f32
    %33 = vector.broadcast %cst_17 : f32 to vector<8x4xf32>
    %34 = arith.mulf %32, %33 : vector<8x4xf32>
    %cst_18 = arith.constant dense<0.000000e+00> : vector<8xf32>
    %35 = vector.multi_reduction <add>, %9, %cst_18 [1] : vector<8x4xf32> to vector<8xf32>
    %36 = vector.shape_cast %35 : vector<8xf32> to vector<8x1xf32>
    %cst_19 = arith.constant 4.000000e+00 : f32
    %37 = vector.broadcast %cst_19 : f32 to vector<8x1xf32>
    %38 = arith.divf %36, %37 : vector<8x1xf32>
    %39 = vector.broadcast %38 : vector<8x1xf32> to vector<8x4xf32>
    %40 = arith.subf %9, %39 : vector<8x4xf32>
    %41 = arith.mulf %40, %40 : vector<8x4xf32>
    %cst_20 = arith.constant dense<0.000000e+00> : vector<8xf32>
    %42 = vector.multi_reduction <add>, %41, %cst_20 [1] : vector<8x4xf32> to vector<8xf32>
    %43 = vector.shape_cast %42 : vector<8xf32> to vector<8x1xf32>
    %cst_21 = arith.constant 4.000000e+00 : f32
    %44 = vector.broadcast %cst_21 : f32 to vector<8x1xf32>
    %45 = arith.divf %43, %44 : vector<8x1xf32>
    %46 = vector.broadcast %38 : vector<8x1xf32> to vector<8x4xf32>
    %47 = arith.subf %9, %46 : vector<8x4xf32>
    %cst_22 = arith.constant 9.99999974E-6 : f32
    %48 = vector.broadcast %cst_22 : f32 to vector<8x1xf32>
    %49 = arith.addf %45, %48 : vector<8x1xf32>
    %50 = math.rsqrt %49 : vector<8x1xf32>
    %51 = vector.broadcast %50 : vector<8x1xf32> to vector<8x4xf32>
    %52 = arith.mulf %47, %51 : vector<8x4xf32>
    %53 = vector.broadcast %6 : vector<1x4xf32> to vector<8x4xf32>
    %54 = arith.mulf %52, %53 : vector<8x4xf32>
    %55 = vector.broadcast %7 : vector<1x4xf32> to vector<8x4xf32>
    %56 = arith.addf %54, %55 : vector<8x4xf32>
    %57 = arith.truncf %34 : vector<8x4xf32> to vector<8x4xbf16>
    %58 = arith.truncf %56 : vector<8x4xf32> to vector<8x4xbf16>
    %cst_23 = arith.constant dense<0.000000e+00> : vector<8x8xf32>
    %59 = tpu.matmul %57, %58, %cst_23 {dimension_numbers = #tpu.dot_dimension_numbers<[1], [1], [0], [0], [0, 0, 1, 0], [], []>} : vector<8x4xbf16>, vector<8x4xbf16>, vector<8x8xf32> -> vector<8x8xf32>
    %cst_24 = arith.constant dense<0xFF800000> : vector<8xf32>
    %60 = vector.multi_reduction <maximumf>, %59, %cst_24 [1] : vector<8x8xf32> to vector<8xf32>
    %61 = vector.shape_cast %60 : vector<8xf32> to vector<8x1xf32>
    %62 = vector.broadcast %61 : vector<8x1xf32> to vector<8x8xf32>
    %63 = arith.subf %59, %62 : vector<8x8xf32>
    %64 = math.exp %63 : vector<8x8xf32>
    %cst_25 = arith.constant dense<0.000000e+00> : vector<8xf32>
    %65 = vector.multi_reduction <add>, %64, %cst_25 [1] : vector<8x8xf32> to vector<8xf32>
    %66 = vector.shape_cast %65 : vector<8xf32> to vector<8x1xf32>
    %67 = tpu.reciprocal %66 {approx = true} : vector<8x1xf32> -> vector<8x1xf32>
    %68 = vector.broadcast %67 : vector<8x1xf32> to vector<8x8xf32>
    %69 = arith.mulf %64, %68 : vector<8x8xf32>
    %70 = arith.truncf %69 : vector<8x8xf32> to vector<8x8xbf16>
    %71 = arith.truncf %10 : vector<8x4xf32> to vector<8x4xbf16>
    %cst_26 = arith.constant dense<0.000000e+00> : vector<8x4xf32>
    %72 = tpu.matmul %70, %71, %cst_26 {dimension_numbers = #tpu.dot_dimension_numbers<[1], [0], [0], [1], [0, 0, 1, 1], [], []>} : vector<8x8xbf16>, vector<8x4xbf16>, vector<8x4xf32> -> vector<8x4xf32>
    %73 = vector.extract_strided_slice %3 {offsets = [0, 0], sizes = [8, 1], strides = [1, 1]} : vector<8x8xf32> to vector<8x1xf32>
    %74 = vector.broadcast %73 : vector<8x1xf32> to vector<8x4xf32>
    %75 = arith.mulf %72, %74 : vector<8x4xf32>
    %76 = vector.extract_strided_slice %1 {offsets = [0, 4], sizes = [8, 4], strides = [1, 1]} : vector<8x96xf32> to vector<8x4xf32>
    %77 = vector.extract_strided_slice %1 {offsets = [0, 36], sizes = [8, 4], strides = [1, 1]} : vector<8x96xf32> to vector<8x4xf32>
    %78 = vector.extract_strided_slice %1 {offsets = [0, 68], sizes = [8, 4], strides = [1, 1]} : vector<8x96xf32> to vector<8x4xf32>
    %cst_27 = arith.constant dense<0.000000e+00> : vector<8xf32>
    %79 = vector.multi_reduction <add>, %76, %cst_27 [1] : vector<8x4xf32> to vector<8xf32>
    %80 = vector.shape_cast %79 : vector<8xf32> to vector<8x1xf32>
    %cst_28 = arith.constant 4.000000e+00 : f32
    %81 = vector.broadcast %cst_28 : f32 to vector<8x1xf32>
    %82 = arith.divf %80, %81 : vector<8x1xf32>
    %83 = vector.broadcast %82 : vector<8x1xf32> to vector<8x4xf32>
    %84 = arith.subf %76, %83 : vector<8x4xf32>
    %85 = arith.mulf %84, %84 : vector<8x4xf32>
    %cst_29 = arith.constant dense<0.000000e+00> : vector<8xf32>
    %86 = vector.multi_reduction <add>, %85, %cst_29 [1] : vector<8x4xf32> to vector<8xf32>
    %87 = vector.shape_cast %86 : vector<8xf32> to vector<8x1xf32>
    %cst_30 = arith.constant 4.000000e+00 : f32
    %88 = vector.broadcast %cst_30 : f32 to vector<8x1xf32>
    %89 = arith.divf %87, %88 : vector<8x1xf32>
    %90 = vector.broadcast %82 : vector<8x1xf32> to vector<8x4xf32>
    %91 = arith.subf %76, %90 : vector<8x4xf32>
    %cst_31 = arith.constant 9.99999974E-6 : f32
    %92 = vector.broadcast %cst_31 : f32 to vector<8x1xf32>
    %93 = arith.addf %89, %92 : vector<8x1xf32>
    %94 = math.rsqrt %93 : vector<8x1xf32>
    %95 = vector.broadcast %94 : vector<8x1xf32> to vector<8x4xf32>
    %96 = arith.mulf %91, %95 : vector<8x4xf32>
    %97 = vector.broadcast %4 : vector<1x4xf32> to vector<8x4xf32>
    %98 = arith.mulf %96, %97 : vector<8x4xf32>
    %99 = vector.broadcast %5 : vector<1x4xf32> to vector<8x4xf32>
    %100 = arith.addf %98, %99 : vector<8x4xf32>
    %cst_32 = arith.constant 5.000000e-01 : f32
    %101 = vector.broadcast %cst_32 : f32 to vector<8x4xf32>
    %102 = arith.mulf %100, %101 : vector<8x4xf32>
    %cst_33 = arith.constant dense<0.000000e+00> : vector<8xf32>
    %103 = vector.multi_reduction <add>, %77, %cst_33 [1] : vector<8x4xf32> to vector<8xf32>
    %104 = vector.shape_cast %103 : vector<8xf32> to vector<8x1xf32>
    %cst_34 = arith.constant 4.000000e+00 : f32
    %105 = vector.broadcast %cst_34 : f32 to vector<8x1xf32>
    %106 = arith.divf %104, %105 : vector<8x1xf32>
    %107 = vector.broadcast %106 : vector<8x1xf32> to vector<8x4xf32>
    %108 = arith.subf %77, %107 : vector<8x4xf32>
    %109 = arith.mulf %108, %108 : vector<8x4xf32>
    %cst_35 = arith.constant dense<0.000000e+00> : vector<8xf32>
    %110 = vector.multi_reduction <add>, %109, %cst_35 [1] : vector<8x4xf32> to vector<8xf32>
    %111 = vector.shape_cast %110 : vector<8xf32> to vector<8x1xf32>
    %cst_36 = arith.constant 4.000000e+00 : f32
    %112 = vector.broadcast %cst_36 : f32 to vector<8x1xf32>
    %113 = arith.divf %111, %112 : vector<8x1xf32>
    %114 = vector.broadcast %106 : vector<8x1xf32> to vector<8x4xf32>
    %115 = arith.subf %77, %114 : vector<8x4xf32>
    %cst_37 = arith.constant 9.99999974E-6 : f32
    %116 = vector.broadcast %cst_37 : f32 to vector<8x1xf32>
    %117 = arith.addf %113, %116 : vector<8x1xf32>
    %118 = math.rsqrt %117 : vector<8x1xf32>
    %119 = vector.broadcast %118 : vector<8x1xf32> to vector<8x4xf32>
    %120 = arith.mulf %115, %119 : vector<8x4xf32>
    %121 = vector.broadcast %6 : vector<1x4xf32> to vector<8x4xf32>
    %122 = arith.mulf %120, %121 : vector<8x4xf32>
    %123 = vector.broadcast %7 : vector<1x4xf32> to vector<8x4xf32>
    %124 = arith.addf %122, %123 : vector<8x4xf32>
    %125 = arith.truncf %102 : vector<8x4xf32> to vector<8x4xbf16>
    %126 = arith.truncf %124 : vector<8x4xf32> to vector<8x4xbf16>
    %cst_38 = arith.constant dense<0.000000e+00> : vector<8x8xf32>
    %127 = tpu.matmul %125, %126, %cst_38 {dimension_numbers = #tpu.dot_dimension_numbers<[1], [1], [0], [0], [0, 0, 1, 0], [], []>} : vector<8x4xbf16>, vector<8x4xbf16>, vector<8x8xf32> -> vector<8x8xf32>
    %cst_39 = arith.constant dense<0xFF800000> : vector<8xf32>
    %128 = vector.multi_reduction <maximumf>, %127, %cst_39 [1] : vector<8x8xf32> to vector<8xf32>
    %129 = vector.shape_cast %128 : vector<8xf32> to vector<8x1xf32>
    %130 = vector.broadcast %129 : vector<8x1xf32> to vector<8x8xf32>
    %131 = arith.subf %127, %130 : vector<8x8xf32>
    %132 = math.exp %131 : vector<8x8xf32>
    %cst_40 = arith.constant dense<0.000000e+00> : vector<8xf32>
    %133 = vector.multi_reduction <add>, %132, %cst_40 [1] : vector<8x8xf32> to vector<8xf32>
    %134 = vector.shape_cast %133 : vector<8xf32> to vector<8x1xf32>
    %135 = tpu.reciprocal %134 {approx = true} : vector<8x1xf32> -> vector<8x1xf32>
    %136 = vector.broadcast %135 : vector<8x1xf32> to vector<8x8xf32>
    %137 = arith.mulf %132, %136 : vector<8x8xf32>
    %138 = arith.truncf %137 : vector<8x8xf32> to vector<8x8xbf16>
    %139 = arith.truncf %78 : vector<8x4xf32> to vector<8x4xbf16>
    %cst_41 = arith.constant dense<0.000000e+00> : vector<8x4xf32>
    %140 = tpu.matmul %138, %139, %cst_41 {dimension_numbers = #tpu.dot_dimension_numbers<[1], [0], [0], [1], [0, 0, 1, 1], [], []>} : vector<8x8xbf16>, vector<8x4xbf16>, vector<8x4xf32> -> vector<8x4xf32>
    %141 = vector.extract_strided_slice %3 {offsets = [0, 1], sizes = [8, 1], strides = [1, 1]} : vector<8x8xf32> to vector<8x1xf32>
    %142 = vector.broadcast %141 : vector<8x1xf32> to vector<8x4xf32>
    %143 = arith.mulf %140, %142 : vector<8x4xf32>
    %144 = vector.extract_strided_slice %1 {offsets = [0, 8], sizes = [8, 4], strides = [1, 1]} : vector<8x96xf32> to vector<8x4xf32>
    %145 = vector.extract_strided_slice %1 {offsets = [0, 40], sizes = [8, 4], strides = [1, 1]} : vector<8x96xf32> to vector<8x4xf32>
    %146 = vector.extract_strided_slice %1 {offsets = [0, 72], sizes = [8, 4], strides = [1, 1]} : vector<8x96xf32> to vector<8x4xf32>
    %cst_42 = arith.constant dense<0.000000e+00> : vector<8xf32>
    %147 = vector.multi_reduction <add>, %144, %cst_42 [1] : vector<8x4xf32> to vector<8xf32>
    %148 = vector.shape_cast %147 : vector<8xf32> to vector<8x1xf32>
    %cst_43 = arith.constant 4.000000e+00 : f32
    %149 = vector.broadcast %cst_43 : f32 to vector<8x1xf32>
    %150 = arith.divf %148, %149 : vector<8x1xf32>
    %151 = vector.broadcast %150 : vector<8x1xf32> to vector<8x4xf32>
    %152 = arith.subf %144, %151 : vector<8x4xf32>
    %153 = arith.mulf %152, %152 : vector<8x4xf32>
    %cst_44 = arith.constant dense<0.000000e+00> : vector<8xf32>
    %154 = vector.multi_reduction <add>, %153, %cst_44 [1] : vector<8x4xf32> to vector<8xf32>
    %155 = vector.shape_cast %154 : vector<8xf32> to vector<8x1xf32>
    %cst_45 = arith.constant 4.000000e+00 : f32
    %156 = vector.broadcast %cst_45 : f32 to vector<8x1xf32>
    %157 = arith.divf %155, %156 : vector<8x1xf32>
    %158 = vector.broadcast %150 : vector<8x1xf32> to vector<8x4xf32>
    %159 = arith.subf %144, %158 : vector<8x4xf32>
    %cst_46 = arith.constant 9.99999974E-6 : f32
    %160 = vector.broadcast %cst_46 : f32 to vector<8x1xf32>
    %161 = arith.addf %157, %160 : vector<8x1xf32>
    %162 = math.rsqrt %161 : vector<8x1xf32>
    %163 = vector.broadcast %162 : vector<8x1xf32> to vector<8x4xf32>
    %164 = arith.mulf %159, %163 : vector<8x4xf32>
    %165 = vector.broadcast %4 : vector<1x4xf32> to vector<8x4xf32>
    %166 = arith.mulf %164, %165 : vector<8x4xf32>
    %167 = vector.broadcast %5 : vector<1x4xf32> to vector<8x4xf32>
    %168 = arith.addf %166, %167 : vector<8x4xf32>
    %cst_47 = arith.constant 5.000000e-01 : f32
    %169 = vector.broadcast %cst_47 : f32 to vector<8x4xf32>
    %170 = arith.mulf %168, %169 : vector<8x4xf32>
    %cst_48 = arith.constant dense<0.000000e+00> : vector<8xf32>
    %171 = vector.multi_reduction <add>, %145, %cst_48 [1] : vector<8x4xf32> to vector<8xf32>
    %172 = vector.shape_cast %171 : vector<8xf32> to vector<8x1xf32>
    %cst_49 = arith.constant 4.000000e+00 : f32
    %173 = vector.broadcast %cst_49 : f32 to vector<8x1xf32>
    %174 = arith.divf %172, %173 : vector<8x1xf32>
    %175 = vector.broadcast %174 : vector<8x1xf32> to vector<8x4xf32>
    %176 = arith.subf %145, %175 : vector<8x4xf32>
    %177 = arith.mulf %176, %176 : vector<8x4xf32>
    %cst_50 = arith.constant dense<0.000000e+00> : vector<8xf32>
    %178 = vector.multi_reduction <add>, %177, %cst_50 [1] : vector<8x4xf32> to vector<8xf32>
    %179 = vector.shape_cast %178 : vector<8xf32> to vector<8x1xf32>
    %cst_51 = arith.constant 4.000000e+00 : f32
    %180 = vector.broadcast %cst_51 : f32 to vector<8x1xf32>
    %181 = arith.divf %179, %180 : vector<8x1xf32>
    %182 = vector.broadcast %174 : vector<8x1xf32> to vector<8x4xf32>
    %183 = arith.subf %145, %182 : vector<8x4xf32>
    %cst_52 = arith.constant 9.99999974E-6 : f32
    %184 = vector.broadcast %cst_52 : f32 to vector<8x1xf32>
    %185 = arith.addf %181, %184 : vector<8x1xf32>
    %186 = math.rsqrt %185 : vector<8x1xf32>
    %187 = vector.broadcast %186 : vector<8x1xf32> to vector<8x4xf32>
    %188 = arith.mulf %183, %187 : vector<8x4xf32>
    %189 = vector.broadcast %6 : vector<1x4xf32> to vector<8x4xf32>
    %190 = arith.mulf %188, %189 : vector<8x4xf32>
    %191 = vector.broadcast %7 : vector<1x4xf32> to vector<8x4xf32>
    %192 = arith.addf %190, %191 : vector<8x4xf32>
    %193 = arith.truncf %170 : vector<8x4xf32> to vector<8x4xbf16>
    %194 = arith.truncf %192 : vector<8x4xf32> to vector<8x4xbf16>
    %cst_53 = arith.constant dense<0.000000e+00> : vector<8x8xf32>
    %195 = tpu.matmul %193, %194, %cst_53 {dimension_numbers = #tpu.dot_dimension_numbers<[1], [1], [0], [0], [0, 0, 1, 0], [], []>} : vector<8x4xbf16>, vector<8x4xbf16>, vector<8x8xf32> -> vector<8x8xf32>
    %cst_54 = arith.constant dense<0xFF800000> : vector<8xf32>
    %196 = vector.multi_reduction <maximumf>, %195, %cst_54 [1] : vector<8x8xf32> to vector<8xf32>
    %197 = vector.shape_cast %196 : vector<8xf32> to vector<8x1xf32>
    %198 = vector.broadcast %197 : vector<8x1xf32> to vector<8x8xf32>
    %199 = arith.subf %195, %198 : vector<8x8xf32>
    %200 = math.exp %199 : vector<8x8xf32>
    %cst_55 = arith.constant dense<0.000000e+00> : vector<8xf32>
    %201 = vector.multi_reduction <add>, %200, %cst_55 [1] : vector<8x8xf32> to vector<8xf32>
    %202 = vector.shape_cast %201 : vector<8xf32> to vector<8x1xf32>
    %203 = tpu.reciprocal %202 {approx = true} : vector<8x1xf32> -> vector<8x1xf32>
    %204 = vector.broadcast %203 : vector<8x1xf32> to vector<8x8xf32>
    %205 = arith.mulf %200, %204 : vector<8x8xf32>
    %206 = arith.truncf %205 : vector<8x8xf32> to vector<8x8xbf16>
    %207 = arith.truncf %146 : vector<8x4xf32> to vector<8x4xbf16>
    %cst_56 = arith.constant dense<0.000000e+00> : vector<8x4xf32>
    %208 = tpu.matmul %206, %207, %cst_56 {dimension_numbers = #tpu.dot_dimension_numbers<[1], [0], [0], [1], [0, 0, 1, 1], [], []>} : vector<8x8xbf16>, vector<8x4xbf16>, vector<8x4xf32> -> vector<8x4xf32>
    %209 = vector.extract_strided_slice %3 {offsets = [0, 2], sizes = [8, 1], strides = [1, 1]} : vector<8x8xf32> to vector<8x1xf32>
    %210 = vector.broadcast %209 : vector<8x1xf32> to vector<8x4xf32>
    %211 = arith.mulf %208, %210 : vector<8x4xf32>
    %212 = vector.extract_strided_slice %1 {offsets = [0, 12], sizes = [8, 4], strides = [1, 1]} : vector<8x96xf32> to vector<8x4xf32>
    %213 = vector.extract_strided_slice %1 {offsets = [0, 44], sizes = [8, 4], strides = [1, 1]} : vector<8x96xf32> to vector<8x4xf32>
    %214 = vector.extract_strided_slice %1 {offsets = [0, 76], sizes = [8, 4], strides = [1, 1]} : vector<8x96xf32> to vector<8x4xf32>
    %cst_57 = arith.constant dense<0.000000e+00> : vector<8xf32>
    %215 = vector.multi_reduction <add>, %212, %cst_57 [1] : vector<8x4xf32> to vector<8xf32>
    %216 = vector.shape_cast %215 : vector<8xf32> to vector<8x1xf32>
    %cst_58 = arith.constant 4.000000e+00 : f32
    %217 = vector.broadcast %cst_58 : f32 to vector<8x1xf32>
    %218 = arith.divf %216, %217 : vector<8x1xf32>
    %219 = vector.broadcast %218 : vector<8x1xf32> to vector<8x4xf32>
    %220 = arith.subf %212, %219 : vector<8x4xf32>
    %221 = arith.mulf %220, %220 : vector<8x4xf32>
    %cst_59 = arith.constant dense<0.000000e+00> : vector<8xf32>
    %222 = vector.multi_reduction <add>, %221, %cst_59 [1] : vector<8x4xf32> to vector<8xf32>
    %223 = vector.shape_cast %222 : vector<8xf32> to vector<8x1xf32>
    %cst_60 = arith.constant 4.000000e+00 : f32
    %224 = vector.broadcast %cst_60 : f32 to vector<8x1xf32>
    %225 = arith.divf %223, %224 : vector<8x1xf32>
    %226 = vector.broadcast %218 : vector<8x1xf32> to vector<8x4xf32>
    %227 = arith.subf %212, %226 : vector<8x4xf32>
    %cst_61 = arith.constant 9.99999974E-6 : f32
    %228 = vector.broadcast %cst_61 : f32 to vector<8x1xf32>
    %229 = arith.addf %225, %228 : vector<8x1xf32>
    %230 = math.rsqrt %229 : vector<8x1xf32>
    %231 = vector.broadcast %230 : vector<8x1xf32> to vector<8x4xf32>
    %232 = arith.mulf %227, %231 : vector<8x4xf32>
    %233 = vector.broadcast %4 : vector<1x4xf32> to vector<8x4xf32>
    %234 = arith.mulf %232, %233 : vector<8x4xf32>
    %235 = vector.broadcast %5 : vector<1x4xf32> to vector<8x4xf32>
    %236 = arith.addf %234, %235 : vector<8x4xf32>
    %cst_62 = arith.constant 5.000000e-01 : f32
    %237 = vector.broadcast %cst_62 : f32 to vector<8x4xf32>
    %238 = arith.mulf %236, %237 : vector<8x4xf32>
    %cst_63 = arith.constant dense<0.000000e+00> : vector<8xf32>
    %239 = vector.multi_reduction <add>, %213, %cst_63 [1] : vector<8x4xf32> to vector<8xf32>
    %240 = vector.shape_cast %239 : vector<8xf32> to vector<8x1xf32>
    %cst_64 = arith.constant 4.000000e+00 : f32
    %241 = vector.broadcast %cst_64 : f32 to vector<8x1xf32>
    %242 = arith.divf %240, %241 : vector<8x1xf32>
    %243 = vector.broadcast %242 : vector<8x1xf32> to vector<8x4xf32>
    %244 = arith.subf %213, %243 : vector<8x4xf32>
    %245 = arith.mulf %244, %244 : vector<8x4xf32>
    %cst_65 = arith.constant dense<0.000000e+00> : vector<8xf32>
    %246 = vector.multi_reduction <add>, %245, %cst_65 [1] : vector<8x4xf32> to vector<8xf32>
    %247 = vector.shape_cast %246 : vector<8xf32> to vector<8x1xf32>
    %cst_66 = arith.constant 4.000000e+00 : f32
    %248 = vector.broadcast %cst_66 : f32 to vector<8x1xf32>
    %249 = arith.divf %247, %248 : vector<8x1xf32>
    %250 = vector.broadcast %242 : vector<8x1xf32> to vector<8x4xf32>
    %251 = arith.subf %213, %250 : vector<8x4xf32>
    %cst_67 = arith.constant 9.99999974E-6 : f32
    %252 = vector.broadcast %cst_67 : f32 to vector<8x1xf32>
    %253 = arith.addf %249, %252 : vector<8x1xf32>
    %254 = math.rsqrt %253 : vector<8x1xf32>
    %255 = vector.broadcast %254 : vector<8x1xf32> to vector<8x4xf32>
    %256 = arith.mulf %251, %255 : vector<8x4xf32>
    %257 = vector.broadcast %6 : vector<1x4xf32> to vector<8x4xf32>
    %258 = arith.mulf %256, %257 : vector<8x4xf32>
    %259 = vector.broadcast %7 : vector<1x4xf32> to vector<8x4xf32>
    %260 = arith.addf %258, %259 : vector<8x4xf32>
    %261 = arith.truncf %238 : vector<8x4xf32> to vector<8x4xbf16>
    %262 = arith.truncf %260 : vector<8x4xf32> to vector<8x4xbf16>
    %cst_68 = arith.constant dense<0.000000e+00> : vector<8x8xf32>
    %263 = tpu.matmul %261, %262, %cst_68 {dimension_numbers = #tpu.dot_dimension_numbers<[1], [1], [0], [0], [0, 0, 1, 0], [], []>} : vector<8x4xbf16>, vector<8x4xbf16>, vector<8x8xf32> -> vector<8x8xf32>
    %cst_69 = arith.constant dense<0xFF800000> : vector<8xf32>
    %264 = vector.multi_reduction <maximumf>, %263, %cst_69 [1] : vector<8x8xf32> to vector<8xf32>
    %265 = vector.shape_cast %264 : vector<8xf32> to vector<8x1xf32>
    %266 = vector.broadcast %265 : vector<8x1xf32> to vector<8x8xf32>
    %267 = arith.subf %263, %266 : vector<8x8xf32>
    %268 = math.exp %267 : vector<8x8xf32>
    %cst_70 = arith.constant dense<0.000000e+00> : vector<8xf32>
    %269 = vector.multi_reduction <add>, %268, %cst_70 [1] : vector<8x8xf32> to vector<8xf32>
    %270 = vector.shape_cast %269 : vector<8xf32> to vector<8x1xf32>
    %271 = tpu.reciprocal %270 {approx = true} : vector<8x1xf32> -> vector<8x1xf32>
    %272 = vector.broadcast %271 : vector<8x1xf32> to vector<8x8xf32>
    %273 = arith.mulf %268, %272 : vector<8x8xf32>
    %274 = arith.truncf %273 : vector<8x8xf32> to vector<8x8xbf16>
    %275 = arith.truncf %214 : vector<8x4xf32> to vector<8x4xbf16>
    %cst_71 = arith.constant dense<0.000000e+00> : vector<8x4xf32>
    %276 = tpu.matmul %274, %275, %cst_71 {dimension_numbers = #tpu.dot_dimension_numbers<[1], [0], [0], [1], [0, 0, 1, 1], [], []>} : vector<8x8xbf16>, vector<8x4xbf16>, vector<8x4xf32> -> vector<8x4xf32>
    %277 = vector.extract_strided_slice %3 {offsets = [0, 3], sizes = [8, 1], strides = [1, 1]} : vector<8x8xf32> to vector<8x1xf32>
    %278 = vector.broadcast %277 : vector<8x1xf32> to vector<8x4xf32>
    %279 = arith.mulf %276, %278 : vector<8x4xf32>
    %280 = vector.extract_strided_slice %1 {offsets = [0, 16], sizes = [8, 4], strides = [1, 1]} : vector<8x96xf32> to vector<8x4xf32>
    %281 = vector.extract_strided_slice %1 {offsets = [0, 48], sizes = [8, 4], strides = [1, 1]} : vector<8x96xf32> to vector<8x4xf32>
    %282 = vector.extract_strided_slice %1 {offsets = [0, 80], sizes = [8, 4], strides = [1, 1]} : vector<8x96xf32> to vector<8x4xf32>
    %cst_72 = arith.constant dense<0.000000e+00> : vector<8xf32>
    %283 = vector.multi_reduction <add>, %280, %cst_72 [1] : vector<8x4xf32> to vector<8xf32>
    %284 = vector.shape_cast %283 : vector<8xf32> to vector<8x1xf32>
    %cst_73 = arith.constant 4.000000e+00 : f32
    %285 = vector.broadcast %cst_73 : f32 to vector<8x1xf32>
    %286 = arith.divf %284, %285 : vector<8x1xf32>
    %287 = vector.broadcast %286 : vector<8x1xf32> to vector<8x4xf32>
    %288 = arith.subf %280, %287 : vector<8x4xf32>
    %289 = arith.mulf %288, %288 : vector<8x4xf32>
    %cst_74 = arith.constant dense<0.000000e+00> : vector<8xf32>
    %290 = vector.multi_reduction <add>, %289, %cst_74 [1] : vector<8x4xf32> to vector<8xf32>
    %291 = vector.shape_cast %290 : vector<8xf32> to vector<8x1xf32>
    %cst_75 = arith.constant 4.000000e+00 : f32
    %292 = vector.broadcast %cst_75 : f32 to vector<8x1xf32>
    %293 = arith.divf %291, %292 : vector<8x1xf32>
    %294 = vector.broadcast %286 : vector<8x1xf32> to vector<8x4xf32>
    %295 = arith.subf %280, %294 : vector<8x4xf32>
    %cst_76 = arith.constant 9.99999974E-6 : f32
    %296 = vector.broadcast %cst_76 : f32 to vector<8x1xf32>
    %297 = arith.addf %293, %296 : vector<8x1xf32>
    %298 = math.rsqrt %297 : vector<8x1xf32>
    %299 = vector.broadcast %298 : vector<8x1xf32> to vector<8x4xf32>
    %300 = arith.mulf %295, %299 : vector<8x4xf32>
    %301 = vector.broadcast %4 : vector<1x4xf32> to vector<8x4xf32>
    %302 = arith.mulf %300, %301 : vector<8x4xf32>
    %303 = vector.broadcast %5 : vector<1x4xf32> to vector<8x4xf32>
    %304 = arith.addf %302, %303 : vector<8x4xf32>
    %cst_77 = arith.constant 5.000000e-01 : f32
    %305 = vector.broadcast %cst_77 : f32 to vector<8x4xf32>
    %306 = arith.mulf %304, %305 : vector<8x4xf32>
    %cst_78 = arith.constant dense<0.000000e+00> : vector<8xf32>
    %307 = vector.multi_reduction <add>, %281, %cst_78 [1] : vector<8x4xf32> to vector<8xf32>
    %308 = vector.shape_cast %307 : vector<8xf32> to vector<8x1xf32>
    %cst_79 = arith.constant 4.000000e+00 : f32
    %309 = vector.broadcast %cst_79 : f32 to vector<8x1xf32>
    %310 = arith.divf %308, %309 : vector<8x1xf32>
    %311 = vector.broadcast %310 : vector<8x1xf32> to vector<8x4xf32>
    %312 = arith.subf %281, %311 : vector<8x4xf32>
    %313 = arith.mulf %312, %312 : vector<8x4xf32>
    %cst_80 = arith.constant dense<0.000000e+00> : vector<8xf32>
    %314 = vector.multi_reduction <add>, %313, %cst_80 [1] : vector<8x4xf32> to vector<8xf32>
    %315 = vector.shape_cast %314 : vector<8xf32> to vector<8x1xf32>
    %cst_81 = arith.constant 4.000000e+00 : f32
    %316 = vector.broadcast %cst_81 : f32 to vector<8x1xf32>
    %317 = arith.divf %315, %316 : vector<8x1xf32>
    %318 = vector.broadcast %310 : vector<8x1xf32> to vector<8x4xf32>
    %319 = arith.subf %281, %318 : vector<8x4xf32>
    %cst_82 = arith.constant 9.99999974E-6 : f32
    %320 = vector.broadcast %cst_82 : f32 to vector<8x1xf32>
    %321 = arith.addf %317, %320 : vector<8x1xf32>
    %322 = math.rsqrt %321 : vector<8x1xf32>
    %323 = vector.broadcast %322 : vector<8x1xf32> to vector<8x4xf32>
    %324 = arith.mulf %319, %323 : vector<8x4xf32>
    %325 = vector.broadcast %6 : vector<1x4xf32> to vector<8x4xf32>
    %326 = arith.mulf %324, %325 : vector<8x4xf32>
    %327 = vector.broadcast %7 : vector<1x4xf32> to vector<8x4xf32>
    %328 = arith.addf %326, %327 : vector<8x4xf32>
    %329 = arith.truncf %306 : vector<8x4xf32> to vector<8x4xbf16>
    %330 = arith.truncf %328 : vector<8x4xf32> to vector<8x4xbf16>
    %cst_83 = arith.constant dense<0.000000e+00> : vector<8x8xf32>
    %331 = tpu.matmul %329, %330, %cst_83 {dimension_numbers = #tpu.dot_dimension_numbers<[1], [1], [0], [0], [0, 0, 1, 0], [], []>} : vector<8x4xbf16>, vector<8x4xbf16>, vector<8x8xf32> -> vector<8x8xf32>
    %cst_84 = arith.constant dense<0xFF800000> : vector<8xf32>
    %332 = vector.multi_reduction <maximumf>, %331, %cst_84 [1] : vector<8x8xf32> to vector<8xf32>
    %333 = vector.shape_cast %332 : vector<8xf32> to vector<8x1xf32>
    %334 = vector.broadcast %333 : vector<8x1xf32> to vector<8x8xf32>
    %335 = arith.subf %331, %334 : vector<8x8xf32>
    %336 = math.exp %335 : vector<8x8xf32>
    %cst_85 = arith.constant dense<0.000000e+00> : vector<8xf32>
    %337 = vector.multi_reduction <add>, %336, %cst_85 [1] : vector<8x8xf32> to vector<8xf32>
    %338 = vector.shape_cast %337 : vector<8xf32> to vector<8x1xf32>
    %339 = tpu.reciprocal %338 {approx = true} : vector<8x1xf32> -> vector<8x1xf32>
    %340 = vector.broadcast %339 : vector<8x1xf32> to vector<8x8xf32>
    %341 = arith.mulf %336, %340 : vector<8x8xf32>
    %342 = arith.truncf %341 : vector<8x8xf32> to vector<8x8xbf16>
    %343 = arith.truncf %282 : vector<8x4xf32> to vector<8x4xbf16>
    %cst_86 = arith.constant dense<0.000000e+00> : vector<8x4xf32>
    %344 = tpu.matmul %342, %343, %cst_86 {dimension_numbers = #tpu.dot_dimension_numbers<[1], [0], [0], [1], [0, 0, 1, 1], [], []>} : vector<8x8xbf16>, vector<8x4xbf16>, vector<8x4xf32> -> vector<8x4xf32>
    %345 = vector.extract_strided_slice %3 {offsets = [0, 4], sizes = [8, 1], strides = [1, 1]} : vector<8x8xf32> to vector<8x1xf32>
    %346 = vector.broadcast %345 : vector<8x1xf32> to vector<8x4xf32>
    %347 = arith.mulf %344, %346 : vector<8x4xf32>
    %348 = vector.extract_strided_slice %1 {offsets = [0, 20], sizes = [8, 4], strides = [1, 1]} : vector<8x96xf32> to vector<8x4xf32>
    %349 = vector.extract_strided_slice %1 {offsets = [0, 52], sizes = [8, 4], strides = [1, 1]} : vector<8x96xf32> to vector<8x4xf32>
    %350 = vector.extract_strided_slice %1 {offsets = [0, 84], sizes = [8, 4], strides = [1, 1]} : vector<8x96xf32> to vector<8x4xf32>
    %cst_87 = arith.constant dense<0.000000e+00> : vector<8xf32>
    %351 = vector.multi_reduction <add>, %348, %cst_87 [1] : vector<8x4xf32> to vector<8xf32>
    %352 = vector.shape_cast %351 : vector<8xf32> to vector<8x1xf32>
    %cst_88 = arith.constant 4.000000e+00 : f32
    %353 = vector.broadcast %cst_88 : f32 to vector<8x1xf32>
    %354 = arith.divf %352, %353 : vector<8x1xf32>
    %355 = vector.broadcast %354 : vector<8x1xf32> to vector<8x4xf32>
    %356 = arith.subf %348, %355 : vector<8x4xf32>
    %357 = arith.mulf %356, %356 : vector<8x4xf32>
    %cst_89 = arith.constant dense<0.000000e+00> : vector<8xf32>
    %358 = vector.multi_reduction <add>, %357, %cst_89 [1] : vector<8x4xf32> to vector<8xf32>
    %359 = vector.shape_cast %358 : vector<8xf32> to vector<8x1xf32>
    %cst_90 = arith.constant 4.000000e+00 : f32
    %360 = vector.broadcast %cst_90 : f32 to vector<8x1xf32>
    %361 = arith.divf %359, %360 : vector<8x1xf32>
    %362 = vector.broadcast %354 : vector<8x1xf32> to vector<8x4xf32>
    %363 = arith.subf %348, %362 : vector<8x4xf32>
    %cst_91 = arith.constant 9.99999974E-6 : f32
    %364 = vector.broadcast %cst_91 : f32 to vector<8x1xf32>
    %365 = arith.addf %361, %364 : vector<8x1xf32>
    %366 = math.rsqrt %365 : vector<8x1xf32>
    %367 = vector.broadcast %366 : vector<8x1xf32> to vector<8x4xf32>
    %368 = arith.mulf %363, %367 : vector<8x4xf32>
    %369 = vector.broadcast %4 : vector<1x4xf32> to vector<8x4xf32>
    %370 = arith.mulf %368, %369 : vector<8x4xf32>
    %371 = vector.broadcast %5 : vector<1x4xf32> to vector<8x4xf32>
    %372 = arith.addf %370, %371 : vector<8x4xf32>
    %cst_92 = arith.constant 5.000000e-01 : f32
    %373 = vector.broadcast %cst_92 : f32 to vector<8x4xf32>
    %374 = arith.mulf %372, %373 : vector<8x4xf32>
    %cst_93 = arith.constant dense<0.000000e+00> : vector<8xf32>
    %375 = vector.multi_reduction <add>, %349, %cst_93 [1] : vector<8x4xf32> to vector<8xf32>
    %376 = vector.shape_cast %375 : vector<8xf32> to vector<8x1xf32>
    %cst_94 = arith.constant 4.000000e+00 : f32
    %377 = vector.broadcast %cst_94 : f32 to vector<8x1xf32>
    %378 = arith.divf %376, %377 : vector<8x1xf32>
    %379 = vector.broadcast %378 : vector<8x1xf32> to vector<8x4xf32>
    %380 = arith.subf %349, %379 : vector<8x4xf32>
    %381 = arith.mulf %380, %380 : vector<8x4xf32>
    %cst_95 = arith.constant dense<0.000000e+00> : vector<8xf32>
    %382 = vector.multi_reduction <add>, %381, %cst_95 [1] : vector<8x4xf32> to vector<8xf32>
    %383 = vector.shape_cast %382 : vector<8xf32> to vector<8x1xf32>
    %cst_96 = arith.constant 4.000000e+00 : f32
    %384 = vector.broadcast %cst_96 : f32 to vector<8x1xf32>
    %385 = arith.divf %383, %384 : vector<8x1xf32>
    %386 = vector.broadcast %378 : vector<8x1xf32> to vector<8x4xf32>
    %387 = arith.subf %349, %386 : vector<8x4xf32>
    %cst_97 = arith.constant 9.99999974E-6 : f32
    %388 = vector.broadcast %cst_97 : f32 to vector<8x1xf32>
    %389 = arith.addf %385, %388 : vector<8x1xf32>
    %390 = math.rsqrt %389 : vector<8x1xf32>
    %391 = vector.broadcast %390 : vector<8x1xf32> to vector<8x4xf32>
    %392 = arith.mulf %387, %391 : vector<8x4xf32>
    %393 = vector.broadcast %6 : vector<1x4xf32> to vector<8x4xf32>
    %394 = arith.mulf %392, %393 : vector<8x4xf32>
    %395 = vector.broadcast %7 : vector<1x4xf32> to vector<8x4xf32>
    %396 = arith.addf %394, %395 : vector<8x4xf32>
    %397 = arith.truncf %374 : vector<8x4xf32> to vector<8x4xbf16>
    %398 = arith.truncf %396 : vector<8x4xf32> to vector<8x4xbf16>
    %cst_98 = arith.constant dense<0.000000e+00> : vector<8x8xf32>
    %399 = tpu.matmul %397, %398, %cst_98 {dimension_numbers = #tpu.dot_dimension_numbers<[1], [1], [0], [0], [0, 0, 1, 0], [], []>} : vector<8x4xbf16>, vector<8x4xbf16>, vector<8x8xf32> -> vector<8x8xf32>
    %cst_99 = arith.constant dense<0xFF800000> : vector<8xf32>
    %400 = vector.multi_reduction <maximumf>, %399, %cst_99 [1] : vector<8x8xf32> to vector<8xf32>
    %401 = vector.shape_cast %400 : vector<8xf32> to vector<8x1xf32>
    %402 = vector.broadcast %401 : vector<8x1xf32> to vector<8x8xf32>
    %403 = arith.subf %399, %402 : vector<8x8xf32>
    %404 = math.exp %403 : vector<8x8xf32>
    %cst_100 = arith.constant dense<0.000000e+00> : vector<8xf32>
    %405 = vector.multi_reduction <add>, %404, %cst_100 [1] : vector<8x8xf32> to vector<8xf32>
    %406 = vector.shape_cast %405 : vector<8xf32> to vector<8x1xf32>
    %407 = tpu.reciprocal %406 {approx = true} : vector<8x1xf32> -> vector<8x1xf32>
    %408 = vector.broadcast %407 : vector<8x1xf32> to vector<8x8xf32>
    %409 = arith.mulf %404, %408 : vector<8x8xf32>
    %410 = arith.truncf %409 : vector<8x8xf32> to vector<8x8xbf16>
    %411 = arith.truncf %350 : vector<8x4xf32> to vector<8x4xbf16>
    %cst_101 = arith.constant dense<0.000000e+00> : vector<8x4xf32>
    %412 = tpu.matmul %410, %411, %cst_101 {dimension_numbers = #tpu.dot_dimension_numbers<[1], [0], [0], [1], [0, 0, 1, 1], [], []>} : vector<8x8xbf16>, vector<8x4xbf16>, vector<8x4xf32> -> vector<8x4xf32>
    %413 = vector.extract_strided_slice %3 {offsets = [0, 5], sizes = [8, 1], strides = [1, 1]} : vector<8x8xf32> to vector<8x1xf32>
    %414 = vector.broadcast %413 : vector<8x1xf32> to vector<8x4xf32>
    %415 = arith.mulf %412, %414 : vector<8x4xf32>
    %416 = vector.extract_strided_slice %1 {offsets = [0, 24], sizes = [8, 4], strides = [1, 1]} : vector<8x96xf32> to vector<8x4xf32>
    %417 = vector.extract_strided_slice %1 {offsets = [0, 56], sizes = [8, 4], strides = [1, 1]} : vector<8x96xf32> to vector<8x4xf32>
    %418 = vector.extract_strided_slice %1 {offsets = [0, 88], sizes = [8, 4], strides = [1, 1]} : vector<8x96xf32> to vector<8x4xf32>
    %cst_102 = arith.constant dense<0.000000e+00> : vector<8xf32>
    %419 = vector.multi_reduction <add>, %416, %cst_102 [1] : vector<8x4xf32> to vector<8xf32>
    %420 = vector.shape_cast %419 : vector<8xf32> to vector<8x1xf32>
    %cst_103 = arith.constant 4.000000e+00 : f32
    %421 = vector.broadcast %cst_103 : f32 to vector<8x1xf32>
    %422 = arith.divf %420, %421 : vector<8x1xf32>
    %423 = vector.broadcast %422 : vector<8x1xf32> to vector<8x4xf32>
    %424 = arith.subf %416, %423 : vector<8x4xf32>
    %425 = arith.mulf %424, %424 : vector<8x4xf32>
    %cst_104 = arith.constant dense<0.000000e+00> : vector<8xf32>
    %426 = vector.multi_reduction <add>, %425, %cst_104 [1] : vector<8x4xf32> to vector<8xf32>
    %427 = vector.shape_cast %426 : vector<8xf32> to vector<8x1xf32>
    %cst_105 = arith.constant 4.000000e+00 : f32
    %428 = vector.broadcast %cst_105 : f32 to vector<8x1xf32>
    %429 = arith.divf %427, %428 : vector<8x1xf32>
    %430 = vector.broadcast %422 : vector<8x1xf32> to vector<8x4xf32>
    %431 = arith.subf %416, %430 : vector<8x4xf32>
    %cst_106 = arith.constant 9.99999974E-6 : f32
    %432 = vector.broadcast %cst_106 : f32 to vector<8x1xf32>
    %433 = arith.addf %429, %432 : vector<8x1xf32>
    %434 = math.rsqrt %433 : vector<8x1xf32>
    %435 = vector.broadcast %434 : vector<8x1xf32> to vector<8x4xf32>
    %436 = arith.mulf %431, %435 : vector<8x4xf32>
    %437 = vector.broadcast %4 : vector<1x4xf32> to vector<8x4xf32>
    %438 = arith.mulf %436, %437 : vector<8x4xf32>
    %439 = vector.broadcast %5 : vector<1x4xf32> to vector<8x4xf32>
    %440 = arith.addf %438, %439 : vector<8x4xf32>
    %cst_107 = arith.constant 5.000000e-01 : f32
    %441 = vector.broadcast %cst_107 : f32 to vector<8x4xf32>
    %442 = arith.mulf %440, %441 : vector<8x4xf32>
    %cst_108 = arith.constant dense<0.000000e+00> : vector<8xf32>
    %443 = vector.multi_reduction <add>, %417, %cst_108 [1] : vector<8x4xf32> to vector<8xf32>
    %444 = vector.shape_cast %443 : vector<8xf32> to vector<8x1xf32>
    %cst_109 = arith.constant 4.000000e+00 : f32
    %445 = vector.broadcast %cst_109 : f32 to vector<8x1xf32>
    %446 = arith.divf %444, %445 : vector<8x1xf32>
    %447 = vector.broadcast %446 : vector<8x1xf32> to vector<8x4xf32>
    %448 = arith.subf %417, %447 : vector<8x4xf32>
    %449 = arith.mulf %448, %448 : vector<8x4xf32>
    %cst_110 = arith.constant dense<0.000000e+00> : vector<8xf32>
    %450 = vector.multi_reduction <add>, %449, %cst_110 [1] : vector<8x4xf32> to vector<8xf32>
    %451 = vector.shape_cast %450 : vector<8xf32> to vector<8x1xf32>
    %cst_111 = arith.constant 4.000000e+00 : f32
    %452 = vector.broadcast %cst_111 : f32 to vector<8x1xf32>
    %453 = arith.divf %451, %452 : vector<8x1xf32>
    %454 = vector.broadcast %446 : vector<8x1xf32> to vector<8x4xf32>
    %455 = arith.subf %417, %454 : vector<8x4xf32>
    %cst_112 = arith.constant 9.99999974E-6 : f32
    %456 = vector.broadcast %cst_112 : f32 to vector<8x1xf32>
    %457 = arith.addf %453, %456 : vector<8x1xf32>
    %458 = math.rsqrt %457 : vector<8x1xf32>
    %459 = vector.broadcast %458 : vector<8x1xf32> to vector<8x4xf32>
    %460 = arith.mulf %455, %459 : vector<8x4xf32>
    %461 = vector.broadcast %6 : vector<1x4xf32> to vector<8x4xf32>
    %462 = arith.mulf %460, %461 : vector<8x4xf32>
    %463 = vector.broadcast %7 : vector<1x4xf32> to vector<8x4xf32>
    %464 = arith.addf %462, %463 : vector<8x4xf32>
    %465 = arith.truncf %442 : vector<8x4xf32> to vector<8x4xbf16>
    %466 = arith.truncf %464 : vector<8x4xf32> to vector<8x4xbf16>
    %cst_113 = arith.constant dense<0.000000e+00> : vector<8x8xf32>
    %467 = tpu.matmul %465, %466, %cst_113 {dimension_numbers = #tpu.dot_dimension_numbers<[1], [1], [0], [0], [0, 0, 1, 0], [], []>} : vector<8x4xbf16>, vector<8x4xbf16>, vector<8x8xf32> -> vector<8x8xf32>
    %cst_114 = arith.constant dense<0xFF800000> : vector<8xf32>
    %468 = vector.multi_reduction <maximumf>, %467, %cst_114 [1] : vector<8x8xf32> to vector<8xf32>
    %469 = vector.shape_cast %468 : vector<8xf32> to vector<8x1xf32>
    %470 = vector.broadcast %469 : vector<8x1xf32> to vector<8x8xf32>
    %471 = arith.subf %467, %470 : vector<8x8xf32>
    %472 = math.exp %471 : vector<8x8xf32>
    %cst_115 = arith.constant dense<0.000000e+00> : vector<8xf32>
    %473 = vector.multi_reduction <add>, %472, %cst_115 [1] : vector<8x8xf32> to vector<8xf32>
    %474 = vector.shape_cast %473 : vector<8xf32> to vector<8x1xf32>
    %475 = tpu.reciprocal %474 {approx = true} : vector<8x1xf32> -> vector<8x1xf32>
    %476 = vector.broadcast %475 : vector<8x1xf32> to vector<8x8xf32>
    %477 = arith.mulf %472, %476 : vector<8x8xf32>
    %478 = arith.truncf %477 : vector<8x8xf32> to vector<8x8xbf16>
    %479 = arith.truncf %418 : vector<8x4xf32> to vector<8x4xbf16>
    %cst_116 = arith.constant dense<0.000000e+00> : vector<8x4xf32>
    %480 = tpu.matmul %478, %479, %cst_116 {dimension_numbers = #tpu.dot_dimension_numbers<[1], [0], [0], [1], [0, 0, 1, 1], [], []>} : vector<8x8xbf16>, vector<8x4xbf16>, vector<8x4xf32> -> vector<8x4xf32>
    %481 = vector.extract_strided_slice %3 {offsets = [0, 6], sizes = [8, 1], strides = [1, 1]} : vector<8x8xf32> to vector<8x1xf32>
    %482 = vector.broadcast %481 : vector<8x1xf32> to vector<8x4xf32>
    %483 = arith.mulf %480, %482 : vector<8x4xf32>
    %484 = vector.extract_strided_slice %1 {offsets = [0, 28], sizes = [8, 4], strides = [1, 1]} : vector<8x96xf32> to vector<8x4xf32>
    %485 = vector.extract_strided_slice %1 {offsets = [0, 60], sizes = [8, 4], strides = [1, 1]} : vector<8x96xf32> to vector<8x4xf32>
    %486 = vector.extract_strided_slice %1 {offsets = [0, 92], sizes = [8, 4], strides = [1, 1]} : vector<8x96xf32> to vector<8x4xf32>
    %cst_117 = arith.constant dense<0.000000e+00> : vector<8xf32>
    %487 = vector.multi_reduction <add>, %484, %cst_117 [1] : vector<8x4xf32> to vector<8xf32>
    %488 = vector.shape_cast %487 : vector<8xf32> to vector<8x1xf32>
    %cst_118 = arith.constant 4.000000e+00 : f32
    %489 = vector.broadcast %cst_118 : f32 to vector<8x1xf32>
    %490 = arith.divf %488, %489 : vector<8x1xf32>
    %491 = vector.broadcast %490 : vector<8x1xf32> to vector<8x4xf32>
    %492 = arith.subf %484, %491 : vector<8x4xf32>
    %493 = arith.mulf %492, %492 : vector<8x4xf32>
    %cst_119 = arith.constant dense<0.000000e+00> : vector<8xf32>
    %494 = vector.multi_reduction <add>, %493, %cst_119 [1] : vector<8x4xf32> to vector<8xf32>
    %495 = vector.shape_cast %494 : vector<8xf32> to vector<8x1xf32>
    %cst_120 = arith.constant 4.000000e+00 : f32
    %496 = vector.broadcast %cst_120 : f32 to vector<8x1xf32>
    %497 = arith.divf %495, %496 : vector<8x1xf32>
    %498 = vector.broadcast %490 : vector<8x1xf32> to vector<8x4xf32>
    %499 = arith.subf %484, %498 : vector<8x4xf32>
    %cst_121 = arith.constant 9.99999974E-6 : f32
    %500 = vector.broadcast %cst_121 : f32 to vector<8x1xf32>
    %501 = arith.addf %497, %500 : vector<8x1xf32>
    %502 = math.rsqrt %501 : vector<8x1xf32>
    %503 = vector.broadcast %502 : vector<8x1xf32> to vector<8x4xf32>
    %504 = arith.mulf %499, %503 : vector<8x4xf32>
    %505 = vector.broadcast %4 : vector<1x4xf32> to vector<8x4xf32>
    %506 = arith.mulf %504, %505 : vector<8x4xf32>
    %507 = vector.broadcast %5 : vector<1x4xf32> to vector<8x4xf32>
    %508 = arith.addf %506, %507 : vector<8x4xf32>
    %cst_122 = arith.constant 5.000000e-01 : f32
    %509 = vector.broadcast %cst_122 : f32 to vector<8x4xf32>
    %510 = arith.mulf %508, %509 : vector<8x4xf32>
    %cst_123 = arith.constant dense<0.000000e+00> : vector<8xf32>
    %511 = vector.multi_reduction <add>, %485, %cst_123 [1] : vector<8x4xf32> to vector<8xf32>
    %512 = vector.shape_cast %511 : vector<8xf32> to vector<8x1xf32>
    %cst_124 = arith.constant 4.000000e+00 : f32
    %513 = vector.broadcast %cst_124 : f32 to vector<8x1xf32>
    %514 = arith.divf %512, %513 : vector<8x1xf32>
    %515 = vector.broadcast %514 : vector<8x1xf32> to vector<8x4xf32>
    %516 = arith.subf %485, %515 : vector<8x4xf32>
    %517 = arith.mulf %516, %516 : vector<8x4xf32>
    %cst_125 = arith.constant dense<0.000000e+00> : vector<8xf32>
    %518 = vector.multi_reduction <add>, %517, %cst_125 [1] : vector<8x4xf32> to vector<8xf32>
    %519 = vector.shape_cast %518 : vector<8xf32> to vector<8x1xf32>
    %cst_126 = arith.constant 4.000000e+00 : f32
    %520 = vector.broadcast %cst_126 : f32 to vector<8x1xf32>
    %521 = arith.divf %519, %520 : vector<8x1xf32>
    %522 = vector.broadcast %514 : vector<8x1xf32> to vector<8x4xf32>
    %523 = arith.subf %485, %522 : vector<8x4xf32>
    %cst_127 = arith.constant 9.99999974E-6 : f32
    %524 = vector.broadcast %cst_127 : f32 to vector<8x1xf32>
    %525 = arith.addf %521, %524 : vector<8x1xf32>
    %526 = math.rsqrt %525 : vector<8x1xf32>
    %527 = vector.broadcast %526 : vector<8x1xf32> to vector<8x4xf32>
    %528 = arith.mulf %523, %527 : vector<8x4xf32>
    %529 = vector.broadcast %6 : vector<1x4xf32> to vector<8x4xf32>
    %530 = arith.mulf %528, %529 : vector<8x4xf32>
    %531 = vector.broadcast %7 : vector<1x4xf32> to vector<8x4xf32>
    %532 = arith.addf %530, %531 : vector<8x4xf32>
    %533 = arith.truncf %510 : vector<8x4xf32> to vector<8x4xbf16>
    %534 = arith.truncf %532 : vector<8x4xf32> to vector<8x4xbf16>
    %cst_128 = arith.constant dense<0.000000e+00> : vector<8x8xf32>
    %535 = tpu.matmul %533, %534, %cst_128 {dimension_numbers = #tpu.dot_dimension_numbers<[1], [1], [0], [0], [0, 0, 1, 0], [], []>} : vector<8x4xbf16>, vector<8x4xbf16>, vector<8x8xf32> -> vector<8x8xf32>
    %cst_129 = arith.constant dense<0xFF800000> : vector<8xf32>
    %536 = vector.multi_reduction <maximumf>, %535, %cst_129 [1] : vector<8x8xf32> to vector<8xf32>
    %537 = vector.shape_cast %536 : vector<8xf32> to vector<8x1xf32>
    %538 = vector.broadcast %537 : vector<8x1xf32> to vector<8x8xf32>
    %539 = arith.subf %535, %538 : vector<8x8xf32>
    %540 = math.exp %539 : vector<8x8xf32>
    %cst_130 = arith.constant dense<0.000000e+00> : vector<8xf32>
    %541 = vector.multi_reduction <add>, %540, %cst_130 [1] : vector<8x8xf32> to vector<8xf32>
    %542 = vector.shape_cast %541 : vector<8xf32> to vector<8x1xf32>
    %543 = tpu.reciprocal %542 {approx = true} : vector<8x1xf32> -> vector<8x1xf32>
    %544 = vector.broadcast %543 : vector<8x1xf32> to vector<8x8xf32>
    %545 = arith.mulf %540, %544 : vector<8x8xf32>
    %546 = arith.truncf %545 : vector<8x8xf32> to vector<8x8xbf16>
    %547 = arith.truncf %486 : vector<8x4xf32> to vector<8x4xbf16>
    %cst_131 = arith.constant dense<0.000000e+00> : vector<8x4xf32>
    %548 = tpu.matmul %546, %547, %cst_131 {dimension_numbers = #tpu.dot_dimension_numbers<[1], [0], [0], [1], [0, 0, 1, 1], [], []>} : vector<8x8xbf16>, vector<8x4xbf16>, vector<8x4xf32> -> vector<8x4xf32>
    %549 = vector.extract_strided_slice %3 {offsets = [0, 7], sizes = [8, 1], strides = [1, 1]} : vector<8x8xf32> to vector<8x1xf32>
    %550 = vector.broadcast %549 : vector<8x1xf32> to vector<8x4xf32>
    %551 = arith.mulf %548, %550 : vector<8x4xf32>
    %552 = tpu.concatenate %75, %143, %211, %279, %347, %415, %483, %551 in 1 : vector<8x4xf32>, vector<8x4xf32>, vector<8x4xf32>, vector<8x4xf32>, vector<8x4xf32>, vector<8x4xf32>, vector<8x4xf32>, vector<8x4xf32> -> vector<8x32xf32>
    %c0_132 = arith.constant 0 : index
    %c0_133 = arith.constant 0 : index
    %c0_134 = arith.constant 0 : index
    %553 = vector.load %arg7[%c0_132, %c0_133, %c0_134] : memref<1x8x32xf32, #tpu.memory_space<vmem>>, vector<1x8x32xf32>
    %554 = vector.shape_cast %553 : vector<1x8x32xf32> to vector<8x32xf32>
    %555 = vector.shape_cast %552 : vector<8x32xf32> to vector<1x8x32xf32>
    tpu.vector_store %arg7[%c0_132, %c0_133, %c0_134], %555 {strides = array<i32>} : memref<1x8x32xf32, #tpu.memory_space<vmem>>, vector<1x8x32xf32>,
    return
  }
  func.func @transform_0(%arg0: i32) -> (i32, i32, i32) {
    %c0_i32 = arith.constant 0 : i32
    %c0_i32_0 = arith.constant 0 : i32
    %c0_i32_1 = arith.constant 0 : i32
    return %arg0, %c0_i32, %c0_i32_0 : i32, i32, i32
  }
  func.func @transform_1(%arg0: i32) -> (i32, i32, i32) {
    %c0_i32 = arith.constant 0 : i32
    %c0_i32_0 = arith.constant 0 : i32
    %c0_i32_1 = arith.constant 0 : i32
    return %arg0, %c0_i32, %c0_i32_0 : i32, i32, i32
  }
  func.func @transform_2(%arg0: i32) -> (i32, i32) {
    %c0_i32 = arith.constant 0 : i32
    %c0_i32_0 = arith.constant 0 : i32
    %c0_i32_1 = arith.constant 0 : i32
    return %c0_i32, %c0_i32_0 : i32, i32
  }
  func.func @transform_3(%arg0: i32) -> (i32, i32) {
    %c0_i32 = arith.constant 0 : i32
    %c0_i32_0 = arith.constant 0 : i32
    %c0_i32_1 = arith.constant 0 : i32
    return %c0_i32, %c0_i32_0 : i32, i32
  }
  func.func @transform_4(%arg0: i32) -> (i32, i32) {
    %c0_i32 = arith.constant 0 : i32
    %c0_i32_0 = arith.constant 0 : i32
    %c0_i32_1 = arith.constant 0 : i32
    return %c0_i32, %c0_i32_0 : i32, i32
  }
  func.func @transform_5(%arg0: i32) -> (i32, i32) {
    %c0_i32 = arith.constant 0 : i32
    %c0_i32_0 = arith.constant 0 : i32
    %c0_i32_1 = arith.constant 0 : i32
    return %c0_i32, %c0_i32_0 : i32, i32
  }
  func.func @transform_6(%arg0: i32) -> (i32, i32, i32) {
    %c0_i32 = arith.constant 0 : i32
    %c0_i32_0 = arith.constant 0 : i32
    %c0_i32_1 = arith.constant 0 : i32
    return %arg0, %c0_i32, %c0_i32_0 : i32, i32, i32
  }
}

module attributes {stable_mosaic.version = 11 : i64} {
  func.func @_mlp2_kernel(%arg0: i32, %arg1: memref<16x32xf32, #tpu.memory_space<vmem>>, %arg2: memref<32x128xbf16, #tpu.memory_space<vmem>>, %arg3: memref<1x128xf32, #tpu.memory_space<vmem>>, %arg4: memref<128x32xbf16, #tpu.memory_space<vmem>>, %arg5: memref<1x32xf32, #tpu.memory_space<vmem>>, %arg6: memref<16x32xf32, #tpu.memory_space<vmem>>, %arg7: memref<1x32xf32, #tpu.memory_space<vmem>>, %arg8: memref<1x32xf32, #tpu.memory_space<vmem>>, %arg9: memref<16x32xf32, #tpu.memory_space<vmem>>) attributes {dimension_semantics = [#tpu.dimension_semantics<parallel>], iteration_bounds = array<i64: 1>, scalar_prefetch = 0 : i64, scratch_operands = 0 : i64, tpu.core_type = #tpu.core_type<tc>, window_params = [{transform_indices = @transform_0, window_bounds = array<i64: 16, 32>}, {pipeline_mode = #tpu.pipeline_mode<synchronous>, transform_indices = @transform_1, window_bounds = array<i64: 32, 128>}, {pipeline_mode = #tpu.pipeline_mode<synchronous>, transform_indices = @transform_2, window_bounds = array<i64: 1, 128>}, {pipeline_mode = #tpu.pipeline_mode<synchronous>, transform_indices = @transform_3, window_bounds = array<i64: 128, 32>}, {pipeline_mode = #tpu.pipeline_mode<synchronous>, transform_indices = @transform_4, window_bounds = array<i64: 1, 32>}, {transform_indices = @transform_5, window_bounds = array<i64: 16, 32>}, {pipeline_mode = #tpu.pipeline_mode<synchronous>, transform_indices = @transform_6, window_bounds = array<i64: 1, 32>}, {pipeline_mode = #tpu.pipeline_mode<synchronous>, transform_indices = @transform_7, window_bounds = array<i64: 1, 32>}, {transform_indices = @transform_8, window_bounds = array<i64: 16, 32>}]} {
    %c0 = arith.constant 0 : index
    %c0_0 = arith.constant 0 : index
    %0 = vector.load %arg1[%c0, %c0_0] : memref<16x32xf32, #tpu.memory_space<vmem>>, vector<16x32xf32>
    %1 = arith.truncf %0 : vector<16x32xf32> to vector<16x32xbf16>
    %c0_1 = arith.constant 0 : index
    %c0_2 = arith.constant 0 : index
    %2 = vector.load %arg2[%c0_1, %c0_2] : memref<32x128xbf16, #tpu.memory_space<vmem>>, vector<32x128xbf16>
    %cst = arith.constant dense<0.000000e+00> : vector<16x128xf32>
    %3 = tpu.matmul %1, %2, %cst {dimension_numbers = #tpu.dot_dimension_numbers<[1], [0], [0], [1], [0, 0, 1, 1], [], []>} : vector<16x32xbf16>, vector<32x128xbf16>, vector<16x128xf32> -> vector<16x128xf32>
    %c0_3 = arith.constant 0 : index
    %c0_4 = arith.constant 0 : index
    %4 = vector.load %arg3[%c0_3, %c0_4] : memref<1x128xf32, #tpu.memory_space<vmem>>, vector<1x128xf32>
    %5 = vector.broadcast %4 : vector<1x128xf32> to vector<16x128xf32>
    %6 = arith.addf %3, %5 : vector<16x128xf32>
    %cst_5 = arith.constant 0.000000e+00 : f32
    %7 = vector.broadcast %cst_5 : f32 to vector<16x128xf32>
    %8 = arith.maximumf %6, %7 : vector<16x128xf32>
    %9 = arith.truncf %8 : vector<16x128xf32> to vector<16x128xbf16>
    %c0_6 = arith.constant 0 : index
    %c0_7 = arith.constant 0 : index
    %10 = vector.load %arg4[%c0_6, %c0_7] : memref<128x32xbf16, #tpu.memory_space<vmem>>, vector<128x32xbf16>
    %cst_8 = arith.constant dense<0.000000e+00> : vector<16x32xf32>
    %11 = tpu.matmul %9, %10, %cst_8 {dimension_numbers = #tpu.dot_dimension_numbers<[1], [0], [0], [1], [0, 0, 1, 1], [], []>} : vector<16x128xbf16>, vector<128x32xbf16>, vector<16x32xf32> -> vector<16x32xf32>
    %c0_9 = arith.constant 0 : index
    %c0_10 = arith.constant 0 : index
    %12 = vector.load %arg5[%c0_9, %c0_10] : memref<1x32xf32, #tpu.memory_space<vmem>>, vector<1x32xf32>
    %13 = vector.broadcast %12 : vector<1x32xf32> to vector<16x32xf32>
    %14 = arith.addf %11, %13 : vector<16x32xf32>
    %c0_11 = arith.constant 0 : index
    %c0_12 = arith.constant 0 : index
    %15 = vector.load %arg6[%c0_11, %c0_12] : memref<16x32xf32, #tpu.memory_space<vmem>>, vector<16x32xf32>
    %16 = arith.addf %14, %15 : vector<16x32xf32>
    %c0_13 = arith.constant 0 : index
    %c0_14 = arith.constant 0 : index
    %17 = vector.load %arg7[%c0_13, %c0_14] : memref<1x32xf32, #tpu.memory_space<vmem>>, vector<1x32xf32>
    %c0_15 = arith.constant 0 : index
    %c0_16 = arith.constant 0 : index
    %18 = vector.load %arg8[%c0_15, %c0_16] : memref<1x32xf32, #tpu.memory_space<vmem>>, vector<1x32xf32>
    %cst_17 = arith.constant dense<0.000000e+00> : vector<16xf32>
    %19 = vector.multi_reduction <add>, %16, %cst_17 [1] : vector<16x32xf32> to vector<16xf32>
    %20 = vector.shape_cast %19 : vector<16xf32> to vector<16x1xf32>
    %cst_18 = arith.constant 3.200000e+01 : f32
    %21 = vector.broadcast %cst_18 : f32 to vector<16x1xf32>
    %22 = arith.divf %20, %21 : vector<16x1xf32>
    %23 = vector.broadcast %22 : vector<16x1xf32> to vector<16x32xf32>
    %24 = arith.subf %16, %23 : vector<16x32xf32>
    %25 = arith.mulf %24, %24 : vector<16x32xf32>
    %cst_19 = arith.constant dense<0.000000e+00> : vector<16xf32>
    %26 = vector.multi_reduction <add>, %25, %cst_19 [1] : vector<16x32xf32> to vector<16xf32>
    %27 = vector.shape_cast %26 : vector<16xf32> to vector<16x1xf32>
    %cst_20 = arith.constant 3.200000e+01 : f32
    %28 = vector.broadcast %cst_20 : f32 to vector<16x1xf32>
    %29 = arith.divf %27, %28 : vector<16x1xf32>
    %30 = vector.broadcast %22 : vector<16x1xf32> to vector<16x32xf32>
    %31 = arith.subf %16, %30 : vector<16x32xf32>
    %cst_21 = arith.constant 9.99999974E-6 : f32
    %32 = vector.broadcast %cst_21 : f32 to vector<16x1xf32>
    %33 = arith.addf %29, %32 : vector<16x1xf32>
    %34 = math.rsqrt %33 : vector<16x1xf32>
    %35 = vector.broadcast %34 : vector<16x1xf32> to vector<16x32xf32>
    %36 = arith.mulf %31, %35 : vector<16x32xf32>
    %37 = vector.broadcast %17 : vector<1x32xf32> to vector<16x32xf32>
    %38 = arith.mulf %36, %37 : vector<16x32xf32>
    %39 = vector.broadcast %18 : vector<1x32xf32> to vector<16x32xf32>
    %40 = arith.addf %38, %39 : vector<16x32xf32>
    %c0_22 = arith.constant 0 : index
    %c0_23 = arith.constant 0 : index
    %41 = vector.load %arg9[%c0_22, %c0_23] : memref<16x32xf32, #tpu.memory_space<vmem>>, vector<16x32xf32>
    tpu.vector_store %arg9[%c0_22, %c0_23], %40 {strides = array<i32>} : memref<16x32xf32, #tpu.memory_space<vmem>>, vector<16x32xf32>,
    return
  }
  func.func @transform_0(%arg0: i32) -> (i32, i32) {
    %c0_i32 = arith.constant 0 : i32
    %c0_i32_0 = arith.constant 0 : i32
    return %arg0, %c0_i32 : i32, i32
  }
  func.func @transform_1(%arg0: i32) -> (i32, i32) {
    %c0_i32 = arith.constant 0 : i32
    %c0_i32_0 = arith.constant 0 : i32
    %c0_i32_1 = arith.constant 0 : i32
    return %c0_i32, %c0_i32_0 : i32, i32
  }
  func.func @transform_2(%arg0: i32) -> (i32, i32) {
    %c0_i32 = arith.constant 0 : i32
    %c0_i32_0 = arith.constant 0 : i32
    %c0_i32_1 = arith.constant 0 : i32
    return %c0_i32, %c0_i32_0 : i32, i32
  }
  func.func @transform_3(%arg0: i32) -> (i32, i32) {
    %c0_i32 = arith.constant 0 : i32
    %c0_i32_0 = arith.constant 0 : i32
    %c0_i32_1 = arith.constant 0 : i32
    return %c0_i32, %c0_i32_0 : i32, i32
  }
  func.func @transform_4(%arg0: i32) -> (i32, i32) {
    %c0_i32 = arith.constant 0 : i32
    %c0_i32_0 = arith.constant 0 : i32
    %c0_i32_1 = arith.constant 0 : i32
    return %c0_i32, %c0_i32_0 : i32, i32
  }
  func.func @transform_5(%arg0: i32) -> (i32, i32) {
    %c0_i32 = arith.constant 0 : i32
    %c0_i32_0 = arith.constant 0 : i32
    return %arg0, %c0_i32 : i32, i32
  }
  func.func @transform_6(%arg0: i32) -> (i32, i32) {
    %c0_i32 = arith.constant 0 : i32
    %c0_i32_0 = arith.constant 0 : i32
    %c0_i32_1 = arith.constant 0 : i32
    return %c0_i32, %c0_i32_0 : i32, i32
  }
  func.func @transform_7(%arg0: i32) -> (i32, i32) {
    %c0_i32 = arith.constant 0 : i32
    %c0_i32_0 = arith.constant 0 : i32
    %c0_i32_1 = arith.constant 0 : i32
    return %c0_i32, %c0_i32_0 : i32, i32
  }
  func.func @transform_8(%arg0: i32) -> (i32, i32) {
    %c0_i32 = arith.constant 0 : i32
    %c0_i32_0 = arith.constant 0 : i32
    return %arg0, %c0_i32 : i32, i32
  }
}

module attributes {stable_mosaic.version = 11 : i64} {
  func.func @_linear_kernel(%arg0: i32, %arg1: i32, %arg2: i32, %arg3: memref<16x32xf32, #tpu.memory_space<vmem>>, %arg4: memref<1x32xf32, #tpu.memory_space<vmem>>, %arg5: memref<32x128xbf16, #tpu.memory_space<vmem>>, %arg6: memref<16x128xf32, #tpu.memory_space<vmem>>, %arg7: memref<16x128xf32, #tpu.memory_space<vmem>>) attributes {dimension_semantics = [#tpu.dimension_semantics<parallel>, #tpu.dimension_semantics<parallel>, #tpu.dimension_semantics<arbitrary>], iteration_bounds = array<i64: 1, 1, 1>, scalar_prefetch = 0 : i64, scratch_operands = 1 : i64, tpu.core_type = #tpu.core_type<tc>, window_params = [{transform_indices = @transform_0, window_bounds = array<i64: 16, 32>}, {pipeline_mode = #tpu.pipeline_mode<synchronous>, transform_indices = @transform_1, window_bounds = array<i64: 1, 32>}, {transform_indices = @transform_2, window_bounds = array<i64: 32, 128>}, {transform_indices = @transform_3, window_bounds = array<i64: 16, 128>}]} {
    %c0_i32 = arith.constant 0 : i32
    %0 = arith.cmpi eq, %arg2, %c0_i32 : i32
    %1 = arith.extui %0 : i1 to i32
    %c0_i32_0 = arith.constant 0 : i32
    %2 = arith.cmpi ne, %1, %c0_i32_0 : i32
    scf.if %2 {
      %cst_15 = arith.constant 0.000000e+00 : f32
      %26 = vector.broadcast %cst_15 : f32 to vector<16x128xf32>
      %c0_16 = arith.constant 0 : index
      %c0_17 = arith.constant 0 : index
      %27 = vector.load %arg7[%c0_16, %c0_17] : memref<16x128xf32, #tpu.memory_space<vmem>>, vector<16x128xf32>
      tpu.vector_store %arg7[%c0_16, %c0_17], %26 {strides = array<i32>} : memref<16x128xf32, #tpu.memory_space<vmem>>, vector<16x128xf32>,
    } else {
    }
    %c0 = arith.constant 0 : index
    %c0_1 = arith.constant 0 : index
    %3 = vector.load %arg3[%c0, %c0_1] : memref<16x32xf32, #tpu.memory_space<vmem>>, vector<16x32xf32>
    %4 = arith.mulf %3, %3 : vector<16x32xf32>
    %cst = arith.constant dense<0.000000e+00> : vector<16xf32>
    %5 = vector.multi_reduction <add>, %4, %cst [1] : vector<16x32xf32> to vector<16xf32>
    %6 = vector.shape_cast %5 : vector<16xf32> to vector<16x1xf32>
    %cst_2 = arith.constant 3.200000e+01 : f32
    %7 = vector.broadcast %cst_2 : f32 to vector<16x1xf32>
    %8 = arith.divf %6, %7 : vector<16x1xf32>
    %cst_3 = arith.constant 9.99999974E-6 : f32
    %9 = vector.broadcast %cst_3 : f32 to vector<16x1xf32>
    %10 = arith.addf %8, %9 : vector<16x1xf32>
    %11 = math.rsqrt %10 : vector<16x1xf32>
    %12 = vector.broadcast %11 : vector<16x1xf32> to vector<16x32xf32>
    %13 = arith.mulf %3, %12 : vector<16x32xf32>
    %c0_4 = arith.constant 0 : index
    %c0_5 = arith.constant 0 : index
    %14 = vector.load %arg4[%c0_4, %c0_5] : memref<1x32xf32, #tpu.memory_space<vmem>>, vector<1x32xf32>
    %15 = vector.broadcast %14 : vector<1x32xf32> to vector<16x32xf32>
    %16 = arith.mulf %13, %15 : vector<16x32xf32>
    %c0_6 = arith.constant 0 : index
    %c0_7 = arith.constant 0 : index
    %17 = vector.load %arg7[%c0_6, %c0_7] : memref<16x128xf32, #tpu.memory_space<vmem>>, vector<16x128xf32>
    %18 = arith.truncf %16 : vector<16x32xf32> to vector<16x32xbf16>
    %c0_8 = arith.constant 0 : index
    %c0_9 = arith.constant 0 : index
    %19 = vector.load %arg5[%c0_8, %c0_9] : memref<32x128xbf16, #tpu.memory_space<vmem>>, vector<32x128xbf16>
    %cst_10 = arith.constant dense<0.000000e+00> : vector<16x128xf32>
    %20 = tpu.matmul %18, %19, %cst_10 {dimension_numbers = #tpu.dot_dimension_numbers<[1], [0], [0], [1], [0, 0, 1, 1], [], []>} : vector<16x32xbf16>, vector<32x128xbf16>, vector<16x128xf32> -> vector<16x128xf32>
    %21 = arith.addf %17, %20 : vector<16x128xf32>
    %c0_11 = arith.constant 0 : index
    %c0_12 = arith.constant 0 : index
    %22 = vector.load %arg7[%c0_11, %c0_12] : memref<16x128xf32, #tpu.memory_space<vmem>>, vector<16x128xf32>
    tpu.vector_store %arg7[%c0_11, %c0_12], %21 {strides = array<i32>} : memref<16x128xf32, #tpu.memory_space<vmem>>, vector<16x128xf32>,
    %c0_i32_13 = arith.constant 0 : i32
    %23 = arith.cmpi eq, %arg2, %c0_i32_13 : i32
    %24 = arith.extui %23 : i1 to i32
    %c0_i32_14 = arith.constant 0 : i32
    %25 = arith.cmpi ne, %24, %c0_i32_14 : i32
    scf.if %25 {
      %c0_15 = arith.constant 0 : index
      %c0_16 = arith.constant 0 : index
      %26 = vector.load %arg7[%c0_15, %c0_16] : memref<16x128xf32, #tpu.memory_space<vmem>>, vector<16x128xf32>
      %c0_17 = arith.constant 0 : index
      %c0_18 = arith.constant 0 : index
      %27 = vector.load %arg6[%c0_17, %c0_18] : memref<16x128xf32, #tpu.memory_space<vmem>>, vector<16x128xf32>
      tpu.vector_store %arg6[%c0_17, %c0_18], %26 {strides = array<i32>} : memref<16x128xf32, #tpu.memory_space<vmem>>, vector<16x128xf32>,
    } else {
    }
    return
  }
  func.func @transform_0(%arg0: i32, %arg1: i32, %arg2: i32) -> (i32, i32) {
    %c0_i32 = arith.constant 0 : i32
    return %arg0, %arg2 : i32, i32
  }
  func.func @transform_1(%arg0: i32, %arg1: i32, %arg2: i32) -> (i32, i32) {
    %c0_i32 = arith.constant 0 : i32
    %c0_i32_0 = arith.constant 0 : i32
    %c0_i32_1 = arith.constant 0 : i32
    return %c0_i32, %c0_i32_0 : i32, i32
  }
  func.func @transform_2(%arg0: i32, %arg1: i32, %arg2: i32) -> (i32, i32) {
    %c0_i32 = arith.constant 0 : i32
    return %arg2, %arg1 : i32, i32
  }
  func.func @transform_3(%arg0: i32, %arg1: i32, %arg2: i32) -> (i32, i32) {
    %c0_i32 = arith.constant 0 : i32
    return %arg0, %arg1 : i32, i32
  }
}

module attributes {stable_mosaic.version = 11 : i64} {
  func.func @_linear_kernel(%arg0: i32, %arg1: i32, %arg2: i32, %arg3: memref<16x64xf32, #tpu.memory_space<vmem>>, %arg4: memref<64x32xbf16, #tpu.memory_space<vmem>>, %arg5: memref<16x32xf32, #tpu.memory_space<vmem>>, %arg6: memref<16x32xf32, #tpu.memory_space<vmem>>, %arg7: memref<16x32xf32, #tpu.memory_space<vmem>>) attributes {dimension_semantics = [#tpu.dimension_semantics<parallel>, #tpu.dimension_semantics<parallel>, #tpu.dimension_semantics<arbitrary>], iteration_bounds = array<i64: 1, 1, 1>, scalar_prefetch = 0 : i64, scratch_operands = 1 : i64, tpu.core_type = #tpu.core_type<tc>, window_params = [{transform_indices = @transform_0, window_bounds = array<i64: 16, 64>}, {transform_indices = @transform_1, window_bounds = array<i64: 64, 32>}, {transform_indices = @transform_2, window_bounds = array<i64: 16, 32>}, {transform_indices = @transform_3, window_bounds = array<i64: 16, 32>}]} {
    %c0_i32 = arith.constant 0 : i32
    %0 = arith.cmpi eq, %arg2, %c0_i32 : i32
    %1 = arith.extui %0 : i1 to i32
    %c0_i32_0 = arith.constant 0 : i32
    %2 = arith.cmpi ne, %1, %c0_i32_0 : i32
    scf.if %2 {
      %cst_10 = arith.constant 0.000000e+00 : f32
      %13 = vector.broadcast %cst_10 : f32 to vector<16x32xf32>
      %c0_11 = arith.constant 0 : index
      %c0_12 = arith.constant 0 : index
      %14 = vector.load %arg7[%c0_11, %c0_12] : memref<16x32xf32, #tpu.memory_space<vmem>>, vector<16x32xf32>
      tpu.vector_store %arg7[%c0_11, %c0_12], %13 {strides = array<i32>} : memref<16x32xf32, #tpu.memory_space<vmem>>, vector<16x32xf32>,
    } else {
    }
    %c0 = arith.constant 0 : index
    %c0_1 = arith.constant 0 : index
    %3 = vector.load %arg3[%c0, %c0_1] : memref<16x64xf32, #tpu.memory_space<vmem>>, vector<16x64xf32>
    %c0_2 = arith.constant 0 : index
    %c0_3 = arith.constant 0 : index
    %4 = vector.load %arg7[%c0_2, %c0_3] : memref<16x32xf32, #tpu.memory_space<vmem>>, vector<16x32xf32>
    %5 = arith.truncf %3 : vector<16x64xf32> to vector<16x64xbf16>
    %c0_4 = arith.constant 0 : index
    %c0_5 = arith.constant 0 : index
    %6 = vector.load %arg4[%c0_4, %c0_5] : memref<64x32xbf16, #tpu.memory_space<vmem>>, vector<64x32xbf16>
    %cst = arith.constant dense<0.000000e+00> : vector<16x32xf32>
    %7 = tpu.matmul %5, %6, %cst {dimension_numbers = #tpu.dot_dimension_numbers<[1], [0], [0], [1], [0, 0, 1, 1], [], []>} : vector<16x64xbf16>, vector<64x32xbf16>, vector<16x32xf32> -> vector<16x32xf32>
    %8 = arith.addf %4, %7 : vector<16x32xf32>
    %c0_6 = arith.constant 0 : index
    %c0_7 = arith.constant 0 : index
    %9 = vector.load %arg7[%c0_6, %c0_7] : memref<16x32xf32, #tpu.memory_space<vmem>>, vector<16x32xf32>
    tpu.vector_store %arg7[%c0_6, %c0_7], %8 {strides = array<i32>} : memref<16x32xf32, #tpu.memory_space<vmem>>, vector<16x32xf32>,
    %c0_i32_8 = arith.constant 0 : i32
    %10 = arith.cmpi eq, %arg2, %c0_i32_8 : i32
    %11 = arith.extui %10 : i1 to i32
    %c0_i32_9 = arith.constant 0 : i32
    %12 = arith.cmpi ne, %11, %c0_i32_9 : i32
    scf.if %12 {
      %c0_10 = arith.constant 0 : index
      %c0_11 = arith.constant 0 : index
      %13 = vector.load %arg7[%c0_10, %c0_11] : memref<16x32xf32, #tpu.memory_space<vmem>>, vector<16x32xf32>
      %c0_12 = arith.constant 0 : index
      %c0_13 = arith.constant 0 : index
      %14 = vector.load %arg5[%c0_12, %c0_13] : memref<16x32xf32, #tpu.memory_space<vmem>>, vector<16x32xf32>
      %15 = arith.addf %13, %14 : vector<16x32xf32>
      %c0_14 = arith.constant 0 : index
      %c0_15 = arith.constant 0 : index
      %16 = vector.load %arg6[%c0_14, %c0_15] : memref<16x32xf32, #tpu.memory_space<vmem>>, vector<16x32xf32>
      tpu.vector_store %arg6[%c0_14, %c0_15], %15 {strides = array<i32>} : memref<16x32xf32, #tpu.memory_space<vmem>>, vector<16x32xf32>,
    } else {
    }
    return
  }
  func.func @transform_0(%arg0: i32, %arg1: i32, %arg2: i32) -> (i32, i32) {
    %c0_i32 = arith.constant 0 : i32
    return %arg0, %arg2 : i32, i32
  }
  func.func @transform_1(%arg0: i32, %arg1: i32, %arg2: i32) -> (i32, i32) {
    %c0_i32 = arith.constant 0 : i32
    return %arg2, %arg1 : i32, i32
  }
  func.func @transform_2(%arg0: i32, %arg1: i32, %arg2: i32) -> (i32, i32) {
    %c0_i32 = arith.constant 0 : i32
    return %arg0, %arg1 : i32, i32
  }
  func.func @transform_3(%arg0: i32, %arg1: i32, %arg2: i32) -> (i32, i32) {
    %c0_i32 = arith.constant 0 : i32
    return %arg0, %arg1 : i32, i32
  }
}

module attributes {stable_mosaic.version = 11 : i64} {
  func.func @_mamba_kernel(%arg0: i32, %arg1: memref<1x8x128xf32, #tpu.memory_space<vmem>>, %arg2: memref<4x64xf32, #tpu.memory_space<vmem>>, %arg3: memref<1x64xf32, #tpu.memory_space<vmem>>, %arg4: memref<64x66xbf16, #tpu.memory_space<vmem>>, %arg5: memref<2x64xf32, #tpu.memory_space<vmem>>, %arg6: memref<1x64xf32, #tpu.memory_space<vmem>>, %arg7: memref<64x32xf32, #tpu.memory_space<vmem>>, %arg8: memref<1x64xf32, #tpu.memory_space<vmem>>, %arg9: memref<1x8x64xf32, #tpu.memory_space<vmem>>, %arg10: memref<8x64x32xf32, #tpu.memory_space<vmem>>, %arg11: memref<8x64x32xf32, #tpu.memory_space<vmem>>, %arg12: memref<8x64x32xf32, #tpu.memory_space<vmem>>) attributes {dimension_semantics = [#tpu.dimension_semantics<parallel>], iteration_bounds = array<i64: 2>, scalar_prefetch = 0 : i64, scratch_operands = 3 : i64, tpu.core_type = #tpu.core_type<tc>, window_params = [{transform_indices = @transform_0, window_bounds = array<i64: 1, 8, 128>}, {pipeline_mode = #tpu.pipeline_mode<synchronous>, transform_indices = @transform_1, window_bounds = array<i64: 4, 64>}, {pipeline_mode = #tpu.pipeline_mode<synchronous>, transform_indices = @transform_2, window_bounds = array<i64: 1, 64>}, {pipeline_mode = #tpu.pipeline_mode<synchronous>, transform_indices = @transform_3, window_bounds = array<i64: 64, 66>}, {pipeline_mode = #tpu.pipeline_mode<synchronous>, transform_indices = @transform_4, window_bounds = array<i64: 2, 64>}, {pipeline_mode = #tpu.pipeline_mode<synchronous>, transform_indices = @transform_5, window_bounds = array<i64: 1, 64>}, {pipeline_mode = #tpu.pipeline_mode<synchronous>, transform_indices = @transform_6, window_bounds = array<i64: 64, 32>}, {pipeline_mode = #tpu.pipeline_mode<synchronous>, transform_indices = @transform_7, window_bounds = array<i64: 1, 64>}, {transform_indices = @transform_8, window_bounds = array<i64: 1, 8, 64>}]} {
    %c0 = arith.constant 0 : index
    %c0_0 = arith.constant 0 : index
    %c0_1 = arith.constant 0 : index
    %0 = vector.load %arg1[%c0, %c0_0, %c0_1] : memref<1x8x128xf32, #tpu.memory_space<vmem>>, vector<1x8x128xf32>
    %1 = vector.shape_cast %0 : vector<1x8x128xf32> to vector<8x128xf32>
    %2 = vector.extract_strided_slice %1 {offsets = [0, 0], sizes = [8, 64], strides = [1, 1]} : vector<8x128xf32> to vector<8x64xf32>
    %3 = vector.extract_strided_slice %1 {offsets = [0, 64], sizes = [8, 64], strides = [1, 1]} : vector<8x128xf32> to vector<8x64xf32>
    %c0_2 = arith.constant 0 : index
    %c0_3 = arith.constant 0 : index
    %4 = vector.load %arg2[%c0_2, %c0_3] : memref<4x64xf32, #tpu.memory_space<vmem>>, vector<4x64xf32>
    %5 = vector.extract_strided_slice %4 {offsets = [3, 0], sizes = [1, 64], strides = [1, 1]} : vector<4x64xf32> to vector<1x64xf32>
    %6 = vector.broadcast %5 : vector<1x64xf32> to vector<8x64xf32>
    %7 = arith.mulf %2, %6 : vector<8x64xf32>
    %cst = arith.constant 0.000000e+00 : f32
    %8 = vector.broadcast %cst : f32 to vector<3x64xf32>
    %9 = vector.extract_strided_slice %2 {offsets = [0, 0], sizes = [5, 64], strides = [1, 1]} : vector<8x64xf32> to vector<5x64xf32>
    %10 = tpu.concatenate %8, %9 in 0 : vector<3x64xf32>, vector<5x64xf32> -> vector<8x64xf32>
    %11 = vector.extract_strided_slice %4 {offsets = [0, 0], sizes = [1, 64], strides = [1, 1]} : vector<4x64xf32> to vector<1x64xf32>
    %12 = vector.broadcast %11 : vector<1x64xf32> to vector<8x64xf32>
    %13 = arith.mulf %10, %12 : vector<8x64xf32>
    %14 = arith.addf %7, %13 : vector<8x64xf32>
    %cst_4 = arith.constant 0.000000e+00 : f32
    %15 = vector.broadcast %cst_4 : f32 to vector<2x64xf32>
    %16 = vector.extract_strided_slice %2 {offsets = [0, 0], sizes = [6, 64], strides = [1, 1]} : vector<8x64xf32> to vector<6x64xf32>
    %17 = tpu.concatenate %15, %16 in 0 : vector<2x64xf32>, vector<6x64xf32> -> vector<8x64xf32>
    %18 = vector.extract_strided_slice %4 {offsets = [1, 0], sizes = [1, 64], strides = [1, 1]} : vector<4x64xf32> to vector<1x64xf32>
    %19 = vector.broadcast %18 : vector<1x64xf32> to vector<8x64xf32>
    %20 = arith.mulf %17, %19 : vector<8x64xf32>
    %21 = arith.addf %14, %20 : vector<8x64xf32>
    %cst_5 = arith.constant 0.000000e+00 : f32
    %22 = vector.broadcast %cst_5 : f32 to vector<1x64xf32>
    %23 = vector.extract_strided_slice %2 {offsets = [0, 0], sizes = [7, 64], strides = [1, 1]} : vector<8x64xf32> to vector<7x64xf32>
    %24 = tpu.concatenate %22, %23 in 0 : vector<1x64xf32>, vector<7x64xf32> -> vector<8x64xf32>
    %25 = vector.extract_strided_slice %4 {offsets = [2, 0], sizes = [1, 64], strides = [1, 1]} : vector<4x64xf32> to vector<1x64xf32>
    %26 = vector.broadcast %25 : vector<1x64xf32> to vector<8x64xf32>
    %27 = arith.mulf %24, %26 : vector<8x64xf32>
    %28 = arith.addf %21, %27 : vector<8x64xf32>
    %c0_6 = arith.constant 0 : index
    %c0_7 = arith.constant 0 : index
    %29 = vector.load %arg3[%c0_6, %c0_7] : memref<1x64xf32, #tpu.memory_space<vmem>>, vector<1x64xf32>
    %30 = vector.broadcast %29 : vector<1x64xf32> to vector<8x64xf32>
    %31 = arith.addf %28, %30 : vector<8x64xf32>
    %cst_8 = arith.constant 0.000000e+00 : f32
    %32 = vector.broadcast %cst_8 : f32 to vector<8x64xf32>
    %33 = arith.subf %32, %31 : vector<8x64xf32>
    %34 = math.exp %33 : vector<8x64xf32>
    %cst_9 = arith.constant 1.000000e+00 : f32
    %35 = vector.broadcast %cst_9 : f32 to vector<8x64xf32>
    %36 = arith.addf %35, %34 : vector<8x64xf32>
    %37 = arith.divf %31, %36 : vector<8x64xf32>
    %38 = arith.truncf %37 : vector<8x64xf32> to vector<8x64xbf16>
    %c0_10 = arith.constant 0 : index
    %c0_11 = arith.constant 0 : index
    %39 = vector.load %arg4[%c0_10, %c0_11] : memref<64x66xbf16, #tpu.memory_space<vmem>>, vector<64x66xbf16>
    %cst_12 = arith.constant dense<0.000000e+00> : vector<8x66xf32>
    %40 = tpu.matmul %38, %39, %cst_12 {dimension_numbers = #tpu.dot_dimension_numbers<[1], [0], [0], [1], [0, 0, 1, 1], [], []>} : vector<8x64xbf16>, vector<64x66xbf16>, vector<8x66xf32> -> vector<8x66xf32>
    %41 = vector.extract_strided_slice %40 {offsets = [0, 0], sizes = [8, 2], strides = [1, 1]} : vector<8x66xf32> to vector<8x2xf32>
    %c0_13 = arith.constant 0 : index
    %c0_14 = arith.constant 0 : index
    %42 = vector.load %arg5[%c0_13, %c0_14] : memref<2x64xf32, #tpu.memory_space<vmem>>, vector<2x64xf32>
    %cst_15 = arith.constant dense<0.000000e+00> : vector<8x64xf32>
    %43 = tpu.matmul %41, %42, %cst_15 {dimension_numbers = #tpu.dot_dimension_numbers<[1], [0], [0], [1], [0, 0, 1, 1], [], []>} : vector<8x2xf32>, vector<2x64xf32>, vector<8x64xf32> -> vector<8x64xf32>
    %c0_16 = arith.constant 0 : index
    %c0_17 = arith.constant 0 : index
    %44 = vector.load %arg6[%c0_16, %c0_17] : memref<1x64xf32, #tpu.memory_space<vmem>>, vector<1x64xf32>
    %45 = vector.broadcast %44 : vector<1x64xf32> to vector<8x64xf32>
    %46 = arith.addf %43, %45 : vector<8x64xf32>
    %cst_18 = arith.constant 0.000000e+00 : f32
    %47 = vector.broadcast %cst_18 : f32 to vector<8x64xf32>
    %48 = arith.maximumf %46, %47 : vector<8x64xf32>
    %49 = math.absf %46 : vector<8x64xf32>
    %cst_19 = arith.constant 0.000000e+00 : f32
    %50 = vector.broadcast %cst_19 : f32 to vector<8x64xf32>
    %51 = arith.subf %50, %49 : vector<8x64xf32>
    %52 = math.exp %51 : vector<8x64xf32>
    %cst_20 = arith.constant 1.000000e+00 : f32
    %53 = vector.broadcast %cst_20 : f32 to vector<8x64xf32>
    %54 = arith.addf %53, %52 : vector<8x64xf32>
    %55 = math.log %54 : vector<8x64xf32>
    %56 = arith.addf %48, %55 : vector<8x64xf32>
    %57 = vector.extract_strided_slice %40 {offsets = [0, 2], sizes = [8, 32], strides = [1, 1]} : vector<8x66xf32> to vector<8x32xf32>
    %58 = vector.extract_strided_slice %40 {offsets = [0, 34], sizes = [8, 32], strides = [1, 1]} : vector<8x66xf32> to vector<8x32xf32>
    %c0_21 = arith.constant 0 : index
    %c0_22 = arith.constant 0 : index
    %59 = vector.load %arg7[%c0_21, %c0_22] : memref<64x32xf32, #tpu.memory_space<vmem>>, vector<64x32xf32>
    %60 = vector.shape_cast %56 : vector<8x64xf32> to vector<8x64x1xf32>
    %61 = vector.shape_cast %59 : vector<64x32xf32> to vector<1x64x32xf32>
    %62 = vector.broadcast %60 : vector<8x64x1xf32> to vector<8x64x32xf32>
    %63 = vector.broadcast %61 : vector<1x64x32xf32> to vector<8x64x32xf32>
    %64 = arith.mulf %62, %63 : vector<8x64x32xf32>
    %65 = math.exp %64 : vector<8x64x32xf32>
    %c0_23 = arith.constant 0 : index
    %c0_24 = arith.constant 0 : index
    %c0_25 = arith.constant 0 : index
    %66 = vector.load %arg10[%c0_23, %c0_24, %c0_25] : memref<8x64x32xf32, #tpu.memory_space<vmem>>, vector<8x64x32xf32>
    tpu.vector_store %arg10[%c0_23, %c0_24, %c0_25], %65 {strides = array<i32>} : memref<8x64x32xf32, #tpu.memory_space<vmem>>, vector<8x64x32xf32>,
    %67 = arith.mulf %56, %37 : vector<8x64xf32>
    %68 = vector.shape_cast %67 : vector<8x64xf32> to vector<8x64x1xf32>
    %69 = vector.shape_cast %57 : vector<8x32xf32> to vector<8x1x32xf32>
    %70 = vector.broadcast %68 : vector<8x64x1xf32> to vector<8x64x32xf32>
    %71 = vector.broadcast %69 : vector<8x1x32xf32> to vector<8x64x32xf32>
    %72 = arith.mulf %70, %71 : vector<8x64x32xf32>
    %c0_26 = arith.constant 0 : index
    %c0_27 = arith.constant 0 : index
    %c0_28 = arith.constant 0 : index
    %73 = vector.load %arg11[%c0_26, %c0_27, %c0_28] : memref<8x64x32xf32, #tpu.memory_space<vmem>>, vector<8x64x32xf32>
    tpu.vector_store %arg11[%c0_26, %c0_27, %c0_28], %72 {strides = array<i32>} : memref<8x64x32xf32, #tpu.memory_space<vmem>>, vector<8x64x32xf32>,
    %cst_29 = arith.constant 0.000000e+00 : f32
    %74 = vector.broadcast %cst_29 : f32 to vector<64x32xf32>
    %c0_i32 = arith.constant 0 : i32
    %75 = arith.index_cast %c0_i32 : i32 to index
    %c0_30 = arith.constant 0 : index
    %c0_31 = arith.constant 0 : index
    %76 = vector.load %arg10[%75, %c0_30, %c0_31] : memref<8x64x32xf32, #tpu.memory_space<vmem>>, vector<1x64x32xf32>
    %77 = vector.shape_cast %76 : vector<1x64x32xf32> to vector<64x32xf32>
    %78 = arith.mulf %77, %74 : vector<64x32xf32>
    %79 = arith.index_cast %c0_i32 : i32 to index
    %c0_32 = arith.constant 0 : index
    %c0_33 = arith.constant 0 : index
    %80 = vector.load %arg11[%79, %c0_32, %c0_33] : memref<8x64x32xf32, #tpu.memory_space<vmem>>, vector<1x64x32xf32>
    %81 = vector.shape_cast %80 : vector<1x64x32xf32> to vector<64x32xf32>
    %82 = arith.addf %78, %81 : vector<64x32xf32>
    %83 = arith.index_cast %c0_i32 : i32 to index
    %c0_34 = arith.constant 0 : index
    %c0_35 = arith.constant 0 : index
    %84 = vector.load %arg12[%83, %c0_34, %c0_35] : memref<8x64x32xf32, #tpu.memory_space<vmem>>, vector<1x64x32xf32>
    %85 = vector.shape_cast %84 : vector<1x64x32xf32> to vector<64x32xf32>
    %86 = vector.shape_cast %82 : vector<64x32xf32> to vector<1x64x32xf32>
    tpu.vector_store %arg12[%83, %c0_34, %c0_35], %86 {strides = array<i32>} : memref<8x64x32xf32, #tpu.memory_space<vmem>>, vector<1x64x32xf32>,
    %c1_i32 = arith.constant 1 : i32
    %87 = arith.index_cast %c1_i32 : i32 to index
    %c0_36 = arith.constant 0 : index
    %c0_37 = arith.constant 0 : index
    %88 = vector.load %arg10[%87, %c0_36, %c0_37] : memref<8x64x32xf32, #tpu.memory_space<vmem>>, vector<1x64x32xf32>
    %89 = vector.shape_cast %88 : vector<1x64x32xf32> to vector<64x32xf32>
    %90 = arith.mulf %89, %82 : vector<64x32xf32>
    %91 = arith.index_cast %c1_i32 : i32 to index
    %c0_38 = arith.constant 0 : index
    %c0_39 = arith.constant 0 : index
    %92 = vector.load %arg11[%91, %c0_38, %c0_39] : memref<8x64x32xf32, #tpu.memory_space<vmem>>, vector<1x64x32xf32>
    %93 = vector.shape_cast %92 : vector<1x64x32xf32> to vector<64x32xf32>
    %94 = arith.addf %90, %93 : vector<64x32xf32>
    %95 = arith.index_cast %c1_i32 : i32 to index
    %c0_40 = arith.constant 0 : index
    %c0_41 = arith.constant 0 : index
    %96 = vector.load %arg12[%95, %c0_40, %c0_41] : memref<8x64x32xf32, #tpu.memory_space<vmem>>, vector<1x64x32xf32>
    %97 = vector.shape_cast %96 : vector<1x64x32xf32> to vector<64x32xf32>
    %98 = vector.shape_cast %94 : vector<64x32xf32> to vector<1x64x32xf32>
    tpu.vector_store %arg12[%95, %c0_40, %c0_41], %98 {strides = array<i32>} : memref<8x64x32xf32, #tpu.memory_space<vmem>>, vector<1x64x32xf32>,
    %c2_i32 = arith.constant 2 : i32
    %99 = arith.index_cast %c2_i32 : i32 to index
    %c0_42 = arith.constant 0 : index
    %c0_43 = arith.constant 0 : index
    %100 = vector.load %arg10[%99, %c0_42, %c0_43] : memref<8x64x32xf32, #tpu.memory_space<vmem>>, vector<1x64x32xf32>
    %101 = vector.shape_cast %100 : vector<1x64x32xf32> to vector<64x32xf32>
    %102 = arith.mulf %101, %94 : vector<64x32xf32>
    %103 = arith.index_cast %c2_i32 : i32 to index
    %c0_44 = arith.constant 0 : index
    %c0_45 = arith.constant 0 : index
    %104 = vector.load %arg11[%103, %c0_44, %c0_45] : memref<8x64x32xf32, #tpu.memory_space<vmem>>, vector<1x64x32xf32>
    %105 = vector.shape_cast %104 : vector<1x64x32xf32> to vector<64x32xf32>
    %106 = arith.addf %102, %105 : vector<64x32xf32>
    %107 = arith.index_cast %c2_i32 : i32 to index
    %c0_46 = arith.constant 0 : index
    %c0_47 = arith.constant 0 : index
    %108 = vector.load %arg12[%107, %c0_46, %c0_47] : memref<8x64x32xf32, #tpu.memory_space<vmem>>, vector<1x64x32xf32>
    %109 = vector.shape_cast %108 : vector<1x64x32xf32> to vector<64x32xf32>
    %110 = vector.shape_cast %106 : vector<64x32xf32> to vector<1x64x32xf32>
    tpu.vector_store %arg12[%107, %c0_46, %c0_47], %110 {strides = array<i32>} : memref<8x64x32xf32, #tpu.memory_space<vmem>>, vector<1x64x32xf32>,
    %c3_i32 = arith.constant 3 : i32
    %111 = arith.index_cast %c3_i32 : i32 to index
    %c0_48 = arith.constant 0 : index
    %c0_49 = arith.constant 0 : index
    %112 = vector.load %arg10[%111, %c0_48, %c0_49] : memref<8x64x32xf32, #tpu.memory_space<vmem>>, vector<1x64x32xf32>
    %113 = vector.shape_cast %112 : vector<1x64x32xf32> to vector<64x32xf32>
    %114 = arith.mulf %113, %106 : vector<64x32xf32>
    %115 = arith.index_cast %c3_i32 : i32 to index
    %c0_50 = arith.constant 0 : index
    %c0_51 = arith.constant 0 : index
    %116 = vector.load %arg11[%115, %c0_50, %c0_51] : memref<8x64x32xf32, #tpu.memory_space<vmem>>, vector<1x64x32xf32>
    %117 = vector.shape_cast %116 : vector<1x64x32xf32> to vector<64x32xf32>
    %118 = arith.addf %114, %117 : vector<64x32xf32>
    %119 = arith.index_cast %c3_i32 : i32 to index
    %c0_52 = arith.constant 0 : index
    %c0_53 = arith.constant 0 : index
    %120 = vector.load %arg12[%119, %c0_52, %c0_53] : memref<8x64x32xf32, #tpu.memory_space<vmem>>, vector<1x64x32xf32>
    %121 = vector.shape_cast %120 : vector<1x64x32xf32> to vector<64x32xf32>
    %122 = vector.shape_cast %118 : vector<64x32xf32> to vector<1x64x32xf32>
    tpu.vector_store %arg12[%119, %c0_52, %c0_53], %122 {strides = array<i32>} : memref<8x64x32xf32, #tpu.memory_space<vmem>>, vector<1x64x32xf32>,
    %c4_i32 = arith.constant 4 : i32
    %123 = arith.index_cast %c4_i32 : i32 to index
    %c0_54 = arith.constant 0 : index
    %c0_55 = arith.constant 0 : index
    %124 = vector.load %arg10[%123, %c0_54, %c0_55] : memref<8x64x32xf32, #tpu.memory_space<vmem>>, vector<1x64x32xf32>
    %125 = vector.shape_cast %124 : vector<1x64x32xf32> to vector<64x32xf32>
    %126 = arith.mulf %125, %118 : vector<64x32xf32>
    %127 = arith.index_cast %c4_i32 : i32 to index
    %c0_56 = arith.constant 0 : index
    %c0_57 = arith.constant 0 : index
    %128 = vector.load %arg11[%127, %c0_56, %c0_57] : memref<8x64x32xf32, #tpu.memory_space<vmem>>, vector<1x64x32xf32>
    %129 = vector.shape_cast %128 : vector<1x64x32xf32> to vector<64x32xf32>
    %130 = arith.addf %126, %129 : vector<64x32xf32>
    %131 = arith.index_cast %c4_i32 : i32 to index
    %c0_58 = arith.constant 0 : index
    %c0_59 = arith.constant 0 : index
    %132 = vector.load %arg12[%131, %c0_58, %c0_59] : memref<8x64x32xf32, #tpu.memory_space<vmem>>, vector<1x64x32xf32>
    %133 = vector.shape_cast %132 : vector<1x64x32xf32> to vector<64x32xf32>
    %134 = vector.shape_cast %130 : vector<64x32xf32> to vector<1x64x32xf32>
    tpu.vector_store %arg12[%131, %c0_58, %c0_59], %134 {strides = array<i32>} : memref<8x64x32xf32, #tpu.memory_space<vmem>>, vector<1x64x32xf32>,
    %c5_i32 = arith.constant 5 : i32
    %135 = arith.index_cast %c5_i32 : i32 to index
    %c0_60 = arith.constant 0 : index
    %c0_61 = arith.constant 0 : index
    %136 = vector.load %arg10[%135, %c0_60, %c0_61] : memref<8x64x32xf32, #tpu.memory_space<vmem>>, vector<1x64x32xf32>
    %137 = vector.shape_cast %136 : vector<1x64x32xf32> to vector<64x32xf32>
    %138 = arith.mulf %137, %130 : vector<64x32xf32>
    %139 = arith.index_cast %c5_i32 : i32 to index
    %c0_62 = arith.constant 0 : index
    %c0_63 = arith.constant 0 : index
    %140 = vector.load %arg11[%139, %c0_62, %c0_63] : memref<8x64x32xf32, #tpu.memory_space<vmem>>, vector<1x64x32xf32>
    %141 = vector.shape_cast %140 : vector<1x64x32xf32> to vector<64x32xf32>
    %142 = arith.addf %138, %141 : vector<64x32xf32>
    %143 = arith.index_cast %c5_i32 : i32 to index
    %c0_64 = arith.constant 0 : index
    %c0_65 = arith.constant 0 : index
    %144 = vector.load %arg12[%143, %c0_64, %c0_65] : memref<8x64x32xf32, #tpu.memory_space<vmem>>, vector<1x64x32xf32>
    %145 = vector.shape_cast %144 : vector<1x64x32xf32> to vector<64x32xf32>
    %146 = vector.shape_cast %142 : vector<64x32xf32> to vector<1x64x32xf32>
    tpu.vector_store %arg12[%143, %c0_64, %c0_65], %146 {strides = array<i32>} : memref<8x64x32xf32, #tpu.memory_space<vmem>>, vector<1x64x32xf32>,
    %c6_i32 = arith.constant 6 : i32
    %147 = arith.index_cast %c6_i32 : i32 to index
    %c0_66 = arith.constant 0 : index
    %c0_67 = arith.constant 0 : index
    %148 = vector.load %arg10[%147, %c0_66, %c0_67] : memref<8x64x32xf32, #tpu.memory_space<vmem>>, vector<1x64x32xf32>
    %149 = vector.shape_cast %148 : vector<1x64x32xf32> to vector<64x32xf32>
    %150 = arith.mulf %149, %142 : vector<64x32xf32>
    %151 = arith.index_cast %c6_i32 : i32 to index
    %c0_68 = arith.constant 0 : index
    %c0_69 = arith.constant 0 : index
    %152 = vector.load %arg11[%151, %c0_68, %c0_69] : memref<8x64x32xf32, #tpu.memory_space<vmem>>, vector<1x64x32xf32>
    %153 = vector.shape_cast %152 : vector<1x64x32xf32> to vector<64x32xf32>
    %154 = arith.addf %150, %153 : vector<64x32xf32>
    %155 = arith.index_cast %c6_i32 : i32 to index
    %c0_70 = arith.constant 0 : index
    %c0_71 = arith.constant 0 : index
    %156 = vector.load %arg12[%155, %c0_70, %c0_71] : memref<8x64x32xf32, #tpu.memory_space<vmem>>, vector<1x64x32xf32>
    %157 = vector.shape_cast %156 : vector<1x64x32xf32> to vector<64x32xf32>
    %158 = vector.shape_cast %154 : vector<64x32xf32> to vector<1x64x32xf32>
    tpu.vector_store %arg12[%155, %c0_70, %c0_71], %158 {strides = array<i32>} : memref<8x64x32xf32, #tpu.memory_space<vmem>>, vector<1x64x32xf32>,
    %c7_i32 = arith.constant 7 : i32
    %159 = arith.index_cast %c7_i32 : i32 to index
    %c0_72 = arith.constant 0 : index
    %c0_73 = arith.constant 0 : index
    %160 = vector.load %arg10[%159, %c0_72, %c0_73] : memref<8x64x32xf32, #tpu.memory_space<vmem>>, vector<1x64x32xf32>
    %161 = vector.shape_cast %160 : vector<1x64x32xf32> to vector<64x32xf32>
    %162 = arith.mulf %161, %154 : vector<64x32xf32>
    %163 = arith.index_cast %c7_i32 : i32 to index
    %c0_74 = arith.constant 0 : index
    %c0_75 = arith.constant 0 : index
    %164 = vector.load %arg11[%163, %c0_74, %c0_75] : memref<8x64x32xf32, #tpu.memory_space<vmem>>, vector<1x64x32xf32>
    %165 = vector.shape_cast %164 : vector<1x64x32xf32> to vector<64x32xf32>
    %166 = arith.addf %162, %165 : vector<64x32xf32>
    %167 = arith.index_cast %c7_i32 : i32 to index
    %c0_76 = arith.constant 0 : index
    %c0_77 = arith.constant 0 : index
    %168 = vector.load %arg12[%167, %c0_76, %c0_77] : memref<8x64x32xf32, #tpu.memory_space<vmem>>, vector<1x64x32xf32>
    %169 = vector.shape_cast %168 : vector<1x64x32xf32> to vector<64x32xf32>
    %170 = vector.shape_cast %166 : vector<64x32xf32> to vector<1x64x32xf32>
    tpu.vector_store %arg12[%167, %c0_76, %c0_77], %170 {strides = array<i32>} : memref<8x64x32xf32, #tpu.memory_space<vmem>>, vector<1x64x32xf32>,
    %c8_i32 = arith.constant 8 : i32
    %c0_78 = arith.constant 0 : index
    %c0_79 = arith.constant 0 : index
    %c0_80 = arith.constant 0 : index
    %171 = vector.load %arg12[%c0_78, %c0_79, %c0_80] : memref<8x64x32xf32, #tpu.memory_space<vmem>>, vector<8x64x32xf32>
    %172 = vector.shape_cast %58 : vector<8x32xf32> to vector<8x1x32xf32>
    %173 = vector.broadcast %172 : vector<8x1x32xf32> to vector<8x64x32xf32>
    %174 = arith.mulf %171, %173 : vector<8x64x32xf32>
    %cst_81 = arith.constant dense<0.000000e+00> : vector<8x64xf32>
    %175 = vector.multi_reduction <add>, %174, %cst_81 [2] : vector<8x64x32xf32> to vector<8x64xf32>
    %c0_82 = arith.constant 0 : index
    %c0_83 = arith.constant 0 : index
    %176 = vector.load %arg8[%c0_82, %c0_83] : memref<1x64xf32, #tpu.memory_space<vmem>>, vector<1x64xf32>
    %177 = vector.broadcast %176 : vector<1x64xf32> to vector<8x64xf32>
    %178 = arith.mulf %177, %37 : vector<8x64xf32>
    %179 = arith.addf %175, %178 : vector<8x64xf32>
    %cst_84 = arith.constant 0.000000e+00 : f32
    %180 = vector.broadcast %cst_84 : f32 to vector<8x64xf32>
    %181 = arith.subf %180, %3 : vector<8x64xf32>
    %182 = math.exp %181 : vector<8x64xf32>
    %cst_85 = arith.constant 1.000000e+00 : f32
    %183 = vector.broadcast %cst_85 : f32 to vector<8x64xf32>
    %184 = arith.addf %183, %182 : vector<8x64xf32>
    %185 = arith.divf %3, %184 : vector<8x64xf32>
    %186 = arith.mulf %179, %185 : vector<8x64xf32>
    %c0_86 = arith.constant 0 : index
    %c0_87 = arith.constant 0 : index
    %c0_88 = arith.constant 0 : index
    %187 = vector.load %arg9[%c0_86, %c0_87, %c0_88] : memref<1x8x64xf32, #tpu.memory_space<vmem>>, vector<1x8x64xf32>
    %188 = vector.shape_cast %187 : vector<1x8x64xf32> to vector<8x64xf32>
    %189 = vector.shape_cast %186 : vector<8x64xf32> to vector<1x8x64xf32>
    tpu.vector_store %arg9[%c0_86, %c0_87, %c0_88], %189 {strides = array<i32>} : memref<1x8x64xf32, #tpu.memory_space<vmem>>, vector<1x8x64xf32>,
    return
  }
  func.func @transform_0(%arg0: i32) -> (i32, i32, i32) {
    %c0_i32 = arith.constant 0 : i32
    %c0_i32_0 = arith.constant 0 : i32
    %c0_i32_1 = arith.constant 0 : i32
    return %arg0, %c0_i32, %c0_i32_0 : i32, i32, i32
  }
  func.func @transform_1(%arg0: i32) -> (i32, i32) {
    %c0_i32 = arith.constant 0 : i32
    %c0_i32_0 = arith.constant 0 : i32
    %c0_i32_1 = arith.constant 0 : i32
    return %c0_i32, %c0_i32_0 : i32, i32
  }
  func.func @transform_2(%arg0: i32) -> (i32, i32) {
    %c0_i32 = arith.constant 0 : i32
    %c0_i32_0 = arith.constant 0 : i32
    %c0_i32_1 = arith.constant 0 : i32
    return %c0_i32, %c0_i32_0 : i32, i32
  }
  func.func @transform_3(%arg0: i32) -> (i32, i32) {
    %c0_i32 = arith.constant 0 : i32
    %c0_i32_0 = arith.constant 0 : i32
    %c0_i32_1 = arith.constant 0 : i32
    return %c0_i32, %c0_i32_0 : i32, i32
  }
  func.func @transform_4(%arg0: i32) -> (i32, i32) {
    %c0_i32 = arith.constant 0 : i32
    %c0_i32_0 = arith.constant 0 : i32
    %c0_i32_1 = arith.constant 0 : i32
    return %c0_i32, %c0_i32_0 : i32, i32
  }
  func.func @transform_5(%arg0: i32) -> (i32, i32) {
    %c0_i32 = arith.constant 0 : i32
    %c0_i32_0 = arith.constant 0 : i32
    %c0_i32_1 = arith.constant 0 : i32
    return %c0_i32, %c0_i32_0 : i32, i32
  }
  func.func @transform_6(%arg0: i32) -> (i32, i32) {
    %c0_i32 = arith.constant 0 : i32
    %c0_i32_0 = arith.constant 0 : i32
    %c0_i32_1 = arith.constant 0 : i32
    return %c0_i32, %c0_i32_0 : i32, i32
  }
  func.func @transform_7(%arg0: i32) -> (i32, i32) {
    %c0_i32 = arith.constant 0 : i32
    %c0_i32_0 = arith.constant 0 : i32
    %c0_i32_1 = arith.constant 0 : i32
    return %c0_i32, %c0_i32_0 : i32, i32
  }
  func.func @transform_8(%arg0: i32) -> (i32, i32, i32) {
    %c0_i32 = arith.constant 0 : i32
    %c0_i32_0 = arith.constant 0 : i32
    %c0_i32_1 = arith.constant 0 : i32
    return %arg0, %c0_i32, %c0_i32_0 : i32, i32, i32
  }
}

module attributes {stable_mosaic.version = 11 : i64} {
  func.func @_mlp2_kernel(%arg0: i32, %arg1: memref<16x32xf32, #tpu.memory_space<vmem>>, %arg2: memref<32x32xbf16, #tpu.memory_space<vmem>>, %arg3: memref<1x32xf32, #tpu.memory_space<vmem>>, %arg4: memref<32x2xbf16, #tpu.memory_space<vmem>>, %arg5: memref<1x2xf32, #tpu.memory_space<vmem>>, %arg6: memref<16x2xf32, #tpu.memory_space<vmem>>) attributes {dimension_semantics = [#tpu.dimension_semantics<parallel>], iteration_bounds = array<i64: 1>, scalar_prefetch = 0 : i64, scratch_operands = 0 : i64, tpu.core_type = #tpu.core_type<tc>, window_params = [{transform_indices = @transform_0, window_bounds = array<i64: 16, 32>}, {pipeline_mode = #tpu.pipeline_mode<synchronous>, transform_indices = @transform_1, window_bounds = array<i64: 32, 32>}, {pipeline_mode = #tpu.pipeline_mode<synchronous>, transform_indices = @transform_2, window_bounds = array<i64: 1, 32>}, {pipeline_mode = #tpu.pipeline_mode<synchronous>, transform_indices = @transform_3, window_bounds = array<i64: 32, 2>}, {pipeline_mode = #tpu.pipeline_mode<synchronous>, transform_indices = @transform_4, window_bounds = array<i64: 1, 2>}, {transform_indices = @transform_5, window_bounds = array<i64: 16, 2>}]} {
    %c0 = arith.constant 0 : index
    %c0_0 = arith.constant 0 : index
    %0 = vector.load %arg1[%c0, %c0_0] : memref<16x32xf32, #tpu.memory_space<vmem>>, vector<16x32xf32>
    %1 = arith.truncf %0 : vector<16x32xf32> to vector<16x32xbf16>
    %c0_1 = arith.constant 0 : index
    %c0_2 = arith.constant 0 : index
    %2 = vector.load %arg2[%c0_1, %c0_2] : memref<32x32xbf16, #tpu.memory_space<vmem>>, vector<32x32xbf16>
    %cst = arith.constant dense<0.000000e+00> : vector<16x32xf32>
    %3 = tpu.matmul %1, %2, %cst {dimension_numbers = #tpu.dot_dimension_numbers<[1], [0], [0], [1], [0, 0, 1, 1], [], []>} : vector<16x32xbf16>, vector<32x32xbf16>, vector<16x32xf32> -> vector<16x32xf32>
    %c0_3 = arith.constant 0 : index
    %c0_4 = arith.constant 0 : index
    %4 = vector.load %arg3[%c0_3, %c0_4] : memref<1x32xf32, #tpu.memory_space<vmem>>, vector<1x32xf32>
    %5 = vector.broadcast %4 : vector<1x32xf32> to vector<16x32xf32>
    %6 = arith.addf %3, %5 : vector<16x32xf32>
    %cst_5 = arith.constant 0.000000e+00 : f32
    %7 = vector.broadcast %cst_5 : f32 to vector<16x32xf32>
    %8 = arith.maximumf %6, %7 : vector<16x32xf32>
    %9 = arith.truncf %8 : vector<16x32xf32> to vector<16x32xbf16>
    %c0_6 = arith.constant 0 : index
    %c0_7 = arith.constant 0 : index
    %10 = vector.load %arg4[%c0_6, %c0_7] : memref<32x2xbf16, #tpu.memory_space<vmem>>, vector<32x2xbf16>
    %cst_8 = arith.constant dense<0.000000e+00> : vector<16x2xf32>
    %11 = tpu.matmul %9, %10, %cst_8 {dimension_numbers = #tpu.dot_dimension_numbers<[1], [0], [0], [1], [0, 0, 1, 1], [], []>} : vector<16x32xbf16>, vector<32x2xbf16>, vector<16x2xf32> -> vector<16x2xf32>
    %c0_9 = arith.constant 0 : index
    %c0_10 = arith.constant 0 : index
    %12 = vector.load %arg5[%c0_9, %c0_10] : memref<1x2xf32, #tpu.memory_space<vmem>>, vector<1x2xf32>
    %13 = vector.broadcast %12 : vector<1x2xf32> to vector<16x2xf32>
    %14 = arith.addf %11, %13 : vector<16x2xf32>
    %c0_11 = arith.constant 0 : index
    %c0_12 = arith.constant 0 : index
    %15 = vector.load %arg6[%c0_11, %c0_12] : memref<16x2xf32, #tpu.memory_space<vmem>>, vector<16x2xf32>
    tpu.vector_store %arg6[%c0_11, %c0_12], %14 {strides = array<i32>} : memref<16x2xf32, #tpu.memory_space<vmem>>, vector<16x2xf32>,
    return
  }
  func.func @transform_0(%arg0: i32) -> (i32, i32) {
    %c0_i32 = arith.constant 0 : i32
    %c0_i32_0 = arith.constant 0 : i32
    return %arg0, %c0_i32 : i32, i32
  }
  func.func @transform_1(%arg0: i32) -> (i32, i32) {
    %c0_i32 = arith.constant 0 : i32
    %c0_i32_0 = arith.constant 0 : i32
    %c0_i32_1 = arith.constant 0 : i32
    return %c0_i32, %c0_i32_0 : i32, i32
  }
  func.func @transform_2(%arg0: i32) -> (i32, i32) {
    %c0_i32 = arith.constant 0 : i32
    %c0_i32_0 = arith.constant 0 : i32
    %c0_i32_1 = arith.constant 0 : i32
    return %c0_i32, %c0_i32_0 : i32, i32
  }
  func.func @transform_3(%arg0: i32) -> (i32, i32) {
    %c0_i32 = arith.constant 0 : i32
    %c0_i32_0 = arith.constant 0 : i32
    %c0_i32_1 = arith.constant 0 : i32
    return %c0_i32, %c0_i32_0 : i32, i32
  }
  func.func @transform_4(%arg0: i32) -> (i32, i32) {
    %c0_i32 = arith.constant 0 : i32
    %c0_i32_0 = arith.constant 0 : i32
    %c0_i32_1 = arith.constant 0 : i32
    return %c0_i32, %c0_i32_0 : i32, i32
  }
  func.func @transform_5(%arg0: i32) -> (i32, i32) {
    %c0_i32 = arith.constant 0 : i32
    %c0_i32_0 = arith.constant 0 : i32
    return %arg0, %c0_i32 : i32, i32
  }
}

</mosaic_0001>

<bundles_post_ra>
// kernel: forward_encoder.15
= control target key start
LH: loop header
LB: loop body
LE: loop exit
PB: predicated region body
PF: predicated region fallthrough
CT: control target
= control target key end

     0   :  { %vm19_vm0 = vcmask 261120   ;;  %vm32_vm1 = vcmask 1041408   ;;  %v114_v0 = vmov 0.0   ;;  %vm115_vm2 = vmmov 0   ;;  %s160_s1 = inlined_call_operand.vmem [shape: bf16[4,32], index: 1, kind: input, shape index: {}]   ;;  %s161_s0 = inlined_call_operand.vmem [shape: f32[16,4], index: 0, kind: input, shape index: {}]   ;;  %s162_s2 = inlined_call_operand.vmem [shape: f32[1,32], index: 2, kind: input, shape index: {}]   ;;  %s163_s3 = inlined_call_operand.vmem [shape: f32[16,32], index: 3, kind: output, shape index: {}]  }
   0x1   :  { %20 = vst.msk [vmem:[#allocation2] sm:$0xff] %vm19_vm0, %v114_v0  ;;  %21 = vst.msk [vmem:[#allocation2 + $0x8] sm:$0xff] %vm19_vm0, %v114_v0  ;;  %106 = vmatprep.subr.bf16.mxu0 %v114_v0  ;;  %v27_v1 = vld [vmem:[%s160_s1] sm:$0x3]  ;;  %108 = vmatprep.mubr.msk.bf16.mxu0 %vm115_vm2, %v114_v0  ;;  %v23_v3 = vld [vmem:[%s161_s0 + $0x8] sm:$0xff]  ;;  %vm28_vm3 = vcmask 31744  }
   0x2   :  { %v22_v2 = vld [vmem:[%s161_s0] sm:$0xff]  ;;  %v34_v4 = vsel %vm32_vm1, %v27_v1, 0 }
   0x3   :  { %v26_v5 = vpack.c.bf16 %v23_v3, %v22_v2  ;;  %107 = vmatpush3.bf16.msra.mxu0 %v34_v4  ;;  %v103_v14 = vld [vmem:[%s162_s2] ss:$0 sm:$0xff] }
   0x6   :  { %109 = vmatmul.mubr.msk.bf16.vlgmr.msra.gmra.mxu0 %vm28_vm3, %v26_v5 }
   0x8   :  { %v24_v6 = vld [vmem:[#allocation2] sm:$0xff]  ;;  %v25_v10 = vld [vmem:[#allocation2 + $0x8] sm:$0xff] }
  0xc6   :  { %v70_v7 = vpop.f32.mrf.mxu0 }
  0xc7   :  { %v77_v8 = vadd.f32 %v70_v7, %v24_v6 }
  0xc8   :  { %v110_v9 = vpop.f32.mrf.mxu0 }
  0xc9   :  { %80 = vst.msk [vmem:[#allocation2] sm:$0xff] %vm19_vm0, %v77_v8 }
  0xca   :  { %v73_v11 = vpop.f32.mrf.mxu0 }
  0xcb   :  { %v78_v12 = vadd.f32 %v73_v11, %v25_v10 }
  0xcc   :  { %v111_v13 = vpop.f32.mrf.mxu0 }
  0xcd   :  { %81 = vst.msk [vmem:[#allocation2 + $0x8] sm:$0xff] %vm19_vm0, %v78_v12 }
  0xd0   :  { %v85_v15 = vld [vmem:[#allocation2] sm:$0xff] }
  0xd1   :  { %v94_v16 = vadd.f32 %v103_v14, %v85_v15 }
  0xd3   :  { %96 = vst.msk [vmem:[%s163_s3] sm:$0xff] %vm19_vm0, %v94_v16 }
  0xd4   :  { %v86_v17 = vld [vmem:[#allocation2 + $0x8] sm:$0xff] }
  0xd5   :  { %v95_v18 = vadd.f32 %v103_v14, %v86_v17 }
  0xd7   :  { %97 = vst.msk [vmem:[%s163_s3 + $0x8] sm:$0xff] %vm19_vm0, %v95_v18 }

// kernel: forward_encoder.16
= control target key start
LH: loop header
LB: loop body
LE: loop exit
PB: predicated region body
PF: predicated region fallthrough
CT: control target
= control target key end

     0   :  { %vm16_vm0 = vcmask 80896   ;;  %v119_v0 = vmov 0.0   ;;  %vm120_vm1 = vmmov 0   ;;  %vm40_vm2 = vcmask 261120   ;;  %s160_s1 = inlined_call_operand.vmem [shape: bf16[32,10], index: 1, kind: input, shape index: {}]   ;;  %s161_s0 = inlined_call_operand.vmem [shape: f32[16,32], index: 0, kind: input, shape index: {}]   ;;  %s162_s2 = inlined_call_operand.vmem [shape: f32[16,10], index: 2, kind: output, shape index: {}]  }
   0x1   :  { %107 = vmatprep.subr.bf16.mxu0 %v119_v0  ;;  %v117_v1 = vld [vmem:[%s160_s1 + $0x8] sm:$0xff]   ;;  %111 = vmatprep.mubr.msk.bf16.mxu0 %vm120_vm1, %v119_v0  ;;  %17 = vst.msk [vmem:[#allocation2] sm:$0xff] %vm16_vm0, %v119_v0  ;;  %18 = vst.msk [vmem:[#allocation2 + $0x8] sm:$0xff] %vm16_vm0, %v119_v0  ;;  %v118_v2 = vld [vmem:[%s160_s1] sm:$0xff]  }
   0x2   :  { %108 = vmatpush3.bf16.msra.mxu0 %v117_v1  ;;  %v19_v3 = vld [vmem:[%s161_s0] sm:$0xff]  ;;  %v20_v4 = vld [vmem:[%s161_s0 + $0x8] sm:$0xff] }
   0x3   :  { %109 = vmatprep.subr.bf16.mxu0 %v119_v0  ;;  %v23_v5 = vpack.c.bf16 %v20_v4, %v19_v3 }
   0x6   :  { %110 = vmatpush3.bf16.msra.mxu0 %v118_v2 }
   0x8   :  { %v21_v6 = vld [vmem:[#allocation2] sm:$0xff]  ;;  %v22_v10 = vld [vmem:[#allocation2 + $0x8] sm:$0xff] }
   0x9   :  { %112 = vmatmul.mubr.msk.bf16.vlgmr.msra.gmra.mxu0 %vm40_vm2, %v23_v5 }
  0xc9   :  { %v78_v7 = vpop.f32.mrf.mxu0 }
  0xca   :  { %v85_v8 = vadd.f32 %v78_v7, %v21_v6 }
  0xcb   :  { %v113_v9 = vpop.f32.mrf.mxu0 }
  0xcc   :  { %88 = vst.msk [vmem:[#allocation2] sm:$0xff] %vm16_vm0, %v85_v8 }
  0xcd   :  { %v81_v11 = vpop.f32.mrf.mxu0 }
  0xce   :  { %v86_v12 = vadd.f32 %v81_v11, %v22_v10 }
  0xcf   :  { %v114_v13 = vpop.f32.mrf.mxu0 }
  0xd0   :  { %89 = vst.msk [vmem:[#allocation2 + $0x8] sm:$0xff] %vm16_vm0, %v86_v12 }
  0xd3   :  { %v93_v14 = vld [vmem:[#allocation2] sm:$0xff] }
  0xd4   :  { %95 = vst.msk [vmem:[%s162_s2] sm:$0xff] %vm16_vm0, %v93_v14 }
  0xd7   :  { %v94_v15 = vld [vmem:[#allocation2 + $0x8] sm:$0xff] }
  0xd8   :  { %96 = vst.msk [vmem:[%s162_s2 + $0x8] sm:$0xff] %vm16_vm0, %v94_v15 }

// kernel: forward_encoder.17
= control target key start
LH: loop header
LB: loop body
LE: loop exit
PB: predicated region body
PF: predicated region fallthrough
CT: control target
= control target key end

     0   :  { %vm19_vm0 = vcmask 785408   ;;  %v132_v0 = vmov 0.0   ;;  %vm133_vm1 = vmmov 0   ;;  %vm43_vm2 = vcmask 261120   ;;  %s181_s1 = inlined_call_operand.vmem [shape: bf16[32,96], index: 1, kind: input, shape index: {}]   ;;  %s182_s0 = inlined_call_operand.vmem [shape: f32[16,32], index: 0, kind: input, shape index: {}]   ;;  %s183_s2 = inlined_call_operand.vmem [shape: f32[1,96], index: 2, kind: input, shape index: {}]   ;;  %s184_s3 = inlined_call_operand.vmem [shape: f32[16,96], index: 3, kind: output, shape index: {}]  }
   0x1   :  { %120 = vmatprep.subr.bf16.mxu0 %v132_v0  ;;  %v130_v1 = vld [vmem:[%s181_s1 + $0x8] sm:$0xff]   ;;  %124 = vmatprep.mubr.msk.bf16.mxu0 %vm133_vm1, %v132_v0  ;;  %20 = vst.msk [vmem:[#allocation2] sm:$0xff] %vm19_vm0, %v132_v0  ;;  %21 = vst.msk [vmem:[#allocation2 + $0x8] sm:$0xff] %vm19_vm0, %v132_v0  ;;  %v131_v2 = vld [vmem:[%s181_s1] sm:$0xff]  }
   0x2   :  { %121 = vmatpush3.bf16.msra.mxu0 %v130_v1  ;;  %v22_v3 = vld [vmem:[%s182_s0] sm:$0xff]  ;;  %v23_v4 = vld [vmem:[%s182_s0 + $0x8] sm:$0xff] }
   0x3   :  { %122 = vmatprep.subr.bf16.mxu0 %v132_v0  ;;  %v26_v5 = vpack.c.bf16 %v23_v4, %v22_v3  ;;  %v116_v14 = vld [vmem:[%s183_s2] ss:$0 sm:$0xff] }
   0x6   :  { %123 = vmatpush3.bf16.msra.mxu0 %v131_v2 }
   0x8   :  { %v24_v6 = vld [vmem:[#allocation2] sm:$0xff]  ;;  %v25_v10 = vld [vmem:[#allocation2 + $0x8] sm:$0xff] }
   0x9   :  { %125 = vmatmul.mubr.msk.bf16.vlgmr.msra.gmra.mxu0 %vm43_vm2, %v26_v5 }
  0xc9   :  { %v81_v7 = vpop.f32.mrf.mxu0 }
  0xca   :  { %v88_v8 = vadd.f32 %v81_v7, %v24_v6 }
  0xcb   :  { %v126_v9 = vpop.f32.mrf.mxu0 }
  0xcc   :  { %91 = vst.msk [vmem:[#allocation2] sm:$0xff] %vm19_vm0, %v88_v8 }
  0xcd   :  { %v84_v11 = vpop.f32.mrf.mxu0 }
  0xce   :  { %v89_v12 = vadd.f32 %v84_v11, %v25_v10 }
  0xcf   :  { %v127_v13 = vpop.f32.mrf.mxu0 }
  0xd0   :  { %92 = vst.msk [vmem:[#allocation2 + $0x8] sm:$0xff] %vm19_vm0, %v89_v12 }
  0xd3   :  { %v96_v15 = vld [vmem:[#allocation2] sm:$0xff] }
  0xd4   :  { %v105_v16 = vadd.f32 %v116_v14, %v96_v15 }
  0xd6   :  { %107 = vst.msk [vmem:[%s184_s3] sm:$0xff] %vm19_vm0, %v105_v16 }
  0xd7   :  { %v97_v17 = vld [vmem:[#allocation2 + $0x8] sm:$0xff] }
  0xd8   :  { %v106_v18 = vadd.f32 %v116_v14, %v97_v17 }
  0xda   :  { %108 = vst.msk [vmem:[%s184_s3 + $0x8] sm:$0xff] %vm19_vm0, %v106_v18 }

// kernel: forward_encoder.19
= control target key start
LH: loop header
LB: loop body
LE: loop exit
PB: predicated region body
PF: predicated region fallthrough
CT: control target
= control target key end

     0   :  { %vm28_vm0 = vcmask 261120   ;;  %v195_v0 = vmov 0.0   ;;  %vm196_vm1 = vmmov 0   ;;  %s276_s1 = inlined_call_operand.vmem [shape: bf16[32,32], index: 1, kind: input, shape index: {}]   ;;  %s277_s0 = inlined_call_operand.vmem [shape: f32[16,32], index: 0, kind: input, shape index: {}]   ;;  %s278_s2 = inlined_call_operand.vmem [shape: f32[1,32], index: 2, kind: input, shape index: {}]   ;;  %s279_s3 = inlined_call_operand.vmem [shape: f32[16,32], index: 3, kind: input, shape index: {}]   ;;  %s280_s4 = inlined_call_operand.vmem [shape: f32[1,32], index: 4, kind: input, shape index: {}]   ;;  %s281_s5 = inlined_call_operand.vmem [shape: f32[1,32], index: 5, kind: input, shape index: {}]   ;;  %s282_s6 = inlined_call_operand.vmem [shape: f32[16,32], index: 6, kind: output, shape index: {}]  }
   0x1   :  { %179 = vmatprep.subr.bf16.mxu0 %v195_v0  ;;  %v189_v1 = vld [vmem:[%s276_s1 + $0x8] sm:$0xff]   ;;  %183 = vmatprep.mubr.msk.bf16.mxu0 %vm196_vm1, %v195_v0  ;;  %29 = vst.msk [vmem:[#allocation2] sm:$0xff] %vm28_vm0, %v195_v0  ;;  %30 = vst.msk [vmem:[#allocation2 + $0x8] sm:$0xff] %vm28_vm0, %v195_v0  ;;  %v190_v2 = vld [vmem:[%s276_s1] sm:$0xff]  }
   0x2   :  { %180 = vmatpush3.bf16.msra.mxu0 %v189_v1  ;;  %v31_v3 = vld [vmem:[%s277_s0] sm:$0xff]  ;;  %v32_v4 = vld [vmem:[%s277_s0 + $0x8] sm:$0xff] }
   0x3   :  { %181 = vmatprep.subr.bf16.mxu0 %v195_v0  ;;  %v35_v5 = vpack.c.bf16 %v32_v4, %v31_v3  ;;  %v173_v14 = vld [vmem:[%s278_s2] ss:$0 sm:$0xff]  ;;  %v116_v20 = vld [vmem:[%s279_s3 + $0x8] sm:$0xff] }
   0x4   :  { %v115_v16 = vld [vmem:[%s279_s3] sm:$0xff] }
   0x5   :  { %v174_v42 = vld [vmem:[%s280_s4] ss:$0 sm:$0xff] }
   0x6   :  { %182 = vmatpush3.bf16.msra.mxu0 %v190_v2  ;;  %v175_v44 = vld [vmem:[%s281_s5] ss:$0 sm:$0xff] }
   0x8   :  { %v33_v6 = vld [vmem:[#allocation2] sm:$0xff]  ;;  %v34_v10 = vld [vmem:[#allocation2 + $0x8] sm:$0xff] }
   0x9   :  { %184 = vmatmul.mubr.msk.bf16.vlgmr.msra.gmra.mxu0 %vm28_vm0, %v35_v5 }
  0xc9   :  { %v90_v7 = vpop.f32.mrf.mxu0 }
  0xca   :  { %v97_v8 = vadd.f32 %v90_v7, %v33_v6 }
  0xcb   :  { %v185_v9 = vpop.f32.mrf.mxu0 }
  0xcc   :  { %99 = vst.msk [vmem:[#allocation2] sm:$0xff] %vm28_vm0, %v97_v8 }
  0xcd   :  { %v93_v11 = vpop.f32.mrf.mxu0 }
  0xce   :  { %v98_v12 = vadd.f32 %v93_v11, %v34_v10 }
  0xcf   :  { %v186_v13 = vpop.f32.mrf.mxu0 }
  0xd0   :  { %100 = vst.msk [vmem:[#allocation2 + $0x8] sm:$0xff] %vm28_vm0, %v98_v12 }
  0xd3   :  { %v104_v15 = vld [vmem:[#allocation2] sm:$0xff] }
  0xd4   :  { %v113_v17 = vadd.f32 %v173_v14, %v104_v15 }
  0xd6   :  { %v117_v18 = vadd.f32 %v115_v16, %v113_v17 }
  0xd7   :  { %v105_v19 = vld [vmem:[#allocation2 + $0x8] sm:$0xff] }
  0xd8   :  { %v121_v21 = vsel %vm28_vm0, %v117_v18, 0.0  ;;  %v114_v22 = vadd.f32 %v173_v14, %v105_v19 }
  0xd9   :  { %122 = vadd.xlane.f32.xlu0 %v121_v21 }
  0xda   :  { %v118_v23 = vadd.f32 %v116_v20, %v114_v22 }
  0xdc   :  { %v124_v24 = vsel %vm28_vm0, %v118_v23, 0.0 }
  0xdd   :  { %125 = vadd.xlane.f32.xlu0 %v124_v24 }
 0x162   :  { %v123_v25 = vpop.xlane.xlu0 %122 }
 0x163   :  { %v128_v26 = vmul.f32 0.03125, %v123_v25 }
 0x165   :  { %v130_v27 = vsub.f32 %v117_v18, %v128_v26 }
 0x166   :  { %v126_v28 = vpop.xlane.xlu0 %125 }
 0x167   :  { %v129_v29 = vmul.f32 0.03125, %v126_v28  ;;  %v132_v30 = vmul.f32 %v130_v27, %v130_v27 }
 0x169   :  { %v131_v31 = vsub.f32 %v118_v23, %v129_v29  ;;  %v134_v32 = vsel %vm28_vm0, %v132_v30, 0.0 }
 0x16a   :  { %135 = vadd.xlane.f32.xlu1 %v134_v32 }
 0x16b   :  { %v133_v33 = vmul.f32 %v131_v31, %v131_v31 }
 0x16d   :  { %v137_v34 = vsel %vm28_vm0, %v133_v33, 0.0 }
 0x16e   :  { %138 = vadd.xlane.f32.xlu1 %v137_v34 }
 0x1f3   :  { %v136_v35 = vpop.xlane.xlu1 %135 }
 0x1f4   :  { %v140_v36 = vmul.f32 0.03125, %v136_v35 }
 0x1f6   :  { %v142_v37 = vadd.f32 1e-05, %v140_v36 }
 0x1f7   :  { %v139_v38 = vpop.xlane.xlu1 %138 }
 0x1f8   :  { %191 = vrsqrt.f32 %v142_v37  ;;  %v141_v39 = vmul.f32 0.03125, %v139_v38 }
 0x1fa   :  { %v143_v40 = vadd.f32 1e-05, %v141_v39 }
 0x1fc   :  { %193 = vrsqrt.f32 %v143_v40 }
 0x205   :  { %v192_v41 = vpop.eup %191 }
 0x206   :  { %v146_v43 = vmul.f32 %v192_v41, %v130_v27 }
 0x208   :  { %v154_v45 = vmul.f32 %v174_v42, %v146_v43 }
 0x209   :  { %v194_v46 = vpop.eup %193 }
 0x20a   :  { %v162_v47 = vadd.f32 %v175_v44, %v154_v45  ;;  %v147_v48 = vmul.f32 %v194_v46, %v131_v31 }
 0x20c   :  { %164 = vst.msk [vmem:[%s282_s6] sm:$0xff] %vm28_vm0, %v162_v47  ;;  %v155_v49 = vmul.f32 %v174_v42, %v147_v48 }
 0x20e   :  { %v163_v50 = vadd.f32 %v175_v44, %v155_v49 }
 0x210   :  { %165 = vst.msk [vmem:[%s282_s6 + $0x8] sm:$0xff] %vm28_vm0, %v163_v50 }

// kernel: forward_encoder.20
= control target key start
LH: loop header
LB: loop body
LE: loop exit
PB: predicated region body
PF: predicated region fallthrough
CT: control target
= control target key end

     0   :  { %v342_v0 = vmov 0.0   ;;  %vm343_vm0 = vmmov 0   ;;  %vm56_vm1 = vcmask 261120   ;;  %s456_s1 = inlined_call_operand.vmem [shape: bf16[32,128], index: 1, kind: input, shape index: {}]   ;;  %s457_s0 = inlined_call_operand.vmem [shape: f32[16,32], index: 0, kind: input, shape index: {}, may-alias: {0,5}]   ;;  %s458_s3 = inlined_call_operand.vmem [shape: bf16[128,32], index: 3, kind: input, shape index: {}]   ;;  %s459_s2 = inlined_call_operand.vmem [shape: f32[1,128], index: 2, kind: input, shape index: {}]   ;;  %s460_s4 = inlined_call_operand.vmem [shape: f32[1,32], index: 4, kind: input, shape index: {}]   ;;  %s461_s5 = inlined_call_operand.vmem [shape: f32[16,32], index: 5, kind: input, shape index: {}, may-alias: {0,5}]   ;;  %s462_s6 = inlined_call_operand.vmem [shape: f32[1,32], index: 6, kind: input, shape index: {}]   ;;  %s463_s7 = inlined_call_operand.vmem [shape: f32[1,32], index: 7, kind: input, shape index: {}]   ;;  %s464_s8 = inlined_call_operand.vmem [shape: f32[16,32], index: 8, kind: output, shape index: {}]  }
   0x1   :  { %298 = vmatprep.subr.bf16.mxu0 %v342_v0  ;;  %v328_v1 = vld [vmem:[%s456_s1 + $0x8] sm:$0xff]   ;;  %302 = vmatprep.mubr.msk.bf16.mxu0 %vm343_vm0, %v342_v0  ;;  %v329_v2 = vld [vmem:[%s456_s1] sm:$0xff]   ;;  %v330_v5 = vld [vmem:[%s458_s3 + $0x38] sm:$0xff]  }
   0x2   :  { %306 = vmatprep.subr.bf16.mxu1 %v342_v0  ;;  %322 = vmatprep.mubr.msk.bf16.mxu1 %vm343_vm0, %v342_v0  ;;  %v30_v3 = vld [vmem:[%s457_s0] sm:$0xff]  ;;  %v31_v4 = vld [vmem:[%s457_s0 + $0x8] sm:$0xff]  ;;  %v331_v7 = vld [vmem:[%s458_s3 + $0x30] sm:$0xff]  }
   0x3   :  { %299 = vmatpush3.bf16.msra.mxu0 %v328_v1  ;;  %v32_v6 = vpack.c.bf16 %v31_v4, %v30_v3  ;;  %307 = vmatpush3.bf16.msra.mxu1 %v330_v5  ;;  %v332_v8 = vld [vmem:[%s458_s3 + $0x28] sm:$0xff]   ;;  %v333_v9 = vld [vmem:[%s458_s3 + $0x20] sm:$0xff]   ;;  %v334_v10 = vld [vmem:[%s458_s3 + $0x18] sm:$0xff]  }
   0x4   :  { %300 = vmatprep.subr.bf16.mxu0 %v342_v0  ;;  %308 = vmatprep.subr.bf16.mxu1 %v342_v0  ;;  %v335_v11 = vld [vmem:[%s458_s3 + $0x10] sm:$0xff]   ;;  %v336_v12 = vld [vmem:[%s458_s3 + $0x8] sm:$0xff]   ;;  %v337_v13 = vld [vmem:[%s458_s3] sm:$0xff]  }
   0x5   :  { %v271_v14 = vld [vmem:[%s459_s2] ss:$0 sm:$0xff]  ;;  %v217_v31 = vld [vmem:[%s461_s5 + $0x8] sm:$0xff] }
   0x6   :  { %v275_v24 = vld [vmem:[%s460_s4] ss:$0 sm:$0xff] }
   0x7   :  { %301 = vmatpush3.bf16.msra.mxu0 %v329_v2  ;;  %309 = vmatpush3.bf16.msra.mxu1 %v331_v7  ;;  %v216_v26 = vld [vmem:[%s461_s5] sm:$0xff] }
   0x8   :  { %310 = vmatprep.subr.bf16.mxu1 %v342_v0  ;;  %v284_v54 = vld [vmem:[%s462_s6] ss:$0 sm:$0xff] }
   0x9   :  { %v285_v56 = vld [vmem:[%s463_s7] ss:$0 sm:$0xff] }
   0xa   :  { %303 = vmatmul.mubr.msk.bf16.vlgmr.msra.gmra.mxu0 %vm56_vm1, %v32_v6 }
   0xb   :  { %311 = vmatpush3.bf16.msra.mxu1 %v332_v8 }
   0xc   :  { %312 = vmatprep.subr.bf16.mxu1 %v342_v0 }
   0xf   :  { %313 = vmatpush3.bf16.msra.mxu1 %v333_v9 }
  0x10   :  { %314 = vmatprep.subr.bf16.mxu1 %v342_v0 }
  0x13   :  { %315 = vmatpush3.bf16.msra.mxu1 %v334_v10 }
  0x14   :  { %316 = vmatprep.subr.bf16.mxu1 %v342_v0 }
  0x17   :  { %317 = vmatpush3.bf16.msra.mxu1 %v335_v11 }
  0x18   :  { %318 = vmatprep.subr.bf16.mxu1 %v342_v0 }
  0x1b   :  { %319 = vmatpush3.bf16.msra.mxu1 %v336_v12 }
  0x1c   :  { %320 = vmatprep.subr.bf16.mxu1 %v342_v0 }
  0x1f   :  { %321 = vmatpush3.bf16.msra.mxu1 %v337_v13 }
  0xca   :  { %v94_v15 = vpop.f32.mrf.mxu0 }
  0xcb   :  { %v95_v17 = vadd.f32 %v271_v14, %v94_v15 }
  0xcc   :  { %v304_v16 = vpop.f32.mrf.mxu0 }
  0xcd   :  { %v101_v21 = vmax.f32 %v95_v17, 0.0 }
  0xce   :  { %v97_v18 = vpop.f32.mrf.mxu0 }
  0xcf   :  { %v98_v19 = vadd.f32 %v271_v14, %v97_v18 }
  0xd0   :  { %v305_v20 = vpop.f32.mrf.mxu0 }
  0xd1   :  { %v102_v22 = vmax.f32 %v98_v19, 0.0 }
  0xd3   :  { %v103_v23 = vpack.c.bf16 %v102_v22, %v101_v21 }
  0xd5   :  { %323 = vmatmul.mubr.bf16.vlgmr.msra.gmra.mxu1 %v103_v23 }
 0x195   :  { %v209_v25 = vpop.f32.mrf.mxu1 }
 0x196   :  { %v210_v27 = vadd.f32 %v275_v24, %v209_v25 }
 0x197   :  { %v324_v28 = vpop.f32.mrf.mxu1 }
 0x198   :  { %v218_v29 = vadd.f32 %v216_v26, %v210_v27 }
 0x199   :  { %v212_v30 = vpop.f32.mrf.mxu1 }
 0x19a   :  { %v213_v32 = vadd.f32 %v275_v24, %v212_v30  ;;  %v222_v33 = vsel %vm56_vm1, %v218_v29, 0.0 }
 0x19b   :  { %223 = vadd.xlane.f32.xlu0 %v222_v33  ;;  %v325_v34 = vpop.f32.mrf.mxu1 }
 0x19c   :  { %v219_v35 = vadd.f32 %v217_v31, %v213_v32 }
 0x19e   :  { %v225_v36 = vsel %vm56_vm1, %v219_v35, 0.0 }
 0x19f   :  { %226 = vadd.xlane.f32.xlu0 %v225_v36 }
 0x224   :  { %v224_v37 = vpop.xlane.xlu0 %223 }
 0x225   :  { %v229_v38 = vmul.f32 0.03125, %v224_v37 }
 0x227   :  { %v231_v39 = vsub.f32 %v218_v29, %v229_v38 }
 0x228   :  { %v227_v40 = vpop.xlane.xlu0 %226 }
 0x229   :  { %v230_v41 = vmul.f32 0.03125, %v227_v40  ;;  %v233_v42 = vmul.f32 %v231_v39, %v231_v39 }
 0x22b   :  { %v232_v43 = vsub.f32 %v219_v35, %v230_v41  ;;  %v235_v44 = vsel %vm56_vm1, %v233_v42, 0.0 }
 0x22c   :  { %236 = vadd.xlane.f32.xlu1 %v235_v44 }
 0x22d   :  { %v234_v45 = vmul.f32 %v232_v43, %v232_v43 }
 0x22f   :  { %v238_v46 = vsel %vm56_vm1, %v234_v45, 0.0 }
 0x230   :  { %239 = vadd.xlane.f32.xlu1 %v238_v46 }
 0x2b5   :  { %v237_v47 = vpop.xlane.xlu1 %236 }
 0x2b6   :  { %v241_v48 = vmul.f32 0.03125, %v237_v47 }
 0x2b8   :  { %v243_v49 = vadd.f32 1e-05, %v241_v48 }
 0x2b9   :  { %v240_v50 = vpop.xlane.xlu1 %239 }
 0x2ba   :  { %338 = vrsqrt.f32 %v243_v49  ;;  %v242_v51 = vmul.f32 0.03125, %v240_v50 }
 0x2bc   :  { %v244_v52 = vadd.f32 1e-05, %v242_v51 }
 0x2be   :  { %340 = vrsqrt.f32 %v244_v52 }
 0x2c7   :  { %v339_v53 = vpop.eup %338 }
 0x2c8   :  { %v247_v55 = vmul.f32 %v339_v53, %v231_v39 }
 0x2ca   :  { %v255_v57 = vmul.f32 %v284_v54, %v247_v55 }
 0x2cb   :  { %v341_v58 = vpop.eup %340 }
 0x2cc   :  { %v263_v59 = vadd.f32 %v285_v56, %v255_v57  ;;  %v248_v60 = vmul.f32 %v341_v58, %v232_v43 }
 0x2ce   :  { %265 = vst.msk [vmem:[%s464_s8] sm:$0xff] %vm56_vm1, %v263_v59  ;;  %v256_v61 = vmul.f32 %v284_v54, %v248_v60 }
 0x2d0   :  { %v264_v62 = vadd.f32 %v285_v56, %v256_v61 }
 0x2d2   :  { %266 = vst.msk [vmem:[%s464_s8 + $0x8] sm:$0xff] %vm56_vm1, %v264_v62 }

// kernel: forward_encoder.26
= control target key start
LH: loop header
LB: loop body
LE: loop exit
PB: predicated region body
PF: predicated region fallthrough
CT: control target
= control target key end

     0   :  { %vm25_vm0 = vcmask 261120   ;;  %v151_v6 = vmov 0.0   ;;  %vm152_vm1 = vmmov 0   ;;  %s197_s0 = inlined_call_operand.vmem [shape: f32[16,32], index: 0, kind: input, shape index: {}]   ;;  %s198_s2 = inlined_call_operand.vmem [shape: bf16[32,128], index: 2, kind: input, shape index: {}]   ;;  %s199_s1 = inlined_call_operand.vmem [shape: f32[1,32], index: 1, kind: input, shape index: {}]   ;;  %s200_s3 = inlined_call_operand.vmem [shape: f32[16,128], index: 3, kind: output, shape index: {}]  }
   0x1   :  { %v21_v0 = vld [vmem:[%s197_s0] sm:$0xff]  ;;  %v22_v1 = vld [vmem:[%s197_s0 + $0x8] sm:$0xff]  ;;  %135 = vmatprep.subr.bf16.mxu0 %v151_v6  ;;  %139 = vmatprep.mubr.msk.bf16.mxu0 %vm152_vm1, %v151_v6 }
   0x2   :  { %v23_v2 = vmul.f32 %v21_v0, %v21_v0  ;;  %v24_v3 = vmul.f32 %v22_v1, %v22_v1  ;;  %v145_v7 = vld [vmem:[%s198_s2 + $0x8] sm:$0xff]   ;;  %v146_v8 = vld [vmem:[%s198_s2] sm:$0xff]  }
   0x3   :  { %136 = vmatpush3.bf16.msra.mxu0 %v145_v7  ;;  %v128_v18 = vld [vmem:[%s199_s1] ss:$0 sm:$0xff] }
   0x4   :  { %v26_v4 = vsel %vm25_vm0, %v23_v2, 0.0  ;;  %v29_v5 = vsel %vm25_vm0, %v24_v3, 0.0  ;;  %137 = vmatprep.subr.bf16.mxu0 %v151_v6 }
   0x5   :  { %27 = vadd.xlane.f32.xlu0 %v26_v4 }
   0x7   :  { %138 = vmatpush3.bf16.msra.mxu0 %v146_v8 }
   0x9   :  { %30 = vadd.xlane.f32.xlu0 %v29_v5 }
  0x8e   :  { %v28_v9 = vpop.xlane.xlu0 %27 }
  0x8f   :  { %v33_v10 = vmul.f32 0.03125, %v28_v9 }
  0x91   :  { %v35_v11 = vadd.f32 1e-05, %v33_v10 }
  0x92   :  { %v31_v12 = vpop.xlane.xlu0 %30 }
  0x93   :  { %147 = vrsqrt.f32 %v35_v11  ;;  %v34_v13 = vmul.f32 0.03125, %v31_v12 }
  0x95   :  { %v36_v14 = vadd.f32 1e-05, %v34_v13 }
  0x97   :  { %149 = vrsqrt.f32 %v36_v14 }
  0xa0   :  { %v148_v15 = vpop.eup %147 }
  0xa1   :  { %v39_v16 = vmul.f32 %v148_v15, %v21_v0 }
  0xa3   :  { %v48_v20 = vmul.f32 %v128_v18, %v39_v16 }
  0xa4   :  { %v150_v17 = vpop.eup %149 }
  0xa5   :  { %v40_v19 = vmul.f32 %v150_v17, %v22_v1 }
  0xa7   :  { %v49_v21 = vmul.f32 %v128_v18, %v40_v19 }
  0xa9   :  { %v52_v22 = vpack.c.bf16 %v49_v21, %v48_v20 }
  0xab   :  { %140 = vmatmul.mubr.msk.bf16.vlgmr.msra.gmra.mxu0 %vm25_vm0, %v52_v22 }
 0x16b   :  { %v106_v23 = vpop.f32.mrf.mxu0 }
 0x16c   :  { %122 = vst [vmem:[%s200_s3] sm:$0xff] %v106_v23 }
 0x16d   :  { %v141_v24 = vpop.f32.mrf.mxu0 }
 0x16f   :  { %v109_v25 = vpop.f32.mrf.mxu0 }
 0x170   :  { %123 = vst [vmem:[%s200_s3 + $0x8] sm:$0xff] %v109_v25 }
 0x171   :  { %v142_v26 = vpop.f32.mrf.mxu0 }

// kernel: forward_encoder.18
= control target key start
LH: loop header
LB: loop body
LE: loop exit
PB: predicated region body
PF: predicated region fallthrough
CT: control target
= control target key end

     0   :  { %s2164_s21 = smov 0   ;;  %s2687_s0 = inlined_call_operand.vmem [shape: f32[2,8,96], index: 0, kind: input, shape index: {}]   ;;  %s2688_s1 = inlined_call_operand.vmem [shape: f32[2,8,8], index: 1, kind: input, shape index: {}]   ;;  %s2689_s2 = inlined_call_operand.vmem [shape: f32[1,4], index: 2, kind: input, shape index: {}]   ;;  %s2690_s3 = inlined_call_operand.vmem [shape: f32[1,4], index: 3, kind: input, shape index: {}]   ;;  %s2691_s4 = inlined_call_operand.vmem [shape: f32[1,4], index: 4, kind: input, shape index: {}]   ;;  %s2692_s5 = inlined_call_operand.vmem [shape: f32[1,4], index: 5, kind: input, shape index: {}]   ;;  %s2693_s6 = inlined_call_operand.vmem [shape: f32[2,8,32], index: 6, kind: output, shape index: {}]  }
   0x1 LB: > { %s1800_s22 = sadd.s32 4294967295, %s2086_s21   ;;  %p1804_p0 = scmp.ge.s32.totalorder %s2086_s21, 1  ;;  %s2086_s21 = sphi %s2164_s21, %s16_s21  }
   0x2   : > { %p220_p1 = scmp.lt.s32.totalorder %s2086_s21, 3 }
   0x4   : > { %p221_p2 = pnand %p1804_p0, %p220_p1 }
   0x5   : > { %p252_p3 = scmp.lt.s32.totalorder (!%p221_p2), %s1800_s22, 1  ;;  %s2088_s27 = smov (!%p221_p2), 96  }
   0x6   : > { %224 = sbr.rel (%p221_p2) target bundleno = 2722 (0xaa2), region = 44  ;;  %s2089_s30 = smov (!%p221_p2), 32  }
   0x7   : > { %s2091_s9 = smov (!%p221_p2), 64   ;;  %s2092_s13 = smov (!%p221_p2), 124  }
   0x8   : > { %s2094_s14 = smov (!%p221_p2), 92   ;;  %s2095_s15 = smov (!%p221_p2), 120  }
   0x9   : > { %s2096_s16 = smov (!%p221_p2), 84   ;;  %s2097_s17 = smov (!%p221_p2), 116  }
   0xa   : > { %s2695_s20 = smov (!%p221_p2), 4   ;;  %s2100_s24 = smov (!%p221_p2), 76  }
   0xb   : > { %s2705_s22 = smov (!%p252_p3, %s1800_s22), 1  ;;  %vm271_vm0 = vcmask 31744   ;;  %v2186_v3 = vld [vmem:[%s2691_s4] ss:$0 sm:$0xff]  ;;  %v2090_v10 = vmov 0   ;;  %v2093_v21 = vmov 0.0  }
   0xc   : > { %s2172_s23 = sshll.u32 %s2705_s22, 3  ;;  %v2196_v9 = vld [vmem:[%s2692_s5] ss:$0 sm:$0xff]  ;;  %2007 = vset.pattern.permute.xlu1 %v2090_v10  ;;  %1868 = vmatprep.subr.bf16.mxu1 %v2093_v21  ;;  %vm411_vm1 = vcmask 1043456   ;;  %s2099_s22 = smov 112   ;;  %vm2102_vm2 = vmmov 0  }
   0xd   : > { %s255_s26 = scalar_lea.vmem %s2687_s0, %s2172_s23  ;;  %s2215_s12 = scalar_lea.vmem %s2688_s1, %s2172_s23  ;;  %1862 = vmatprep.subr.bf16.mxu0 %v2093_v21  ;;  %v2241_v32 = vld [vmem:[%s2690_s3] ss:$0 sm:$0xff]  ;;  %1864 = vmatprep.mubr.msk.bf16.mxu0 %vm2102_vm2, %v2093_v21  ;;  %vm391_vm3 = vcmask 64512   ;;  %vm1723_vm4 = vcmask 97280   ;;  %vm1725_vm5 = vcmask 130048   ;;  %vm1727_vm6 = vcmask 162816  }
   0xe   : > { %v2178_v0 = vld [vmem:[%s255_s26] sm:$0xff]  ;;  %s2101_s25 = smov 108   ;;  %1870 = vmatprep.mubr.msk.bf16.mxu1 %vm2102_vm2, %v2093_v21  ;;  %s2103_s26 = smov 72   ;;  %vm1729_vm7 = vcmask 195584   ;;  %vm1731_vm8 = vcmask 228352   ;;  %vm1733_vm9 = vcmask 261120  }
   0xf   : > { %302 = vrot.lane.b32.xlu0 %v2178_v0, %s2088_s27  ;;  %v272_v8 = vsel %vm271_vm0, %v2178_v0, 0.0  ;;  %v2202_v13 = vpack.c.bf16 %v2178_v0, %v2178_v0  ;;  %v2218_v19 = vld [vmem:[%s2215_s12] sm:$0xff]  ;;  %s2104_s28 = smov 104   ;;  %s2105_s29 = smov 68  }
  0x10   : > { %v2275_v47 = vld [vmem:[%s2689_s2] ss:$0 sm:$0xff]  ;;  %s2696_s10 = smov 36   ;;  %s2110_s11 = smov 60  }
  0x11   : > { %s2697_s18 = smov 40   ;;  %s2694_s19 = smov 8  }
  0x12   : > { %s2113_s7 = smov 44   ;;  %s2114_s8 = smov 12  }
  0x81   : > { %v303_v1 = vpop.permute.xlu0 %302 }
  0x82   : > { %v305_v2 = vsel %vm271_vm0, %v303_v1, 0.0 }
  0x83   : > { %306 = vadd.xlane.f32.xlu0 %v305_v2 }
  0x99   : > { %327 = vrot.lane.b32.xlu0 %v2186_v3, %s2089_s30 }
 0x10c   : > { %v307_v4 = vpop.xlane.xlu0 %306 }
 0x10d   : > { %v308_v5 = vmul.f32 0.25, %v307_v4 }
 0x10f   : > { %v309_v6 = vsub.f32 %v2178_v0, %v308_v5 }
 0x110   : > { %v328_v20 = vpop.permute.xlu0 %327 }
 0x111   : > { %v310_v7 = vmul.f32 %v309_v6, %v309_v6 }
 0x113   : > { %312 = vrot.lane.b32.xlu1 %v310_v7, %s2088_s27 }
 0x137   : > { %273 = vadd.xlane.f32.xlu1 %v272_v8 }
 0x148   : > { %336 = vrot.lane.b32.xlu1 %v2196_v9, %s2089_s30  ;;  %s2106_s30 = smov 100  }
 0x185   : > { %v313_v11 = vpop.permute.xlu1 %312 }
 0x186   : > { %v315_v12 = vsel %vm271_vm0, %v313_v11, 0.0 }
 0x187   : > { %316 = vadd.xlane.f32.xlu0 %v315_v12 }
 0x19d   : > { %406 = vrot.lane.b32.xlu0 %v2202_v13, %s2091_s9  ;;  %s2108_s9 = smov 80  }
 0x1c0   : > { %v274_v14 = vpop.xlane.xlu1 %273 }
 0x1c1   : > { %v276_v15 = vmul.f32 0.25, %v274_v14 }
 0x1c3   : > { %v2206_v16 = vsub.f32 %v2178_v0, %v276_v15 }
 0x1c4   : > { %v337_v25 = vpop.permute.xlu1 %336 }
 0x1c5   : > { %v278_v17 = vmul.f32 %v2206_v16, %v2206_v16 }
 0x1c7   : > { %v279_v18 = vsel %vm271_vm0, %v278_v17, 0.0 }
 0x1c8   : > { %280 = vadd.xlane.f32.xlu1 %v279_v18 }
 0x1d9   : > { %457 = vperm.xlu1 %2007, %v2218_v19  }
 0x1dd   : > { %461 = vrot.lane.b32.xlu1 %v2178_v0, %s2092_s13 }
 0x210   : > { %v317_v22 = vpop.xlane.xlu0 %316 }
 0x211   : > { %v318_v30 = vmul.f32 0.25, %v317_v22 }
 0x213   : > { %v319_v31 = vadd.f32 1e-05, %v318_v30 }
 0x214   : > { %v407_v23 = vpop.permute.xlu0 %406 }
 0x215   : > { %v413_v24 = vsel %vm411_vm1, %v407_v23, 0  ;;  %2015 = vrsqrt.f32 %v319_v31 }
 0x216   : > { %1869 = vmatpush3.bf16.msra.mxu1 %v413_v24 }
 0x217   : > { %1874 = vmatprep.subr.bf16.mxu1 %v2093_v21 }
 0x222   : > { %v2016_v33 = vpop.eup %2015 }
 0x223   : > { %v321_v34 = vmul.f32 %v2016_v33, %v309_v6 }
 0x225   : > { %v330_v35 = vmul.f32 %v328_v20, %v321_v34 }
 0x227   : > { %v339_v36 = vadd.f32 %v337_v25, %v330_v35 }
 0x229   : > { %v341_v37 = vpack.c.bf16 %v339_v36, %v339_v36 }
 0x251   : > { %v281_v26 = vpop.xlane.xlu1 %280 }
 0x252   : > { %v282_v43 = vmul.f32 0.25, %v281_v26 }
 0x254   : > { %v283_v45 = vadd.f32 1e-05, %v282_v43 }
 0x255   : > { %v2227_v27 = vpop.permute.xlu1 %457 }
 0x256   : > { %2017 = vrsqrt.f32 %v283_v45 }
 0x259   : > { %v462_v28 = vpop.permute.xlu1 %461 }
 0x25a   : > { %v464_v29 = vsel %vm271_vm0, %v462_v28, 0.0 }
 0x25b   : > { %465 = vadd.xlane.f32.xlu0 %v464_v29 }
 0x263   : > { %v2018_v51 = vpop.eup %2017 }
 0x264   : > { %v285_v53 = vmul.f32 %v2018_v51, %v2206_v16 }
 0x266   : > { %v292_v55 = vmul.f32 %v2275_v47, %v285_v53 }
 0x268   : > { %v299_v57 = vadd.f32 %v2241_v32, %v292_v55 }
 0x26a   : > { %v300_v60 = vmul.f32 0.5, %v299_v57 }
 0x26c   : > { %v340_v61 = vpack.c.bf16 %v300_v60, %v300_v60 }
 0x271   : > { %490 = vrot.lane.b32.xlu0 %v2178_v0, %s2094_s14 }
 0x275   : > { %637 = vrot.lane.b32.xlu0 %v2178_v0, %s2095_s15 }
 0x279   : > { %842 = vrot.lane.b32.xlu0 %v2178_v0, %s2096_s16 }
 0x27d   : > { %813 = vrot.lane.b32.xlu0 %v2178_v0, %s2097_s17 }
 0x281   : > { %485 = vrot.lane.b32.xlu0 %v2241_v32, %s2695_s20 }
 0x285   : > { %989 = vrot.lane.b32.xlu0 %v2178_v0, %s2099_s22 }
 0x289   : > { %1194 = vrot.lane.b32.xlu0 %v2178_v0, %s2100_s24 }
 0x28d   : > { %1165 = vrot.lane.b32.xlu0 %v2178_v0, %s2101_s25 }
 0x291   : > { %1370 = vrot.lane.b32.xlu0 %v2178_v0, %s2103_s26 }
 0x295   : > { %343 = vrot.lane.b32.xlu0 %v341_v37, %s2088_s27  ;;  %s2107_s27 = smov 88  }
 0x299   : > { %1341 = vrot.lane.b32.xlu0 %v2178_v0, %s2104_s28 }
 0x29d   : > { %1546 = vrot.lane.b32.xlu0 %v2178_v0, %s2105_s29 }
 0x2a1   : > { %1517 = vrot.lane.b32.xlu0 %v2178_v0, %s2106_s30 }
 0x2e4   : > { %v466_v38 = vpop.xlane.xlu0 %465 }
 0x2e5   : > { %v467_v39 = vmul.f32 0.25, %v466_v38 }
 0x2e7   : > { %v2265_v40 = vsub.f32 %v2178_v0, %v467_v39 }
 0x2e8   : > { %v491_v41 = vpop.permute.xlu0 %490 }
 0x2e9   : > { %v469_v42 = vmul.f32 %v2265_v40, %v2265_v40  ;;  %v493_v62 = vsel %vm271_vm0, %v491_v41, 0.0 }
 0x2eb   : > { %471 = vrot.lane.b32.xlu1 %v469_v42, %s2092_s13 }
 0x2ec   : > { %v638_v44 = vpop.permute.xlu0 %637 }
 0x2ed   : > { %v640_v2 = vsel %vm271_vm0, %v638_v44, 0.0 }
 0x2ef   : > { %666 = vrot.lane.b32.xlu1 %v2178_v0, %s2107_s27 }
 0x2f0   : > { %v843_v46 = vpop.permute.xlu0 %842 }
 0x2f1   : > { %v845_v6 = vsel %vm271_vm0, %v843_v46, 0.0 }
 0x2f3   : > { %481 = vrot.lane.b32.xlu1 %v2275_v47, %s2695_s20  ;;  %s2698_s20 = smov 20  }
 0x2f4   : > { %v814_v48 = vpop.permute.xlu0 %813 }
 0x2f5   : > { %v816_v10 = vsel %vm271_vm0, %v814_v48, 0.0 }
 0x2f7   : > { %1018 = vrot.lane.b32.xlu1 %v2178_v0, %s2108_s9 }
 0x2f8   : > { %v2281_v49 = vpop.permute.xlu0 %485 }
 0x2fc   : > { %v990_v50 = vpop.permute.xlu0 %989 }
 0x2fd   : > { %v992_v17 = vsel %vm271_vm0, %v990_v50, 0.0 }
 0x300   : > { %v1195_v52 = vpop.permute.xlu0 %1194 }
 0x301   : > { %v1197_v18 = vsel %vm271_vm0, %v1195_v52, 0.0 }
 0x304   : > { %v1166_v54 = vpop.permute.xlu0 %1165 }
 0x305   : > { %v1168_v7 = vsel %vm271_vm0, %v1166_v54, 0.0 }
 0x308   : > { %v1371_v56 = vpop.permute.xlu0 %1370 }
 0x309   : > { %v1373_v11 = vsel %vm271_vm0, %v1371_v56, 0.0 }
 0x30c   : > { %v344_v58 = vpop.permute.xlu0 %343 }
 0x30d   : > { %v349_v59 = vsel %vm271_vm0, %v344_v58, 0 }
 0x30e   : > { %1863 = vmatpush3.bf16.xpose.msra.mxu0 %v349_v59 }
 0x30f   : > { %1880 = vmatprep.subr.bf16.mxu0 %v2093_v21 }
 0x310   : > { %v1342_v14 = vpop.permute.xlu0 %1341 }
 0x311   : > { %v1344_v15 = vsel %vm271_vm0, %v1342_v14, 0.0 }
 0x314   : > { %v1547_v20 = vpop.permute.xlu0 %1546 }
 0x315   : > { %1865 = vmatmul.mubr.msk.bf16.vlgmr.msra.gmra.mxu0 %vm271_vm0, %v340_v61  ;;  %v1549_v22 = vsel %vm271_vm0, %v1547_v20, 0.0 }
 0x316   : > { %1882 = vmatprep.mubr.msk.bf16.mxu0 %vm2102_vm2, %v2093_v21 }
 0x318   : > { %v1518_v28 = vpop.permute.xlu0 %1517 }
 0x319   : > { %v1520_v29 = vsel %vm271_vm0, %v1518_v28, 0.0 }
 0x31b   : > { %494 = vadd.xlane.f32.xlu1 %v493_v62 }
 0x35d   : > { %v472_v63 = vpop.permute.xlu1 %471 }
 0x35e   : > { %v474_v1 = vsel %vm271_vm0, %v472_v63, 0.0 }
 0x35f   : > { %475 = vadd.xlane.f32.xlu1 %v474_v1 }
 0x361   : > { %v667_v4 = vpop.permute.xlu1 %666 }
 0x362   : > { %v669_v5 = vsel %vm271_vm0, %v667_v4, 0.0 }
 0x363   : > { %670 = vadd.xlane.f32.xlu0 %v669_v5  ;;  %641 = vadd.xlane.f32.xlu1 %v640_v2 }
 0x365   : > { %v2297_v8 = vpop.permute.xlu1 %481 }
 0x367   : > { %846 = vadd.xlane.f32.xlu1 %v845_v6  ;;  %1169 = vadd.xlane.f32.xlu0 %v1168_v7 }
 0x369   : > { %v1019_v12 = vpop.permute.xlu1 %1018 }
 0x36a   : > { %v1021_v16 = vsel %vm271_vm0, %v1019_v12, 0.0 }
 0x36b   : > { %817 = vadd.xlane.f32.xlu1 %v816_v10  ;;  %1374 = vadd.xlane.f32.xlu0 %v1373_v11 }
 0x36f   : > { %1022 = vadd.xlane.f32.xlu1 %v1021_v16  ;;  %1345 = vadd.xlane.f32.xlu0 %v1344_v15 }
 0x373   : > { %993 = vadd.xlane.f32.xlu1 %v992_v17  ;;  %1550 = vadd.xlane.f32.xlu0 %v1549_v22 }
 0x377   : > { %1198 = vadd.xlane.f32.xlu1 %v1197_v18 }
 0x3a4   : > { %v495_v23 = vpop.xlane.xlu1 %494 }
 0x3a5   : > { %v496_v24 = vmul.f32 0.25, %v495_v23 }
 0x3a7   : > { %v2307_v25 = vsub.f32 %v2178_v0, %v496_v24 }
 0x3a9   : > { %v498_v26 = vmul.f32 %v2307_v25, %v2307_v25 }
 0x3ab   : > { %500 = vrot.lane.b32.xlu1 %v498_v26, %s2094_s14 }
 0x3cf   : > { %1521 = vadd.xlane.f32.xlu1 %v1520_v29 }
 0x3d5   : > { %v2313_v30 = vpop.f32.mrf.mxu0 }
 0x3d7   : > { %v1866_v31 = vpop.f32.mrf.mxu0 }
 0x3d9   : > { %v388_v33 = vpop.f32.mrf.mxu0 }
 0x3db   : > { %v1867_v34 = vpop.f32.mrf.mxu0 }
 0x3e8   : > { %v2315_v35 = vpop.xlane.xlu1 %475 }
 0x3ec   : > { %v642_v36 = vpop.xlane.xlu1 %641  ;;  %v671_v44 = vpop.xlane.xlu0 %670 }
 0x3ed   : > { %v643_v37 = vmul.f32 0.25, %v642_v36  ;;  %v672_v16 = vmul.f32 0.25, %v671_v44 }
 0x3ef   : > { %v2318_v38 = vsub.f32 %v2178_v0, %v643_v37  ;;  %v2367_v17 = vsub.f32 %v2178_v0, %v672_v16 }
 0x3f0   : > { %v847_v39 = vpop.xlane.xlu1 %846  ;;  %v1170_v51 = vpop.xlane.xlu0 %1169 }
 0x3f1   : > { %v645_v41 = vmul.f32 %v2318_v38, %v2318_v38  ;;  %v1171_v58 = vmul.f32 0.25, %v1170_v51  ;;  %v848_v20 = vmul.f32 0.25, %v847_v39  ;;  %v674_v22 = vmul.f32 %v2367_v17, %v2367_v17 }
 0x3f3   : > { %647 = vrot.lane.b32.xlu1 %v645_v41, %s2095_s15  ;;  %v2345_v63 = vsub.f32 %v2178_v0, %v1171_v58  ;;  %v2375_v24 = vsub.f32 %v2178_v0, %v848_v20 }
 0x3f4   : > { %v818_v42 = vpop.xlane.xlu1 %817  ;;  %v1375_v56 = vpop.xlane.xlu0 %1374 }
 0x3f5   : > { %v819_v43 = vmul.f32 0.25, %v818_v42  ;;  %v1376_v1 = vmul.f32 0.25, %v1375_v56  ;;  %v1173_v5 = vmul.f32 %v2345_v63, %v2345_v63  ;;  %v850_v28 = vmul.f32 %v2375_v24, %v2375_v24 }
 0x3f7   : > { %v2324_v45 = vsub.f32 %v2178_v0, %v819_v43  ;;  %v2353_v6 = vsub.f32 %v2178_v0, %v1376_v1 }
 0x3f8   : > { %v1023_v46 = vpop.xlane.xlu1 %1022  ;;  %v1346_v2 = vpop.xlane.xlu0 %1345 }
 0x3f9   : > { %v1024_v48 = vmul.f32 0.25, %v1023_v46  ;;  %v821_v50 = vmul.f32 %v2324_v45, %v2324_v45  ;;  %v1347_v7 = vmul.f32 0.25, %v1346_v2  ;;  %v1378_v11 = vmul.f32 %v2353_v6, %v2353_v6 }
 0x3fb   : > { %v2329_v52 = vsub.f32 %v2178_v0, %v1024_v48  ;;  %823 = vrot.lane.b32.xlu1 %v821_v50, %s2097_s17  ;;  %v2357_v10 = vsub.f32 %v2178_v0, %v1347_v7 }
 0x3fc   : > { %v994_v53 = vpop.xlane.xlu1 %993  ;;  %v1551_v18 = vpop.xlane.xlu0 %1550 }
 0x3fd   : > { %v1026_v54 = vmul.f32 %v2329_v52, %v2329_v52  ;;  %v995_v55 = vmul.f32 0.25, %v994_v53  ;;  %v1349_v12 = vmul.f32 %v2357_v10, %v2357_v10  ;;  %v1552_v23 = vmul.f32 0.25, %v1551_v18 }
 0x3ff   : > { %1028 = vrot.lane.b32.xlu1 %v1026_v54, %s2108_s9  ;;  %v2336_v57 = vsub.f32 %v2178_v0, %v995_v55  ;;  %v2380_v26 = vsub.f32 %v2178_v0, %v1552_v23 }
 0x400   : > { %v1199_v59 = vpop.xlane.xlu1 %1198 }
 0x401   : > { %v1200_v60 = vmul.f32 0.25, %v1199_v59  ;;  %v997_v61 = vmul.f32 %v2336_v57, %v2336_v57  ;;  %v1554_v29 = vmul.f32 %v2380_v26, %v2380_v26 }
 0x403   : > { %v2341_v62 = vsub.f32 %v2178_v0, %v1200_v60  ;;  %999 = vrot.lane.b32.xlu1 %v997_v61, %s2099_s22 }
 0x405   : > { %v1202_v4 = vmul.f32 %v2341_v62, %v2341_v62 }
 0x407   : > { %1204 = vrot.lane.b32.xlu1 %v1202_v4, %s2100_s24 }
 0x40b   : > { %1175 = vrot.lane.b32.xlu1 %v1173_v5, %s2101_s25 }
 0x40f   : > { %1380 = vrot.lane.b32.xlu1 %v1378_v11, %s2103_s26 }
 0x413   : > { %1351 = vrot.lane.b32.xlu1 %v1349_v12, %s2104_s28 }
 0x41d   : > { %v501_v14 = vpop.permute.xlu1 %500 }
 0x41e   : > { %v503_v15 = vsel %vm271_vm0, %v501_v14, 0.0 }
 0x41f   : > { %504 = vadd.xlane.f32.xlu0 %v503_v15 }
 0x435   : > { %510 = vrot.lane.b32.xlu0 %v2186_v3, %s2696_s10 }
 0x439   : > { %676 = vrot.lane.b32.xlu0 %v674_v22, %s2107_s27 }
 0x43d   : > { %514 = vrot.lane.b32.xlu0 %v2196_v9, %s2696_s10  ;;  %s2119_s10 = smov 56  }
 0x441   : > { %852 = vrot.lane.b32.xlu0 %v850_v28, %s2096_s16 }
 0x445   : > { %1556 = vrot.lane.b32.xlu0 %v1554_v29, %s2105_s29 }
 0x458   : > { %v1522_v31 = vpop.xlane.xlu1 %1521 }
 0x459   : > { %v1523_v33 = vmul.f32 0.25, %v1522_v31 }
 0x45b   : > { %v2389_v34 = vsub.f32 %v2178_v0, %v1523_v33 }
 0x45d   : > { %v1525_v36 = vmul.f32 %v2389_v34, %v2389_v34 }
 0x45f   : > { %1527 = vrot.lane.b32.xlu1 %v1525_v36, %s2106_s30 }
 0x465   : > { %v648_v37 = vpop.permute.xlu1 %647 }
 0x466   : > { %v650_v39 = vsel %vm271_vm0, %v648_v37, 0.0 }
 0x46d   : > { %v824_v41 = vpop.permute.xlu1 %823 }
 0x46e   : > { %v826_v5 = vsel %vm271_vm0, %v824_v41, 0.0 }
 0x471   : > { %v1029_v44 = vpop.permute.xlu1 %1028 }
 0x472   : > { %v1031_v55 = vsel %vm271_vm0, %v1029_v44, 0.0 }
 0x475   : > { %v1000_v50 = vpop.permute.xlu1 %999 }
 0x476   : > { %v1002_v11 = vsel %vm271_vm0, %v1000_v50, 0.0 }
 0x479   : > { %v1205_v53 = vpop.permute.xlu1 %1204 }
 0x47a   : > { %v1207_v59 = vsel %vm271_vm0, %v1205_v53, 0.0 }
 0x47d   : > { %v1176_v58 = vpop.permute.xlu1 %1175 }
 0x47e   : > { %v1178_v2 = vsel %vm271_vm0, %v1176_v58, 0.0 }
 0x481   : > { %v1381_v12 = vpop.permute.xlu1 %1380 }
 0x482   : > { %v1383_v16 = vsel %vm271_vm0, %v1381_v12, 0.0 }
 0x483   : > { %651 = vadd.xlane.f32.xlu1 %v650_v39 }
 0x485   : > { %v1352_v15 = vpop.permute.xlu1 %1351 }
 0x486   : > { %v1354_v18 = vsel %vm271_vm0, %v1352_v15, 0.0 }
 0x4a8   : > { %v505_v42 = vpop.xlane.xlu0 %504 }
 0x4a9   : > { %v506_v43 = vmul.f32 0.25, %v505_v42 }
 0x4ab   : > { %v507_v46 = vadd.f32 1e-05, %v506_v43 }
 0x4ac   : > { %v511_v48 = vpop.permute.xlu0 %510 }
 0x4ad   : > { %2019 = vrsqrt.f32 %v507_v46 }
 0x4b0   : > { %v677_v51 = vpop.permute.xlu0 %676 }
 0x4b1   : > { %v679_v0 = vsel %vm271_vm0, %v677_v51, 0.0 }
 0x4b2   : > { %680 = vadd.xlane.f32.xlu0 %v679_v0 }
 0x4b4   : > { %v515_v54 = vpop.permute.xlu0 %514 }
 0x4b6   : > { %1032 = vadd.xlane.f32.xlu0 %v1031_v55 }
 0x4b8   : > { %v853_v56 = vpop.permute.xlu0 %852 }
 0x4b9   : > { %v855_v60 = vsel %vm271_vm0, %v853_v56, 0.0 }
 0x4ba   : > { %v2020_v61 = vpop.eup %2019  ;;  %1208 = vadd.xlane.f32.xlu0 %v1207_v59  ;;  %856 = vadd.xlane.f32.xlu1 %v855_v60 }
 0x4bb   : > { %v509_v1 = vmul.f32 %v2020_v61, %v2307_v25  ;;  %v477_v25 = vmul.f32 0.25, %v2315_v35 }
 0x4bc   : > { %v1557_v33 = vpop.permute.xlu0 %1556 }
 0x4bd   : > { %v513_v4 = vmul.f32 %v511_v48, %v509_v1  ;;  %v478_v14 = vadd.f32 1e-05, %v477_v25 }
 0x4be   : > { %1179 = vadd.xlane.f32.xlu0 %v1178_v2  ;;  %827 = vadd.xlane.f32.xlu1 %v826_v5 }
 0x4bf   : > { %v517_v7 = vadd.f32 %v515_v54, %v513_v4  ;;  %2021 = vrsqrt.f32 %v478_v14 }
 0x4c1   : > { %v519_v28 = vpack.c.bf16 %v517_v7, %v517_v7 }
 0x4c2   : > { %1003 = vadd.xlane.f32.xlu1 %v1002_v11 }
 0x4cc   : > { %v2022_v20 = vpop.eup %2021 }
 0x4cd   : > { %v480_v22 = vmul.f32 %v2022_v20, %v2265_v40  ;;  %v1559_v40 = vsel %vm271_vm0, %v1557_v33, 0.0 }
 0x4cf   : > { %v484_v23 = vmul.f32 %v2297_v8, %v480_v22  ;;  %v392_v8 = vsel %vm391_vm3, %v2313_v30, -inf }
 0x4d1   : > { %v488_v35 = vadd.f32 %v2281_v49, %v484_v23  ;;  %v1528_v49 = vpop.permute.xlu1 %1527 }
 0x4d2   : > { %v1530_v44 = vsel %vm271_vm0, %v1528_v49, 0.0 }
 0x4d3   : > { %584 = vrot.lane.b32.xlu1 %v2202_v13, %s2110_s11  ;;  %v489_v29 = vmul.f32 0.5, %v488_v35 }
 0x4d4   : > { %686 = vrot.lane.b32.xlu0 %v2186_v3, %s2697_s18 }
 0x4d5   : > { %v518_v31 = vpack.c.bf16 %v489_v29, %v489_v29 }
 0x4d8   : > { %690 = vrot.lane.b32.xlu0 %v2196_v9, %s2697_s18  ;;  %s2120_s18 = smov 24  }
 0x4dc   : > { %657 = vrot.lane.b32.xlu0 %v2275_v47, %s2694_s19 }
 0x4f7   : > { %1384 = vadd.xlane.f32.xlu1 %v1383_v16 }
 0x4fb   : > { %1355 = vadd.xlane.f32.xlu0 %v1354_v18 }
 0x508   : > { %661 = vrot.lane.b32.xlu1 %v2241_v32, %s2694_s19  ;;  %s2117_s19 = smov 52  }
 0x50c   : > { %v2428_v36 = vpop.xlane.xlu1 %651 }
 0x511   : > { %862 = vrot.lane.b32.xlu0 %v2186_v3, %s2113_s7 }
 0x515   : > { %524 = vrot.lane.b32.xlu0 %v519_v28, %s2094_s14  ;;  %s2115_s14 = smov 48  }
 0x519   : > { %521 = vrot.lane.b32.xlu0 %v518_v31, %s2092_s13  ;;  %s2116_s13 = smov 16   ;;  %v653_v31 = vmul.f32 0.25, %v2428_v36 }
 0x52c   : > { %1560 = vadd.xlane.f32.xlu1 %v1559_v40 }
 0x538   : > { %393 = vmax.xlane.f32.xlu0 %v392_v8 }
 0x53b   : > { %v681_v46 = vpop.xlane.xlu0 %680 }
 0x53c   : > { %v682_v48 = vmul.f32 0.25, %v681_v46 }
 0x53d   : > { %837 = vrot.lane.b32.xlu1 %v2241_v32, %s2114_s8 }
 0x53e   : > { %v683_v50 = vadd.f32 1e-05, %v682_v48  ;;  %v654_v48 = vadd.f32 1e-05, %v653_v31 }
 0x53f   : > { %v1033_v51 = vpop.xlane.xlu0 %1032 }
 0x540   : > { %2023 = vrsqrt.f32 %v683_v50  ;;  %v1034_v4 = vmul.f32 0.25, %v1033_v51 }
 0x541   : > { %1038 = vrot.lane.b32.xlu1 %v2186_v3, %s2115_s14 }
 0x542   : > { %v1035_v7 = vadd.f32 1e-05, %v1034_v4 }
 0x543   : > { %v857_v37 = vpop.xlane.xlu1 %856  ;;  %v1209_v0 = vpop.xlane.xlu0 %1208 }
 0x544   : > { %v858_v1 = vmul.f32 0.25, %v857_v37  ;;  %v1210_v25 = vmul.f32 0.25, %v1209_v0 }
 0x545   : > { %1042 = vrot.lane.b32.xlu1 %v2196_v9, %s2115_s14 }
 0x546   : > { %v859_v5 = vadd.f32 1e-05, %v858_v1 }
 0x547   : > { %v2434_v39 = vpop.xlane.xlu1 %827  ;;  %v2463_v53 = vpop.xlane.xlu0 %1179 }
 0x548   : > { %2025 = vrsqrt.f32 %v859_v5 }
 0x549   : > { %1013 = vrot.lane.b32.xlu1 %v2241_v32, %s2116_s13  ;;  %2027 = vrsqrt.f32 %v1035_v7 }
 0x54b   : > { %v2438_v41 = vpop.xlane.xlu1 %1003  ;;  %v687_v55 = vpop.permute.xlu0 %686 }
 0x54d   : > { %1214 = vrot.lane.b32.xlu1 %v2186_v3, %s2117_s19  ;;  %v2024_v54 = vpop.eup %2023 }
 0x54e   : > { %866 = vrot.lane.b32.xlu0 %v2196_v9, %s2113_s7 }
 0x54f   : > { %v585_v42 = vpop.permute.xlu1 %584  ;;  %v691_v58 = vpop.permute.xlu0 %690 }
 0x550   : > { %v590_v43 = vsel %vm411_vm1, %v585_v42, 0  ;;  %v829_v42 = vmul.f32 0.25, %v2434_v39 }
 0x551   : > { %1218 = vrot.lane.b32.xlu1 %v2196_v9, %s2117_s19  ;;  %1881 = vmatpush3.bf16.msra.mxu0 %v590_v43 }
 0x552   : > { %833 = vrot.lane.b32.xlu0 %v2275_v47, %s2114_s8  ;;  %1892 = vmatprep.subr.bf16.mxu0 %v2093_v21 }
 0x553   : > { %v658_v61 = vpop.permute.xlu0 %657 }
 0x555   : > { %1185 = vrot.lane.b32.xlu1 %v2275_v47, %s2698_s20  ;;  %v2026_v20 = vpop.eup %2025 }
 0x556   : > { %v2028_v22 = vpop.eup %2027  ;;  %v861_v28 = vmul.f32 %v2026_v20, %v2375_v24 }
 0x557   : > { %v1037_v40 = vmul.f32 %v2028_v22, %v2329_v52 }
 0x559   : > { %1189 = vrot.lane.b32.xlu1 %v2241_v32, %s2698_s20  ;;  %s2121_s20 = smov 28  }
 0x55d   : > { %1394 = vrot.lane.b32.xlu1 %v2196_v9, %s2119_s10 }
 0x561   : > { %1365 = vrot.lane.b32.xlu1 %v2241_v32, %s2120_s18 }
 0x565   : > { %1570 = vrot.lane.b32.xlu1 %v2196_v9, %s2110_s11  ;;  %v685_v9 = vmul.f32 %v2024_v54, %v2367_v17 }
 0x567   : > { %v689_v56 = vmul.f32 %v687_v55, %v685_v9 }
 0x569   : > { %v693_v59 = vadd.f32 %v691_v58, %v689_v56 }
 0x56b   : > { %v695_v60 = vpack.c.bf16 %v693_v59, %v693_v59 }
 0x571   : > { %1531 = vadd.xlane.f32.xlu0 %v1530_v44 }
 0x580   : > { %v2475_v17 = vpop.xlane.xlu1 %1384 }
 0x584   : > { %v2477_v2 = vpop.xlane.xlu0 %1355  ;;  %v662_v11 = vpop.permute.xlu1 %661 }
 0x587   : > { %1009 = vrot.lane.b32.xlu0 %v2275_v47, %s2116_s13 }
 0x58b   : > { %1390 = vrot.lane.b32.xlu0 %v2186_v3, %s2119_s10 }
 0x58f   : > { %1361 = vrot.lane.b32.xlu0 %v2275_v47, %s2120_s18 }
 0x593   : > { %1566 = vrot.lane.b32.xlu0 %v2186_v3, %s2110_s11  ;;  %v863_v3 = vpop.permute.xlu0 %862 }
 0x594   : > { %v865_v33 = vmul.f32 %v863_v3, %v861_v28  ;;  %v1181_v3 = vmul.f32 0.25, %v2463_v53  ;;  %v1357_v53 = vmul.f32 0.25, %v2477_v2 }
 0x596   : > { %v1182_v20 = vadd.f32 1e-05, %v1181_v3 }
 0x597   : > { %1537 = vrot.lane.b32.xlu0 %v2275_v47, %s2121_s20  ;;  %v1211_v47 = vadd.f32 1e-05, %v1210_v25  ;;  %v2481_v14 = vpop.permute.xlu0 %524 }
 0x599   : > { %2029 = vrsqrt.f32 %v1211_v47 }
 0x59b   : > { %700 = vrot.lane.b32.xlu0 %v695_v60, %s2107_s27  ;;  %v2483_v16 = vpop.permute.xlu0 %521 }
 0x5a6   : > { %v2030_v46 = vpop.eup %2029 }
 0x5a7   : > { %v1213_v36 = vmul.f32 %v2030_v46, %v2341_v62 }
 0x5b5   : > { %v2479_v12 = vpop.xlane.xlu1 %1560 }
 0x5b9   : > { %v838_v15 = vpop.permute.xlu1 %837 }
 0x5bd   : > { %v1039_v18 = vpop.permute.xlu1 %1038 }
 0x5be   : > { %v1041_v43 = vmul.f32 %v1039_v18, %v1037_v40  ;;  %v1005_v18 = vmul.f32 0.25, %v2438_v41  ;;  %v1358_v41 = vadd.f32 1e-05, %v1357_v53 }
 0x5c1   : > { %v1043_v23 = vpop.permute.xlu1 %1042  ;;  %v394_v35 = vpop.xlane.xlu0 %393 }
 0x5c2   : > { %v395_v29 = vsub.f32 %v2313_v30, %v394_v35  ;;  %v1045_v50 = vadd.f32 %v1043_v23, %v1041_v43  ;;  %v830_v30 = vadd.f32 1e-05, %v829_v42  ;;  %v1006_v35 = vadd.f32 1e-05, %v1005_v18 }
 0x5c4   : > { %v396_v8 = vmul.f32 1.442695, %v395_v29  ;;  %v1047_v52 = vpack.c.bf16 %v1045_v50, %v1045_v50 }
 0x5c5   : > { %v2489_v49 = vpop.permute.xlu1 %1013  ;;  %v867_v37 = vpop.permute.xlu0 %866 }
 0x5c6   : > { %2031 = vpow2.f32 %v396_v8  ;;  %v869_v44 = vadd.f32 %v867_v37, %v865_v33 }
 0x5c7   : > { %2033 = vrsqrt.f32 %v654_v48 }
 0x5c8   : > { %v871_v24 = vpack.c.bf16 %v869_v44, %v869_v44  ;;  %2035 = vrsqrt.f32 %v830_v30 }
 0x5c9   : > { %v1215_v51 = vpop.permute.xlu1 %1214  ;;  %v834_v60 = vpop.permute.xlu0 %833  ;;  %2037 = vrsqrt.f32 %v1182_v20 }
 0x5ca   : > { %876 = vrot.lane.b32.xlu0 %v871_v24, %s2096_s16  ;;  %v1217_v0 = vmul.f32 %v1215_v51, %v1213_v36  ;;  %2039 = vrsqrt.f32 %v1006_v35  ;;  %v2124_v35 = vmov 2   ;;  %s2701_s16 = smov 4  }
 0x5cd   : > { %v1219_v54 = vpop.permute.xlu1 %1218 }
 0x5ce   : > { %v1221_v9 = vadd.f32 %v1219_v54, %v1217_v0  ;;  %1052 = vrot.lane.b32.xlu0 %v1047_v52, %s2108_s9 }
 0x5d0   : > { %v1223_v39 = vpack.c.bf16 %v1221_v9, %v1221_v9 }
 0x5d2   : > { %1228 = vrot.lane.b32.xlu0 %v1223_v39, %s2100_s24 }
 0x5d3   : > { %v2496_v55 = vpop.eup %2031 }
 0x5d4   : > { %v398_v56 = vsel %vm391_vm3, %v2496_v55, 0.0  ;;  %v2034_v62 = vpop.eup %2033 }
 0x5d5   : > { %399 = vadd.xlane.f32.xlu1 %v398_v56  ;;  %v2036_v58 = vpop.eup %2035  ;;  %v656_v59 = vmul.f32 %v2034_v62, %v2318_v38  ;;  %v1386_v38 = vmul.f32 0.25, %v2475_v17 }
 0x5d6   : > { %v832_v4 = vmul.f32 %v2036_v58, %v2324_v45  ;;  %v2038_v28 = vpop.eup %2037 }
 0x5d7   : > { %v660_v1 = vmul.f32 %v658_v61, %v656_v59  ;;  %v1387_v61 = vadd.f32 1e-05, %v1386_v38  ;;  %v2040_v17 = vpop.eup %2039  ;;  %v1184_v33 = vmul.f32 %v2038_v28, %v2345_v63 }
 0x5d8   : > { %v836_v7 = vmul.f32 %v834_v60, %v832_v4  ;;  %v1008_v40 = vmul.f32 %v2040_v17, %v2336_v57 }
 0x5d9   : > { %v664_v5 = vadd.f32 %v662_v11, %v660_v1  ;;  %2041 = vrsqrt.f32 %v1387_v61  ;;  %v1186_v11 = vpop.permute.xlu1 %1185 }
 0x5da   : > { %v840_v47 = vadd.f32 %v838_v15, %v836_v7  ;;  %2043 = vrsqrt.f32 %v1358_v41  ;;  %v1188_v42 = vmul.f32 %v1186_v11, %v1184_v33  ;;  %v530_v11 = vsel %vm271_vm0, %v2481_v14, 0 }
 0x5db   : > { %v665_v25 = vmul.f32 0.5, %v664_v5 }
 0x5dc   : > { %v841_v23 = vmul.f32 0.5, %v840_v47  ;;  %v2123_v47 = vmov 3  }
 0x5dd   : > { %v694_v22 = vpack.c.bf16 %v665_v25, %v665_v25  ;;  %v1190_v29 = vpop.permute.xlu1 %1189  ;;  %2010 = vset.pattern.permute.xlu1 %v2123_v47 }
 0x5de   : > { %v870_v45 = vpack.c.bf16 %v841_v23, %v841_v23  ;;  %v1192_v44 = vadd.f32 %v1190_v29, %v1188_v42 }
 0x5e0   : > { %v1193_v36 = vmul.f32 0.5, %v1192_v44 }
 0x5e1   : > { %v1395_v37 = vpop.permute.xlu1 %1394 }
 0x5e2   : > { %v1222_v56 = vpack.c.bf16 %v1193_v36, %v1193_v36 }
 0x5e5   : > { %v1366_v30 = vpop.permute.xlu1 %1365 }
 0x5e6   : > { %1541 = vrot.lane.b32.xlu1 %v2241_v32, %s2121_s20  ;;  %v1562_v32 = vmul.f32 0.25, %v2479_v12  ;;  %v2042_v8 = vpop.eup %2041 }
 0x5e7   : > { %v1389_v46 = vmul.f32 %v2042_v8, %v2353_v6  ;;  %v2044_v48 = vpop.eup %2043 }
 0x5e8   : > { %v1563_v15 = vadd.f32 1e-05, %v1562_v32  ;;  %v1360_v57 = vmul.f32 %v2044_v48, %v2357_v10 }
 0x5e9   : > { %v1571_v58 = vpop.permute.xlu1 %1570 }
 0x5ea   : > { %697 = vrot.lane.b32.xlu1 %v694_v22, %s2095_s15  ;;  %2045 = vrsqrt.f32 %v1563_v15  ;;  %s2699_s15 = smov 40  }
 0x5ee   : > { %873 = vrot.lane.b32.xlu1 %v870_v45, %s2097_s17  ;;  %s2702_s17 = smov 8  }
 0x5f7   : > { %v2046_v0 = vpop.eup %2045 }
 0x5f8   : > { %v1565_v6 = vmul.f32 %v2046_v0, %v2380_v26  ;;  %v2122_v26 = vmov 1  }
 0x5f9   : > { %2008 = vset.pattern.permute.xlu0 %v2122_v26 }
 0x5fa   : > { %v1532_v31 = vpop.xlane.xlu0 %1531 }
 0x5fb   : > { %v1533_v5 = vmul.f32 0.25, %v1532_v31 }
 0x5fd   : > { %v1534_v7 = vadd.f32 1e-05, %v1533_v5 }
 0x5fe   : > { %v1010_v2 = vpop.permute.xlu0 %1009 }
 0x5ff   : > { %v1012_v43 = vmul.f32 %v1010_v2, %v1008_v40  ;;  %2047 = vrsqrt.f32 %v1534_v7 }
 0x601   : > { %v1016_v12 = vadd.f32 %v2489_v49, %v1012_v43 }
 0x602   : > { %v1391_v50 = vpop.permute.xlu0 %1390 }
 0x603   : > { %v1017_v24 = vmul.f32 0.5, %v1016_v12  ;;  %v1393_v51 = vmul.f32 %v1391_v50, %v1389_v46  ;;  %v2126_v46 = vmov 5  }
 0x605   : > { %v1046_v52 = vpack.c.bf16 %v1017_v24, %v1017_v24  ;;  %v1397_v63 = vadd.f32 %v1395_v37, %v1393_v51 }
 0x606   : > { %v1362_v54 = vpop.permute.xlu0 %1361 }
 0x607   : > { %v1399_v9 = vpack.c.bf16 %v1397_v63, %v1397_v63  ;;  %v1364_v39 = vmul.f32 %v1362_v54, %v1360_v57  ;;  %1049 = vrot.lane.b32.xlu1 %v1046_v52, %s2099_s22  ;;  %s2703_s22 = smov 20  }
 0x609   : > { %v1368_v49 = vadd.f32 %v1366_v30, %v1364_v39  ;;  %1404 = vrot.lane.b32.xlu0 %v1399_v9, %s2103_s26 }
 0x60a   : > { %v1567_v62 = vpop.permute.xlu0 %1566 }
 0x60b   : > { %v1369_v59 = vmul.f32 0.5, %v1368_v49  ;;  %v1569_v60 = vmul.f32 %v1567_v62, %v1565_v6  ;;  %1225 = vrot.lane.b32.xlu1 %v1222_v56, %s2101_s25  ;;  %s263_s25 = scalar_lea.vmem %s2693_s6, %s2172_s23 }
 0x60c   : > { %v2048_v3 = vpop.eup %2047 }
 0x60d   : > { %v1398_v1 = vpack.c.bf16 %v1369_v59, %v1369_v59  ;;  %v1573_v10 = vadd.f32 %v1571_v58, %v1569_v60  ;;  %v1536_v25 = vmul.f32 %v2048_v3, %v2389_v34  ;;  %v2125_v34 = vmov 4  }
 0x60e   : > { %v1538_v18 = vpop.permute.xlu0 %1537 }
 0x60f   : > { %v1575_v4 = vpack.c.bf16 %v1573_v10, %v1573_v10  ;;  %1401 = vrot.lane.b32.xlu1 %v1398_v1, %s2104_s28  ;;  %v1540_v22 = vmul.f32 %v1538_v18, %v1536_v25 }
 0x611   : > { %1580 = vrot.lane.b32.xlu0 %v1575_v4, %s2105_s29 }
 0x615   : > { %633 = vperm.xlu0 %2008, %v2218_v19  }
 0x619   : > { %2009 = vset.pattern.permute.xlu0 %v2124_v35  ;;  %v2584_v35 = vld [vmem:[%s2215_s12] sm:$0xff]  ;;  %s2700_s12 = smov 36  }
 0x61a   : > { %809 = vperm.xlu0 %2009, %v2218_v19  }
 0x61e   : > { %1112 = vrot.lane.b32.xlu0 %v2202_v13, %s2115_s14 }
 0x61f   : > { %2011 = vset.pattern.permute.xlu0 %v2125_v34 }
 0x622   : > { %1161 = vperm.xlu0 %2011, %v2218_v19  }
 0x65e   : > { %v400_v20 = vpop.xlane.xlu1 %399 }
 0x65f   : > { %2049 = vrcp.f32 %v400_v20 }
 0x662   : > { %v1542_v23 = vpop.permute.xlu1 %1541 }
 0x663   : > { %v1544_v38 = vadd.f32 %v1542_v23, %v1540_v22 }
 0x665   : > { %v1545_v45 = vmul.f32 0.5, %v1544_v38 }
 0x666   : > { %v698_v28 = vpop.permute.xlu1 %697 }
 0x667   : > { %v1574_v61 = vpack.c.bf16 %v1545_v45, %v1545_v45 }
 0x669   : > { %1577 = vrot.lane.b32.xlu1 %v1574_v61, %s2106_s30 }
 0x66c   : > { %v2050_v53 = vpop.eup %2049 }
 0x66d   : > { %v402_v41 = vmul.f32 %v2050_v53, %v2496_v55  ;;  %760 = vrot.lane.b32.xlu1 %v2202_v13, %s2119_s10  ;;  %v701_v55 = vpop.permute.xlu0 %700 }
 0x66e   : > { %v706_v15 = vsel %vm271_vm0, %v701_v55, 0 }
 0x66f   : > { %v403_v32 = vpack.c.bf16 %v402_v41, %v402_v41 }
 0x671   : > { %1871 = vmatmul.mubr.msk.bf16.vlgmr.msra.gmra.mxu1 %vm391_vm3, %v403_v32  ;;  %936 = vrot.lane.b32.xlu1 %v2202_v13, %s2117_s19  ;;  %v877_v14 = vpop.permute.xlu0 %876 }
 0x672   : > { %1875 = vmatpush3.bf16.xpose.msra.mxu1 %v530_v11  ;;  %1876 = vmatprep.mubr.msk.bf16.mxu1 %vm2102_vm2, %v2093_v21  ;;  %v882_v17 = vsel %vm271_vm0, %v877_v14, 0 }
 0x673   : > { %1886 = vmatprep.subr.bf16.mxu1 %v2093_v21 }
 0x675   : > { %985 = vperm.xlu1 %2010, %v2218_v19   ;;  %v1053_v19 = vpop.permute.xlu0 %1052 }
 0x676   : > { %v1058_v29 = vsel %vm271_vm0, %v1053_v19, 0 }
 0x679   : > { %1877 = vmatmul.mubr.msk.bf16.vlgmr.msra.gmra.mxu1 %vm271_vm0, %v2483_v16  ;;  %1288 = vrot.lane.b32.xlu1 %v2202_v13, %s2113_s7  ;;  %v874_v16 = vpop.permute.xlu1 %873  ;;  %v1229_v31 = vpop.permute.xlu0 %1228 }
 0x67a   : > { %1887 = vmatpush3.bf16.xpose.msra.mxu1 %v706_v15  ;;  %1888 = vmatprep.mubr.msk.bf16.mxu1 %vm2102_vm2, %v2093_v21  ;;  %v1234_v40 = vsel %vm271_vm0, %v1229_v31, 0 }
 0x67b   : > { %1898 = vmatprep.subr.bf16.mxu1 %v2093_v21  ;;  %2012 = vset.pattern.permute.xlu1 %v2126_v46 }
 0x67d   : > { %v1050_v33 = vpop.permute.xlu1 %1049  ;;  %v1405_v8 = vpop.permute.xlu0 %1404 }
 0x67e   : > { %v1410_v37 = vsel %vm271_vm0, %v1405_v8, 0 }
 0x681   : > { %1889 = vmatmul.mubr.msk.bf16.vlgmr.msra.gmra.mxu1 %vm271_vm0, %v698_v28  ;;  %v1226_v2 = vpop.permute.xlu1 %1225 }
 0x682   : > { %1899 = vmatpush3.bf16.xpose.msra.mxu1 %v882_v17  ;;  %1900 = vmatprep.mubr.msk.bf16.mxu1 %vm2102_vm2, %v2093_v21 }
 0x683   : > { %1910 = vmatprep.subr.bf16.mxu1 %v2093_v21  ;;  %v1581_v42 = vpop.permute.xlu0 %1580 }
 0x684   : > { %v1586_v44 = vsel %vm271_vm0, %v1581_v42, 0 }
 0x685   : > { %v1402_v43 = vpop.permute.xlu1 %1401 }
 0x689   : > { %1901 = vmatmul.mubr.msk.bf16.vlgmr.msra.gmra.mxu1 %vm271_vm0, %v874_v16 }
 0x68a   : > { %1911 = vmatpush3.bf16.xpose.msra.mxu1 %v1058_v29  ;;  %1912 = vmatprep.mubr.msk.bf16.mxu1 %vm2102_vm2, %v2093_v21 }
 0x68b   : > { %1922 = vmatprep.subr.bf16.mxu1 %v2093_v21 }
 0x690   : > { %v2590_v41 = vpop.permute.xlu0 %633 }
 0x691   : > { %1913 = vmatmul.mubr.msk.bf16.vlgmr.msra.gmra.mxu1 %vm271_vm0, %v1050_v33 }
 0x692   : > { %1923 = vmatpush3.bf16.xpose.msra.mxu1 %v1234_v40  ;;  %1924 = vmatprep.mubr.msk.bf16.mxu1 %vm2102_vm2, %v2093_v21 }
 0x693   : > { %1934 = vmatprep.subr.bf16.mxu1 %v2093_v21 }
 0x695   : > { %v2592_v32 = vpop.permute.xlu0 %809 }
 0x699   : > { %1925 = vmatmul.mubr.msk.bf16.vlgmr.msra.gmra.mxu1 %vm271_vm0, %v1226_v2  ;;  %v2596_v55 = vpop.permute.xlu0 %1112 }
 0x69a   : > { %1935 = vmatpush3.bf16.xpose.msra.mxu1 %v1410_v37  ;;  %1936 = vmatprep.mubr.msk.bf16.mxu1 %vm2102_vm2, %v2093_v21 }
 0x69b   : > { %1946 = vmatprep.subr.bf16.mxu1 %v2093_v21 }
 0x69d   : > { %v2600_v14 = vpop.permute.xlu0 %1161 }
 0x6a1   : > { %1937 = vmatmul.mubr.msk.bf16.vlgmr.msra.gmra.mxu1 %vm271_vm0, %v1402_v43 }
 0x6a2   : > { %1947 = vmatpush3.bf16.xpose.msra.mxu1 %v1586_v44  ;;  %1948 = vmatprep.mubr.msk.bf16.mxu1 %vm2102_vm2, %v2093_v21 }
 0x6db   : > { %v1578_v12 = vpop.permute.xlu1 %1577 }
 0x6dc   : > { %1949 = vmatmul.mubr.msk.bf16.vlgmr.msra.gmra.mxu1 %vm271_vm0, %v1578_v12 }
 0x6df   : > { %v2594_v11 = vpop.permute.xlu1 %760 }
 0x6e3   : > { %v2598_v15 = vpop.permute.xlu1 %936 }
 0x6f0   : > { %v2602_v28 = vpop.permute.xlu1 %985 }
 0x6f4   : > { %v2604_v29 = vpop.permute.xlu1 %1288 }
 0x731   : > { %v2574_v48 = vpop.f32.mrf.mxu1 }
 0x733   : > { %v1872_v50 = vpop.f32.mrf.mxu1 }
 0x735   : > { %v452_v24 = vpop.f32.mrf.mxu1 }
 0x737   : > { %v1873_v51 = vpop.f32.mrf.mxu1 }
 0x739   : > { %v566_v30 = vpop.f32.mrf.mxu1 }
 0x73a   : > { %v572_v36 = vsel %vm391_vm3, %v566_v30, -inf }
 0x73b   : > { %v1878_v52 = vpop.f32.mrf.mxu1  ;;  %573 = vmax.xlane.f32.xlu0 %v572_v36 }
 0x73d   : > { %v569_v63 = vpop.f32.mrf.mxu1 }
 0x73f   : > { %v1879_v57 = vpop.f32.mrf.mxu1 }
 0x741   : > { %v742_v0 = vpop.f32.mrf.mxu1 }
 0x742   : > { %v748_v54 = vsel %vm391_vm3, %v742_v0, -inf }
 0x743   : > { %749 = vmax.xlane.f32.xlu1 %v748_v54  ;;  %v1890_v9 = vpop.f32.mrf.mxu1 }
 0x745   : > { %v745_v39 = vpop.f32.mrf.mxu1 }
 0x747   : > { %v1891_v56 = vpop.f32.mrf.mxu1 }
 0x748   : > { %v2127_v56 = vmov 6  }
 0x749   : > { %v918_v49 = vpop.f32.mrf.mxu1 }
 0x74a   : > { %v924_v6 = vsel %vm391_vm3, %v918_v49, -inf }
 0x74b   : > { %925 = vmax.xlane.f32.xlu1 %v924_v6  ;;  %v1902_v62 = vpop.f32.mrf.mxu1 }
 0x74d   : > { %v921_v58 = vpop.f32.mrf.mxu1 }
 0x74f   : > { %v1903_v59 = vpop.f32.mrf.mxu1 }
 0x751   : > { %v1094_v60 = vpop.f32.mrf.mxu1  ;;  %1464 = vrot.lane.b32.xlu0 %v2202_v13, %s2699_s15 }
 0x752   : > { %v1100_v1 = vsel %vm391_vm3, %v1094_v60, -inf }
 0x753   : > { %1101 = vmax.xlane.f32.xlu1 %v1100_v1  ;;  %v1914_v10 = vpop.f32.mrf.mxu1  ;;  %v2128_v1 = vmov 7  }
 0x754   : > { %2014 = vset.pattern.permute.xlu0 %v2128_v1 }
 0x755   : > { %v1097_v4 = vpop.f32.mrf.mxu1 }
 0x757   : > { %v1915_v5 = vpop.f32.mrf.mxu1 }
 0x759   : > { %v1270_v7 = vpop.f32.mrf.mxu1 }
 0x75a   : > { %v1276_v3 = vsel %vm391_vm3, %v1270_v7, -inf }
 0x75b   : > { %1277 = vmax.xlane.f32.xlu1 %v1276_v3  ;;  %v1926_v25 = vpop.f32.mrf.mxu1 }
 0x75d   : > { %v1273_v26 = vpop.f32.mrf.mxu1 }
 0x75f   : > { %v1927_v47 = vpop.f32.mrf.mxu1 }
 0x760   : > { %v766_v47 = vsel %vm411_vm1, %v2594_v11, 0 }
 0x761   : > { %v1446_v18 = vpop.f32.mrf.mxu1 }
 0x762   : > { %v1452_v38 = vsel %vm391_vm3, %v1446_v18, -inf }
 0x763   : > { %v1938_v20 = vpop.f32.mrf.mxu1 }
 0x765   : > { %v1449_v22 = vpop.f32.mrf.mxu1 }
 0x767   : > { %v1939_v23 = vpop.f32.mrf.mxu1 }
 0x768   : > { %v942_v23 = vsel %vm411_vm1, %v2598_v15, 0 }
 0x76c   : > { %1337 = vperm.xlu1 %2012, %v2584_v35  }
 0x770   : > { %2013 = vset.pattern.permute.xlu1 %v2127_v56 }
 0x790   : > { %1453 = vmax.xlane.f32.xlu1 %v1452_v38 }
 0x79c   : > { %v2588_v45 = vpop.f32.mrf.mxu1 }
 0x79e   : > { %v1950_v61 = vpop.f32.mrf.mxu1 }
 0x7a0   : > { %v1625_v34 = vpop.f32.mrf.mxu1 }
 0x7a2   : > { %v1951_v53 = vpop.f32.mrf.mxu1 }
 0x7a3   : > { %v1118_v53 = vsel %vm411_vm1, %v2596_v55, 0 }
 0x7c4   : > { %v574_v17 = vpop.xlane.xlu0 %573 }
 0x7c5   : > { %v575_v19 = vsub.f32 %v566_v30, %v574_v17 }
 0x7c7   : > { %v576_v16 = vmul.f32 1.442695, %v575_v19  ;;  %v1294_v19 = vsel %vm411_vm1, %v2604_v29, 0 }
 0x7c8   : > { %v1465_v4 = vpop.permute.xlu0 %1464 }
 0x7c9   : > { %2051 = vpow2.f32 %v576_v16 }
 0x7cc   : > { %v750_v31 = vpop.xlane.xlu1 %749 }
 0x7cd   : > { %v751_v33 = vsub.f32 %v742_v0, %v750_v31 }
 0x7cf   : > { %v752_v40 = vmul.f32 1.442695, %v751_v33  ;;  %v1470_v33 = vsel %vm411_vm1, %v1465_v4, 0 }
 0x7d1   : > { %2053 = vpow2.f32 %v752_v40 }
 0x7d4   : > { %v926_v8 = vpop.xlane.xlu1 %925 }
 0x7d5   : > { %v927_v2 = vsub.f32 %v918_v49, %v926_v8 }
 0x7d6   : > { %v2052_v37 = vpop.eup %2051 }
 0x7d7   : > { %v928_v42 = vmul.f32 1.442695, %v927_v2  ;;  %v578_v43 = vsel %vm391_vm3, %v2052_v37, 0.0 }
 0x7d8   : > { %579 = vadd.xlane.f32.xlu1 %v578_v43 }
 0x7d9   : > { %2055 = vpow2.f32 %v928_v42 }
 0x7dc   : > { %v1102_v44 = vpop.xlane.xlu1 %1101 }
 0x7dd   : > { %v1103_v12 = vsub.f32 %v1094_v60, %v1102_v44  ;;  %v1628_v60 = vsel %vm391_vm3, %v2588_v45, -inf }
 0x7de   : > { %v2054_v46 = vpop.eup %2053 }
 0x7df   : > { %v1104_v50 = vmul.f32 1.442695, %v1103_v12  ;;  %v754_v24 = vsel %vm391_vm3, %v2054_v46, 0.0 }
 0x7e0   : > { %755 = vadd.xlane.f32.xlu0 %v754_v24 }
 0x7e1   : > { %2057 = vpow2.f32 %v1104_v50 }
 0x7e4   : > { %v1278_v51 = vpop.xlane.xlu1 %1277 }
 0x7e5   : > { %v1279_v30 = vsub.f32 %v1270_v7, %v1278_v51 }
 0x7e6   : > { %v2056_v36 = vpop.eup %2055 }
 0x7e7   : > { %v1280_v52 = vmul.f32 1.442695, %v1279_v30  ;;  %v930_v63 = vsel %vm391_vm3, %v2056_v36, 0.0 }
 0x7e8   : > { %931 = vadd.xlane.f32.xlu0 %v930_v63  ;;  %v2614_v39 = vpop.permute.xlu1 %1337 }
 0x7e9   : > { %2059 = vpow2.f32 %v1280_v52  ;;  %1513 = vperm.xlu1 %2013, %v2584_v35  }
 0x7ee   : > { %v2058_v57 = vpop.eup %2057 }
 0x7ef   : > { %v1106_v0 = vsel %vm391_vm3, %v2058_v57, 0.0 }
 0x7f0   : > { %1107 = vadd.xlane.f32.xlu0 %v1106_v0 }
 0x7f6   : > { %v2610_v54 = vpop.eup %2059 }
 0x7f7   : > { %v1282_v9 = vsel %vm391_vm3, %v2610_v54, 0.0 }
 0x7f8   : > { %1283 = vadd.xlane.f32.xlu0 %v1282_v9 }
 0x819   : > { %v1454_v49 = vpop.xlane.xlu1 %1453 }
 0x81a   : > { %v1455_v6 = vsub.f32 %v1446_v18, %v1454_v49 }
 0x81c   : > { %v1456_v62 = vmul.f32 1.442695, %v1455_v6 }
 0x81e   : > { %2061 = vpow2.f32 %v1456_v62 }
 0x82b   : > { %v2617_v58 = vpop.eup %2061 }
 0x82c   : > { %v1458_v59 = vsel %vm391_vm3, %v2617_v58, 0.0 }
 0x82d   : > { %1459 = vadd.xlane.f32.xlu0 %v1458_v59 }
 0x831   : > { %1629 = vmax.xlane.f32.xlu0 %v1628_v60 }
 0x847   : > { %1640 = vrot.lane.b32.xlu0 %v2202_v13, %s2700_s12 }
 0x84b   : > { %1689 = vperm.xlu0 %2014, %v2584_v35  }
 0x861   : > { %v580_v10 = vpop.xlane.xlu1 %579 }
 0x862   : > { %2063 = vrcp.f32 %v580_v10 }
 0x865   : > { %v1514_v60 = vpop.permute.xlu1 %1513 }
 0x869   : > { %v756_v5 = vpop.xlane.xlu0 %755 }
 0x86a   : > { %2065 = vrcp.f32 %v756_v5 }
 0x86f   : > { %v2064_v7 = vpop.eup %2063 }
 0x870   : > { %v582_v3 = vmul.f32 %v2064_v7, %v2052_v37 }
 0x871   : > { %v932_v25 = vpop.xlane.xlu0 %931 }
 0x872   : > { %2067 = vrcp.f32 %v932_v25  ;;  %v583_v26 = vpack.c.bf16 %v582_v3, %v582_v3 }
 0x874   : > { %1883 = vmatmul.mubr.msk.bf16.vlgmr.msra.gmra.mxu0 %vm391_vm3, %v583_v26 }
 0x875   : > { %1893 = vmatpush3.bf16.msra.mxu0 %v766_v47  ;;  %1894 = vmatprep.mubr.msk.bf16.mxu0 %vm2102_vm2, %v2093_v21 }
 0x876   : > { %1904 = vmatprep.subr.bf16.mxu0 %v2093_v21 }
 0x877   : > { %v2066_v13 = vpop.eup %2065 }
 0x878   : > { %v758_v18 = vmul.f32 %v2066_v13, %v2054_v46 }
 0x879   : > { %v1108_v20 = vpop.xlane.xlu0 %1107 }
 0x87a   : > { %2069 = vrcp.f32 %v1108_v20  ;;  %v759_v22 = vpack.c.bf16 %v758_v18, %v758_v18 }
 0x87c   : > { %1895 = vmatmul.mubr.msk.bf16.vlgmr.msra.gmra.mxu0 %vm391_vm3, %v759_v22 }
 0x87d   : > { %1905 = vmatpush3.bf16.msra.mxu0 %v942_v23  ;;  %1906 = vmatprep.mubr.msk.bf16.mxu0 %vm2102_vm2, %v2093_v21 }
 0x87e   : > { %1916 = vmatprep.subr.bf16.mxu0 %v2093_v21 }
 0x87f   : > { %v2068_v35 = vpop.eup %2067 }
 0x880   : > { %v934_v38 = vmul.f32 %v2068_v35, %v2056_v36 }
 0x881   : > { %v1284_v61 = vpop.xlane.xlu0 %1283 }
 0x882   : > { %2071 = vrcp.f32 %v1284_v61  ;;  %v935_v34 = vpack.c.bf16 %v934_v38, %v934_v38 }
 0x884   : > { %1907 = vmatmul.mubr.msk.bf16.vlgmr.msra.gmra.mxu0 %vm391_vm3, %v935_v34 }
 0x885   : > { %1917 = vmatpush3.bf16.msra.mxu0 %v1118_v53  ;;  %1918 = vmatprep.mubr.msk.bf16.mxu0 %vm2102_vm2, %v2093_v21 }
 0x886   : > { %1928 = vmatprep.subr.bf16.mxu0 %v2093_v21 }
 0x887   : > { %v2070_v11 = vpop.eup %2069 }
 0x888   : > { %v1110_v15 = vmul.f32 %v2070_v11, %v2058_v57 }
 0x88a   : > { %v1111_v17 = vpack.c.bf16 %v1110_v15, %v1110_v15  ;;  %v460_v15 = vmul.f32 %v2227_v27, %v2574_v48 }
 0x88c   : > { %1919 = vmatmul.mubr.msk.bf16.vlgmr.msra.gmra.mxu0 %vm391_vm3, %v1111_v17 }
 0x88d   : > { %1929 = vmatpush3.bf16.msra.mxu0 %v1294_v19  ;;  %1930 = vmatprep.mubr.msk.bf16.mxu0 %vm2102_vm2, %v2093_v21 }
 0x88e   : > { %1940 = vmatprep.subr.bf16.mxu0 %v2093_v21 }
 0x88f   : > { %v2072_v55 = vpop.eup %2071 }
 0x890   : > { %v1286_v16 = vmul.f32 %v2072_v55, %v2610_v54 }
 0x892   : > { %v1287_v31 = vpack.c.bf16 %v1286_v16, %v1286_v16 }
 0x894   : > { %1931 = vmatmul.mubr.msk.bf16.vlgmr.msra.gmra.mxu0 %vm391_vm3, %v1287_v31 }
 0x895   : > { %1941 = vmatpush3.bf16.msra.mxu0 %v1470_v33  ;;  %1942 = vmatprep.mubr.msk.bf16.mxu0 %vm2102_vm2, %v2093_v21 }
 0x896   : > { %1952 = vmatprep.subr.bf16.mxu0 %v2093_v21 }
 0x8b6   : > { %v1460_v29 = vpop.xlane.xlu0 %1459 }
 0x8b7   : > { %2073 = vrcp.f32 %v1460_v29 }
 0x8ba   : > { %v1630_v40 = vpop.xlane.xlu0 %1629 }
 0x8bb   : > { %v1631_v8 = vsub.f32 %v2588_v45, %v1630_v40 }
 0x8bd   : > { %v1632_v2 = vmul.f32 1.442695, %v1631_v8 }
 0x8be   : > { %v1641_v46 = vpop.permute.xlu0 %1640 }
 0x8bf   : > { %2075 = vpow2.f32 %v1632_v2  ;;  %v1646_v50 = vsel %vm411_vm1, %v1641_v46, 0 }
 0x8c4   : > { %v2074_v37 = vpop.eup %2073 }
 0x8c5   : > { %v1462_v42 = vmul.f32 %v2074_v37, %v2617_v58 }
 0x8c7   : > { %v1463_v43 = vpack.c.bf16 %v1462_v42, %v1462_v42 }
 0x8c9   : > { %1943 = vmatmul.mubr.msk.bf16.vlgmr.msra.gmra.mxu0 %vm391_vm3, %v1463_v43 }
 0x8ca   : > { %1954 = vmatprep.mubr.msk.bf16.mxu0 %vm2102_vm2, %v2093_v21  ;;  %1953 = vmatpush3.bf16.msra.mxu0 %v1646_v50 }
 0x8cc   : > { %v2076_v44 = vpop.eup %2075 }
 0x8cd   : > { %v1634_v12 = vsel %vm391_vm3, %v2076_v44, 0.0 }
 0x8ce   : > { %1635 = vadd.xlane.f32.xlu1 %v1634_v12 }
 0x934   : > { %v626_v45 = vpop.f32.mrf.mxu0 }
 0x935   : > { %v636_v24 = vmul.f32 %v2590_v41, %v626_v45 }
 0x936   : > { %v1884_v51 = vpop.f32.mrf.mxu0 }
 0x937   : > { %1694 = vrot.lane.b32.xlu1 %v636_v24, %s2701_s16 }
 0x938   : > { %v629_v30 = vpop.f32.mrf.mxu0 }
 0x93a   : > { %v1885_v36 = vpop.f32.mrf.mxu0 }
 0x93c   : > { %v802_v52 = vpop.f32.mrf.mxu0 }
 0x93d   : > { %v812_v63 = vmul.f32 %v2592_v32, %v802_v52 }
 0x93e   : > { %v1896_v21 = vpop.f32.mrf.mxu0 }
 0x93f   : > { %1698 = vrot.lane.b32.xlu0 %v812_v63, %s2702_s17 }
 0x940   : > { %v805_v57 = vpop.f32.mrf.mxu0 }
 0x942   : > { %v1897_v0 = vpop.f32.mrf.mxu0 }
 0x944   : > { %v978_v54 = vpop.f32.mrf.mxu0 }
 0x945   : > { %v988_v9 = vmul.f32 %v2602_v28, %v978_v54 }
 0x946   : > { %v1908_v56 = vpop.f32.mrf.mxu0 }
 0x947   : > { %1702 = vrot.lane.b32.xlu0 %v988_v9, %s2114_s8 }
 0x948   : > { %v981_v41 = vpop.f32.mrf.mxu0 }
 0x94a   : > { %v1909_v49 = vpop.f32.mrf.mxu0 }
 0x94c   : > { %v1154_v6 = vpop.f32.mrf.mxu0 }
 0x94d   : > { %v1164_v62 = vmul.f32 %v2600_v14, %v1154_v6 }
 0x94e   : > { %v1920_v58 = vpop.f32.mrf.mxu0 }
 0x94f   : > { %1706 = vrot.lane.b32.xlu0 %v1164_v62, %s2116_s13 }
 0x950   : > { %v1157_v32 = vpop.f32.mrf.mxu0 }
 0x952   : > { %v1921_v59 = vpop.f32.mrf.mxu0 }
 0x954   : > { %v1330_v1 = vpop.f32.mrf.mxu0 }
 0x955   : > { %v1340_v10 = vmul.f32 %v2614_v39, %v1330_v1  ;;  %v1690_v39 = vpop.permute.xlu0 %1689 }
 0x956   : > { %v1932_v4 = vpop.f32.mrf.mxu0 }
 0x957   : > { %1710 = vrot.lane.b32.xlu1 %v1340_v10, %s2703_s22  ;;  %v1636_v28 = vpop.xlane.xlu1 %1635 }
 0x958   : > { %2077 = vrcp.f32 %v1636_v28  ;;  %v1333_v5 = vpop.f32.mrf.mxu0 }
 0x95a   : > { %v1933_v7 = vpop.f32.mrf.mxu0 }
 0x965   : > { %v2078_v3 = vpop.eup %2077 }
 0x966   : > { %v1638_v25 = vmul.f32 %v2078_v3, %v2076_v44 }
 0x968   : > { %v1639_v26 = vpack.c.bf16 %v1638_v25, %v1638_v25 }
 0x96a   : > { %1955 = vmatmul.mubr.msk.bf16.vlgmr.msra.gmra.mxu0 %vm391_vm3, %v1639_v26 }
 0x989   : > { %v1506_v14 = vpop.f32.mrf.mxu0 }
 0x98a   : > { %v1516_v47 = vmul.f32 %v1514_v60, %v1506_v14 }
 0x98b   : > { %v1944_v13 = vpop.f32.mrf.mxu0 }
 0x98c   : > { %1714 = vrot.lane.b32.xlu0 %v1516_v47, %s2120_s18 }
 0x98d   : > { %v1509_v18 = vpop.f32.mrf.mxu0 }
 0x98f   : > { %v1945_v20 = vpop.f32.mrf.mxu0 }
 0x9a9   : > { %v1695_v11 = vpop.permute.xlu1 %1694 }
 0x9aa   : > { %v1721_v19 = vsel %vm271_vm0, %v460_v15, %v1695_v11 }
 0x9b1   : > { %v1699_v34 = vpop.permute.xlu0 %1698 }
 0x9b2   : > { %v1722_v55 = vsel %vm391_vm3, %v1721_v19, %v1699_v34 }
 0x9b9   : > { %v1703_v53 = vpop.permute.xlu0 %1702 }
 0x9ba   : > { %v1724_v31 = vsel %vm1723_vm4, %v1722_v55, %v1703_v53 }
 0x9c1   : > { %v1707_v17 = vpop.permute.xlu0 %1706 }
 0x9c2   : > { %v1726_v29 = vsel %vm1725_vm5, %v1724_v31, %v1707_v17 }
 0x9c9   : > { %v1711_v16 = vpop.permute.xlu1 %1710 }
 0x9ca   : > { %v1728_v40 = vsel %vm1727_vm6, %v1726_v29, %v1711_v16 }
 0x9fe   : > { %v1715_v33 = vpop.permute.xlu0 %1714 }
 0x9ff   : > { %v1730_v27 = vsel %vm1729_vm7, %v1728_v40, %v1715_v33 }
 0xa2a   : > { %v1682_v22 = vpop.f32.mrf.mxu0 }
 0xa2b   : > { %v1692_v23 = vmul.f32 %v1690_v39, %v1682_v22 }
 0xa2c   : > { %v1956_v35 = vpop.f32.mrf.mxu0 }
 0xa2d   : > { %1718 = vrot.lane.b32.xlu1 %v1692_v23, %s2121_s20 }
 0xa2e   : > { %v1685_v38 = vpop.f32.mrf.mxu0 }
 0xa30   : > { %v1957_v61 = vpop.f32.mrf.mxu0 }
 0xa9f   : > { %v1719_v48 = vpop.permute.xlu1 %1718 }
 0xaa0   : > { %v1732_v8 = vsel %vm1731_vm8, %v1730_v27, %v1719_v48 }
 0xaa1   : > { %1734 = vst.msk [vmem:[%s263_s25] sm:$0xff] %vm1733_vm9, %v1732_v8 }
 0xaa2 PF: > { %s16_s21 = sadd.s32 1, %s2086_s21  }
 0xaa3   : > { %p13_p4 = scmp.ge.s32.totalorder %s16_s21, 4  }
 0xaa5   :  { %15 = sbr.rel (!%p13_p4) target bundleno = 1 (0x1), region = 77 }

// kernel: forward_encoder.28
= control target key start
LH: loop header
LB: loop body
LE: loop exit
PB: predicated region body
PF: predicated region fallthrough
CT: control target
= control target key end

     0   :  { %vm19_vm0 = vcmask 261120   ;;  %v152_v0 = vmov 0.0   ;;  %vm153_vm1 = vmmov 0   ;;  %vm59_vm2 = vcmask 523264   ;;  %s210_s1 = inlined_call_operand.vmem [shape: bf16[64,32], index: 1, kind: input, shape index: {}]   ;;  %s211_s0 = inlined_call_operand.vmem [shape: f32[16,64], index: 0, kind: input, shape index: {}]   ;;  %s212_s2 = inlined_call_operand.vmem [shape: f32[16,32], index: 2, kind: input, shape index: {}]   ;;  %s213_s3 = inlined_call_operand.vmem [shape: f32[16,32], index: 3, kind: output, shape index: {}]  }
   0x1   :  { %134 = vmatprep.subr.bf16.mxu0 %v152_v0  ;;  %v148_v1 = vld [vmem:[%s210_s1 + $0x18] sm:$0xff]   ;;  %142 = vmatprep.mubr.msk.bf16.mxu0 %vm153_vm1, %v152_v0  ;;  %20 = vst.msk [vmem:[#allocation2] sm:$0xff] %vm19_vm0, %v152_v0  ;;  %21 = vst.msk [vmem:[#allocation2 + $0x8] sm:$0xff] %vm19_vm0, %v152_v0  ;;  %v149_v2 = vld [vmem:[%s210_s1 + $0x10] sm:$0xff]  }
   0x2   :  { %135 = vmatpush3.bf16.msra.mxu0 %v148_v1  ;;  %v150_v3 = vld [vmem:[%s210_s1 + $0x8] sm:$0xff]   ;;  %v151_v4 = vld [vmem:[%s210_s1] sm:$0xff]  }
   0x3   :  { %136 = vmatprep.subr.bf16.mxu0 %v152_v0  ;;  %v22_v5 = vld [vmem:[%s211_s0] sm:$0xff]  ;;  %v23_v6 = vld [vmem:[%s211_s0 + $0x8] sm:$0xff] }
   0x4   :  { %v26_v7 = vpack.c.bf16 %v23_v6, %v22_v5  ;;  %v114_v16 = vld [vmem:[%s212_s2] sm:$0xff]  ;;  %v115_v19 = vld [vmem:[%s212_s2 + $0x8] sm:$0xff] }
   0x6   :  { %137 = vmatpush3.bf16.msra.mxu0 %v149_v2 }
   0x7   :  { %138 = vmatprep.subr.bf16.mxu0 %v152_v0 }
   0x8   :  { %v24_v8 = vld [vmem:[#allocation2] sm:$0xff]  ;;  %v25_v12 = vld [vmem:[#allocation2 + $0x8] sm:$0xff] }
   0xa   :  { %139 = vmatpush3.bf16.msra.mxu0 %v150_v3 }
   0xb   :  { %140 = vmatprep.subr.bf16.mxu0 %v152_v0 }
   0xe   :  { %141 = vmatpush3.bf16.msra.mxu0 %v151_v4 }
  0x11   :  { %143 = vmatmul.mubr.msk.bf16.vlgmr.msra.gmra.mxu0 %vm59_vm2, %v26_v7 }
  0xd1   :  { %v97_v9 = vpop.f32.mrf.mxu0 }
  0xd2   :  { %v104_v10 = vadd.f32 %v97_v9, %v24_v8 }
  0xd3   :  { %v144_v11 = vpop.f32.mrf.mxu0 }
  0xd4   :  { %107 = vst.msk [vmem:[#allocation2] sm:$0xff] %vm19_vm0, %v104_v10 }
  0xd5   :  { %v100_v13 = vpop.f32.mrf.mxu0 }
  0xd6   :  { %v105_v14 = vadd.f32 %v100_v13, %v25_v12 }
  0xd7   :  { %v145_v15 = vpop.f32.mrf.mxu0 }
  0xd8   :  { %108 = vst.msk [vmem:[#allocation2 + $0x8] sm:$0xff] %vm19_vm0, %v105_v14 }
  0xdb   :  { %v112_v17 = vld [vmem:[#allocation2] sm:$0xff] }
  0xdc   :  { %v116_v18 = vadd.f32 %v114_v16, %v112_v17 }
  0xde   :  { %118 = vst.msk [vmem:[%s213_s3] sm:$0xff] %vm19_vm0, %v116_v18 }
  0xdf   :  { %v113_v20 = vld [vmem:[#allocation2 + $0x8] sm:$0xff] }
  0xe0   :  { %v117_v21 = vadd.f32 %v115_v19, %v113_v20 }
  0xe2   :  { %119 = vst.msk [vmem:[%s213_s3 + $0x8] sm:$0xff] %vm19_vm0, %v117_v21 }

// kernel: forward_encoder.29
= control target key start
LH: loop header
LB: loop body
LE: loop exit
PB: predicated region body
PF: predicated region fallthrough
CT: control target
= control target key end

     0   :  { %v205_v0 = vmov 0.0   ;;  %vm206_vm0 = vmmov 0   ;;  %vm47_vm1 = vcmask 261120   ;;  %vm162_vm2 = vcmask 15360   ;;  %s269_s1 = inlined_call_operand.vmem [shape: bf16[32,32], index: 1, kind: input, shape index: {}]   ;;  %s270_s0 = inlined_call_operand.vmem [shape: f32[16,32], index: 0, kind: input, shape index: {}]   ;;  %s271_s3 = inlined_call_operand.vmem [shape: bf16[32,2], index: 3, kind: input, shape index: {}]   ;;  %s272_s2 = inlined_call_operand.vmem [shape: f32[1,32], index: 2, kind: input, shape index: {}]   ;;  %s273_s4 = inlined_call_operand.vmem [shape: f32[1,2], index: 4, kind: input, shape index: {}]   ;;  %s274_s5 = inlined_call_operand.vmem [shape: f32[16,2], index: 5, kind: output, shape index: {}]  }
   0x1   :  { %183 = vmatprep.subr.bf16.mxu0 %v205_v0  ;;  %v201_v1 = vld [vmem:[%s269_s1 + $0x8] sm:$0xff]   ;;  %187 = vmatprep.mubr.msk.bf16.mxu0 %vm206_vm0, %v205_v0  ;;  %v202_v2 = vld [vmem:[%s269_s1] sm:$0xff]  }
   0x2   :  { %191 = vmatprep.subr.bf16.mxu1 %v205_v0  ;;  %195 = vmatprep.mubr.msk.bf16.mxu1 %vm206_vm0, %v205_v0  ;;  %v21_v3 = vld [vmem:[%s270_s0] sm:$0xff]  ;;  %v22_v4 = vld [vmem:[%s270_s0 + $0x8] sm:$0xff] }
   0x3   :  { %184 = vmatpush3.bf16.msra.mxu0 %v201_v1  ;;  %v23_v5 = vpack.c.bf16 %v22_v4, %v21_v3  ;;  %v203_v6 = vld [vmem:[%s271_s3 + $0x8] sm:$0xff]   ;;  %v204_v7 = vld [vmem:[%s271_s3] sm:$0xff]  }
   0x4   :  { %185 = vmatprep.subr.bf16.mxu0 %v205_v0  ;;  %192 = vmatpush3.bf16.msra.mxu1 %v203_v6  ;;  %v169_v8 = vld [vmem:[%s272_s2] ss:$0 sm:$0xff] }
   0x5   :  { %193 = vmatprep.subr.bf16.mxu1 %v205_v0  ;;  %v173_v18 = vld [vmem:[%s273_s4] ss:$0 sm:$0xff] }
   0x7   :  { %186 = vmatpush3.bf16.msra.mxu0 %v202_v2 }
   0x8   :  { %194 = vmatpush3.bf16.msra.mxu1 %v204_v7 }
   0xa   :  { %188 = vmatmul.mubr.msk.bf16.vlgmr.msra.gmra.mxu0 %vm47_vm1, %v23_v5 }
  0xca   :  { %v85_v9 = vpop.f32.mrf.mxu0 }
  0xcb   :  { %v86_v11 = vadd.f32 %v169_v8, %v85_v9 }
  0xcc   :  { %v189_v10 = vpop.f32.mrf.mxu0 }
  0xcd   :  { %v92_v15 = vmax.f32 %v86_v11, 0.0 }
  0xce   :  { %v88_v12 = vpop.f32.mrf.mxu0 }
  0xcf   :  { %v89_v13 = vadd.f32 %v169_v8, %v88_v12 }
  0xd0   :  { %v190_v14 = vpop.f32.mrf.mxu0 }
  0xd1   :  { %v93_v16 = vmax.f32 %v89_v13, 0.0 }
  0xd3   :  { %v94_v17 = vpack.c.bf16 %v93_v16, %v92_v15 }
  0xd5   :  { %196 = vmatmul.mubr.msk.bf16.vlgmr.msra.gmra.mxu1 %vm47_vm1, %v94_v17 }
 0x195   :  { %v155_v19 = vpop.f32.mrf.mxu1 }
 0x196   :  { %v156_v20 = vadd.f32 %v173_v18, %v155_v19 }
 0x197   :  { %v197_v21 = vpop.f32.mrf.mxu1 }
 0x198   :  { %163 = vst.msk [vmem:[%s274_s5] sm:$0xff] %vm162_vm2, %v156_v20 }
 0x199   :  { %v158_v22 = vpop.f32.mrf.mxu1 }
 0x19a   :  { %v159_v23 = vadd.f32 %v173_v18, %v158_v22 }
 0x19b   :  { %v198_v24 = vpop.f32.mrf.mxu1 }
 0x19c   :  { %164 = vst.msk [vmem:[%s274_s5 + $0x8] sm:$0xff] %vm162_vm2, %v159_v23 }

// kernel: forward_encoder.27
= control target key start
LH: loop header
LB: loop body
LE: loop exit
PB: predicated region body
PF: predicated region fallthrough
CT: control target
= control target key end

     0   :  { %s4264_s27 = smov 0   ;;  %s5857_s0 = inlined_call_operand.vmem [shape: f32[2,8,128], index: 0, kind: input, shape index: {}]   ;;  %s5858_s1 = inlined_call_operand.vmem [shape: f32[4,64], index: 1, kind: input, shape index: {}]   ;;  %s5859_s2 = inlined_call_operand.vmem [shape: f32[1,64], index: 2, kind: input, shape index: {}]   ;;  %s5860_s3 = inlined_call_operand.vmem [shape: bf16[64,66], index: 3, kind: input, shape index: {}]   ;;  %s5861_s4 = inlined_call_operand.vmem [shape: f32[2,64], index: 4, kind: input, shape index: {}]   ;;  %s5862_s5 = inlined_call_operand.vmem [shape: f32[1,64], index: 5, kind: input, shape index: {}]   ;;  %s5863_s6 = inlined_call_operand.vmem [shape: f32[64,32], index: 6, kind: input, shape index: {}]   ;;  %s5864_s7 = inlined_call_operand.vmem [shape: f32[1,64], index: 7, kind: input, shape index: {}]   ;;  %s5865_s8 = inlined_call_operand.vmem [shape: f32[2,8,64], index: 8, kind: output, shape index: {}]  }
   0x1 LB: > { %s4002_s28 = sadd.s32 4294967295, %s4211_s27   ;;  %p4006_p0 = scmp.ge.s32.totalorder %s4211_s27, 1  ;;  %s4211_s27 = sphi %s4264_s27, %s18_s27  }
   0x2   : > { %p261_p1 = scmp.lt.s32.totalorder %s4211_s27, 3 }
   0x4   : > { %p262_p2 = pnand %p4006_p0, %p261_p1 }
   0x6   : > { %265 = sbr.rel (%p262_p2) target bundleno = 1382 (0x566), region = 52 }
   0xb   : > { %v4061_v0 = vld [vmem:[%s5860_s3 + $0x18] sm:$0xff]   ;;  %v5866_v1 = vlaneseq  ;;  %v4213_v2 = vmov 0.0   ;;  %v4062_v3 = vld [vmem:[%s5860_s3 + $0x10] sm:$0xff]   ;;  %vm4214_vm0 = vmmov 0   ;;  %p293_p3 = scmp.lt.s32.totalorder %s4002_s28, 1  ;;  %v4063_v9 = vld [vmem:[%s5860_s3 + $0x8] sm:$0xff]  }
   0xc   : > { %4028 = vmatprep.subr.bf16.mxu0 %v4213_v2  ;;  %4040 = vmatprep.subr.mxu1 %v4213_v2  ;;  %v303_v5 = vld [vmem:[%s5858_s1] sm:$0xf]  ;;  %vm312_vm1 = vcmask 1042432   ;;  %vm322_vm2 = vcmask 1041408   ;;  %vm332_vm3 = vcmask 1040384   ;;  %vm387_vm4 = vcmask 523264  }
   0xd   : > { %4029 = vmatpush3.bf16.msra.mxu0 %v4061_v0  ;;  %4036 = vmatprep.mubr.msk.bf16.mxu0 %vm4214_vm0, %v4213_v2  ;;  %v4279_v4 = vshrl.u32 %v5866_v1, 7  ;;  %s6037_s28 = smov (!%p293_p3, %s4002_s28), 1  ;;  %v4064_v18 = vld [vmem:[%s5860_s3] sm:$0xff]   ;;  %v4215_v0 = vmov 1966171168   ;;  %vm439_vm5 = vcmask 15360  }
   0xe   : > { %4030 = vmatprep.subr.bf16.mxu0 %v4213_v2  ;;  %4042 = vmatprep.mubr.msk.f32.mxu1 %vm4214_vm0, %v4213_v2  ;;  %s4007_s15 = sshll.u32 %s6037_s28, 3  ;;  %v4009_v29 = vld [vmem:[%s5859_s2] ss:$0 sm:$0xff]  ;;  %s4216_s29 = smov 94   ;;  %vm1005_vm6 = vcmask 261120   ;;  %vm3616_vm7 = vcmask 130112  }
   0xf   : > { %5869 = vst [vmem:[#allocation5_spill] sm:$0xff] %v4279_v4  ;;  %v4287_v6 = vsub.s32 3, %v4279_v4  ;;  %v4290_v7 = vsub.s32 0, %v4279_v4  ;;  %v4293_v8 = vsub.s32 1, %v4279_v4  ;;  %v4300_v10 = vsub.s32 2, %v4279_v4  ;;  %s296_s18 = scalar_lea.vmem %s5857_s0, %s4007_s15  ;;  %s300_s10 = scalar_lea.vmem %s5865_s8, %s4007_s15 }
  0x10   : > { %v4308_v12 = vld [vmem:[%s296_s18] sm:$0xff]  ;;  %v4344_v45 = vsub.s32 4, %v4279_v4  ;;  %v4353_v48 = vsub.s32 5, %v4279_v4  ;;  %v4359_v52 = vsub.s32 6, %v4279_v4  ;;  %v4364_v56 = vsub.s32 7, %v4279_v4 }
  0x11   : > { %4031 = vmatpush3.bf16.msra.mxu0 %v4062_v3  ;;  %v307_v11 = vrot.slane %v303_v5, %v4287_v6  ;;  %v317_v13 = vrot.slane %v303_v5, %v4290_v7  ;;  %v327_v14 = vrot.slane %v303_v5, %v4293_v8  ;;  %v310_v15 = vrot.slane %v4308_v12, 5  ;;  %v4018_v37 = vld [vmem:[%s5864_s7] ss:$0 sm:$0xff] }
  0x12   : > { %4032 = vmatprep.subr.bf16.mxu0 %v4213_v2  ;;  %v320_v16 = vrot.slane %v4308_v12, 6  ;;  %v330_v17 = vrot.slane %v4308_v12, 7  ;;  %v337_v20 = vrot.slane %v303_v5, %v4300_v10  ;;  %v431_v47 = vld [vmem:[%s5861_s4] sm:$0x3]  ;;  %v2926_v49 = vsub.f32 0.0, %v4308_v12 }
  0x13   : > { %v308_v19 = vmul.f32 %v307_v11, %v4308_v12  ;;  %v313_v21 = vsel %vm312_vm1, 0.0, %v310_v15  ;;  %4041 = vmatpush3.msk.msra.mxu1 %vm322_vm2, %v431_v47  ;;  %vm3623_vm8 = vcmask 195712   ;;  %vm3630_vm9 = vcmask 261312  }
  0x14   : > { %v323_v22 = vsel %vm322_vm2, 0.0, %v320_v16  ;;  %v333_v23 = vsel %vm332_vm3, 0.0, %v330_v17  ;;  %v318_v24 = vmul.f32 %v317_v13, %v313_v21  ;;  %v2927_v51 = vmul.f32 1.442695, %v2926_v49 }
  0x15   : > { %4033 = vmatpush3.bf16.msra.mxu0 %v4063_v9  ;;  %v328_v25 = vmul.f32 %v327_v14, %v323_v22  ;;  %v338_v27 = vmul.f32 %v337_v20, %v333_v23  ;;  %vm3637_vm10 = vcmask 326912   ;;  %vm3644_vm11 = vcmask 392512  }
  0x16   : > { %4034 = vmatprep.subr.bf16.mxu0 %v4213_v2  ;;  %v319_v26 = vadd.f32 %v318_v24, %v308_v19  ;;  %v1353_v2 = vunpack.c.l.s4 %v4215_v0  ;;  %vm3651_vm12 = vcmask 458112   ;;  %vm3658_vm13 = vcmask 523712  }
  0x17   : > { %vm3933_vm14 = vcmask 1041409   ;;  %vm3935_vm15 = vcmask 1042434   ;;  %vm3937_vm0 = vcmask 1043459   ;;  %vm3939_vm1 = vcmask 1044484  }
  0x18   : > { %v329_v28 = vadd.f32 %v328_v25, %v319_v26  ;;  %v1354_v3 = vunpack.c.0.s8 %v1353_v2  ;;  %vm3941_vm2 = vcmask 1045509   ;;  %vm3943_vm3 = vcmask 1046534  }
  0x19   : > { %4035 = vmatpush3.bf16.msra.mxu0 %v4064_v18 }
  0x1a   : > { %v339_v30 = vadd.f32 %v338_v27, %v329_v28  ;;  %v1357_v9 = vsub.s32 %v1354_v3, %v4279_v4 }
  0x1c   : > { %v347_v31 = vadd.f32 %v4009_v29, %v339_v30 }
  0x1e   : > { %v348_v32 = vsub.f32 0.0, %v347_v31 }
  0x20   : > { %v349_v33 = vmul.f32 1.442695, %v348_v32 }
  0x22   : > { %4065 = vpow2.f32 %v349_v33 }
  0x2f   : > { %v4066_v34 = vpop.eup %4065 }
  0x30   : > { %v351_v35 = vadd.f32 1.0, %v4066_v34 }
  0x32   : > { %4067 = vrcp.f32 %v351_v35 }
  0x33   : > { %4069 = vpow2.f32 %v2927_v51 }
  0x3f   : > { %v4068_v36 = vpop.eup %4067 }
  0x40   : > { %v4327_v38 = vmul.f32 %v4068_v36, %v347_v31  ;;  %v4070_v54 = vpop.eup %4069 }
  0x41   : > { %v2929_v55 = vadd.f32 1.0, %v4070_v54 }
  0x42   : > { %v354_v39 = vpack.c.bf16 %v4327_v38, %v4327_v38  ;;  %v4332_v40 = vmul.f32 %v4018_v37, %v4327_v38 }
  0x43   : > { %4071 = vrcp.f32 %v2929_v55 }
  0x44   : > { %4037 = vmatmul.mubr.msk.bf16.vlgmr.msra.gmra.mxu0 %vm387_vm4, %v354_v39  ;;  %v2521_v41 = vrot.slane %v4332_v40, %v4290_v7  ;;  %v2556_v42 = vrot.slane %v4332_v40, %v4293_v8  ;;  %v2591_v43 = vrot.slane %v4332_v40, %v4300_v10  ;;  %v2626_v44 = vrot.slane %v4332_v40, %v4287_v6 }
  0x45   : > { %v2661_v46 = vrot.slane %v4332_v40, %v4344_v45  ;;  %v2696_v50 = vrot.slane %v4332_v40, %v4353_v48  ;;  %v2731_v53 = vrot.slane %v4332_v40, %v4359_v52  ;;  %v2766_v57 = vrot.slane %v4332_v40, %v4364_v56 }
  0x46   : > { %2523 = vbcast.lane.b32.xlu1 %v2521_v41, 256  ;;  %2527 = vbcast.lane.b32.xlu0 %v2521_v41, 264 }
  0x4a   : > { %2531 = vbcast.lane.b32.xlu1 %v2521_v41, 272  ;;  %2539 = vbcast.lane.b32.xlu0 %v2521_v41, 288 }
  0x4e   : > { %2535 = vbcast.lane.b32.xlu1 %v2521_v41, 280  ;;  %2547 = vbcast.lane.b32.xlu0 %v2521_v41, 304 }
  0x50   : > { %v4072_v58 = vpop.eup %4071 }
  0x51   : > { %v4369_v59 = vmul.f32 %v4072_v58, %v4308_v12 }
  0x52   : > { %2543 = vbcast.lane.b32.xlu1 %v2521_v41, 296  ;;  %2558 = vbcast.lane.b32.xlu0 %v2556_v42, 256 }
  0x53   : > { %v2936_v60 = vrot.slane %v4369_v59, %v4290_v7  ;;  %v2972_v61 = vrot.slane %v4369_v59, %v4293_v8  ;;  %v3008_v62 = vrot.slane %v4369_v59, %v4300_v10  ;;  %v3044_v63 = vrot.slane %v4369_v59, %v4287_v6 }
  0x54   : > { %v4381_v5 = vrot.slane %v4369_v59, %v4344_v45 }
  0x56   : > { %2551 = vbcast.lane.b32.xlu1 %v2521_v41, 312  ;;  %2566 = vbcast.lane.b32.xlu0 %v2556_v42, 272 }
  0x5a   : > { %2562 = vbcast.lane.b32.xlu1 %v2556_v42, 264  ;;  %2574 = vbcast.lane.b32.xlu0 %v2556_v42, 288 }
  0x5e   : > { %2570 = vbcast.lane.b32.xlu1 %v2556_v42, 280  ;;  %2582 = vbcast.lane.b32.xlu0 %v2556_v42, 304 }
  0x62   : > { %2578 = vbcast.lane.b32.xlu1 %v2556_v42, 296  ;;  %2593 = vbcast.lane.b32.xlu0 %v2591_v43, 256 }
  0x66   : > { %2586 = vbcast.lane.b32.xlu1 %v2556_v42, 312  ;;  %2601 = vbcast.lane.b32.xlu0 %v2591_v43, 272 }
  0x6a   : > { %2597 = vbcast.lane.b32.xlu1 %v2591_v43, 264  ;;  %2609 = vbcast.lane.b32.xlu0 %v2591_v43, 288 }
  0x6e   : > { %2605 = vbcast.lane.b32.xlu1 %v2591_v43, 280  ;;  %2617 = vbcast.lane.b32.xlu0 %v2591_v43, 304 }
  0x72   : > { %2613 = vbcast.lane.b32.xlu1 %v2591_v43, 296  ;;  %2628 = vbcast.lane.b32.xlu0 %v2626_v44, 256 }
  0x76   : > { %2621 = vbcast.lane.b32.xlu1 %v2591_v43, 312  ;;  %2636 = vbcast.lane.b32.xlu0 %v2626_v44, 272 }
  0x7a   : > { %2632 = vbcast.lane.b32.xlu1 %v2626_v44, 264  ;;  %2644 = vbcast.lane.b32.xlu0 %v2626_v44, 288 }
  0x7e   : > { %2640 = vbcast.lane.b32.xlu1 %v2626_v44, 280  ;;  %2652 = vbcast.lane.b32.xlu0 %v2626_v44, 304 }
  0x82   : > { %2648 = vbcast.lane.b32.xlu1 %v2626_v44, 296  ;;  %2663 = vbcast.lane.b32.xlu0 %v2661_v46, 256 }
  0x86   : > { %2656 = vbcast.lane.b32.xlu1 %v2626_v44, 312  ;;  %2671 = vbcast.lane.b32.xlu0 %v2661_v46, 272 }
  0x8a   : > { %2667 = vbcast.lane.b32.xlu1 %v2661_v46, 264  ;;  %2679 = vbcast.lane.b32.xlu0 %v2661_v46, 288 }
  0x8e   : > { %2675 = vbcast.lane.b32.xlu1 %v2661_v46, 280  ;;  %2687 = vbcast.lane.b32.xlu0 %v2661_v46, 304 }
  0x92   : > { %2683 = vbcast.lane.b32.xlu1 %v2661_v46, 296  ;;  %2698 = vbcast.lane.b32.xlu0 %v2696_v50, 256 }
  0x96   : > { %2691 = vbcast.lane.b32.xlu1 %v2661_v46, 312  ;;  %2706 = vbcast.lane.b32.xlu0 %v2696_v50, 272 }
  0x9a   : > { %2702 = vbcast.lane.b32.xlu1 %v2696_v50, 264  ;;  %2714 = vbcast.lane.b32.xlu0 %v2696_v50, 288 }
  0x9e   : > { %2710 = vbcast.lane.b32.xlu1 %v2696_v50, 280  ;;  %2722 = vbcast.lane.b32.xlu0 %v2696_v50, 304 }
  0xa2   : > { %2718 = vbcast.lane.b32.xlu1 %v2696_v50, 296  ;;  %2733 = vbcast.lane.b32.xlu0 %v2731_v53, 256 }
  0xa6   : > { %2726 = vbcast.lane.b32.xlu1 %v2696_v50, 312  ;;  %2741 = vbcast.lane.b32.xlu0 %v2731_v53, 272 }
  0xaa   : > { %2737 = vbcast.lane.b32.xlu1 %v2731_v53, 264  ;;  %2749 = vbcast.lane.b32.xlu0 %v2731_v53, 288 }
  0xae   : > { %2745 = vbcast.lane.b32.xlu1 %v2731_v53, 280  ;;  %2757 = vbcast.lane.b32.xlu0 %v2731_v53, 304 }
  0xb2   : > { %2753 = vbcast.lane.b32.xlu1 %v2731_v53, 296  ;;  %2768 = vbcast.lane.b32.xlu0 %v2766_v57, 256 }
  0xb6   : > { %2761 = vbcast.lane.b32.xlu1 %v2731_v53, 312  ;;  %2776 = vbcast.lane.b32.xlu0 %v2766_v57, 272 }
  0xb8   : > { %v4385_v15 = vpop.permute.xlu1 %2523  ;;  %v4393_v27 = vpop.permute.xlu0 %2527 }
  0xba   : > { %2772 = vbcast.lane.b32.xlu1 %v2766_v57, 264  ;;  %2784 = vbcast.lane.b32.xlu0 %v2766_v57, 288 }
  0xbc   : > { %v4396_v28 = vpop.permute.xlu1 %2531  ;;  %v4407_v33 = vpop.permute.xlu0 %2539 }
  0xbe   : > { %2780 = vbcast.lane.b32.xlu1 %v2766_v57, 280  ;;  %2792 = vbcast.lane.b32.xlu0 %v2766_v57, 304 }
  0xc0   : > { %v4412_v36 = vpop.permute.xlu1 %2535  ;;  %v4425_v42 = vpop.permute.xlu0 %2547 }
  0xc2   : > { %2788 = vbcast.lane.b32.xlu1 %v2766_v57, 296  ;;  %2939 = vbcast.lane.b32.xlu0 %v2936_v60, 320 }
  0xc4   : > { %v4428_v43 = vpop.permute.xlu1 %2543  ;;  %v4431_v44 = vpop.permute.xlu0 %2558 }
  0xc5   : > { %5870 = vst [vmem:[#allocation6_spill] sm:$0xff] %v4431_v44 }
  0xc6   : > { %2796 = vbcast.lane.b32.xlu1 %v2766_v57, 312  ;;  %2947 = vbcast.lane.b32.xlu0 %v2936_v60, 336 }
  0xc8   : > { %v4433_v46 = vpop.permute.xlu1 %2551  ;;  %v4435_v47 = vpop.permute.xlu0 %2566 }
  0xc9   : > { %5871 = vst [vmem:[#allocation7_spill] sm:$0xff] %v4435_v47  ;;  %v4691_v47 = vld [vmem:[%s5863_s6 + $0x38] sm:$0xff] }
  0xca   : > { %2943 = vbcast.lane.b32.xlu1 %v2936_v60, 328  ;;  %2955 = vbcast.lane.b32.xlu0 %v2936_v60, 352 }
  0xcc   : > { %v4437_v49 = vpop.permute.xlu1 %2562  ;;  %v4439_v50 = vpop.permute.xlu0 %2574 }
  0xcd   : > { %5872 = vst [vmem:[#allocation8_spill] sm:$0xff] %v4437_v49  ;;  %5873 = vst [vmem:[#allocation9_spill] sm:$0xff] %v4439_v50 }
  0xce   : > { %2951 = vbcast.lane.b32.xlu1 %v2936_v60, 344  ;;  %2963 = vbcast.lane.b32.xlu0 %v2936_v60, 368 }
  0xd0   : > { %v4441_v51 = vpop.permute.xlu1 %2570  ;;  %v4443_v53 = vpop.permute.xlu0 %2582 }
  0xd1   : > { %5874 = vst [vmem:[#allocation10_spill] sm:$0xff] %v4441_v51  ;;  %5875 = vst [vmem:[#allocation11_spill] sm:$0xff] %v4443_v53  ;;  %v4668_v53 = vld [vmem:[%s5863_s6 + $0x8] sm:$0xff] }
  0xd2   : > { %2959 = vbcast.lane.b32.xlu1 %v2936_v60, 360  ;;  %2975 = vbcast.lane.b32.xlu0 %v2972_v61, 320 }
  0xd4   : > { %v4445_v54 = vpop.permute.xlu1 %2578  ;;  %v4447_v55 = vpop.permute.xlu0 %2593 }
  0xd5   : > { %5876 = vst [vmem:[#allocation12_spill] sm:$0xff] %v4445_v54  ;;  %5877 = vst [vmem:[#allocation13_spill] sm:$0xff] %v4447_v55 }
  0xd6   : > { %2967 = vbcast.lane.b32.xlu1 %v2936_v60, 376  ;;  %2983 = vbcast.lane.b32.xlu0 %v2972_v61, 336 }
  0xd8   : > { %v4449_v57 = vpop.permute.xlu1 %2586  ;;  %v4451_v58 = vpop.permute.xlu0 %2601 }
  0xd9   : > { %5878 = vst [vmem:[#allocation14_spill] sm:$0xff] %v4449_v57  ;;  %5879 = vst [vmem:[#allocation15_spill] sm:$0xff] %v4451_v58 }
  0xda   : > { %2979 = vbcast.lane.b32.xlu1 %v2972_v61, 328  ;;  %2991 = vbcast.lane.b32.xlu0 %v2972_v61, 352 }
  0xdc   : > { %v4453_v60 = vpop.permute.xlu1 %2597 }
  0xdd   : > { %5880 = vst [vmem:[#allocation16_spill] sm:$0xff] %v4453_v60  ;;  %v4651_v60 = vld [vmem:[%s5863_s6 + $0x10] sm:$0xff] }
  0xde   : > { %2987 = vbcast.lane.b32.xlu1 %v2972_v61, 344  ;;  %2999 = vbcast.lane.b32.xlu0 %v2972_v61, 368 }
  0xe2   : > { %2995 = vbcast.lane.b32.xlu1 %v2972_v61, 360  ;;  %3011 = vbcast.lane.b32.xlu0 %v3008_v62, 320 }
  0xe6   : > { %3003 = vbcast.lane.b32.xlu1 %v2972_v61, 376  ;;  %3019 = vbcast.lane.b32.xlu0 %v3008_v62, 336  ;;  %v4455_v61 = vpop.permute.xlu0 %2609 }
  0xe7   : > { %5881 = vst [vmem:[#allocation17_spill] sm:$0xff] %v4455_v61 }
  0xea   : > { %3015 = vbcast.lane.b32.xlu1 %v3008_v62, 328  ;;  %3027 = vbcast.lane.b32.xlu0 %v3008_v62, 352 }
  0xee   : > { %3023 = vbcast.lane.b32.xlu1 %v3008_v62, 344  ;;  %3035 = vbcast.lane.b32.xlu0 %v3008_v62, 368 }
  0xf2   : > { %3031 = vbcast.lane.b32.xlu1 %v3008_v62, 360  ;;  %3047 = vbcast.lane.b32.xlu0 %v3044_v63, 320 }
  0xf6   : > { %3039 = vbcast.lane.b32.xlu1 %v3008_v62, 376  ;;  %3055 = vbcast.lane.b32.xlu0 %v3044_v63, 336  ;;  %v4457_v62 = vpop.permute.xlu1 %2605 }
  0xf7   : > { %5882 = vst [vmem:[#allocation18_spill] sm:$0xff] %v4457_v62 }
  0xfa   : > { %3051 = vbcast.lane.b32.xlu1 %v3044_v63, 328  ;;  %3063 = vbcast.lane.b32.xlu0 %v3044_v63, 352  ;;  %v4461_v0 = vpop.permute.xlu1 %2613 }
  0xfb   : > { %5884 = vst [vmem:[#allocation20_spill] sm:$0xff] %v4461_v0 }
  0xfe   : > { %3059 = vbcast.lane.b32.xlu1 %v3044_v63, 344  ;;  %3071 = vbcast.lane.b32.xlu0 %v3044_v63, 368  ;;  %v4465_v3 = vpop.permute.xlu1 %2621 }
  0xff   : > { %5886 = vst [vmem:[#allocation22_spill] sm:$0xff] %v4465_v3 }
 0x102   : > { %3067 = vbcast.lane.b32.xlu1 %v3044_v63, 360  ;;  %3083 = vbcast.lane.b32.xlu0 %v4381_v5, 320 }
 0x104   : > { %v425_v11 = vpop.f32.mrf.mxu0 }
 0x105   : > { %v1351_v12 = vcombine.high %v425_v11, %v425_v11  ;;  %v1358_v13 = vrot.slane %v425_v11, %v1357_v9  ;;  %4043 = vmatmul.mubr.msk.f32.vlgmr.msra.gmra.mxu1 %vm439_vm5, %v425_v11  ;;  %v4469_v11 = vpop.permute.xlu1 %2632  ;;  %vm3945_vm5 = vcmask 1047559  }
 0x106   : > { %v4038_v14 = vpop.f32.mrf.mxu0  ;;  %3075 = vbcast.lane.b32.xlu1 %v3044_v63, 376  ;;  %v4459_v63 = vpop.permute.xlu0 %2617  ;;  %5888 = vst [vmem:[#allocation24_spill] sm:$0xff] %v4469_v11 }
 0x107   : > { %v1365_v16 = vrot.slane %v1351_v12, %v1357_v9  ;;  %v1366_v17 = vcombine.high %v1358_v13, %v1358_v13  ;;  %v1374_v18 = vrot.slane %v1358_v13, %v1357_v9  ;;  %5883 = vst [vmem:[#allocation19_spill] sm:$0xff] %v4459_v63 }
 0x108   : > { %v428_v19 = vpop.f32.mrf.mxu0 }
 0x109   : > { %v1388_v20 = vrot.slane %v1366_v17, %v1357_v9  ;;  %v1396_v21 = vcombine.high %v1374_v18, %v1374_v18  ;;  %v4388_v22 = vrot.slane %v1374_v18, %v4290_v7  ;;  %v1367_v24 = vcombine.high %v1365_v16, %v1365_v16  ;;  %v4473_v13 = vpop.permute.xlu1 %2640 }
 0x10a   : > { %v4039_v23 = vpop.f32.mrf.mxu0  ;;  %v1381_v29 = vrot.slane %v1365_v16, %v1357_v9  ;;  %v4463_v2 = vpop.permute.xlu0 %2628  ;;  %5890 = vst [vmem:[#allocation26_spill] sm:$0xff] %v4473_v13 }
 0x10b   : > { %v1398_v25 = vcombine.high %v1388_v20, %v1388_v20  ;;  %v4391_v26 = vrot.slane %v1388_v20, %v4290_v7  ;;  %2229 = vrot.lane.b32.xlu0 %v4388_v22, %s4216_s29  ;;  %v4400_v30 = vrot.slane %v1396_v21, %v4290_v7  ;;  %v1395_v31 = vrot.slane %v1367_v24, %v1357_v9 }
 0x10c   : > { %v1397_v34 = vcombine.high %v1381_v29, %v1381_v29  ;;  %v4410_v35 = vrot.slane %v1381_v29, %v4290_v7  ;;  %5885 = vst [vmem:[#allocation21_spill] sm:$0xff] %v4463_v2 }
 0x10d   : > { %2231 = vrot.lane.b32.xlu1 %v4391_v26, %s4216_s29  ;;  %v4403_v32 = vrot.slane %v1398_v25, %v4290_v7  ;;  %v1399_v37 = vcombine.high %v1395_v31, %v1395_v31  ;;  %v4415_v39 = vrot.slane %v1395_v31, %v4290_v7  ;;  %v4477_v16 = vpop.permute.xlu1 %2648 }
 0x10e   : > { %v4420_v40 = vrot.slane %v1397_v34, %v4290_v7  ;;  %v4467_v9 = vpop.permute.xlu0 %2636  ;;  %5892 = vst [vmem:[#allocation28_spill] sm:$0xff] %v4477_v16 }
 0x10f   : > { %2233 = vrot.lane.b32.xlu0 %v4400_v30, %s4216_s29  ;;  %v4423_v41 = vrot.slane %v1399_v37, %v4290_v7  ;;  %5887 = vst [vmem:[#allocation23_spill] sm:$0xff] %v4467_v9 }
 0x111   : > { %2235 = vrot.lane.b32.xlu1 %v4403_v32, %s4216_s29  ;;  %v4481_v18 = vpop.permute.xlu1 %2656 }
 0x112   : > { %v4471_v12 = vpop.permute.xlu0 %2644  ;;  %5894 = vst [vmem:[#allocation30_spill] sm:$0xff] %v4481_v18 }
 0x113   : > { %2237 = vrot.lane.b32.xlu0 %v4410_v35, %s4216_s29  ;;  %5889 = vst [vmem:[#allocation25_spill] sm:$0xff] %v4471_v12 }
 0x115   : > { %2239 = vrot.lane.b32.xlu1 %v4415_v39, %s4216_s29  ;;  %v4485_v20 = vpop.permute.xlu1 %2667 }
 0x116   : > { %v4475_v14 = vpop.permute.xlu0 %2652  ;;  %5896 = vst [vmem:[#allocation32_spill] sm:$0xff] %v4485_v20 }
 0x117   : > { %2241 = vrot.lane.b32.xlu0 %v4420_v40, %s4216_s29  ;;  %5891 = vst [vmem:[#allocation27_spill] sm:$0xff] %v4475_v14 }
 0x119   : > { %2243 = vrot.lane.b32.xlu1 %v4423_v41, %s4216_s29  ;;  %v4489_v23 = vpop.permute.xlu1 %2675  ;;  %s4217_s29 = smov 126  }
 0x11a   : > { %v4479_v17 = vpop.permute.xlu0 %2663  ;;  %5898 = vst [vmem:[#allocation34_spill] sm:$0xff] %v4489_v23 }
 0x11b   : > { %5893 = vst [vmem:[#allocation29_spill] sm:$0xff] %v4479_v17 }
 0x11d   : > { %v4493_v25 = vpop.permute.xlu1 %2683 }
 0x11e   : > { %v4483_v19 = vpop.permute.xlu0 %2671  ;;  %5900 = vst [vmem:[#allocation36_spill] sm:$0xff] %v4493_v25 }
 0x11f   : > { %5895 = vst [vmem:[#allocation31_spill] sm:$0xff] %v4483_v19 }
 0x121   : > { %v4497_v31 = vpop.permute.xlu1 %2691 }
 0x122   : > { %v4487_v21 = vpop.permute.xlu0 %2679  ;;  %5902 = vst [vmem:[#allocation38_spill] sm:$0xff] %v4497_v31 }
 0x123   : > { %5897 = vst [vmem:[#allocation33_spill] sm:$0xff] %v4487_v21 }
 0x125   : > { %v4501_v37 = vpop.permute.xlu1 %2702 }
 0x126   : > { %v4491_v24 = vpop.permute.xlu0 %2687  ;;  %5904 = vst [vmem:[#allocation40_spill] sm:$0xff] %v4501_v37 }
 0x127   : > { %5899 = vst [vmem:[#allocation35_spill] sm:$0xff] %v4491_v24 }
 0x129   : > { %v4505_v4 = vpop.permute.xlu1 %2710 }
 0x12a   : > { %v4495_v29 = vpop.permute.xlu0 %2698  ;;  %5906 = vst [vmem:[#allocation42_spill] sm:$0xff] %v4505_v4 }
 0x12b   : > { %5901 = vst [vmem:[#allocation37_spill] sm:$0xff] %v4495_v29 }
 0x12d   : > { %v4509_v21 = vpop.permute.xlu1 %2718 }
 0x12e   : > { %v4499_v34 = vpop.permute.xlu0 %2706  ;;  %5908 = vst [vmem:[#allocation44_spill] sm:$0xff] %v4509_v21 }
 0x12f   : > { %5903 = vst [vmem:[#allocation39_spill] sm:$0xff] %v4499_v34  ;;  %v4015_v34 = vld [vmem:[%s5862_s5] ss:$0 sm:$0xff] }
 0x131   : > { %v4513_v24 = vpop.permute.xlu1 %2726 }
 0x132   : > { %v4503_v1 = vpop.permute.xlu0 %2714  ;;  %5910 = vst [vmem:[#allocation46_spill] sm:$0xff] %v4513_v24 }
 0x133   : > { %5905 = vst [vmem:[#allocation41_spill] sm:$0xff] %v4503_v1 }
 0x135   : > { %v4517_v29 = vpop.permute.xlu1 %2737 }
 0x136   : > { %v4507_v19 = vpop.permute.xlu0 %2722  ;;  %5912 = vst [vmem:[#allocation48_spill] sm:$0xff] %v4517_v29 }
 0x137   : > { %5907 = vst [vmem:[#allocation43_spill] sm:$0xff] %v4507_v19 }
 0x139   : > { %v4524_v1 = vpop.permute.xlu1 %2745 }
 0x13a   : > { %v4511_v23 = vpop.permute.xlu0 %2733  ;;  %5914 = vst [vmem:[#allocation50_spill] sm:$0xff] %v4524_v1 }
 0x13b   : > { %5909 = vst [vmem:[#allocation45_spill] sm:$0xff] %v4511_v23 }
 0x13d   : > { %v4528_v23 = vpop.permute.xlu1 %2753 }
 0x13e   : > { %v4515_v25 = vpop.permute.xlu0 %2741  ;;  %5916 = vst [vmem:[#allocation52_spill] sm:$0xff] %v4528_v23 }
 0x13f   : > { %5911 = vst [vmem:[#allocation47_spill] sm:$0xff] %v4515_v25 }
 0x141   : > { %v4532_v17 = vpop.permute.xlu1 %2761 }
 0x142   : > { %v4522_v37 = vpop.permute.xlu0 %2749  ;;  %5918 = vst [vmem:[#allocation54_spill] sm:$0xff] %v4532_v17 }
 0x143   : > { %5913 = vst [vmem:[#allocation49_spill] sm:$0xff] %v4522_v37 }
 0x145   : > { %v4536_v37 = vpop.permute.xlu1 %2772 }
 0x146   : > { %v4526_v20 = vpop.permute.xlu0 %2757  ;;  %5920 = vst [vmem:[#allocation56_spill] sm:$0xff] %v4536_v37 }
 0x147   : > { %5915 = vst [vmem:[#allocation51_spill] sm:$0xff] %v4526_v20 }
 0x14a   : > { %v4530_v29 = vpop.permute.xlu0 %2768 }
 0x14b   : > { %5917 = vst [vmem:[#allocation53_spill] sm:$0xff] %v4530_v29 }
 0x14e   : > { %v4534_v18 = vpop.permute.xlu0 %2776 }
 0x14f   : > { %5919 = vst [vmem:[#allocation55_spill] sm:$0xff] %v4534_v18 }
 0x152   : > { %v4538_v14 = vpop.permute.xlu0 %2784 }
 0x153   : > { %5921 = vst [vmem:[#allocation57_spill] sm:$0xff] %v4538_v14 }
 0x1c5   : > { %v512_v4 = vpop.f32.mrf.mxu1 }
 0x1c6   : > { %v513_v19 = vadd.f32 %v4015_v34, %v512_v4  ;;  %v4540_v4 = vpop.permute.xlu1 %2780  ;;  %v4542_v34 = vpop.permute.xlu0 %2792 }
 0x1c7   : > { %v4044_v31 = vpop.f32.mrf.mxu1  ;;  %5922 = vst [vmem:[#allocation58_spill] sm:$0xff] %v4540_v4  ;;  %5923 = vst [vmem:[#allocation59_spill] sm:$0xff] %v4542_v34 }
 0x1c8   : > { %v517_v21 = vand.u32 2147483647, %v513_v19  ;;  %v516_v20 = vmax.f32 %v513_v19, 0.0 }
 0x1ca   : > { %v518_v24 = vsub.f32 0.0, %v517_v21  ;;  %v4544_v21 = vpop.permute.xlu1 %2788 }
 0x1cb   : > { %5924 = vst [vmem:[#allocation60_spill] sm:$0xff] %v4544_v21 }
 0x1cc   : > { %v519_v25 = vmul.f32 1.442695, %v518_v24  ;;  %v4546_v24 = vpop.permute.xlu0 %2939 }
 0x1ce   : > { %4073 = vpow2.f32 %v519_v25  ;;  %v4548_v25 = vpop.permute.xlu1 %2796 }
 0x1cf   : > { %5925 = vst [vmem:[#allocation61_spill] sm:$0xff] %v4548_v25 }
 0x1d0   : > { %v4550_v18 = vpop.permute.xlu0 %2947 }
 0x1d2   : > { %v4552_v37 = vpop.permute.xlu1 %2943 }
 0x1d6   : > { %v4560_v34 = vpop.permute.xlu1 %2951 }
 0x1db   : > { %v4074_v1 = vpop.eup %4073 }
 0x1dc   : > { %v521_v31 = vadd.f32 1.0, %v4074_v1 }
 0x1de   : > { %4075 = vlog2.f32 %v521_v31  ;;  %v4558_v31 = vpop.permute.xlu0 %2955 }
 0x1e2   : > { %v4562_v25 = vpop.permute.xlu0 %2963 }
 0x1e6   : > { %v4566_v19 = vpop.permute.xlu0 %2975 }
 0x1e7   : > { %5926 = vst [vmem:[#allocation62_spill] sm:$0xff] %v4566_v19 }
 0x1ea   : > { %v4572_v21 = vpop.permute.xlu0 %2983 }
 0x1eb   : > { %v4076_v17 = vpop.eup %4075  ;;  %5928 = vst [vmem:[#allocation64_spill] sm:$0xff] %v4572_v21  ;;  %v4675_v21 = vld [vmem:[%s5863_s6 + $0x28] sm:$0xff] }
 0x1ec   : > { %v523_v23 = vmul.f32 0.6931472, %v4076_v17  ;;  %v4564_v17 = vpop.permute.xlu1 %2959 }
 0x1ee   : > { %v4554_v14 = vadd.f32 %v523_v23, %v516_v20  ;;  %v4576_v29 = vpop.permute.xlu0 %2991 }
 0x1ef   : > { %5930 = vst [vmem:[#allocation66_spill] sm:$0xff] %v4576_v29 }
 0x1f0   : > { %v536_v1 = vrot.slane %v4554_v14, %v4290_v7  ;;  %v4568_v20 = vpop.permute.xlu1 %2967  ;;  %v571_v23 = vrot.slane %v4554_v14, %v4293_v8  ;;  %v606_v16 = vrot.slane %v4554_v14, %v4300_v10  ;;  %v641_v3 = vrot.slane %v4554_v14, %v4287_v6 }
 0x1f1   : > { %5927 = vst [vmem:[#allocation63_spill] sm:$0xff] %v4568_v20 }
 0x1f2   : > { %546 = vbcast.lane.b32.xlu1 %v536_v1, 272  ;;  %538 = vbcast.lane.b32.xlu0 %v536_v1, 256  ;;  %v4582_v12 = vpop.permute.xlu0 %2999 }
 0x1f3   : > { %5932 = vst [vmem:[#allocation68_spill] sm:$0xff] %v4582_v12 }
 0x1f4   : > { %v4574_v4 = vpop.permute.xlu1 %2979 }
 0x1f5   : > { %5929 = vst [vmem:[#allocation65_spill] sm:$0xff] %v4574_v4 }
 0x1f6   : > { %550 = vbcast.lane.b32.xlu1 %v536_v1, 280  ;;  %542 = vbcast.lane.b32.xlu0 %v536_v1, 264  ;;  %v4586_v9 = vpop.permute.xlu0 %3011 }
 0x1f7   : > { %5934 = vst [vmem:[#allocation70_spill] sm:$0xff] %v4586_v9  ;;  %v781_v9 = vrot.slane %v4554_v14, %v4364_v56 }
 0x1fa   : > { %558 = vbcast.lane.b32.xlu1 %v536_v1, 296  ;;  %554 = vbcast.lane.b32.xlu0 %v536_v1, 288  ;;  %v4590_v2 = vpop.permute.xlu0 %3019 }
 0x1fb   : > { %5936 = vst [vmem:[#allocation72_spill] sm:$0xff] %v4590_v2 }
 0x1fe   : > { %566 = vbcast.lane.b32.xlu1 %v536_v1, 312  ;;  %562 = vbcast.lane.b32.xlu0 %v536_v1, 304  ;;  %v4578_v1 = vpop.permute.xlu1 %2987  ;;  %v4596_v63 = vpop.permute.xlu0 %3027 }
 0x1ff   : > { %5931 = vst [vmem:[#allocation67_spill] sm:$0xff] %v4578_v1  ;;  %5938 = vst [vmem:[#allocation74_spill] sm:$0xff] %v4596_v63 }
 0x202   : > { %577 = vbcast.lane.b32.xlu1 %v571_v23, 264  ;;  %573 = vbcast.lane.b32.xlu0 %v571_v23, 256  ;;  %v4584_v13 = vpop.permute.xlu1 %2995  ;;  %v4600_v61 = vpop.permute.xlu0 %3035 }
 0x203   : > { %5933 = vst [vmem:[#allocation69_spill] sm:$0xff] %v4584_v13  ;;  %5940 = vst [vmem:[#allocation76_spill] sm:$0xff] %v4600_v61  ;;  %v4663_v13 = vld [vmem:[%s5863_s6 + $0x18] sm:$0xff] }
 0x206   : > { %585 = vbcast.lane.b32.xlu1 %v571_v23, 280  ;;  %581 = vbcast.lane.b32.xlu0 %v571_v23, 272  ;;  %v4588_v11 = vpop.permute.xlu1 %3003 }
 0x207   : > { %5935 = vst [vmem:[#allocation71_spill] sm:$0xff] %v4588_v11  ;;  %v4656_v11 = vld [vmem:[%s5863_s6] sm:$0xff] }
 0x20a   : > { %593 = vbcast.lane.b32.xlu1 %v571_v23, 296  ;;  %589 = vbcast.lane.b32.xlu0 %v571_v23, 288 }
 0x20e   : > { %601 = vbcast.lane.b32.xlu1 %v571_v23, 312  ;;  %597 = vbcast.lane.b32.xlu0 %v571_v23, 304  ;;  %v4592_v23 = vpop.permute.xlu1 %3015 }
 0x20f   : > { %5937 = vst [vmem:[#allocation73_spill] sm:$0xff] %v4592_v23  ;;  %v676_v23 = vrot.slane %v4554_v14, %v4344_v45 }
 0x212   : > { %612 = vbcast.lane.b32.xlu1 %v606_v16, 264  ;;  %608 = vbcast.lane.b32.xlu0 %v606_v16, 256  ;;  %v4598_v0 = vpop.permute.xlu1 %3023 }
 0x213   : > { %5939 = vst [vmem:[#allocation75_spill] sm:$0xff] %v4598_v0 }
 0x216   : > { %620 = vbcast.lane.b32.xlu1 %v606_v16, 280  ;;  %616 = vbcast.lane.b32.xlu0 %v606_v16, 272  ;;  %v4602_v62 = vpop.permute.xlu1 %3031 }
 0x217   : > { %5941 = vst [vmem:[#allocation77_spill] sm:$0xff] %v4602_v62 }
 0x21a   : > { %628 = vbcast.lane.b32.xlu1 %v606_v16, 296  ;;  %624 = vbcast.lane.b32.xlu0 %v606_v16, 288  ;;  %v4606_v2 = vpop.permute.xlu1 %3039 }
 0x21b   : > { %5943 = vst [vmem:[#allocation79_spill] sm:$0xff] %v4606_v2 }
 0x21e   : > { %636 = vbcast.lane.b32.xlu1 %v606_v16, 312  ;;  %632 = vbcast.lane.b32.xlu0 %v606_v16, 304  ;;  %v4604_v16 = vpop.permute.xlu0 %3047  ;;  %v4612_v0 = vpop.permute.xlu1 %3051 }
 0x21f   : > { %5942 = vst [vmem:[#allocation78_spill] sm:$0xff] %v4604_v16  ;;  %5945 = vst [vmem:[#allocation81_spill] sm:$0xff] %v4612_v0  ;;  %v711_v16 = vrot.slane %v4554_v14, %v4353_v48 }
 0x222   : > { %647 = vbcast.lane.b32.xlu1 %v641_v3, 264  ;;  %643 = vbcast.lane.b32.xlu0 %v641_v3, 256  ;;  %v4610_v63 = vpop.permute.xlu0 %3055 }
 0x223   : > { %5944 = vst [vmem:[#allocation80_spill] sm:$0xff] %v4610_v63 }
 0x226   : > { %655 = vbcast.lane.b32.xlu1 %v641_v3, 280  ;;  %651 = vbcast.lane.b32.xlu0 %v641_v3, 272  ;;  %v4614_v61 = vpop.permute.xlu0 %3063 }
 0x227   : > { %5946 = vst [vmem:[#allocation82_spill] sm:$0xff] %v4614_v61 }
 0x22a   : > { %663 = vbcast.lane.b32.xlu1 %v641_v3, 296  ;;  %659 = vbcast.lane.b32.xlu0 %v641_v3, 288  ;;  %v4620_v2 = vpop.permute.xlu0 %3071 }
 0x22b   : > { %5948 = vst [vmem:[#allocation84_spill] sm:$0xff] %v4620_v2  ;;  %v746_v2 = vrot.slane %v4554_v14, %v4359_v52 }
 0x22e   : > { %671 = vbcast.lane.b32.xlu1 %v641_v3, 312  ;;  %667 = vbcast.lane.b32.xlu0 %v641_v3, 304  ;;  %v4616_v3 = vpop.permute.xlu1 %3059  ;;  %v4624_v63 = vpop.permute.xlu0 %3083 }
 0x22f   : > { %5947 = vst [vmem:[#allocation83_spill] sm:$0xff] %v4616_v3  ;;  %5950 = vst [vmem:[#allocation86_spill] sm:$0xff] %v4624_v63 }
 0x232   : > { %682 = vbcast.lane.b32.xlu1 %v676_v23, 264  ;;  %678 = vbcast.lane.b32.xlu0 %v676_v23, 256  ;;  %v4622_v62 = vpop.permute.xlu1 %3067  ;;  %v4628_v61 = vpop.permute.xlu0 %2229 }
 0x233   : > { %5949 = vst [vmem:[#allocation85_spill] sm:$0xff] %v4622_v62 }
 0x236   : > { %690 = vbcast.lane.b32.xlu1 %v676_v23, 280  ;;  %686 = vbcast.lane.b32.xlu0 %v676_v23, 272  ;;  %v4626_v0 = vpop.permute.xlu1 %3075  ;;  %v4634_v62 = vpop.permute.xlu0 %2233 }
 0x237   : > { %5951 = vst [vmem:[#allocation87_spill] sm:$0xff] %v4626_v0 }
 0x23a   : > { %698 = vbcast.lane.b32.xlu1 %v676_v23, 296  ;;  %694 = vbcast.lane.b32.xlu0 %v676_v23, 288  ;;  %v4638_v63 = vpop.permute.xlu0 %2237 }
 0x23e   : > { %706 = vbcast.lane.b32.xlu1 %v676_v23, 312  ;;  %702 = vbcast.lane.b32.xlu0 %v676_v23, 304  ;;  %v4630_v23 = vpop.permute.xlu1 %2231 }
 0x242   : > { %717 = vbcast.lane.b32.xlu1 %v711_v16, 264  ;;  %713 = vbcast.lane.b32.xlu0 %v711_v16, 256  ;;  %v4636_v3 = vpop.permute.xlu1 %2235 }
 0x246   : > { %725 = vbcast.lane.b32.xlu1 %v711_v16, 280  ;;  %721 = vbcast.lane.b32.xlu0 %v711_v16, 272  ;;  %v4640_v0 = vpop.permute.xlu1 %2239 }
 0x24a   : > { %733 = vbcast.lane.b32.xlu1 %v711_v16, 296  ;;  %729 = vbcast.lane.b32.xlu0 %v711_v16, 288  ;;  %v4644_v58 = vpop.permute.xlu1 %2243 }
 0x24e   : > { %741 = vbcast.lane.b32.xlu1 %v711_v16, 312  ;;  %737 = vbcast.lane.b32.xlu0 %v711_v16, 304  ;;  %v4642_v16 = vpop.permute.xlu0 %2241 }
 0x252   : > { %752 = vbcast.lane.b32.xlu1 %v746_v2, 264  ;;  %748 = vbcast.lane.b32.xlu0 %v746_v2, 256 }
 0x256   : > { %760 = vbcast.lane.b32.xlu1 %v746_v2, 280  ;;  %756 = vbcast.lane.b32.xlu0 %v746_v2, 272 }
 0x25a   : > { %768 = vbcast.lane.b32.xlu1 %v746_v2, 296  ;;  %764 = vbcast.lane.b32.xlu0 %v746_v2, 288 }
 0x25e   : > { %776 = vbcast.lane.b32.xlu1 %v746_v2, 312  ;;  %772 = vbcast.lane.b32.xlu0 %v746_v2, 304 }
 0x262   : > { %787 = vbcast.lane.b32.xlu1 %v781_v9, 264  ;;  %783 = vbcast.lane.b32.xlu0 %v781_v9, 256 }
 0x264   : > { %v547_v2 = vpop.permute.xlu1 %546  ;;  %v539_v55 = vpop.permute.xlu0 %538 }
 0x265   : > { %v815_v12 = vmul.f32 %v547_v2, %v4651_v60  ;;  %v813_v57 = vmul.f32 %v539_v55, %v4656_v11 }
 0x266   : > { %795 = vbcast.lane.b32.xlu1 %v781_v9, 280  ;;  %791 = vbcast.lane.b32.xlu0 %v781_v9, 272 }
 0x267   : > { %v881_v29 = vmul.f32 1.442695, %v815_v12  ;;  %v877_v54 = vmul.f32 1.442695, %v813_v57  ;;  %v4680_v12 = vld [vmem:[%s5863_s6 + $0x20] sm:$0xff] }
 0x268   : > { %v551_v1 = vpop.permute.xlu1 %550  ;;  %v543_v50 = vpop.permute.xlu0 %542 }
 0x269   : > { %4077 = vpow2.f32 %v881_v29  ;;  %v816_v2 = vmul.f32 %v551_v1, %v4663_v13  ;;  %v814_v55 = vmul.f32 %v543_v50, %v4668_v53  ;;  %v4684_v29 = vmul.f32 %v4554_v14, %v4327_v38  ;;  %v4696_v38 = vld [vmem:[%s5863_s6 + $0x30] sm:$0xff] }
 0x26a   : > { %4079 = vpow2.f32 %v877_v54  ;;  %803 = vbcast.lane.b32.xlu1 %v781_v9, 296  ;;  %799 = vbcast.lane.b32.xlu0 %v781_v9, 288 }
 0x26b   : > { %v883_v57 = vmul.f32 1.442695, %v816_v2  ;;  %v879_v51 = vmul.f32 1.442695, %v814_v55 }
 0x26c   : > { %v559_v50 = vpop.permute.xlu1 %558  ;;  %v555_v54 = vpop.permute.xlu0 %554 }
 0x26d   : > { %4081 = vpow2.f32 %v883_v57  ;;  %v818_v1 = vmul.f32 %v559_v50, %v4675_v21  ;;  %v817_v4 = vmul.f32 %v555_v54, %v4680_v12  ;;  %v1074_v50 = vrot.slane %v4684_v29, %v4290_v7 }
 0x26e   : > { %4083 = vpow2.f32 %v879_v51  ;;  %811 = vbcast.lane.b32.xlu1 %v781_v9, 312  ;;  %807 = vbcast.lane.b32.xlu0 %v781_v9, 304 }
 0x26f   : > { %v887_v14 = vmul.f32 1.442695, %v818_v1  ;;  %v885_v2 = vmul.f32 1.442695, %v817_v4 }
 0x270   : > { %v567_v55 = vpop.permute.xlu1 %566  ;;  %v563_v57 = vpop.permute.xlu0 %562 }
 0x271   : > { %4085 = vpow2.f32 %v887_v14  ;;  %v820_v51 = vmul.f32 %v567_v55, %v4691_v47  ;;  %v819_v9 = vmul.f32 %v563_v57, %v4696_v38 }
 0x272   : > { %4087 = vpow2.f32 %v885_v2  ;;  %1080 = vbcast.lane.b32.xlu1 %v1074_v50, 264  ;;  %1076 = vbcast.lane.b32.xlu0 %v1074_v50, 256 }
 0x273   : > { %v891_v54 = vmul.f32 1.442695, %v820_v51  ;;  %v889_v19 = vmul.f32 1.442695, %v819_v9 }
 0x274   : > { %v578_v49 = vpop.permute.xlu1 %577  ;;  %v574_v20 = vpop.permute.xlu0 %573 }
 0x275   : > { %4089 = vpow2.f32 %v891_v54  ;;  %v822_v4 = vmul.f32 %v578_v49, %v4668_v53  ;;  %v821_v1 = vmul.f32 %v574_v20, %v4656_v11 }
 0x276   : > { %v4078_v44 = vpop.eup %4077  ;;  %4091 = vpow2.f32 %v889_v19  ;;  %1088 = vbcast.lane.b32.xlu1 %v1074_v50, 280  ;;  %1084 = vbcast.lane.b32.xlu0 %v1074_v50, 272 }
 0x277   : > { %v4080_v7 = vpop.eup %4079  ;;  %1008 = vst.msk [vmem:[#allocation2 + $0x10] sm:$0xff] %vm1005_vm6, %v4078_v44  ;;  %v895_v14 = vmul.f32 1.442695, %v822_v4  ;;  %v893_v2 = vmul.f32 1.442695, %v821_v1 }
 0x278   : > { %1006 = vst.msk [vmem:[#allocation2] sm:$0xff] %vm1005_vm6, %v4080_v7  ;;  %v586_v55 = vpop.permute.xlu1 %585  ;;  %v582_v57 = vpop.permute.xlu0 %581 }
 0x279   : > { %4093 = vpow2.f32 %v895_v14  ;;  %v824_v51 = vmul.f32 %v586_v55, %v4663_v13  ;;  %v823_v49 = vmul.f32 %v582_v57, %v4651_v60 }
 0x27a   : > { %v4082_v9 = vpop.eup %4081  ;;  %4095 = vpow2.f32 %v893_v2  ;;  %1096 = vbcast.lane.b32.xlu1 %v1074_v50, 296  ;;  %1092 = vbcast.lane.b32.xlu0 %v1074_v50, 288 }
 0x27b   : > { %v4084_v19 = vpop.eup %4083  ;;  %1009 = vst.msk [vmem:[#allocation2 + $0x18] sm:$0xff] %vm1005_vm6, %v4082_v9  ;;  %v899_v20 = vmul.f32 1.442695, %v824_v51  ;;  %v897_v44 = vmul.f32 1.442695, %v823_v49  ;;  %v1109_v9 = vrot.slane %v4684_v29, %v4293_v8 }
 0x27c   : > { %1007 = vst.msk [vmem:[#allocation2 + $0x8] sm:$0xff] %vm1005_vm6, %v4084_v19  ;;  %v594_v54 = vpop.permute.xlu1 %593  ;;  %v590_v4 = vpop.permute.xlu0 %589 }
 0x27d   : > { %4097 = vpow2.f32 %v899_v20  ;;  %v826_v1 = vmul.f32 %v594_v54, %v4675_v21  ;;  %v825_v7 = vmul.f32 %v590_v4, %v4680_v12 }
 0x27e   : > { %v4086_v14 = vpop.eup %4085  ;;  %4099 = vpow2.f32 %v897_v44  ;;  %1104 = vbcast.lane.b32.xlu1 %v1074_v50, 312  ;;  %1100 = vbcast.lane.b32.xlu0 %v1074_v50, 304 }
 0x27f   : > { %v4088_v2 = vpop.eup %4087  ;;  %1011 = vst.msk [vmem:[#allocation2 + $0x28] sm:$0xff] %vm1005_vm6, %v4086_v14  ;;  %v903_v55 = vmul.f32 1.442695, %v826_v1  ;;  %v901_v57 = vmul.f32 1.442695, %v825_v7 }
 0x280   : > { %1010 = vst.msk [vmem:[#allocation2 + $0x20] sm:$0xff] %vm1005_vm6, %v4088_v2  ;;  %v602_v51 = vpop.permute.xlu1 %601  ;;  %v598_v49 = vpop.permute.xlu0 %597 }
 0x281   : > { %4101 = vpow2.f32 %v903_v55  ;;  %v828_v19 = vmul.f32 %v602_v51, %v4691_v47  ;;  %v827_v20 = vmul.f32 %v598_v49, %v4696_v38 }
 0x282   : > { %v4090_v44 = vpop.eup %4089  ;;  %4103 = vpow2.f32 %v901_v57  ;;  %1115 = vbcast.lane.b32.xlu1 %v1109_v9, 264  ;;  %1111 = vbcast.lane.b32.xlu0 %v1109_v9, 256 }
 0x283   : > { %v4092_v50 = vpop.eup %4091  ;;  %1013 = vst.msk [vmem:[#allocation2 + $0x38] sm:$0xff] %vm1005_vm6, %v4090_v44  ;;  %v907_v54 = vmul.f32 1.442695, %v828_v19  ;;  %v905_v4 = vmul.f32 1.442695, %v827_v20 }
 0x284   : > { %1012 = vst.msk [vmem:[#allocation2 + $0x30] sm:$0xff] %vm1005_vm6, %v4092_v50  ;;  %v613_v1 = vpop.permute.xlu1 %612  ;;  %v609_v7 = vpop.permute.xlu0 %608 }
 0x285   : > { %4105 = vpow2.f32 %v907_v54  ;;  %v830_v8 = vmul.f32 %v613_v1, %v4668_v53  ;;  %v829_v14 = vmul.f32 %v609_v7, %v4656_v11 }
 0x286   : > { %v4094_v2 = vpop.eup %4093  ;;  %4107 = vpow2.f32 %v905_v4  ;;  %1123 = vbcast.lane.b32.xlu1 %v1109_v9, 280  ;;  %1119 = vbcast.lane.b32.xlu0 %v1109_v9, 272 }
 0x287   : > { %v4096_v55 = vpop.eup %4095  ;;  %1015 = vst.msk [vmem:[#allocation2 + $0x48] sm:$0xff] %vm1005_vm6, %v4094_v2  ;;  %v911_v57 = vmul.f32 1.442695, %v830_v8  ;;  %v909_v51 = vmul.f32 1.442695, %v829_v14 }
 0x288   : > { %1014 = vst.msk [vmem:[#allocation2 + $0x40] sm:$0xff] %vm1005_vm6, %v4096_v55  ;;  %v621_v49 = vpop.permute.xlu1 %620  ;;  %v617_v19 = vpop.permute.xlu0 %616 }
 0x289   : > { %4109 = vpow2.f32 %v911_v57  ;;  %v832_v20 = vmul.f32 %v621_v49, %v4663_v13  ;;  %v831_v44 = vmul.f32 %v617_v19, %v4651_v60 }
 0x28a   : > { %v4098_v50 = vpop.eup %4097  ;;  %4111 = vpow2.f32 %v909_v51  ;;  %1131 = vbcast.lane.b32.xlu1 %v1109_v9, 296  ;;  %1127 = vbcast.lane.b32.xlu0 %v1109_v9, 288 }
 0x28b   : > { %v4100_v54 = vpop.eup %4099  ;;  %1017 = vst.msk [vmem:[#allocation2 + $0x58] sm:$0xff] %vm1005_vm6, %v4098_v50  ;;  %v915_v4 = vmul.f32 1.442695, %v832_v20  ;;  %v913_v1 = vmul.f32 1.442695, %v831_v44  ;;  %v1144_v44 = vrot.slane %v4684_v29, %v4300_v10 }
 0x28c   : > { %1016 = vst.msk [vmem:[#allocation2 + $0x50] sm:$0xff] %vm1005_vm6, %v4100_v54  ;;  %v629_v7 = vpop.permute.xlu1 %628  ;;  %v625_v8 = vpop.permute.xlu0 %624 }
 0x28d   : > { %4113 = vpow2.f32 %v915_v4  ;;  %v834_v14 = vmul.f32 %v629_v7, %v4675_v21  ;;  %v833_v2 = vmul.f32 %v625_v8, %v4680_v12 }
 0x28e   : > { %v4102_v55 = vpop.eup %4101  ;;  %4115 = vpow2.f32 %v913_v1  ;;  %1139 = vbcast.lane.b32.xlu1 %v1109_v9, 312  ;;  %1135 = vbcast.lane.b32.xlu0 %v1109_v9, 304 }
 0x28f   : > { %v4104_v57 = vpop.eup %4103  ;;  %1019 = vst.msk [vmem:[#allocation2 + $0x68] sm:$0xff] %vm1005_vm6, %v4102_v55  ;;  %v919_v51 = vmul.f32 1.442695, %v834_v14  ;;  %v917_v49 = vmul.f32 1.442695, %v833_v2 }
 0x290   : > { %1018 = vst.msk [vmem:[#allocation2 + $0x60] sm:$0xff] %vm1005_vm6, %v4104_v57  ;;  %v637_v19 = vpop.permute.xlu1 %636  ;;  %v633_v20 = vpop.permute.xlu0 %632 }
 0x291   : > { %4117 = vpow2.f32 %v919_v51  ;;  %v836_v50 = vmul.f32 %v637_v19, %v4691_v47  ;;  %v835_v54 = vmul.f32 %v633_v20, %v4696_v38 }
 0x292   : > { %v4106_v4 = vpop.eup %4105  ;;  %4119 = vpow2.f32 %v917_v49  ;;  %1150 = vbcast.lane.b32.xlu1 %v1144_v44, 264  ;;  %1146 = vbcast.lane.b32.xlu0 %v1144_v44, 256 }
 0x293   : > { %v4108_v9 = vpop.eup %4107  ;;  %1021 = vst.msk [vmem:[#allocation2 + $0x78] sm:$0xff] %vm1005_vm6, %v4106_v4  ;;  %v923_v1 = vmul.f32 1.442695, %v836_v50  ;;  %v921_v7 = vmul.f32 1.442695, %v835_v54 }
 0x294   : > { %1020 = vst.msk [vmem:[#allocation2 + $0x70] sm:$0xff] %vm1005_vm6, %v4108_v9  ;;  %v648_v8 = vpop.permute.xlu1 %647  ;;  %v644_v14 = vpop.permute.xlu0 %643 }
 0x295   : > { %4121 = vpow2.f32 %v923_v1  ;;  %v838_v10 = vmul.f32 %v648_v8, %v4668_v53  ;;  %v837_v2 = vmul.f32 %v644_v14, %v4656_v11 }
 0x296   : > { %v4110_v55 = vpop.eup %4109  ;;  %4123 = vpow2.f32 %v921_v7  ;;  %1158 = vbcast.lane.b32.xlu1 %v1144_v44, 280  ;;  %1154 = vbcast.lane.b32.xlu0 %v1144_v44, 272 }
 0x297   : > { %v4112_v57 = vpop.eup %4111  ;;  %1023 = vst.msk [vmem:[#allocation2 + $0x88] sm:$0xff] %vm1005_vm6, %v4110_v55  ;;  %v927_v51 = vmul.f32 1.442695, %v838_v10  ;;  %v925_v49 = vmul.f32 1.442695, %v837_v2 }
 0x298   : > { %1022 = vst.msk [vmem:[#allocation2 + $0x80] sm:$0xff] %vm1005_vm6, %v4112_v57  ;;  %v656_v19 = vpop.permute.xlu1 %655  ;;  %v652_v20 = vpop.permute.xlu0 %651 }
 0x299   : > { %4125 = vpow2.f32 %v927_v51  ;;  %v840_v50 = vmul.f32 %v656_v19, %v4663_v13  ;;  %v839_v54 = vmul.f32 %v652_v20, %v4651_v60 }
 0x29a   : > { %v4114_v4 = vpop.eup %4113  ;;  %4127 = vpow2.f32 %v925_v49  ;;  %1166 = vbcast.lane.b32.xlu1 %v1144_v44, 296  ;;  %1162 = vbcast.lane.b32.xlu0 %v1144_v44, 288 }
 0x29b   : > { %v4116_v9 = vpop.eup %4115  ;;  %1025 = vst.msk [vmem:[#allocation2 + $0x98] sm:$0xff] %vm1005_vm6, %v4114_v4  ;;  %v931_v1 = vmul.f32 1.442695, %v840_v50  ;;  %v929_v7 = vmul.f32 1.442695, %v839_v54  ;;  %v1179_v50 = vrot.slane %v4684_v29, %v4287_v6 }
 0x29c   : > { %1024 = vst.msk [vmem:[#allocation2 + $0x90] sm:$0xff] %vm1005_vm6, %v4116_v9  ;;  %v664_v8 = vpop.permute.xlu1 %663  ;;  %v660_v14 = vpop.permute.xlu0 %659 }
 0x29d   : > { %4129 = vpow2.f32 %v931_v1  ;;  %v842_v10 = vmul.f32 %v664_v8, %v4675_v21  ;;  %v841_v2 = vmul.f32 %v660_v14, %v4680_v12 }
 0x29e   : > { %v4118_v55 = vpop.eup %4117  ;;  %4131 = vpow2.f32 %v929_v7  ;;  %1174 = vbcast.lane.b32.xlu1 %v1144_v44, 312  ;;  %1170 = vbcast.lane.b32.xlu0 %v1144_v44, 304 }
 0x29f   : > { %v4120_v57 = vpop.eup %4119  ;;  %1027 = vst.msk [vmem:[#allocation2 + $0xa8] sm:$0xff] %vm1005_vm6, %v4118_v55  ;;  %v935_v51 = vmul.f32 1.442695, %v842_v10  ;;  %v933_v49 = vmul.f32 1.442695, %v841_v2 }
 0x2a0   : > { %1026 = vst.msk [vmem:[#allocation2 + $0xa0] sm:$0xff] %vm1005_vm6, %v4120_v57  ;;  %v672_v19 = vpop.permute.xlu1 %671  ;;  %v668_v20 = vpop.permute.xlu0 %667 }
 0x2a1   : > { %4133 = vpow2.f32 %v935_v51  ;;  %v844_v54 = vmul.f32 %v672_v19, %v4691_v47  ;;  %v843_v4 = vmul.f32 %v668_v20, %v4696_v38 }
 0x2a2   : > { %v4122_v9 = vpop.eup %4121  ;;  %4135 = vpow2.f32 %v933_v49  ;;  %1185 = vbcast.lane.b32.xlu1 %v1179_v50, 264  ;;  %1181 = vbcast.lane.b32.xlu0 %v1179_v50, 256 }
 0x2a3   : > { %v4124_v44 = vpop.eup %4123  ;;  %1029 = vst.msk [vmem:[#allocation2 + $0xb8] sm:$0xff] %vm1005_vm6, %v4122_v9  ;;  %v939_v1 = vmul.f32 1.442695, %v844_v54  ;;  %v937_v7 = vmul.f32 1.442695, %v843_v4 }
 0x2a4   : > { %1028 = vst.msk [vmem:[#allocation2 + $0xb0] sm:$0xff] %vm1005_vm6, %v4124_v44  ;;  %v683_v8 = vpop.permute.xlu1 %682  ;;  %v679_v14 = vpop.permute.xlu0 %678 }
 0x2a5   : > { %4137 = vpow2.f32 %v939_v1  ;;  %v846_v6 = vmul.f32 %v683_v8, %v4668_v53  ;;  %v845_v10 = vmul.f32 %v679_v14, %v4656_v11 }
 0x2a6   : > { %v4126_v2 = vpop.eup %4125  ;;  %4139 = vpow2.f32 %v937_v7  ;;  %1193 = vbcast.lane.b32.xlu1 %v1179_v50, 280  ;;  %1189 = vbcast.lane.b32.xlu0 %v1179_v50, 272 }
 0x2a7   : > { %v4128_v55 = vpop.eup %4127  ;;  %1031 = vst.msk [vmem:[#allocation2 + $0xc8] sm:$0xff] %vm1005_vm6, %v4126_v2  ;;  %v943_v57 = vmul.f32 1.442695, %v846_v6  ;;  %v941_v51 = vmul.f32 1.442695, %v845_v10 }
 0x2a8   : > { %1030 = vst.msk [vmem:[#allocation2 + $0xc0] sm:$0xff] %vm1005_vm6, %v4128_v55  ;;  %v691_v49 = vpop.permute.xlu1 %690  ;;  %v687_v19 = vpop.permute.xlu0 %686 }
 0x2a9   : > { %4141 = vpow2.f32 %v943_v57  ;;  %v848_v20 = vmul.f32 %v691_v49, %v4663_v13  ;;  %v847_v54 = vmul.f32 %v687_v19, %v4651_v60  ;;  %v1214_v19 = vrot.slane %v4684_v29, %v4344_v45 }
 0x2aa   : > { %v4130_v4 = vpop.eup %4129  ;;  %4143 = vpow2.f32 %v941_v51  ;;  %1201 = vbcast.lane.b32.xlu1 %v1179_v50, 296  ;;  %1197 = vbcast.lane.b32.xlu0 %v1179_v50, 288 }
 0x2ab   : > { %v4132_v9 = vpop.eup %4131  ;;  %1033 = vst.msk [vmem:[#allocation2 + $0xd8] sm:$0xff] %vm1005_vm6, %v4130_v4  ;;  %v947_v44 = vmul.f32 1.442695, %v848_v20  ;;  %v945_v1 = vmul.f32 1.442695, %v847_v54 }
 0x2ac   : > { %1032 = vst.msk [vmem:[#allocation2 + $0xd0] sm:$0xff] %vm1005_vm6, %v4132_v9  ;;  %v699_v7 = vpop.permute.xlu1 %698  ;;  %v695_v8 = vpop.permute.xlu0 %694 }
 0x2ad   : > { %4145 = vpow2.f32 %v947_v44  ;;  %v850_v14 = vmul.f32 %v699_v7, %v4675_v21  ;;  %v849_v6 = vmul.f32 %v695_v8, %v4680_v12 }
 0x2ae   : > { %v4134_v10 = vpop.eup %4133  ;;  %4147 = vpow2.f32 %v945_v1  ;;  %1209 = vbcast.lane.b32.xlu1 %v1179_v50, 312  ;;  %1205 = vbcast.lane.b32.xlu0 %v1179_v50, 304 }
 0x2af   : > { %v4136_v2 = vpop.eup %4135  ;;  %1035 = vst.msk [vmem:[#allocation2 + $0xe8] sm:$0xff] %vm1005_vm6, %v4134_v10  ;;  %v951_v55 = vmul.f32 1.442695, %v850_v14  ;;  %v949_v57 = vmul.f32 1.442695, %v849_v6 }
 0x2b0   : > { %1034 = vst.msk [vmem:[#allocation2 + $0xe0] sm:$0xff] %vm1005_vm6, %v4136_v2  ;;  %v707_v51 = vpop.permute.xlu1 %706  ;;  %v703_v49 = vpop.permute.xlu0 %702 }
 0x2b1   : > { %4149 = vpow2.f32 %v951_v55  ;;  %v852_v20 = vmul.f32 %v707_v51, %v4691_v47  ;;  %v851_v54 = vmul.f32 %v703_v49, %v4696_v38 }
 0x2b2   : > { %v4138_v4 = vpop.eup %4137  ;;  %4151 = vpow2.f32 %v949_v57  ;;  %1220 = vbcast.lane.b32.xlu1 %v1214_v19, 264  ;;  %1216 = vbcast.lane.b32.xlu0 %v1214_v19, 256 }
 0x2b3   : > { %v4140_v50 = vpop.eup %4139  ;;  %1037 = vst.msk [vmem:[#allocation2 + $0xf8] sm:$0xff] %vm1005_vm6, %v4138_v4  ;;  %v955_v9 = vmul.f32 1.442695, %v852_v20  ;;  %v953_v44 = vmul.f32 1.442695, %v851_v54 }
 0x2b4   : > { %1036 = vst.msk [vmem:[#allocation2 + $0xf0] sm:$0xff] %vm1005_vm6, %v4140_v50  ;;  %v718_v1 = vpop.permute.xlu1 %717  ;;  %v714_v7 = vpop.permute.xlu0 %713 }
 0x2b5   : > { %4153 = vpow2.f32 %v955_v9  ;;  %v854_v45 = vmul.f32 %v718_v1, %v4668_v53  ;;  %v853_v8 = vmul.f32 %v714_v7, %v4656_v11 }
 0x2b6   : > { %v4142_v14 = vpop.eup %4141  ;;  %4155 = vpow2.f32 %v953_v44  ;;  %1228 = vbcast.lane.b32.xlu1 %v1214_v19, 280  ;;  %1224 = vbcast.lane.b32.xlu0 %v1214_v19, 272 }
 0x2b7   : > { %v4144_v6 = vpop.eup %4143  ;;  %1039 = vst.msk [vmem:[#allocation2 + $0x108] sm:$0xff] %vm1005_vm6, %v4142_v14  ;;  %v959_v10 = vmul.f32 1.442695, %v854_v45  ;;  %v957_v2 = vmul.f32 1.442695, %v853_v8 }
 0x2b8   : > { %1038 = vst.msk [vmem:[#allocation2 + $0x100] sm:$0xff] %vm1005_vm6, %v4144_v6  ;;  %v726_v55 = vpop.permute.xlu1 %725  ;;  %v722_v57 = vpop.permute.xlu0 %721 }
 0x2b9   : > { %4157 = vpow2.f32 %v959_v10  ;;  %v856_v51 = vmul.f32 %v726_v55, %v4663_v13  ;;  %v855_v49 = vmul.f32 %v722_v57, %v4651_v60  ;;  %v1249_v55 = vrot.slane %v4684_v29, %v4353_v48 }
 0x2ba   : > { %v4146_v20 = vpop.eup %4145  ;;  %4159 = vpow2.f32 %v957_v2  ;;  %1236 = vbcast.lane.b32.xlu1 %v1214_v19, 296  ;;  %1232 = vbcast.lane.b32.xlu0 %v1214_v19, 288 }
 0x2bb   : > { %v4148_v54 = vpop.eup %4147  ;;  %1041 = vst.msk [vmem:[#allocation2 + $0x118] sm:$0xff] %vm1005_vm6, %v4146_v20  ;;  %v963_v4 = vmul.f32 1.442695, %v856_v51  ;;  %v961_v50 = vmul.f32 1.442695, %v855_v49 }
 0x2bc   : > { %1040 = vst.msk [vmem:[#allocation2 + $0x110] sm:$0xff] %vm1005_vm6, %v4148_v54  ;;  %v734_v9 = vpop.permute.xlu1 %733  ;;  %v730_v44 = vpop.permute.xlu0 %729 }
 0x2bd   : > { %4161 = vpow2.f32 %v963_v4  ;;  %v858_v1 = vmul.f32 %v734_v9, %v4675_v21  ;;  %v857_v7 = vmul.f32 %v730_v44, %v4680_v12 }
 0x2be   : > { %v4150_v45 = vpop.eup %4149  ;;  %4163 = vpow2.f32 %v961_v50  ;;  %1244 = vbcast.lane.b32.xlu1 %v1214_v19, 312  ;;  %1240 = vbcast.lane.b32.xlu0 %v1214_v19, 304 }
 0x2bf   : > { %v4152_v8 = vpop.eup %4151  ;;  %1043 = vst.msk [vmem:[#allocation2 + $0x128] sm:$0xff] %vm1005_vm6, %v4150_v45  ;;  %v967_v14 = vmul.f32 1.442695, %v858_v1  ;;  %v965_v6 = vmul.f32 1.442695, %v857_v7 }
 0x2c0   : > { %1042 = vst.msk [vmem:[#allocation2 + $0x120] sm:$0xff] %vm1005_vm6, %v4152_v8  ;;  %v742_v10 = vpop.permute.xlu1 %741  ;;  %v738_v2 = vpop.permute.xlu0 %737 }
 0x2c1   : > { %4165 = vpow2.f32 %v967_v14  ;;  %v860_v57 = vmul.f32 %v742_v10, %v4691_v47  ;;  %v859_v51 = vmul.f32 %v738_v2, %v4696_v38 }
 0x2c2   : > { %v4154_v49 = vpop.eup %4153  ;;  %4167 = vpow2.f32 %v965_v6  ;;  %1255 = vbcast.lane.b32.xlu1 %v1249_v55, 264  ;;  %1251 = vbcast.lane.b32.xlu0 %v1249_v55, 256 }
 0x2c3   : > { %v4156_v19 = vpop.eup %4155  ;;  %1045 = vst.msk [vmem:[#allocation2 + $0x138] sm:$0xff] %vm1005_vm6, %v4154_v49  ;;  %v971_v20 = vmul.f32 1.442695, %v860_v57  ;;  %v969_v54 = vmul.f32 1.442695, %v859_v51 }
 0x2c4   : > { %1044 = vst.msk [vmem:[#allocation2 + $0x130] sm:$0xff] %vm1005_vm6, %v4156_v19  ;;  %v753_v4 = vpop.permute.xlu1 %752  ;;  %v749_v50 = vpop.permute.xlu0 %748 }
 0x2c5   : > { %4169 = vpow2.f32 %v971_v20  ;;  %v862_v9 = vmul.f32 %v753_v4, %v4668_v53  ;;  %v861_v44 = vmul.f32 %v749_v50, %v4656_v11 }
 0x2c6   : > { %v4158_v1 = vpop.eup %4157  ;;  %4171 = vpow2.f32 %v969_v54  ;;  %1263 = vbcast.lane.b32.xlu1 %v1249_v55, 280  ;;  %1259 = vbcast.lane.b32.xlu0 %v1249_v55, 272 }
 0x2c7   : > { %v4160_v7 = vpop.eup %4159  ;;  %1047 = vst.msk [vmem:[#allocation2 + $0x148] sm:$0xff] %vm1005_vm6, %v4158_v1  ;;  %v975_v45 = vmul.f32 1.442695, %v862_v9  ;;  %v973_v8 = vmul.f32 1.442695, %v861_v44 }
 0x2c8   : > { %1046 = vst.msk [vmem:[#allocation2 + $0x140] sm:$0xff] %vm1005_vm6, %v4160_v7  ;;  %v761_v14 = vpop.permute.xlu1 %760  ;;  %v757_v6 = vpop.permute.xlu0 %756 }
 0x2c9   : > { %4173 = vpow2.f32 %v975_v45  ;;  %v864_v10 = vmul.f32 %v761_v14, %v4663_v13  ;;  %v863_v2 = vmul.f32 %v757_v6, %v4651_v60  ;;  %v1284_v14 = vrot.slane %v4684_v29, %v4359_v52 }
 0x2ca   : > { %v4162_v57 = vpop.eup %4161  ;;  %4175 = vpow2.f32 %v973_v8  ;;  %1271 = vbcast.lane.b32.xlu1 %v1249_v55, 296  ;;  %1267 = vbcast.lane.b32.xlu0 %v1249_v55, 288 }
 0x2cb   : > { %v4164_v51 = vpop.eup %4163  ;;  %1049 = vst.msk [vmem:[#allocation2 + $0x158] sm:$0xff] %vm1005_vm6, %v4162_v57  ;;  %v979_v49 = vmul.f32 1.442695, %v864_v10  ;;  %v977_v19 = vmul.f32 1.442695, %v863_v2 }
 0x2cc   : > { %1048 = vst.msk [vmem:[#allocation2 + $0x150] sm:$0xff] %vm1005_vm6, %v4164_v51  ;;  %v769_v20 = vpop.permute.xlu1 %768  ;;  %v765_v54 = vpop.permute.xlu0 %764 }
 0x2cd   : > { %4177 = vpow2.f32 %v979_v49  ;;  %v866_v4 = vmul.f32 %v769_v20, %v4675_v21  ;;  %v865_v50 = vmul.f32 %v765_v54, %v4680_v12 }
 0x2ce   : > { %v4166_v9 = vpop.eup %4165  ;;  %4179 = vpow2.f32 %v977_v19  ;;  %1279 = vbcast.lane.b32.xlu1 %v1249_v55, 312  ;;  %1275 = vbcast.lane.b32.xlu0 %v1249_v55, 304 }
 0x2cf   : > { %v4168_v44 = vpop.eup %4167  ;;  %1051 = vst.msk [vmem:[#allocation2 + $0x168] sm:$0xff] %vm1005_vm6, %v4166_v9  ;;  %v983_v1 = vmul.f32 1.442695, %v866_v4  ;;  %v981_v7 = vmul.f32 1.442695, %v865_v50 }
 0x2d0   : > { %1050 = vst.msk [vmem:[#allocation2 + $0x160] sm:$0xff] %vm1005_vm6, %v4168_v44  ;;  %v777_v45 = vpop.permute.xlu1 %776  ;;  %v773_v8 = vpop.permute.xlu0 %772 }
 0x2d1   : > { %4181 = vpow2.f32 %v983_v1  ;;  %v868_v6 = vmul.f32 %v777_v45, %v4691_v47  ;;  %v867_v10 = vmul.f32 %v773_v8, %v4696_v38 }
 0x2d2   : > { %v4170_v2 = vpop.eup %4169  ;;  %4183 = vpow2.f32 %v981_v7  ;;  %1290 = vbcast.lane.b32.xlu1 %v1284_v14, 264  ;;  %1286 = vbcast.lane.b32.xlu0 %v1284_v14, 256 }
 0x2d3   : > { %v4172_v55 = vpop.eup %4171  ;;  %1053 = vst.msk [vmem:[#allocation2 + $0x178] sm:$0xff] %vm1005_vm6, %v4170_v2  ;;  %v987_v57 = vmul.f32 1.442695, %v868_v6  ;;  %v985_v51 = vmul.f32 1.442695, %v867_v10 }
 0x2d4   : > { %1052 = vst.msk [vmem:[#allocation2 + $0x170] sm:$0xff] %vm1005_vm6, %v4172_v55  ;;  %v788_v49 = vpop.permute.xlu1 %787  ;;  %v784_v19 = vpop.permute.xlu0 %783 }
 0x2d5   : > { %4185 = vpow2.f32 %v987_v57  ;;  %v870_v20 = vmul.f32 %v788_v49, %v4668_v53  ;;  %v869_v54 = vmul.f32 %v784_v19, %v4656_v11 }
 0x2d6   : > { %v4174_v4 = vpop.eup %4173  ;;  %4187 = vpow2.f32 %v985_v51  ;;  %1298 = vbcast.lane.b32.xlu1 %v1284_v14, 280  ;;  %1294 = vbcast.lane.b32.xlu0 %v1284_v14, 272 }
 0x2d7   : > { %v4176_v50 = vpop.eup %4175  ;;  %1055 = vst.msk [vmem:[#allocation2 + $0x188] sm:$0xff] %vm1005_vm6, %v4174_v4  ;;  %v991_v9 = vmul.f32 1.442695, %v870_v20  ;;  %v989_v44 = vmul.f32 1.442695, %v869_v54  ;;  %v1319_v4 = vrot.slane %v4684_v29, %v4364_v56 }
 0x2d8   : > { %1054 = vst.msk [vmem:[#allocation2 + $0x180] sm:$0xff] %vm1005_vm6, %v4176_v50  ;;  %v796_v1 = vpop.permute.xlu1 %795  ;;  %v792_v7 = vpop.permute.xlu0 %791 }
 0x2d9   : > { %4189 = vpow2.f32 %v991_v9  ;;  %v872_v45 = vmul.f32 %v796_v1, %v4663_v13  ;;  %v871_v53 = vmul.f32 %v792_v7, %v4651_v60 }
 0x2da   : > { %v4178_v8 = vpop.eup %4177  ;;  %4191 = vpow2.f32 %v989_v44  ;;  %1306 = vbcast.lane.b32.xlu1 %v1284_v14, 296  ;;  %1302 = vbcast.lane.b32.xlu0 %v1284_v14, 288 }
 0x2db   : > { %v4180_v11 = vpop.eup %4179  ;;  %1057 = vst.msk [vmem:[#allocation2 + $0x198] sm:$0xff] %vm1005_vm6, %v4178_v8  ;;  %v995_v6 = vmul.f32 1.442695, %v872_v45  ;;  %v993_v10 = vmul.f32 1.442695, %v871_v53 }
 0x2dc   : > { %1056 = vst.msk [vmem:[#allocation2 + $0x190] sm:$0xff] %vm1005_vm6, %v4180_v11  ;;  %v804_v2 = vpop.permute.xlu1 %803  ;;  %v800_v55 = vpop.permute.xlu0 %799 }
 0x2dd   : > { %4193 = vpow2.f32 %v995_v6  ;;  %v874_v57 = vmul.f32 %v804_v2, %v4675_v21  ;;  %v873_v13 = vmul.f32 %v800_v55, %v4680_v12 }
 0x2de   : > { %v4182_v51 = vpop.eup %4181  ;;  %4195 = vpow2.f32 %v993_v10  ;;  %1314 = vbcast.lane.b32.xlu1 %v1284_v14, 312  ;;  %1310 = vbcast.lane.b32.xlu0 %v1284_v14, 304 }
 0x2df   : > { %v4184_v60 = vpop.eup %4183  ;;  %1059 = vst.msk [vmem:[#allocation2 + $0x1a8] sm:$0xff] %vm1005_vm6, %v4182_v51  ;;  %v999_v49 = vmul.f32 1.442695, %v874_v57  ;;  %v997_v19 = vmul.f32 1.442695, %v873_v13 }
 0x2e0   : > { %1058 = vst.msk [vmem:[#allocation2 + $0x1a0] sm:$0xff] %vm1005_vm6, %v4184_v60  ;;  %v812_v20 = vpop.permute.xlu1 %811  ;;  %v808_v54 = vpop.permute.xlu0 %807 }
 0x2e1   : > { %4197 = vpow2.f32 %v999_v49  ;;  %v876_v21 = vmul.f32 %v812_v20, %v4691_v47  ;;  %v875_v12 = vmul.f32 %v808_v54, %v4696_v38 }
 0x2e2   : > { %v4186_v50 = vpop.eup %4185  ;;  %4199 = vpow2.f32 %v997_v19  ;;  %1325 = vbcast.lane.b32.xlu1 %v1319_v4, 264  ;;  %1321 = vbcast.lane.b32.xlu0 %v1319_v4, 256 }
 0x2e3   : > { %v4188_v14 = vpop.eup %4187  ;;  %1061 = vst.msk [vmem:[#allocation2 + $0x1b8] sm:$0xff] %vm1005_vm6, %v4186_v50  ;;  %v1003_v9 = vmul.f32 1.442695, %v876_v21  ;;  %v1001_v44 = vmul.f32 1.442695, %v875_v12 }
 0x2e4   : > { %1060 = vst.msk [vmem:[#allocation2 + $0x1b0] sm:$0xff] %vm1005_vm6, %v4188_v14  ;;  %v1081_v1 = vpop.permute.xlu1 %1080  ;;  %v1077_v7 = vpop.permute.xlu0 %1076 }
 0x2e5   : > { %4201 = vpow2.f32 %v1003_v9  ;;  %v1441_v55 = vmul.f32 %v4388_v22, %v1081_v1  ;;  %v1440_v57 = vmul.f32 %v4388_v22, %v1077_v7 }
 0x2e6   : > { %v4190_v29 = vpop.eup %4189  ;;  %4203 = vpow2.f32 %v1001_v44  ;;  %1333 = vbcast.lane.b32.xlu1 %v1319_v4, 280  ;;  %1329 = vbcast.lane.b32.xlu0 %v1319_v4, 272 }
 0x2e7   : > { %v4192_v47 = vpop.eup %4191  ;;  %1063 = vst.msk [vmem:[#allocation2 + $0x1c8] sm:$0xff] %vm1005_vm6, %v4190_v29 }
 0x2e8   : > { %1062 = vst.msk [vmem:[#allocation2 + $0x1c0] sm:$0xff] %vm1005_vm6, %v4192_v47  ;;  %v1089_v38 = vpop.permute.xlu1 %1088  ;;  %v1085_v45 = vpop.permute.xlu0 %1084 }
 0x2e9   : > { %v1443_v19 = vmul.f32 %v4388_v22, %v1089_v38  ;;  %v1442_v20 = vmul.f32 %v4388_v22, %v1085_v45 }
 0x2ea   : > { %v4194_v53 = vpop.eup %4193  ;;  %1341 = vbcast.lane.b32.xlu1 %v1319_v4, 296  ;;  %1337 = vbcast.lane.b32.xlu0 %v1319_v4, 288 }
 0x2eb   : > { %v4196_v8 = vpop.eup %4195  ;;  %1065 = vst.msk [vmem:[#allocation2 + $0x1d8] sm:$0xff] %vm1005_vm6, %v4194_v53 }
 0x2ec   : > { %1064 = vst.msk [vmem:[#allocation2 + $0x1d0] sm:$0xff] %vm1005_vm6, %v4196_v8  ;;  %v1097_v11 = vpop.permute.xlu1 %1096  ;;  %v1093_v6 = vpop.permute.xlu0 %1092 }
 0x2ed   : > { %v1445_v21 = vmul.f32 %v4388_v22, %v1097_v11  ;;  %v1444_v12 = vmul.f32 %v4388_v22, %v1093_v6 }
 0x2ee   : > { %v4198_v10 = vpop.eup %4197  ;;  %1349 = vbcast.lane.b32.xlu1 %v1319_v4, 312  ;;  %1345 = vbcast.lane.b32.xlu0 %v1319_v4, 304 }
 0x2ef   : > { %v4200_v2 = vpop.eup %4199  ;;  %1067 = vst.msk [vmem:[#allocation2 + $0x1e8] sm:$0xff] %vm1005_vm6, %v4198_v10 }
 0x2f0   : > { %1066 = vst.msk [vmem:[#allocation2 + $0x1e0] sm:$0xff] %vm1005_vm6, %v4200_v2  ;;  %v1105_v13 = vpop.permute.xlu1 %1104  ;;  %v1101_v51 = vpop.permute.xlu0 %1100 }
 0x2f1   : > { %v1447_v9 = vmul.f32 %v4388_v22, %v1105_v13  ;;  %v1446_v44 = vmul.f32 %v4388_v22, %v1101_v51 }
 0x2f2   : > { %v4202_v60 = vpop.eup %4201  ;;  %1570 = vrot.lane.b32.xlu1 %v1441_v55, %s4217_s29  ;;  %1568 = vrot.lane.b32.xlu0 %v1440_v57, %s4217_s29 }
 0x2f3   : > { %v4204_v49 = vpop.eup %4203  ;;  %1069 = vst.msk [vmem:[#allocation2 + $0x1f8] sm:$0xff] %vm1005_vm6, %v4202_v60 }
 0x2f4   : > { %1068 = vst.msk [vmem:[#allocation2 + $0x1f0] sm:$0xff] %vm1005_vm6, %v4204_v49  ;;  %v1116_v54 = vpop.permute.xlu1 %1115  ;;  %v1112_v4 = vpop.permute.xlu0 %1111 }
 0x2f5   : > { %v1449_v29 = vmul.f32 %v4391_v26, %v1116_v54  ;;  %v1448_v47 = vmul.f32 %v4391_v26, %v1112_v4 }
 0x2f6   : > { %1574 = vrot.lane.b32.xlu1 %v1443_v19, %s4217_s29  ;;  %1572 = vrot.lane.b32.xlu0 %v1442_v20, %s4217_s29 }
 0x2f8   : > { %v1124_v50 = vpop.permute.xlu1 %1123  ;;  %v1120_v14 = vpop.permute.xlu0 %1119 }
 0x2f9   : > { %v1451_v53 = vmul.f32 %v4391_v26, %v1124_v50  ;;  %v1450_v22 = vmul.f32 %v4391_v26, %v1120_v14 }
 0x2fa   : > { %1578 = vrot.lane.b32.xlu1 %v1445_v21, %s4217_s29  ;;  %1576 = vrot.lane.b32.xlu0 %v1444_v12, %s4217_s29 }
 0x2fc   : > { %v1132_v1 = vpop.permute.xlu1 %1131  ;;  %v1128_v7 = vpop.permute.xlu0 %1127 }
 0x2fd   : > { %v1453_v6 = vmul.f32 %v4391_v26, %v1132_v1  ;;  %v1452_v10 = vmul.f32 %v4391_v26, %v1128_v7 }
 0x2fe   : > { %1582 = vrot.lane.b32.xlu1 %v1447_v9, %s4217_s29  ;;  %1580 = vrot.lane.b32.xlu0 %v1446_v44, %s4217_s29 }
 0x300   : > { %v1140_v38 = vpop.permute.xlu1 %1139  ;;  %v1136_v45 = vpop.permute.xlu0 %1135 }
 0x301   : > { %v1455_v57 = vmul.f32 %v4391_v26, %v1140_v38  ;;  %v1454_v13 = vmul.f32 %v4391_v26, %v1136_v45 }
 0x302   : > { %1586 = vrot.lane.b32.xlu1 %v1449_v29, %s4217_s29  ;;  %1584 = vrot.lane.b32.xlu0 %v1448_v47, %s4217_s29 }
 0x304   : > { %v1151_v8 = vpop.permute.xlu1 %1150  ;;  %v1147_v11 = vpop.permute.xlu0 %1146 }
 0x305   : > { %v1457_v49 = vmul.f32 %v4400_v30, %v1151_v8  ;;  %v1456_v19 = vmul.f32 %v4400_v30, %v1147_v11 }
 0x306   : > { %1590 = vrot.lane.b32.xlu1 %v1451_v53, %s4217_s29  ;;  %1588 = vrot.lane.b32.xlu0 %v1450_v22, %s4217_s29 }
 0x308   : > { %v1159_v2 = vpop.permute.xlu1 %1158  ;;  %v1155_v55 = vpop.permute.xlu0 %1154 }
 0x309   : > { %v1459_v4 = vmul.f32 %v4400_v30, %v1159_v2  ;;  %v1458_v26 = vmul.f32 %v4400_v30, %v1155_v55 }
 0x30a   : > { %1594 = vrot.lane.b32.xlu1 %v1453_v6, %s4217_s29  ;;  %1592 = vrot.lane.b32.xlu0 %v1452_v10, %s4217_s29 }
 0x30c   : > { %v1167_v51 = vpop.permute.xlu1 %1166  ;;  %v1163_v60 = vpop.permute.xlu0 %1162 }
 0x30d   : > { %v1461_v50 = vmul.f32 %v4400_v30, %v1167_v51  ;;  %v1460_v14 = vmul.f32 %v4400_v30, %v1163_v60 }
 0x30e   : > { %1598 = vrot.lane.b32.xlu1 %v1455_v57, %s4217_s29  ;;  %1596 = vrot.lane.b32.xlu0 %v1454_v13, %s4217_s29 }
 0x310   : > { %v1175_v20 = vpop.permute.xlu1 %1174  ;;  %v1171_v54 = vpop.permute.xlu0 %1170 }
 0x311   : > { %v1463_v1 = vmul.f32 %v4400_v30, %v1175_v20  ;;  %v1462_v7 = vmul.f32 %v4400_v30, %v1171_v54 }
 0x312   : > { %1602 = vrot.lane.b32.xlu1 %v1457_v49, %s4217_s29  ;;  %1600 = vrot.lane.b32.xlu0 %v1456_v19, %s4217_s29 }
 0x314   : > { %v1186_v21 = vpop.permute.xlu1 %1185  ;;  %v1182_v12 = vpop.permute.xlu0 %1181 }
 0x315   : > { %v1465_v38 = vmul.f32 %v4403_v32, %v1186_v21  ;;  %v1464_v45 = vmul.f32 %v4403_v32, %v1182_v12 }
 0x316   : > { %1606 = vrot.lane.b32.xlu1 %v1459_v4, %s4217_s29  ;;  %1604 = vrot.lane.b32.xlu0 %v1458_v26, %s4217_s29 }
 0x318   : > { %v1194_v9 = vpop.permute.xlu1 %1193  ;;  %v1190_v44 = vpop.permute.xlu0 %1189 }
 0x319   : > { %v1467_v8 = vmul.f32 %v4403_v32, %v1194_v9  ;;  %v1466_v30 = vmul.f32 %v4403_v32, %v1190_v44 }
 0x31a   : > { %1610 = vrot.lane.b32.xlu1 %v1461_v50, %s4217_s29  ;;  %1608 = vrot.lane.b32.xlu0 %v1460_v14, %s4217_s29 }
 0x31c   : > { %v1202_v29 = vpop.permute.xlu1 %1201  ;;  %v1198_v47 = vpop.permute.xlu0 %1197 }
 0x31d   : > { %v1469_v10 = vmul.f32 %v4403_v32, %v1202_v29  ;;  %v1468_v2 = vmul.f32 %v4403_v32, %v1198_v47 }
 0x31e   : > { %1614 = vrot.lane.b32.xlu1 %v1463_v1, %s4217_s29  ;;  %1612 = vrot.lane.b32.xlu0 %v1462_v7, %s4217_s29 }
 0x320   : > { %v1210_v53 = vpop.permute.xlu1 %1209  ;;  %v1206_v22 = vpop.permute.xlu0 %1205 }
 0x321   : > { %v1471_v13 = vmul.f32 %v4403_v32, %v1210_v53  ;;  %v1470_v51 = vmul.f32 %v4403_v32, %v1206_v22 }
 0x322   : > { %1618 = vrot.lane.b32.xlu1 %v1465_v38, %s4217_s29  ;;  %1616 = vrot.lane.b32.xlu0 %v1464_v45, %s4217_s29 }
 0x324   : > { %v1221_v11 = vpop.permute.xlu1 %1220  ;;  %v1217_v6 = vpop.permute.xlu0 %1216 }
 0x325   : > { %v1473_v19 = vmul.f32 %v4410_v35, %v1221_v11  ;;  %v1472_v20 = vmul.f32 %v4410_v35, %v1217_v6 }
 0x326   : > { %1622 = vrot.lane.b32.xlu1 %v1467_v8, %s4217_s29  ;;  %1620 = vrot.lane.b32.xlu0 %v1466_v30, %s4217_s29 }
 0x328   : > { %v1229_v55 = vpop.permute.xlu1 %1228  ;;  %v1225_v57 = vpop.permute.xlu0 %1224 }
 0x329   : > { %v1475_v26 = vmul.f32 %v4410_v35, %v1229_v55  ;;  %v1474_v32 = vmul.f32 %v4410_v35, %v1225_v57 }
 0x32a   : > { %1626 = vrot.lane.b32.xlu1 %v1469_v10, %s4217_s29  ;;  %1624 = vrot.lane.b32.xlu0 %v1468_v2, %s4217_s29 }
 0x32c   : > { %v1237_v60 = vpop.permute.xlu1 %1236  ;;  %v1233_v49 = vpop.permute.xlu0 %1232 }
 0x32d   : > { %v1477_v50 = vmul.f32 %v4410_v35, %v1237_v60  ;;  %v1476_v14 = vmul.f32 %v4410_v35, %v1233_v49 }
 0x32e   : > { %1630 = vrot.lane.b32.xlu1 %v1471_v13, %s4217_s29  ;;  %1628 = vrot.lane.b32.xlu0 %v1470_v51, %s4217_s29 }
 0x330   : > { %v1245_v54 = vpop.permute.xlu1 %1244  ;;  %v1241_v4 = vpop.permute.xlu0 %1240 }
 0x331   : > { %v1479_v1 = vmul.f32 %v4410_v35, %v1245_v54  ;;  %v1478_v7 = vmul.f32 %v4410_v35, %v1241_v4 }
 0x332   : > { %1634 = vrot.lane.b32.xlu1 %v1473_v19, %s4217_s29  ;;  %1632 = vrot.lane.b32.xlu0 %v1472_v20, %s4217_s29 }
 0x334   : > { %v1256_v21 = vpop.permute.xlu1 %1255  ;;  %v1252_v12 = vpop.permute.xlu0 %1251 }
 0x335   : > { %v1481_v38 = vmul.f32 %v4415_v39, %v1256_v21  ;;  %v1480_v45 = vmul.f32 %v4415_v39, %v1252_v12 }
 0x336   : > { %1638 = vrot.lane.b32.xlu1 %v1475_v26, %s4217_s29  ;;  %1636 = vrot.lane.b32.xlu0 %v1474_v32, %s4217_s29 }
 0x338   : > { %v1264_v9 = vpop.permute.xlu1 %1263  ;;  %v1260_v44 = vpop.permute.xlu0 %1259 }
 0x339   : > { %v1483_v8 = vmul.f32 %v4415_v39, %v1264_v9  ;;  %v1482_v35 = vmul.f32 %v4415_v39, %v1260_v44 }
 0x33a   : > { %1642 = vrot.lane.b32.xlu1 %v1477_v50, %s4217_s29  ;;  %1640 = vrot.lane.b32.xlu0 %v1476_v14, %s4217_s29 }
 0x33c   : > { %v1272_v29 = vpop.permute.xlu1 %1271  ;;  %v1268_v47 = vpop.permute.xlu0 %1267 }
 0x33d   : > { %v1485_v6 = vmul.f32 %v4415_v39, %v1272_v29  ;;  %v1484_v10 = vmul.f32 %v4415_v39, %v1268_v47 }
 0x33e   : > { %1646 = vrot.lane.b32.xlu1 %v1479_v1, %s4217_s29  ;;  %1644 = vrot.lane.b32.xlu0 %v1478_v7, %s4217_s29 }
 0x340   : > { %v1280_v53 = vpop.permute.xlu1 %1279  ;;  %v1276_v22 = vpop.permute.xlu0 %1275 }
 0x341   : > { %v1487_v57 = vmul.f32 %v4415_v39, %v1280_v53  ;;  %v1486_v13 = vmul.f32 %v4415_v39, %v1276_v22 }
 0x342   : > { %1650 = vrot.lane.b32.xlu1 %v1481_v38, %s4217_s29  ;;  %1648 = vrot.lane.b32.xlu0 %v1480_v45, %s4217_s29 }
 0x344   : > { %v1291_v30 = vpop.permute.xlu1 %1290  ;;  %v1287_v11 = vpop.permute.xlu0 %1286 }
 0x345   : > { %v1489_v49 = vmul.f32 %v4420_v40, %v1291_v30  ;;  %v1488_v19 = vmul.f32 %v4420_v40, %v1287_v11  ;;  %v1825_v11 = vld [vmem:[#allocation2 + $0x8] sm:$0xff] }
 0x346   : > { %1654 = vrot.lane.b32.xlu1 %v1483_v8, %s4217_s29  ;;  %1652 = vrot.lane.b32.xlu0 %v1482_v35, %s4217_s29 }
 0x348   : > { %v1299_v2 = vpop.permute.xlu1 %1298  ;;  %v1295_v55 = vpop.permute.xlu0 %1294 }
 0x349   : > { %v1491_v4 = vmul.f32 %v4420_v40, %v1299_v2  ;;  %v1490_v39 = vmul.f32 %v4420_v40, %v1295_v55  ;;  %v1833_v55 = vmul.f32 0.0, %v1825_v11 }
 0x34a   : > { %1658 = vrot.lane.b32.xlu1 %v1485_v6, %s4217_s29  ;;  %1656 = vrot.lane.b32.xlu0 %v1484_v10, %s4217_s29  ;;  %v1824_v6 = vld [vmem:[#allocation2] sm:$0xff] }
 0x34c   : > { %v1307_v51 = vpop.permute.xlu1 %1306  ;;  %v1303_v60 = vpop.permute.xlu0 %1302 }
 0x34d   : > { %v1493_v21 = vmul.f32 %v4420_v40, %v1307_v51  ;;  %v1492_v12 = vmul.f32 %v4420_v40, %v1303_v60 }
 0x34e   : > { %1662 = vrot.lane.b32.xlu1 %v1487_v57, %s4217_s29  ;;  %1660 = vrot.lane.b32.xlu0 %v1486_v13, %s4217_s29  ;;  %v1832_v57 = vmul.f32 0.0, %v1824_v6  ;;  %v1826_v13 = vld [vmem:[#allocation2 + $0x10] sm:$0xff] }
 0x350   : > { %v1315_v20 = vpop.permute.xlu1 %1314  ;;  %v1311_v54 = vpop.permute.xlu0 %1310 }
 0x351   : > { %v1495_v9 = vmul.f32 %v4420_v40, %v1315_v20  ;;  %v1494_v44 = vmul.f32 %v4420_v40, %v1311_v54  ;;  %v1827_v20 = vld [vmem:[#allocation2 + $0x18] sm:$0xff] }
 0x352   : > { %1666 = vrot.lane.b32.xlu1 %v1489_v49, %s4217_s29  ;;  %1664 = vrot.lane.b32.xlu0 %v1488_v19, %s4217_s29 }
 0x354   : > { %v1326_v26 = vpop.permute.xlu1 %1325  ;;  %v1322_v32 = vpop.permute.xlu0 %1321 }
 0x355   : > { %v1497_v29 = vmul.f32 %v4423_v41, %v1326_v26  ;;  %v1496_v47 = vmul.f32 %v4423_v41, %v1322_v32  ;;  %v1834_v32 = vmul.f32 0.0, %v1826_v13 }
 0x356   : > { %1670 = vrot.lane.b32.xlu1 %v1491_v4, %s4217_s29  ;;  %1668 = vrot.lane.b32.xlu0 %v1490_v39, %s4217_s29 }
 0x358   : > { %v1334_v50 = vpop.permute.xlu1 %1333  ;;  %v1330_v14 = vpop.permute.xlu0 %1329 }
 0x359   : > { %v1499_v53 = vmul.f32 %v4423_v41, %v1334_v50  ;;  %v1498_v40 = vmul.f32 %v4423_v41, %v1330_v14  ;;  %v1828_v14 = vld [vmem:[#allocation2 + $0x20] sm:$0xff] }
 0x35a   : > { %1674 = vrot.lane.b32.xlu1 %v1493_v21, %s4217_s29  ;;  %1672 = vrot.lane.b32.xlu0 %v1492_v12, %s4217_s29  ;;  %v1829_v21 = vld [vmem:[#allocation2 + $0x28] sm:$0xff] }
 0x35c   : > { %v1342_v1 = vpop.permute.xlu1 %1341  ;;  %v1338_v7 = vpop.permute.xlu0 %1337 }
 0x35d   : > { %v1501_v35 = vmul.f32 %v4423_v41, %v1342_v1  ;;  %v1500_v30 = vmul.f32 %v4423_v41, %v1338_v7 }
 0x35e   : > { %1678 = vrot.lane.b32.xlu1 %v1495_v9, %s4217_s29  ;;  %1676 = vrot.lane.b32.xlu0 %v1494_v44, %s4217_s29 }
 0x360   : > { %v1350_v38 = vpop.permute.xlu1 %1349  ;;  %v1346_v45 = vpop.permute.xlu0 %1345 }
 0x361   : > { %v1503_v51 = vmul.f32 %v4423_v41, %v1350_v38  ;;  %v1502_v60 = vmul.f32 %v4423_v41, %v1346_v45  ;;  %v1835_v41 = vmul.f32 0.0, %v1827_v20  ;;  %v1831_v38 = vld [vmem:[#allocation2 + $0x38] sm:$0xff] }
 0x362   : > { %1682 = vrot.lane.b32.xlu1 %v1497_v29, %s4217_s29  ;;  %1680 = vrot.lane.b32.xlu0 %v1496_v47, %s4217_s29  ;;  %v1837_v29 = vmul.f32 0.0, %v1829_v21  ;;  %v1836_v47 = vmul.f32 0.0, %v1828_v14  ;;  %v1839_v11 = vmul.f32 0.0, %v1831_v38  ;;  %v1867_v14 = vld [vmem:[#allocation2 + $0x50] sm:$0xff] }
 0x364   : > { %v1571_v22 = vpop.permute.xlu1 %1570  ;;  %v1569_v8 = vpop.permute.xlu0 %1568 }
 0x365   : > { %1761 = vst.msk [vmem:[#allocation3 + $0x8] sm:$0xff] %vm1005_vm6, %v1571_v22  ;;  %1760 = vst.msk [vmem:[#allocation3] sm:$0xff] %vm1005_vm6, %v1569_v8 }
 0x366   : > { %1686 = vrot.lane.b32.xlu1 %v1499_v53, %s4217_s29  ;;  %1684 = vrot.lane.b32.xlu0 %v1498_v40, %s4217_s29  ;;  %v1830_v40 = vld [vmem:[#allocation2 + $0x30] sm:$0xff] }
 0x367   : > { %v1838_v6 = vmul.f32 0.0, %v1830_v40  ;;  %v1869_v40 = vld [vmem:[#allocation2 + $0x60] sm:$0xff] }
 0x368   : > { %v1575_v10 = vpop.permute.xlu1 %1574  ;;  %v1573_v2 = vpop.permute.xlu0 %1572 }
 0x369   : > { %1763 = vst.msk [vmem:[#allocation3 + $0x18] sm:$0xff] %vm1005_vm6, %v1575_v10  ;;  %1762 = vst.msk [vmem:[#allocation3 + $0x10] sm:$0xff] %vm1005_vm6, %v1573_v2 }
 0x36a   : > { %1690 = vrot.lane.b32.xlu1 %v1501_v35, %s4217_s29  ;;  %1688 = vrot.lane.b32.xlu0 %v1500_v30, %s4217_s29 }
 0x36c   : > { %v1841_v49 = vld [vmem:[#allocation3 + $0x8] sm:$0xff]  ;;  %v1840_v19 = vld [vmem:[#allocation3] sm:$0xff]  ;;  %v1579_v54 = vpop.permute.xlu1 %1578  ;;  %v1577_v4 = vpop.permute.xlu0 %1576 }
 0x36d   : > { %v1849_v39 = vadd.f32 %v1841_v49, %v1833_v55  ;;  %v1848_v26 = vadd.f32 %v1840_v19, %v1832_v57  ;;  %1765 = vst.msk [vmem:[#allocation3 + $0x28] sm:$0xff] %vm1005_vm6, %v1579_v54  ;;  %1764 = vst.msk [vmem:[#allocation3 + $0x20] sm:$0xff] %vm1005_vm6, %v1577_v4  ;;  %v1865_v49 = vld [vmem:[#allocation2 + $0x40] sm:$0xff] }
 0x36e   : > { %1694 = vrot.lane.b32.xlu1 %v1503_v51, %s4217_s29  ;;  %1692 = vrot.lane.b32.xlu0 %v1502_v60, %s4217_s29  ;;  %v1866_v60 = vld [vmem:[#allocation2 + $0x48] sm:$0xff] }
 0x36f   : > { %1857 = vst.msk [vmem:[#allocation4 + $0x8] sm:$0xff] %vm1005_vm6, %v1849_v39  ;;  %1856 = vst.msk [vmem:[#allocation4] sm:$0xff] %vm1005_vm6, %v1848_v26  ;;  %v1874_v19 = vmul.f32 %v1866_v60, %v1849_v39  ;;  %v1873_v20 = vmul.f32 %v1865_v49, %v1848_v26 }
 0x370   : > { %v1843_v12 = vld [vmem:[#allocation3 + $0x18] sm:$0xff]  ;;  %v1842_v50 = vld [vmem:[#allocation3 + $0x10] sm:$0xff]  ;;  %v1583_v9 = vpop.permute.xlu1 %1582  ;;  %v1581_v44 = vpop.permute.xlu0 %1580 }
 0x371   : > { %v1851_v1 = vadd.f32 %v1843_v12, %v1835_v41  ;;  %v1850_v7 = vadd.f32 %v1842_v50, %v1834_v32  ;;  %1767 = vst.msk [vmem:[#allocation3 + $0x38] sm:$0xff] %vm1005_vm6, %v1583_v9  ;;  %1766 = vst.msk [vmem:[#allocation3 + $0x30] sm:$0xff] %vm1005_vm6, %v1581_v44  ;;  %v1868_v50 = vld [vmem:[#allocation2 + $0x58] sm:$0xff] }
 0x372   : > { %3087 = vbcast.lane.b32.xlu1 %v4381_v5, 328  ;;  %3091 = vbcast.lane.b32.xlu0 %v4381_v5, 336 }
 0x373   : > { %1859 = vst.msk [vmem:[#allocation4 + $0x18] sm:$0xff] %vm1005_vm6, %v1851_v1  ;;  %1858 = vst.msk [vmem:[#allocation4 + $0x10] sm:$0xff] %vm1005_vm6, %v1850_v7  ;;  %v1876_v9 = vmul.f32 %v1868_v50, %v1851_v1  ;;  %v1875_v44 = vmul.f32 %v1867_v14, %v1850_v7  ;;  %v1908_v50 = vld [vmem:[#allocation2 + $0x80] sm:$0xff] }
 0x374   : > { %v1845_v45 = vld [vmem:[#allocation3 + $0x28] sm:$0xff]  ;;  %v1844_v53 = vld [vmem:[#allocation3 + $0x20] sm:$0xff]  ;;  %v1587_v22 = vpop.permute.xlu1 %1586  ;;  %v1585_v8 = vpop.permute.xlu0 %1584 }
 0x375   : > { %v1853_v35 = vadd.f32 %v1845_v45, %v1837_v29  ;;  %v1852_v30 = vadd.f32 %v1844_v53, %v1836_v47  ;;  %1769 = vst.msk [vmem:[#allocation3 + $0x48] sm:$0xff] %vm1005_vm6, %v1587_v22  ;;  %1768 = vst.msk [vmem:[#allocation3 + $0x40] sm:$0xff] %vm1005_vm6, %v1585_v8  ;;  %v1870_v53 = vld [vmem:[#allocation2 + $0x68] sm:$0xff] }
 0x376   : > { %3095 = vbcast.lane.b32.xlu1 %v4381_v5, 344 }
 0x377   : > { %1861 = vst.msk [vmem:[#allocation4 + $0x28] sm:$0xff] %vm1005_vm6, %v1853_v35  ;;  %1860 = vst.msk [vmem:[#allocation4 + $0x20] sm:$0xff] %vm1005_vm6, %v1852_v30  ;;  %v1878_v22 = vmul.f32 %v1870_v53, %v1853_v35  ;;  %v1877_v8 = vmul.f32 %v1869_v40, %v1852_v30  ;;  %v1911_v40 = vld [vmem:[#allocation2 + $0x98] sm:$0xff] }
 0x378   : > { %v1847_v10 = vld [vmem:[#allocation3 + $0x38] sm:$0xff]  ;;  %v1846_v2 = vld [vmem:[#allocation3 + $0x30] sm:$0xff]  ;;  %v1591_v55 = vpop.permute.xlu1 %1590  ;;  %v1589_v57 = vpop.permute.xlu0 %1588 }
 0x379   : > { %v1855_v13 = vadd.f32 %v1847_v10, %v1839_v11  ;;  %v1854_v51 = vadd.f32 %v1846_v2, %v1838_v6  ;;  %1771 = vst.msk [vmem:[#allocation3 + $0x58] sm:$0xff] %vm1005_vm6, %v1591_v55  ;;  %1770 = vst.msk [vmem:[#allocation3 + $0x50] sm:$0xff] %vm1005_vm6, %v1589_v57  ;;  %v1872_v55 = vld [vmem:[#allocation2 + $0x78] sm:$0xff]  ;;  %v1871_v57 = vld [vmem:[#allocation2 + $0x70] sm:$0xff] }
 0x37a   : > { %v2167_v53 = vld [vmem:[#allocation4 + $0x10] sm:$0xff] }
 0x37b   : > { %1863 = vst.msk [vmem:[#allocation4 + $0x38] sm:$0xff] %vm1005_vm6, %v1855_v13  ;;  %1862 = vst.msk [vmem:[#allocation4 + $0x30] sm:$0xff] %vm1005_vm6, %v1854_v51  ;;  %v1880_v60 = vmul.f32 %v1872_v55, %v1855_v13  ;;  %v1879_v49 = vmul.f32 %v1871_v57, %v1854_v51  ;;  %v2255_v55 = vmul.f32 %v4628_v61, %v2167_v53 }
 0x37c   : > { %v1883_v54 = vld [vmem:[#allocation3 + $0x48] sm:$0xff]  ;;  %v1882_v4 = vld [vmem:[#allocation3 + $0x40] sm:$0xff]  ;;  %v1595_v41 = vpop.permute.xlu1 %1594  ;;  %v1593_v32 = vpop.permute.xlu0 %1592 }
 0x37d   : > { %v1891_v21 = vadd.f32 %v1883_v54, %v1874_v19  ;;  %v1890_v12 = vadd.f32 %v1882_v4, %v1873_v20  ;;  %1773 = vst.msk [vmem:[#allocation3 + $0x68] sm:$0xff] %vm1005_vm6, %v1595_v41  ;;  %1772 = vst.msk [vmem:[#allocation3 + $0x60] sm:$0xff] %vm1005_vm6, %v1593_v32  ;;  %v2165_v41 = vld [vmem:[#allocation4] sm:$0xff]  ;;  %v1909_v32 = vld [vmem:[#allocation2 + $0x88] sm:$0xff] }
 0x37f   : > { %1900 = vst.msk [vmem:[#allocation4 + $0x48] sm:$0xff] %vm1005_vm6, %v1891_v21  ;;  %1899 = vst.msk [vmem:[#allocation4 + $0x40] sm:$0xff] %vm1005_vm6, %v1890_v12  ;;  %v1917_v13 = vmul.f32 %v1909_v32, %v1891_v21  ;;  %v1916_v51 = vmul.f32 %v1908_v50, %v1890_v12 }
 0x380   : > { %v1885_v39 = vld [vmem:[#allocation3 + $0x58] sm:$0xff]  ;;  %v1884_v26 = vld [vmem:[#allocation3 + $0x50] sm:$0xff]  ;;  %v1599_v29 = vpop.permute.xlu1 %1598  ;;  %v1597_v47 = vpop.permute.xlu0 %1596 }
 0x381   : > { %v1893_v38 = vadd.f32 %v1885_v39, %v1876_v9  ;;  %v1892_v45 = vadd.f32 %v1884_v26, %v1875_v44  ;;  %1775 = vst.msk [vmem:[#allocation3 + $0x78] sm:$0xff] %vm1005_vm6, %v1599_v29  ;;  %1774 = vst.msk [vmem:[#allocation3 + $0x70] sm:$0xff] %vm1005_vm6, %v1597_v47  ;;  %v2253_v26 = vmul.f32 %v4628_v61, %v2165_v41 }
 0x383   : > { %1902 = vst.msk [vmem:[#allocation4 + $0x58] sm:$0xff] %vm1005_vm6, %v1893_v38  ;;  %1901 = vst.msk [vmem:[#allocation4 + $0x50] sm:$0xff] %vm1005_vm6, %v1892_v45  ;;  %v1919_v21 = vmul.f32 %v1911_v40, %v1893_v38  ;;  %v1913_v38 = vld [vmem:[#allocation2 + $0xa8] sm:$0xff] }
 0x384   : > { %v1887_v1 = vld [vmem:[#allocation3 + $0x68] sm:$0xff]  ;;  %v1886_v7 = vld [vmem:[#allocation3 + $0x60] sm:$0xff]  ;;  %v1603_v11 = vpop.permute.xlu1 %1602  ;;  %v1601_v6 = vpop.permute.xlu0 %1600 }
 0x385   : > { %v1895_v10 = vadd.f32 %v1887_v1, %v1878_v22  ;;  %v1894_v2 = vadd.f32 %v1886_v7, %v1877_v8  ;;  %1777 = vst.msk [vmem:[#allocation3 + $0x88] sm:$0xff] %vm1005_vm6, %v1603_v11  ;;  %1776 = vst.msk [vmem:[#allocation3 + $0x80] sm:$0xff] %vm1005_vm6, %v1601_v6  ;;  %v1910_v22 = vld [vmem:[#allocation2 + $0x90] sm:$0xff]  ;;  %v2317_v6 = vsel %vm1005_vm6, %v2253_v26, 0.0  ;;  %v2169_v26 = vld [vmem:[#allocation4 + $0x20] sm:$0xff] }
 0x386   : > { %v1918_v12 = vmul.f32 %v1910_v22, %v1892_v45  ;;  %v1912_v45 = vld [vmem:[#allocation2 + $0xa0] sm:$0xff] }
 0x387   : > { %1904 = vst.msk [vmem:[#allocation4 + $0x68] sm:$0xff] %vm1005_vm6, %v1895_v10  ;;  %1903 = vst.msk [vmem:[#allocation4 + $0x60] sm:$0xff] %vm1005_vm6, %v1894_v2 }
 0x388   : > { %v1889_v35 = vld [vmem:[#allocation3 + $0x78] sm:$0xff]  ;;  %v1888_v30 = vld [vmem:[#allocation3 + $0x70] sm:$0xff]  ;;  %v1607_v19 = vpop.permute.xlu1 %1606  ;;  %v1605_v20 = vpop.permute.xlu0 %1604 }
 0x389   : > { %v4999_v54 = vadd.f32 %v1889_v35, %v1880_v60  ;;  %v5001_v4 = vadd.f32 %v1888_v30, %v1879_v49  ;;  %1779 = vst.msk [vmem:[#allocation3 + $0x98] sm:$0xff] %vm1005_vm6, %v1607_v19  ;;  %1778 = vst.msk [vmem:[#allocation3 + $0x90] sm:$0xff] %vm1005_vm6, %v1605_v20  ;;  %v2168_v49 = vld [vmem:[#allocation4 + $0x18] sm:$0xff]  ;;  %v2166_v35 = vld [vmem:[#allocation4 + $0x8] sm:$0xff]  ;;  %v1921_v30 = vmul.f32 %v1913_v38, %v1895_v10 }
 0x38a   : > { %v1920_v19 = vmul.f32 %v1912_v45, %v1894_v2  ;;  %v2254_v10 = vmul.f32 %v4628_v61, %v2166_v35  ;;  %v2170_v2 = vld [vmem:[#allocation4 + $0x28] sm:$0xff]  ;;  %v1951_v38 = vld [vmem:[#allocation2 + $0xc0] sm:$0xff]  ;;  %v2171_v45 = vld [vmem:[#allocation4 + $0x30] sm:$0xff] }
 0x38b   : > { %1906 = vst.msk [vmem:[#allocation4 + $0x78] sm:$0xff] %vm1005_vm6, %v4999_v54  ;;  %1905 = vst.msk [vmem:[#allocation4 + $0x70] sm:$0xff] %vm1005_vm6, %v5001_v4 }
 0x38c   : > { %v1926_v14 = vld [vmem:[#allocation3 + $0x88] sm:$0xff]  ;;  %v1925_v9 = vld [vmem:[#allocation3 + $0x80] sm:$0xff]  ;;  %v1611_v44 = vpop.permute.xlu1 %1610  ;;  %v1609_v39 = vpop.permute.xlu0 %1608 }
 0x38d   : > { %v5010_v29 = vadd.f32 %v1926_v14, %v1917_v13  ;;  %v5012_v47 = vadd.f32 %v1925_v9, %v1916_v51  ;;  %1781 = vst.msk [vmem:[#allocation3 + $0xa8] sm:$0xff] %vm1005_vm6, %v1611_v44  ;;  %1780 = vst.msk [vmem:[#allocation3 + $0xa0] sm:$0xff] %vm1005_vm6, %v1609_v39  ;;  %v2323_v13 = vsel %vm1005_vm6, %v2255_v55, 0.0  ;;  %v2256_v51 = vmul.f32 %v4628_v61, %v2168_v49  ;;  %v1915_v44 = vld [vmem:[#allocation2 + $0xb8] sm:$0xff]  ;;  %v1914_v39 = vld [vmem:[#allocation2 + $0xb0] sm:$0xff] }
 0x38e   : > { %v1923_v53 = vmul.f32 %v1915_v44, %v4999_v54  ;;  %v1922_v40 = vmul.f32 %v1914_v39, %v5001_v4  ;;  %v2320_v54 = vsel %vm1005_vm6, %v2254_v10, 0.0  ;;  %v2257_v4 = vmul.f32 %v4628_v61, %v2169_v26  ;;  %v2172_v55 = vld [vmem:[#allocation4 + $0x38] sm:$0xff]  ;;  %v1952_v49 = vld [vmem:[#allocation2 + $0xc8] sm:$0xff]  ;;  %v1953_v39 = vld [vmem:[#allocation2 + $0xd0] sm:$0xff] }
 0x38f   : > { %1943 = vst.msk [vmem:[#allocation4 + $0x88] sm:$0xff] %vm1005_vm6, %v5010_v29  ;;  %1942 = vst.msk [vmem:[#allocation4 + $0x80] sm:$0xff] %vm1005_vm6, %v5012_v47  ;;  %v1960_v35 = vmul.f32 %v1952_v49, %v5010_v29  ;;  %v1954_v44 = vld [vmem:[#allocation2 + $0xd8] sm:$0xff]  ;;  %v2173_v26 = vld [vmem:[#allocation4 + $0x40] sm:$0xff] }
 0x390   : > { %v1928_v8 = vld [vmem:[#allocation3 + $0x98] sm:$0xff]  ;;  %v1927_v1 = vld [vmem:[#allocation3 + $0x90] sm:$0xff]  ;;  %v1615_v7 = vpop.permute.xlu1 %1614  ;;  %v1613_v11 = vpop.permute.xlu0 %1612  ;;  %v2329_v29 = vsel %vm1005_vm6, %v2257_v4, 0.0  ;;  %v1955_v49 = vld [vmem:[#allocation2 + $0xe0] sm:$0xff] }
 0x391   : > { %v5022_v57 = vadd.f32 %v1928_v8, %v1919_v21  ;;  %v5024_v60 = vadd.f32 %v1927_v1, %v1918_v12  ;;  %1783 = vst.msk [vmem:[#allocation3 + $0xb8] sm:$0xff] %vm1005_vm6, %v1615_v7  ;;  %1782 = vst.msk [vmem:[#allocation3 + $0xb0] sm:$0xff] %vm1005_vm6, %v1613_v11  ;;  %2318 = vadd.xlane.f32.xlu0 %v2317_v6  ;;  %v2326_v1 = vsel %vm1005_vm6, %v2256_v51, 0.0  ;;  %v2176_v4 = vld [vmem:[#allocation4 + $0x58] sm:$0xff] }
 0x392   : > { %v2258_v7 = vmul.f32 %v4628_v61, %v2170_v2  ;;  %v2174_v2 = vld [vmem:[#allocation4 + $0x48] sm:$0xff] }
 0x393   : > { %1945 = vst.msk [vmem:[#allocation4 + $0x98] sm:$0xff] %vm1005_vm6, %v5022_v57  ;;  %1944 = vst.msk [vmem:[#allocation4 + $0x90] sm:$0xff] %vm1005_vm6, %v5024_v60 }
 0x394   : > { %v1930_v20 = vld [vmem:[#allocation3 + $0xa8] sm:$0xff]  ;;  %v1929_v41 = vld [vmem:[#allocation3 + $0xa0] sm:$0xff]  ;;  %v1619_v32 = vpop.permute.xlu1 %1618  ;;  %v1617_v50 = vpop.permute.xlu0 %1616 }
 0x395   : > { %v5034_v14 = vadd.f32 %v1930_v20, %v1921_v30  ;;  %v5036_v9 = vadd.f32 %v1929_v41, %v1920_v19  ;;  %1785 = vst.msk [vmem:[#allocation3 + $0xc8] sm:$0xff] %vm1005_vm6, %v1619_v32  ;;  %1784 = vst.msk [vmem:[#allocation3 + $0xc0] sm:$0xff] %vm1005_vm6, %v1617_v50  ;;  %2324 = vadd.xlane.f32.xlu0 %v2323_v13  ;;  %v1959_v30 = vmul.f32 %v1951_v38, %v5012_v47  ;;  %v2175_v38 = vld [vmem:[#allocation4 + $0x50] sm:$0xff] }
 0x396   : > { %v2332_v50 = vsel %vm1005_vm6, %v2258_v7, 0.0  ;;  %v2260_v13 = vmul.f32 %v4628_v61, %v2172_v55  ;;  %v2259_v47 = vmul.f32 %v4628_v61, %v2171_v45  ;;  %v1956_v55 = vld [vmem:[#allocation2 + $0xe8] sm:$0xff] }
 0x397   : > { %1947 = vst.msk [vmem:[#allocation4 + $0xa8] sm:$0xff] %vm1005_vm6, %v5034_v14  ;;  %1946 = vst.msk [vmem:[#allocation4 + $0xa0] sm:$0xff] %vm1005_vm6, %v5036_v9  ;;  %v1964_v45 = vmul.f32 %v1956_v55, %v5034_v14  ;;  %v1994_v55 = vld [vmem:[#allocation2 + $0x100] sm:$0xff] }
 0x398   : > { %v1932_v22 = vld [vmem:[#allocation3 + $0xb8] sm:$0xff]  ;;  %v1931_v21 = vld [vmem:[#allocation3 + $0xb0] sm:$0xff]  ;;  %v1623_v12 = vpop.permute.xlu1 %1622  ;;  %v1621_v8 = vpop.permute.xlu0 %1620  ;;  %v2338_v61 = vsel %vm1005_vm6, %v2260_v13, 0.0 }
 0x399   : > { %v5049_v11 = vadd.f32 %v1932_v22, %v1923_v53  ;;  %v5051_v6 = vadd.f32 %v1931_v21, %v1922_v40  ;;  %1787 = vst.msk [vmem:[#allocation3 + $0xd8] sm:$0xff] %vm1005_vm6, %v1623_v12  ;;  %1786 = vst.msk [vmem:[#allocation3 + $0xd0] sm:$0xff] %vm1005_vm6, %v1621_v8  ;;  %2327 = vadd.xlane.f32.xlu0 %v2326_v1  ;;  %v1962_v53 = vmul.f32 %v1954_v44, %v5022_v57  ;;  %v1957_v44 = vld [vmem:[#allocation2 + $0xf0] sm:$0xff] }
 0x39a   : > { %2321 = vadd.xlane.f32.xlu1 %v2320_v54  ;;  %v1961_v40 = vmul.f32 %v1953_v39, %v5024_v60  ;;  %v2262_v1 = vmul.f32 %v4630_v23, %v2174_v2  ;;  %v2335_v57 = vsel %vm1005_vm6, %v2259_v47, 0.0  ;;  %v2261_v60 = vmul.f32 %v4630_v23, %v2173_v26  ;;  %v2178_v47 = vld [vmem:[#allocation4 + $0x68] sm:$0xff]  ;;  %v1958_v2 = vld [vmem:[#allocation2 + $0xf8] sm:$0xff]  ;;  %v2177_v39 = vld [vmem:[#allocation4 + $0x60] sm:$0xff] }
 0x39b   : > { %1949 = vst.msk [vmem:[#allocation4 + $0xb8] sm:$0xff] %vm1005_vm6, %v5049_v11  ;;  %1948 = vst.msk [vmem:[#allocation4 + $0xb0] sm:$0xff] %vm1005_vm6, %v5051_v6  ;;  %v1966_v26 = vmul.f32 %v1958_v2, %v5049_v11  ;;  %v1996_v2 = vld [vmem:[#allocation2 + $0x110] sm:$0xff] }
 0x39c   : > { %v1969_v19 = vld [vmem:[#allocation3 + $0xc8] sm:$0xff]  ;;  %v1968_v20 = vld [vmem:[#allocation3 + $0xc0] sm:$0xff]  ;;  %v1627_v41 = vpop.permute.xlu1 %1626  ;;  %v1625_v32 = vpop.permute.xlu0 %1624  ;;  %v2341_v14 = vsel %vm1005_vm6, %v2261_v60, 0.0  ;;  %v2180_v60 = vld [vmem:[#allocation4 + $0x78] sm:$0xff] }
 0x39d   : > { %v5065_v51 = vadd.f32 %v1969_v19, %v1960_v35  ;;  %v5067_v10 = vadd.f32 %v1968_v20, %v1959_v30  ;;  %1789 = vst.msk [vmem:[#allocation3 + $0xe8] sm:$0xff] %vm1005_vm6, %v1627_v41  ;;  %1788 = vst.msk [vmem:[#allocation3 + $0xe0] sm:$0xff] %vm1005_vm6, %v1625_v32  ;;  %2333 = vadd.xlane.f32.xlu0 %v2332_v50  ;;  %v1963_v35 = vmul.f32 %v1955_v49, %v5036_v9  ;;  %v2179_v49 = vld [vmem:[#allocation4 + $0x70] sm:$0xff] }
 0x39e   : > { %2330 = vadd.xlane.f32.xlu1 %v2329_v29  ;;  %v2344_v32 = vsel %vm1005_vm6, %v2262_v1, 0.0  ;;  %v2264_v50 = vmul.f32 %v4630_v23, %v2176_v4  ;;  %v2263_v9 = vmul.f32 %v4630_v23, %v2175_v38  ;;  %v1995_v4 = vld [vmem:[#allocation2 + $0x108] sm:$0xff] }
 0x39f   : > { %1986 = vst.msk [vmem:[#allocation4 + $0xc8] sm:$0xff] %vm1005_vm6, %v5065_v51  ;;  %1985 = vst.msk [vmem:[#allocation4 + $0xc0] sm:$0xff] %vm1005_vm6, %v5067_v10  ;;  %v2003_v38 = vmul.f32 %v1995_v4, %v5065_v51  ;;  %v2183_v4 = vld [vmem:[#allocation4 + $0x90] sm:$0xff] }
 0x3a0   : > { %v1971_v22 = vld [vmem:[#allocation3 + $0xd8] sm:$0xff]  ;;  %v1970_v21 = vld [vmem:[#allocation3 + $0xd0] sm:$0xff]  ;;  %v1631_v12 = vpop.permute.xlu1 %1630  ;;  %v1629_v8 = vpop.permute.xlu0 %1628  ;;  %v2347_v11 = vsel %vm1005_vm6, %v2263_v9, 0.0  ;;  %v2182_v9 = vld [vmem:[#allocation4 + $0x88] sm:$0xff] }
 0x3a1   : > { %v5081_v7 = vadd.f32 %v1971_v22, %v1962_v53  ;;  %v5083_v54 = vadd.f32 %v1970_v21, %v1961_v40  ;;  %1791 = vst.msk [vmem:[#allocation3 + $0xf8] sm:$0xff] %vm1005_vm6, %v1631_v12  ;;  %1790 = vst.msk [vmem:[#allocation3 + $0xf0] sm:$0xff] %vm1005_vm6, %v1629_v8  ;;  %2339 = vadd.xlane.f32.xlu0 %v2338_v61  ;;  %v1965_v53 = vmul.f32 %v1957_v44, %v5051_v6  ;;  %v2181_v44 = vld [vmem:[#allocation4 + $0x80] sm:$0xff] }
 0x3a2   : > { %2336 = vadd.xlane.f32.xlu1 %v2335_v57  ;;  %v2350_v8 = vsel %vm1005_vm6, %v2264_v50, 0.0  ;;  %v2266_v61 = vmul.f32 %v4630_v23, %v2178_v47  ;;  %v2265_v6 = vmul.f32 %v4630_v23, %v2177_v39  ;;  %v1997_v47 = vld [vmem:[#allocation2 + $0x118] sm:$0xff] }
 0x3a3   : > { %1988 = vst.msk [vmem:[#allocation4 + $0xd8] sm:$0xff] %vm1005_vm6, %v5081_v7  ;;  %1987 = vst.msk [vmem:[#allocation4 + $0xd0] sm:$0xff] %vm1005_vm6, %v5083_v54  ;;  %v2005_v39 = vmul.f32 %v1997_v47, %v5081_v7  ;;  %v2185_v47 = vld [vmem:[#allocation4 + $0xa0] sm:$0xff] }
 0x3a4   : > { %v1973_v30 = vld [vmem:[#allocation3 + $0xe8] sm:$0xff]  ;;  %v1972_v19 = vld [vmem:[#allocation3 + $0xe0] sm:$0xff]  ;;  %v1635_v20 = vpop.permute.xlu1 %1634  ;;  %v1633_v41 = vpop.permute.xlu0 %1632  ;;  %v2353_v51 = vsel %vm1005_vm6, %v2265_v6, 0.0 }
 0x3a5   : > { %v5097_v13 = vadd.f32 %v1973_v30, %v1964_v45  ;;  %v5099_v29 = vadd.f32 %v1972_v19, %v1963_v35  ;;  %1793 = vst.msk [vmem:[#allocation3 + $0x108] sm:$0xff] %vm1005_vm6, %v1635_v20  ;;  %1792 = vst.msk [vmem:[#allocation3 + $0x100] sm:$0xff] %vm1005_vm6, %v1633_v41  ;;  %2345 = vadd.xlane.f32.xlu0 %v2344_v32  ;;  %v2002_v45 = vmul.f32 %v1994_v55, %v5067_v10  ;;  %v1999_v6 = vld [vmem:[#allocation2 + $0x128] sm:$0xff] }
 0x3a6   : > { %2342 = vadd.xlane.f32.xlu1 %v2341_v14  ;;  %v2356_v41 = vsel %vm1005_vm6, %v2266_v61, 0.0  ;;  %v2268_v32 = vmul.f32 %v4630_v23, %v2180_v60  ;;  %v2267_v10 = vmul.f32 %v4630_v23, %v2179_v49  ;;  %v1998_v60 = vld [vmem:[#allocation2 + $0x120] sm:$0xff] }
 0x3a7   : > { %1990 = vst.msk [vmem:[#allocation4 + $0xe8] sm:$0xff] %vm1005_vm6, %v5097_v13  ;;  %1989 = vst.msk [vmem:[#allocation4 + $0xe0] sm:$0xff] %vm1005_vm6, %v5099_v29  ;;  %v2007_v55 = vmul.f32 %v1999_v6, %v5097_v13  ;;  %v2006_v49 = vmul.f32 %v1998_v60, %v5099_v29  ;;  %v2271_v29 = vmul.f32 %v4634_v62, %v2183_v4  ;;  %v2187_v6 = vld [vmem:[#allocation4 + $0xb0] sm:$0xff] }
 0x3a8   : > { %v1975_v40 = vld [vmem:[#allocation3 + $0xf8] sm:$0xff]  ;;  %v1974_v22 = vld [vmem:[#allocation3 + $0xf0] sm:$0xff]  ;;  %v1639_v21 = vpop.permute.xlu1 %1638  ;;  %v1637_v12 = vpop.permute.xlu0 %1636  ;;  %v2362_v23 = vsel %vm1005_vm6, %v2268_v32, 0.0  ;;  %v2359_v7 = vsel %vm1005_vm6, %v2267_v10, 0.0 }
 0x3a9   : > { %v5113_v1 = vadd.f32 %v1975_v40, %v1966_v26  ;;  %v5115_v57 = vadd.f32 %v1974_v22, %v1965_v53  ;;  %1795 = vst.msk [vmem:[#allocation3 + $0x118] sm:$0xff] %vm1005_vm6, %v1639_v21  ;;  %1794 = vst.msk [vmem:[#allocation3 + $0x110] sm:$0xff] %vm1005_vm6, %v1637_v12  ;;  %2351 = vadd.xlane.f32.xlu0 %v2350_v8  ;;  %v2004_v26 = vmul.f32 %v1996_v2, %v5083_v54  ;;  %v2001_v10 = vld [vmem:[#allocation2 + $0x138] sm:$0xff] }
 0x3aa   : > { %2348 = vadd.xlane.f32.xlu1 %v2347_v11  ;;  %v2270_v12 = vmul.f32 %v4634_v62, %v2182_v9  ;;  %v2269_v54 = vmul.f32 %v4634_v62, %v2181_v44  ;;  %v2184_v11 = vld [vmem:[#allocation4 + $0x98] sm:$0xff]  ;;  %v2000_v9 = vld [vmem:[#allocation2 + $0x130] sm:$0xff] }
 0x3ab   : > { %1992 = vst.msk [vmem:[#allocation4 + $0xf8] sm:$0xff] %vm1005_vm6, %v5113_v1  ;;  %1991 = vst.msk [vmem:[#allocation4 + $0xf0] sm:$0xff] %vm1005_vm6, %v5115_v57  ;;  %v2009_v2 = vmul.f32 %v2001_v10, %v5113_v1  ;;  %v2008_v44 = vmul.f32 %v2000_v9, %v5115_v57  ;;  %v2371_v1 = vsel %vm1005_vm6, %v2271_v29, 0.0  ;;  %v2273_v57 = vmul.f32 %v4634_v62, %v2185_v47  ;;  %v2040_v29 = vld [vmem:[#allocation2 + $0x158] sm:$0xff]  ;;  %v2189_v10 = vld [vmem:[#allocation4 + $0xc0] sm:$0xff] }
 0x3ac   : > { %v2012_v35 = vld [vmem:[#allocation3 + $0x108] sm:$0xff]  ;;  %v2011_v30 = vld [vmem:[#allocation3 + $0x100] sm:$0xff]  ;;  %v1643_v19 = vpop.permute.xlu1 %1642  ;;  %v1641_v20 = vpop.permute.xlu0 %1640  ;;  %v2365_v13 = vsel %vm1005_vm6, %v2269_v54, 0.0 }
 0x3ad   : > { %v5129_v50 = vadd.f32 %v2012_v35, %v2003_v38  ;;  %v5131_v14 = vadd.f32 %v2011_v30, %v2002_v45  ;;  %1797 = vst.msk [vmem:[#allocation3 + $0x128] sm:$0xff] %vm1005_vm6, %v1643_v19  ;;  %1796 = vst.msk [vmem:[#allocation3 + $0x120] sm:$0xff] %vm1005_vm6, %v1641_v20  ;;  %2357 = vadd.xlane.f32.xlu0 %v2356_v41  ;;  %v2368_v19 = vsel %vm1005_vm6, %v2270_v12, 0.0  ;;  %v2038_v54 = vld [vmem:[#allocation2 + $0x148] sm:$0xff] }
 0x3ae   : > { %2354 = vadd.xlane.f32.xlu1 %v2353_v51  ;;  %v2272_v20 = vmul.f32 %v4634_v62, %v2184_v11  ;;  %v2186_v51 = vld [vmem:[#allocation4 + $0xa8] sm:$0xff]  ;;  %v2037_v11 = vld [vmem:[#allocation2 + $0x140] sm:$0xff] }
 0x3af   : > { %2029 = vst.msk [vmem:[#allocation4 + $0x108] sm:$0xff] %vm1005_vm6, %v5129_v50  ;;  %2028 = vst.msk [vmem:[#allocation4 + $0x100] sm:$0xff] %vm1005_vm6, %v5131_v14  ;;  %v2046_v60 = vmul.f32 %v2038_v54, %v5129_v50  ;;  %v2045_v4 = vmul.f32 %v2037_v11, %v5131_v14  ;;  %v2377_v50 = vsel %vm1005_vm6, %v2273_v57, 0.0  ;;  %v2275_v14 = vmul.f32 %v4634_v62, %v2187_v6  ;;  %v2041_v57 = vld [vmem:[#allocation2 + $0x160] sm:$0xff] }
 0x3b0   : > { %v2014_v53 = vld [vmem:[#allocation3 + $0x118] sm:$0xff]  ;;  %v2013_v40 = vld [vmem:[#allocation3 + $0x110] sm:$0xff]  ;;  %v1647_v22 = vpop.permute.xlu1 %1646  ;;  %v1645_v21 = vpop.permute.xlu0 %1644 }
 0x3b1   : > { %v5145_v8 = vadd.f32 %v2014_v53, %v2005_v39  ;;  %v5147_v61 = vadd.f32 %v2013_v40, %v2004_v26  ;;  %1799 = vst.msk [vmem:[#allocation3 + $0x138] sm:$0xff] %vm1005_vm6, %v1647_v22  ;;  %1798 = vst.msk [vmem:[#allocation3 + $0x130] sm:$0xff] %vm1005_vm6, %v1645_v21  ;;  %2363 = vadd.xlane.f32.xlu0 %v2362_v23  ;;  %v2374_v22 = vsel %vm1005_vm6, %v2272_v20, 0.0 }
 0x3b2   : > { %2360 = vadd.xlane.f32.xlu1 %v2359_v7  ;;  %v2274_v21 = vmul.f32 %v4634_v62, %v2186_v51  ;;  %v2188_v7 = vld [vmem:[#allocation4 + $0xb8] sm:$0xff]  ;;  %v2039_v51 = vld [vmem:[#allocation2 + $0x150] sm:$0xff] }
 0x3b3   : > { %2031 = vst.msk [vmem:[#allocation4 + $0x118] sm:$0xff] %vm1005_vm6, %v5145_v8  ;;  %2030 = vst.msk [vmem:[#allocation4 + $0x110] sm:$0xff] %vm1005_vm6, %v5147_v61  ;;  %v2048_v9 = vmul.f32 %v2040_v29, %v5145_v8  ;;  %v2047_v47 = vmul.f32 %v2039_v51, %v5147_v61  ;;  %v2383_v8 = vsel %vm1005_vm6, %v2275_v14, 0.0  ;;  %v2277_v61 = vmul.f32 %v4636_v3, %v2189_v10  ;;  %v2043_v14 = vld [vmem:[#allocation2 + $0x170] sm:$0xff] }
 0x3b4   : > { %v2016_v38 = vld [vmem:[#allocation3 + $0x128] sm:$0xff]  ;;  %v2015_v45 = vld [vmem:[#allocation3 + $0x120] sm:$0xff]  ;;  %v1651_v35 = vpop.permute.xlu1 %1650  ;;  %v1649_v30 = vpop.permute.xlu0 %1648 }
 0x3b5   : > { %v5161_v41 = vadd.f32 %v2016_v38, %v2007_v55  ;;  %v5163_v32 = vadd.f32 %v2015_v45, %v2006_v49  ;;  %1801 = vst.msk [vmem:[#allocation3 + $0x148] sm:$0xff] %vm1005_vm6, %v1651_v35  ;;  %1800 = vst.msk [vmem:[#allocation3 + $0x140] sm:$0xff] %vm1005_vm6, %v1649_v30  ;;  %2369 = vadd.xlane.f32.xlu0 %v2368_v19  ;;  %v2380_v35 = vsel %vm1005_vm6, %v2274_v21, 0.0  ;;  %v2192_v21 = vld [vmem:[#allocation4 + $0xd8] sm:$0xff] }
 0x3b6   : > { %2366 = vadd.xlane.f32.xlu1 %v2365_v13  ;;  %v2276_v30 = vmul.f32 %v4634_v62, %v2188_v7  ;;  %v2190_v13 = vld [vmem:[#allocation4 + $0xc8] sm:$0xff]  ;;  %v2191_v7 = vld [vmem:[#allocation4 + $0xd0] sm:$0xff] }
 0x3b7   : > { %2033 = vst.msk [vmem:[#allocation4 + $0x128] sm:$0xff] %vm1005_vm6, %v5161_v41  ;;  %2032 = vst.msk [vmem:[#allocation4 + $0x120] sm:$0xff] %vm1005_vm6, %v5163_v32  ;;  %v2049_v11 = vmul.f32 %v2041_v57, %v5163_v32  ;;  %v2279_v32 = vmul.f32 %v4636_v3, %v2191_v7 }
 0x3b8   : > { %v2018_v39 = vld [vmem:[#allocation3 + $0x138] sm:$0xff]  ;;  %v2017_v26 = vld [vmem:[#allocation3 + $0x130] sm:$0xff]  ;;  %v1655_v53 = vpop.permute.xlu1 %1654  ;;  %v1653_v40 = vpop.permute.xlu0 %1652  ;;  %v2386_v62 = vsel %vm1005_vm6, %v2276_v30, 0.0  ;;  %v2194_v30 = vld [vmem:[#allocation4 + $0xe8] sm:$0xff] }
 0x3b9   : > { %v5177_v23 = vadd.f32 %v2018_v39, %v2009_v2  ;;  %v5179_v12 = vadd.f32 %v2017_v26, %v2008_v44  ;;  %1803 = vst.msk [vmem:[#allocation3 + $0x158] sm:$0xff] %vm1005_vm6, %v1655_v53  ;;  %1802 = vst.msk [vmem:[#allocation3 + $0x150] sm:$0xff] %vm1005_vm6, %v1653_v40  ;;  %2375 = vadd.xlane.f32.xlu0 %v2374_v22  ;;  %v2278_v53 = vmul.f32 %v4636_v3, %v2190_v13  ;;  %v2193_v13 = vld [vmem:[#allocation4 + $0xe0] sm:$0xff] }
 0x3ba   : > { %2372 = vadd.xlane.f32.xlu1 %v2371_v1  ;;  %v2042_v1 = vld [vmem:[#allocation2 + $0x168] sm:$0xff] }
 0x3bb   : > { %2035 = vst.msk [vmem:[#allocation4 + $0x138] sm:$0xff] %vm1005_vm6, %v5177_v23  ;;  %2034 = vst.msk [vmem:[#allocation4 + $0x130] sm:$0xff] %vm1005_vm6, %v5179_v12  ;;  %v2050_v54 = vmul.f32 %v2042_v1, %v5161_v41  ;;  %v2389_v41 = vsel %vm1005_vm6, %v2277_v61, 0.0  ;;  %v2051_v51 = vmul.f32 %v2043_v14, %v5179_v12  ;;  %v2281_v12 = vmul.f32 %v4636_v3, %v2193_v13  ;;  %v2080_v61 = vld [vmem:[#allocation2 + $0x180] sm:$0xff] }
 0x3bc   : > { %v2055_v55 = vld [vmem:[#allocation3 + $0x148] sm:$0xff]  ;;  %v2054_v49 = vld [vmem:[#allocation3 + $0x140] sm:$0xff]  ;;  %v1659_v38 = vpop.permute.xlu1 %1658  ;;  %v1657_v45 = vpop.permute.xlu0 %1656 }
 0x3bd   : > { %v5193_v19 = vadd.f32 %v2055_v55, %v2046_v60  ;;  %v5195_v20 = vadd.f32 %v2054_v49, %v2045_v4  ;;  %1805 = vst.msk [vmem:[#allocation3 + $0x168] sm:$0xff] %vm1005_vm6, %v1659_v38  ;;  %1804 = vst.msk [vmem:[#allocation3 + $0x160] sm:$0xff] %vm1005_vm6, %v1657_v45  ;;  %2381 = vadd.xlane.f32.xlu0 %v2380_v35  ;;  %v2392_v49 = vsel %vm1005_vm6, %v2278_v53, 0.0  ;;  %v2196_v53 = vld [vmem:[#allocation4 + $0xf8] sm:$0xff] }
 0x3be   : > { %2378 = vadd.xlane.f32.xlu1 %v2377_v50  ;;  %v2280_v38 = vmul.f32 %v4636_v3, %v2192_v21  ;;  %v2044_v50 = vld [vmem:[#allocation2 + $0x178] sm:$0xff]  ;;  %v2195_v21 = vld [vmem:[#allocation4 + $0xf0] sm:$0xff] }
 0x3bf   : > { %2072 = vst.msk [vmem:[#allocation4 + $0x148] sm:$0xff] %vm1005_vm6, %v5193_v19  ;;  %2071 = vst.msk [vmem:[#allocation4 + $0x140] sm:$0xff] %vm1005_vm6, %v5195_v20  ;;  %v2052_v29 = vmul.f32 %v2044_v50, %v5177_v23  ;;  %v2395_v23 = vsel %vm1005_vm6, %v2279_v32, 0.0  ;;  %v2088_v57 = vmul.f32 %v2080_v61, %v5195_v20  ;;  %v2283_v20 = vmul.f32 %v4636_v3, %v2195_v21  ;;  %v2082_v32 = vld [vmem:[#allocation2 + $0x190] sm:$0xff] }
 0x3c0   : > { %v2057_v2 = vld [vmem:[#allocation3 + $0x158] sm:$0xff]  ;;  %v2056_v44 = vld [vmem:[#allocation3 + $0x150] sm:$0xff]  ;;  %v1663_v39 = vpop.permute.xlu1 %1662  ;;  %v1661_v26 = vpop.permute.xlu0 %1660 }
 0x3c1   : > { %v5209_v40 = vadd.f32 %v2057_v2, %v2048_v9  ;;  %v5211_v22 = vadd.f32 %v2056_v44, %v2047_v47  ;;  %1807 = vst.msk [vmem:[#allocation3 + $0x178] sm:$0xff] %vm1005_vm6, %v1663_v39  ;;  %1806 = vst.msk [vmem:[#allocation3 + $0x170] sm:$0xff] %vm1005_vm6, %v1661_v26  ;;  %2387 = vadd.xlane.f32.xlu0 %v2386_v62  ;;  %v2398_v44 = vsel %vm1005_vm6, %v2280_v38, 0.0  ;;  %v2198_v38 = vld [vmem:[#allocation4 + $0x108] sm:$0xff] }
 0x3c2   : > { %2384 = vadd.xlane.f32.xlu1 %v2383_v8  ;;  %v2282_v39 = vmul.f32 %v4636_v3, %v2194_v30  ;;  %v2081_v8 = vld [vmem:[#allocation2 + $0x188] sm:$0xff]  ;;  %v2197_v30 = vld [vmem:[#allocation4 + $0x100] sm:$0xff] }
 0x3c3   : > { %2074 = vst.msk [vmem:[#allocation4 + $0x158] sm:$0xff] %vm1005_vm6, %v5209_v40  ;;  %2073 = vst.msk [vmem:[#allocation4 + $0x150] sm:$0xff] %vm1005_vm6, %v5211_v22  ;;  %v2089_v1 = vmul.f32 %v2081_v8, %v5193_v19  ;;  %v2401_v19 = vsel %vm1005_vm6, %v2281_v12, 0.0  ;;  %v2090_v14 = vmul.f32 %v2082_v32, %v5211_v22  ;;  %v2285_v22 = vmul.f32 %v4638_v63, %v2197_v30  ;;  %v2199_v12 = vld [vmem:[#allocation4 + $0x110] sm:$0xff] }
 0x3c4   : > { %v2059_v6 = vld [vmem:[#allocation3 + $0x168] sm:$0xff]  ;;  %v2058_v60 = vld [vmem:[#allocation3 + $0x160] sm:$0xff]  ;;  %v1667_v4 = vpop.permute.xlu1 %1666  ;;  %v1665_v55 = vpop.permute.xlu0 %1664 }
 0x3c5   : > { %v5225_v45 = vadd.f32 %v2059_v6, %v2050_v54  ;;  %v5227_v35 = vadd.f32 %v2058_v60, %v2049_v11  ;;  %1809 = vst.msk [vmem:[#allocation3 + $0x188] sm:$0xff] %vm1005_vm6, %v1667_v4  ;;  %1808 = vst.msk [vmem:[#allocation3 + $0x180] sm:$0xff] %vm1005_vm6, %v1665_v55  ;;  %2393 = vadd.xlane.f32.xlu0 %v2392_v49  ;;  %v2404_v60 = vsel %vm1005_vm6, %v2282_v39, 0.0  ;;  %v2085_v39 = vld [vmem:[#allocation2 + $0x1a8] sm:$0xff] }
 0x3c6   : > { %2390 = vadd.xlane.f32.xlu1 %v2389_v41  ;;  %v2284_v4 = vmul.f32 %v4636_v3, %v2196_v53  ;;  %v2083_v41 = vld [vmem:[#allocation2 + $0x198] sm:$0xff] }
 0x3c7   : > { %2076 = vst.msk [vmem:[#allocation4 + $0x168] sm:$0xff] %vm1005_vm6, %v5225_v45  ;;  %2075 = vst.msk [vmem:[#allocation4 + $0x160] sm:$0xff] %vm1005_vm6, %v5227_v35  ;;  %v2091_v50 = vmul.f32 %v2083_v41, %v5209_v40  ;;  %v2407_v40 = vsel %vm1005_vm6, %v2283_v20, 0.0  ;;  %v2093_v53 = vmul.f32 %v2085_v39, %v5225_v45  ;;  %v2413_v45 = vsel %vm1005_vm6, %v2285_v22, 0.0  ;;  %v2201_v20 = vld [vmem:[#allocation4 + $0x120] sm:$0xff]  ;;  %v2203_v22 = vld [vmem:[#allocation4 + $0x130] sm:$0xff] }
 0x3c8   : > { %v2061_v10 = vld [vmem:[#allocation3 + $0x178] sm:$0xff]  ;;  %v2060_v9 = vld [vmem:[#allocation3 + $0x170] sm:$0xff]  ;;  %v1671_v47 = vpop.permute.xlu1 %1670  ;;  %v1669_v2 = vpop.permute.xlu0 %1668  ;;  %v2410_v3 = vsel %vm1005_vm6, %v2284_v4, 0.0 }
 0x3c9   : > { %v5241_v26 = vadd.f32 %v2061_v10, %v2052_v29  ;;  %v5243_v62 = vadd.f32 %v2060_v9, %v2051_v51  ;;  %1811 = vst.msk [vmem:[#allocation3 + $0x198] sm:$0xff] %vm1005_vm6, %v1671_v47  ;;  %1810 = vst.msk [vmem:[#allocation3 + $0x190] sm:$0xff] %vm1005_vm6, %v1669_v2  ;;  %2399 = vadd.xlane.f32.xlu0 %v2398_v44  ;;  %v2286_v9 = vmul.f32 %v4638_v63, %v2198_v38  ;;  %v2200_v44 = vld [vmem:[#allocation4 + $0x118] sm:$0xff] }
 0x3ca   : > { %2396 = vadd.xlane.f32.xlu1 %v2395_v23  ;;  %v2084_v23 = vld [vmem:[#allocation2 + $0x1a0] sm:$0xff]  ;;  %v2087_v4 = vld [vmem:[#allocation2 + $0x1b8] sm:$0xff] }
 0x3cb   : > { %2078 = vst.msk [vmem:[#allocation4 + $0x178] sm:$0xff] %vm1005_vm6, %v5241_v26  ;;  %2077 = vst.msk [vmem:[#allocation4 + $0x170] sm:$0xff] %vm1005_vm6, %v5243_v62  ;;  %v2092_v8 = vmul.f32 %v2084_v23, %v5227_v35  ;;  %v2287_v35 = vmul.f32 %v4638_v63, %v2199_v12  ;;  %v2095_v38 = vmul.f32 %v2087_v4, %v5241_v26  ;;  %v4218_v23 = vmov 0  }
 0x3cc   : > { %v2098_v7 = vld [vmem:[#allocation3 + $0x188] sm:$0xff]  ;;  %v2097_v54 = vld [vmem:[#allocation3 + $0x180] sm:$0xff]  ;;  %v1675_v11 = vpop.permute.xlu1 %1674  ;;  %v1673_v6 = vpop.permute.xlu0 %1672  ;;  %4060 = vset.pattern.permute.xlu1 %v4218_v23  ;;  %4059 = vset.pattern.permute.xlu0 %v4218_v23 }
 0x3cd   : > { %v5257_v55 = vadd.f32 %v2098_v7, %v2089_v1  ;;  %v5259_v49 = vadd.f32 %v2097_v54, %v2088_v57  ;;  %1813 = vst.msk [vmem:[#allocation3 + $0x1a8] sm:$0xff] %vm1005_vm6, %v1675_v11  ;;  %1812 = vst.msk [vmem:[#allocation3 + $0x1a0] sm:$0xff] %vm1005_vm6, %v1673_v6  ;;  %2405 = vadd.xlane.f32.xlu0 %v2404_v60  ;;  %v2416_v7 = vsel %vm1005_vm6, %v2286_v9, 0.0  ;;  %v2202_v60 = vld [vmem:[#allocation4 + $0x128] sm:$0xff]  ;;  %v2419_v26 = vsel %vm1005_vm6, %v2287_v35, 0.0  ;;  %v2125_v35 = vld [vmem:[#allocation2 + $0x1d0] sm:$0xff] }
 0x3ce   : > { %2402 = vadd.xlane.f32.xlu1 %v2401_v19  ;;  %v2288_v54 = vmul.f32 %v4638_v63, %v2200_v44  ;;  %v2086_v19 = vld [vmem:[#allocation2 + $0x1b0] sm:$0xff]  ;;  %v2124_v9 = vld [vmem:[#allocation2 + $0x1c8] sm:$0xff] }
 0x3cf   : > { %2115 = vst.msk [vmem:[#allocation4 + $0x188] sm:$0xff] %vm1005_vm6, %v5257_v55  ;;  %2114 = vst.msk [vmem:[#allocation4 + $0x180] sm:$0xff] %vm1005_vm6, %v5259_v49  ;;  %v2094_v41 = vmul.f32 %v2086_v19, %v5243_v62  ;;  %v2289_v62 = vmul.f32 %v4638_v63, %v2201_v20  ;;  %v2132_v44 = vmul.f32 %v2124_v9, %v5257_v55 }
 0x3d0   : > { %v2100_v13 = vld [vmem:[#allocation3 + $0x198] sm:$0xff]  ;;  %v2099_v29 = vld [vmem:[#allocation3 + $0x190] sm:$0xff]  ;;  %v1679_v51 = vpop.permute.xlu1 %1678  ;;  %v1677_v10 = vpop.permute.xlu0 %1676 }
 0x3d1   : > { %v5273_v47 = vadd.f32 %v2100_v13, %v2091_v50  ;;  %v5275_v2 = vadd.f32 %v2099_v29, %v2090_v14  ;;  %1815 = vst.msk [vmem:[#allocation3 + $0x1b8] sm:$0xff] %vm1005_vm6, %v1679_v51  ;;  %1814 = vst.msk [vmem:[#allocation3 + $0x1b0] sm:$0xff] %vm1005_vm6, %v1677_v10  ;;  %2411 = vadd.xlane.f32.xlu0 %v2410_v3  ;;  %v2422_v13 = vsel %vm1005_vm6, %v2288_v54, 0.0  ;;  %v2204_v3 = vld [vmem:[#allocation4 + $0x138] sm:$0xff]  ;;  %v2425_v55 = vsel %vm1005_vm6, %v2289_v62, 0.0  ;;  %v2206_v54 = vld [vmem:[#allocation4 + $0x148] sm:$0xff] }
 0x3d2   : > { %2408 = vadd.xlane.f32.xlu1 %v2407_v40  ;;  %v2290_v29 = vmul.f32 %v4638_v63, %v2202_v60  ;;  %v2123_v40 = vld [vmem:[#allocation2 + $0x1c0] sm:$0xff]  ;;  %v2207_v62 = vld [vmem:[#allocation4 + $0x150] sm:$0xff] }
 0x3d3   : > { %2117 = vst.msk [vmem:[#allocation4 + $0x198] sm:$0xff] %vm1005_vm6, %v5273_v47  ;;  %2116 = vst.msk [vmem:[#allocation4 + $0x190] sm:$0xff] %vm1005_vm6, %v5275_v2  ;;  %v2131_v39 = vmul.f32 %v2123_v40, %v5259_v49  ;;  %v2291_v49 = vmul.f32 %v4638_v63, %v2203_v22  ;;  %v2205_v60 = vld [vmem:[#allocation4 + $0x140] sm:$0xff]  ;;  %v2133_v19 = vmul.f32 %v2125_v35, %v5275_v2  ;;  %v2208_v2 = vld [vmem:[#allocation4 + $0x158] sm:$0xff] }
 0x3d4   : > { %v2102_v61 = vld [vmem:[#allocation3 + $0x1a8] sm:$0xff]  ;;  %v2101_v21 = vld [vmem:[#allocation3 + $0x1a0] sm:$0xff]  ;;  %v1683_v1 = vpop.permute.xlu1 %1682  ;;  %v1681_v57 = vpop.permute.xlu0 %1680 }
 0x3d5   : > { %v5289_v11 = vadd.f32 %v2102_v61, %v2093_v53  ;;  %v5291_v6 = vadd.f32 %v2101_v21, %v2092_v8  ;;  %1817 = vst.msk [vmem:[#allocation3 + $0x1c8] sm:$0xff] %vm1005_vm6, %v1683_v1  ;;  %1816 = vst.msk [vmem:[#allocation3 + $0x1c0] sm:$0xff] %vm1005_vm6, %v1681_v57  ;;  %2417 = vadd.xlane.f32.xlu0 %v2416_v7  ;;  %v2428_v21 = vsel %vm1005_vm6, %v2290_v29, 0.0  ;;  %v2128_v29 = vld [vmem:[#allocation2 + $0x1e8] sm:$0xff] }
 0x3d6   : > { %2414 = vadd.xlane.f32.xlu1 %v2413_v45  ;;  %v2292_v1 = vmul.f32 %v4638_v63, %v2204_v3  ;;  %v2126_v45 = vld [vmem:[#allocation2 + $0x1d8] sm:$0xff]  ;;  %v2294_v63 = vmul.f32 %v4640_v0, %v2206_v54 }
 0x3d7   : > { %2119 = vst.msk [vmem:[#allocation4 + $0x1a8] sm:$0xff] %vm1005_vm6, %v5289_v11  ;;  %2118 = vst.msk [vmem:[#allocation4 + $0x1a0] sm:$0xff] %vm1005_vm6, %v5291_v6  ;;  %v2134_v4 = vmul.f32 %v2126_v45, %v5273_v47  ;;  %v2293_v47 = vmul.f32 %v4640_v0, %v2205_v60  ;;  %v2136_v3 = vmul.f32 %v2128_v29, %v5289_v11  ;;  %v2209_v11 = vld [vmem:[#allocation4 + $0x160] sm:$0xff] }
 0x3d8   : > { %v2104_v32 = vld [vmem:[#allocation3 + $0x1b8] sm:$0xff]  ;;  %v2103_v30 = vld [vmem:[#allocation3 + $0x1b0] sm:$0xff]  ;;  %v1687_v50 = vpop.permute.xlu1 %1686  ;;  %v1685_v14 = vpop.permute.xlu0 %1684 }
 0x3d9   : > { %v5305_v51 = vadd.f32 %v2104_v32, %v2095_v38  ;;  %v5307_v10 = vadd.f32 %v2103_v30, %v2094_v41  ;;  %1819 = vst.msk [vmem:[#allocation3 + $0x1d8] sm:$0xff] %vm1005_vm6, %v1687_v50  ;;  %1818 = vst.msk [vmem:[#allocation3 + $0x1d0] sm:$0xff] %vm1005_vm6, %v1685_v14  ;;  %2423 = vadd.xlane.f32.xlu0 %v2422_v13  ;;  %v2434_v30 = vsel %vm1005_vm6, %v2292_v1, 0.0  ;;  %v2431_v13 = vsel %vm1005_vm6, %v2291_v49, 0.0  ;;  %v2129_v1 = vld [vmem:[#allocation2 + $0x1f0] sm:$0xff] }
 0x3da   : > { %2420 = vadd.xlane.f32.xlu1 %v2419_v26  ;;  %v2127_v26 = vld [vmem:[#allocation2 + $0x1e0] sm:$0xff] }
 0x3db   : > { %2121 = vst.msk [vmem:[#allocation4 + $0x1b8] sm:$0xff] %vm1005_vm6, %v5305_v51  ;;  %2120 = vst.msk [vmem:[#allocation4 + $0x1b0] sm:$0xff] %vm1005_vm6, %v5307_v10  ;;  %v2135_v9 = vmul.f32 %v2127_v26, %v5291_v6 }
 0x3dc   : > { %v2141_v12 = vld [vmem:[#allocation3 + $0x1c8] sm:$0xff]  ;;  %v2140_v53 = vld [vmem:[#allocation3 + $0x1c0] sm:$0xff]  ;;  %v1691_v8 = vpop.permute.xlu1 %1690  ;;  %v1689_v61 = vpop.permute.xlu0 %1688 }
 0x3dd   : > { %v2149_v57 = vadd.f32 %v2141_v12, %v2132_v44  ;;  %v2148_v7 = vadd.f32 %v2140_v53, %v2131_v39  ;;  %1821 = vst.msk [vmem:[#allocation3 + $0x1e8] sm:$0xff] %vm1005_vm6, %v1691_v8  ;;  %1820 = vst.msk [vmem:[#allocation3 + $0x1e0] sm:$0xff] %vm1005_vm6, %v1689_v61  ;;  %2429 = vadd.xlane.f32.xlu0 %v2428_v21  ;;  %v2440_v44 = vsel %vm1005_vm6, %v2294_v63, 0.0  ;;  %v2437_v53 = vsel %vm1005_vm6, %v2293_v47, 0.0  ;;  %v2210_v61 = vld [vmem:[#allocation4 + $0x168] sm:$0xff]  ;;  %v2130_v21 = vld [vmem:[#allocation2 + $0x1f8] sm:$0xff] }
 0x3de   : > { %2426 = vadd.xlane.f32.xlu1 %v2425_v55  ;;  %v2296_v39 = vmul.f32 %v4640_v0, %v2208_v2  ;;  %v2295_v8 = vmul.f32 %v4640_v0, %v2207_v62  ;;  %v2138_v6 = vmul.f32 %v2130_v21, %v5305_v51  ;;  %v2298_v54 = vmul.f32 %v4640_v0, %v2210_v61  ;;  %v2216_v47 = vld [vmem:[#allocation4 + $0x198] sm:$0xff]  ;;  %v2215_v2 = vld [vmem:[#allocation4 + $0x190] sm:$0xff] }
 0x3df   : > { %2158 = vst.msk [vmem:[#allocation4 + $0x1c8] sm:$0xff] %vm1005_vm6, %v2149_v57  ;;  %2157 = vst.msk [vmem:[#allocation4 + $0x1c0] sm:$0xff] %vm1005_vm6, %v2148_v7  ;;  %v2137_v57 = vmul.f32 %v2129_v1, %v5307_v10  ;;  %v2304_v26 = vmul.f32 %v4642_v16, %v2216_v47  ;;  %v2303_v62 = vmul.f32 %v4642_v16, %v2215_v2 }
 0x3e0   : > { %v2143_v20 = vld [vmem:[#allocation3 + $0x1d8] sm:$0xff]  ;;  %v2142_v38 = vld [vmem:[#allocation3 + $0x1d0] sm:$0xff]  ;;  %v1695_v41 = vpop.permute.xlu1 %1694  ;;  %v1693_v32 = vpop.permute.xlu0 %1692  ;;  %v2446_v49 = vsel %vm1005_vm6, %v2296_v39, 0.0  ;;  %v2443_v60 = vsel %vm1005_vm6, %v2295_v8, 0.0  ;;  %v2452_v51 = vsel %vm1005_vm6, %v2298_v54, 0.0 }
 0x3e1   : > { %v2151_v50 = vadd.f32 %v2143_v20, %v2134_v4  ;;  %v2150_v14 = vadd.f32 %v2142_v38, %v2133_v19  ;;  %1823 = vst.msk [vmem:[#allocation3 + $0x1f8] sm:$0xff] %vm1005_vm6, %v1695_v41  ;;  %1822 = vst.msk [vmem:[#allocation3 + $0x1f0] sm:$0xff] %vm1005_vm6, %v1693_v32  ;;  %2435 = vadd.xlane.f32.xlu0 %v2434_v30  ;;  %v2297_v4 = vmul.f32 %v4640_v0, %v2209_v11  ;;  %v2212_v19 = vld [vmem:[#allocation4 + $0x178] sm:$0xff]  ;;  %v2211_v20 = vld [vmem:[#allocation4 + $0x170] sm:$0xff] }
 0x3e2   : > { %2432 = vadd.xlane.f32.xlu1 %v2431_v13  ;;  %v2300_v10 = vmul.f32 %v4640_v0, %v2212_v19  ;;  %v2299_v41 = vmul.f32 %v4640_v0, %v2211_v20  ;;  %v2214_v32 = vld [vmem:[#allocation4 + $0x188] sm:$0xff]  ;;  %v2213_v30 = vld [vmem:[#allocation4 + $0x180] sm:$0xff] }
 0x3e3   : > { %2160 = vst.msk [vmem:[#allocation4 + $0x1d8] sm:$0xff] %vm1005_vm6, %v2151_v50  ;;  %2159 = vst.msk [vmem:[#allocation4 + $0x1d0] sm:$0xff] %vm1005_vm6, %v2150_v14  ;;  %v2449_v38 = vsel %vm1005_vm6, %v2297_v4, 0.0  ;;  %v2302_v50 = vmul.f32 %v4642_v16, %v2214_v32  ;;  %v2301_v13 = vmul.f32 %v4642_v16, %v2213_v30 }
 0x3e4   : > { %v2145_v40 = vld [vmem:[#allocation3 + $0x1e8] sm:$0xff]  ;;  %v2144_v22 = vld [vmem:[#allocation3 + $0x1e0] sm:$0xff]  ;;  %v2458_v63 = vsel %vm1005_vm6, %v2300_v10, 0.0  ;;  %v2455_v14 = vsel %vm1005_vm6, %v2299_v41, 0.0  ;;  %v5391_v2 = vpop.permute.xlu0 %3091 }
 0x3e5   : > { %v2153_v23 = vadd.f32 %v2145_v40, %v2136_v3  ;;  %v2152_v12 = vadd.f32 %v2144_v22, %v2135_v9  ;;  %2441 = vadd.xlane.f32.xlu0 %v2440_v44  ;;  %v2464_v29 = vsel %vm1005_vm6, %v2302_v50, 0.0  ;;  %v2461_v0 = vsel %vm1005_vm6, %v2301_v13, 0.0  ;;  %v2218_v3 = vld [vmem:[#allocation4 + $0x1a8] sm:$0xff]  ;;  %v2217_v9 = vld [vmem:[#allocation4 + $0x1a0] sm:$0xff] }
 0x3e6   : > { %2438 = vadd.xlane.f32.xlu1 %v2437_v53  ;;  %v2470_v40 = vsel %vm1005_vm6, %v2304_v26, 0.0  ;;  %v2306_v22 = vmul.f32 %v4642_v16, %v2218_v3  ;;  %v2467_v44 = vsel %vm1005_vm6, %v2303_v62, 0.0  ;;  %v2305_v39 = vmul.f32 %v4642_v16, %v2217_v9  ;;  %v2222_v1 = vld [vmem:[#allocation4 + $0x1c8] sm:$0xff]  ;;  %v2221_v11 = vld [vmem:[#allocation4 + $0x1c0] sm:$0xff] }
 0x3e7   : > { %2162 = vst.msk [vmem:[#allocation4 + $0x1e8] sm:$0xff] %vm1005_vm6, %v2153_v23  ;;  %2161 = vst.msk [vmem:[#allocation4 + $0x1e0] sm:$0xff] %vm1005_vm6, %v2152_v12  ;;  %v2220_v23 = vld [vmem:[#allocation4 + $0x1b8] sm:$0xff]  ;;  %v2219_v12 = vld [vmem:[#allocation4 + $0x1b0] sm:$0xff] }
 0x3e8   : > { %v2147_v7 = vld [vmem:[#allocation3 + $0x1f8] sm:$0xff]  ;;  %v2146_v55 = vld [vmem:[#allocation3 + $0x1f0] sm:$0xff]  ;;  %v2476_v53 = vsel %vm1005_vm6, %v2306_v22, 0.0  ;;  %v2308_v8 = vmul.f32 %v4642_v16, %v2220_v23  ;;  %v2473_v61 = vsel %vm1005_vm6, %v2305_v39, 0.0  ;;  %v2307_v21 = vmul.f32 %v4642_v16, %v2219_v12 }
 0x3e9   : > { %v2155_v45 = vadd.f32 %v2147_v7, %v2138_v6  ;;  %v2154_v35 = vadd.f32 %v2146_v55, %v2137_v57  ;;  %2447 = vadd.xlane.f32.xlu0 %v2446_v49  ;;  %v2310_v57 = vmul.f32 %v4644_v58, %v2222_v1  ;;  %v2309_v55 = vmul.f32 %v4644_v58, %v2221_v11 }
 0x3ea   : > { %2444 = vadd.xlane.f32.xlu1 %v2443_v60  ;;  %v2482_v6 = vsel %vm1005_vm6, %v2308_v8, 0.0  ;;  %v2479_v7 = vsel %vm1005_vm6, %v2307_v21, 0.0  ;;  %v2224_v49 = vld [vmem:[#allocation4 + $0x1d8] sm:$0xff]  ;;  %v2223_v54 = vld [vmem:[#allocation4 + $0x1d0] sm:$0xff]  ;;  %v3116_v22 = vrot.slane %v4369_v59, %v4353_v48 }
 0x3eb   : > { %2164 = vst.msk [vmem:[#allocation4 + $0x1f8] sm:$0xff] %vm1005_vm6, %v2155_v45  ;;  %2163 = vst.msk [vmem:[#allocation4 + $0x1f0] sm:$0xff] %vm1005_vm6, %v2154_v35  ;;  %v2488_v45 = vsel %vm1005_vm6, %v2310_v57, 0.0  ;;  %v2312_v35 = vmul.f32 %v4644_v58, %v2224_v49  ;;  %v2485_v16 = vsel %vm1005_vm6, %v2309_v55, 0.0  ;;  %v2311_v60 = vmul.f32 %v4644_v58, %v2223_v54 }
 0x3ec   : > { %v3188_v49 = vrot.slane %v4369_v59, %v4364_v56 }
 0x3ed   : > { %2453 = vadd.xlane.f32.xlu0 %v2452_v51  ;;  %v2494_v20 = vsel %vm1005_vm6, %v2312_v35, 0.0  ;;  %v2491_v10 = vsel %vm1005_vm6, %v2311_v60, 0.0 }
 0x3ee   : > { %2450 = vadd.xlane.f32.xlu1 %v2449_v38  ;;  %v2226_v4 = vld [vmem:[#allocation4 + $0x1e8] sm:$0xff]  ;;  %v2225_v19 = vld [vmem:[#allocation4 + $0x1e0] sm:$0xff] }
 0x3ef   : > { %v2314_v51 = vmul.f32 %v4644_v58, %v2226_v4  ;;  %v2313_v38 = vmul.f32 %v4644_v58, %v2225_v19 }
 0x3f1   : > { %2459 = vadd.xlane.f32.xlu0 %v2458_v63  ;;  %v2500_v30 = vsel %vm1005_vm6, %v2314_v51, 0.0  ;;  %v2497_v50 = vsel %vm1005_vm6, %v2313_v38, 0.0 }
 0x3f2   : > { %2456 = vadd.xlane.f32.xlu1 %v2455_v14  ;;  %v2228_v41 = vld [vmem:[#allocation4 + $0x1f8] sm:$0xff]  ;;  %v2227_v32 = vld [vmem:[#allocation4 + $0x1f0] sm:$0xff] }
 0x3f3   : > { %v2316_v63 = vmul.f32 %v4644_v58, %v2228_v41  ;;  %v2315_v14 = vmul.f32 %v4644_v58, %v2227_v32 }
 0x3f5   : > { %2465 = vadd.xlane.f32.xlu0 %v2464_v29  ;;  %v2506_v13 = vsel %vm1005_vm6, %v2316_v63, 0.0  ;;  %v2503_v47 = vsel %vm1005_vm6, %v2315_v14, 0.0  ;;  %v5393_v29 = vpop.permute.xlu1 %3087 }
 0x3f6   : > { %2462 = vadd.xlane.f32.xlu1 %v2461_v0 }
 0x3f9   : > { %2471 = vadd.xlane.f32.xlu0 %v2470_v40  ;;  %v5395_v62 = vpop.permute.xlu1 %3095 }
 0x3fa   : > { %2468 = vadd.xlane.f32.xlu1 %v2467_v44 }
 0x3fd   : > { %2477 = vadd.xlane.f32.xlu0 %v2476_v53 }
 0x3fe   : > { %2474 = vadd.xlane.f32.xlu1 %v2473_v61 }
 0x401   : > { %2483 = vadd.xlane.f32.xlu0 %v2482_v6 }
 0x402   : > { %2480 = vadd.xlane.f32.xlu1 %v2479_v7 }
 0x405   : > { %2489 = vadd.xlane.f32.xlu0 %v2488_v45 }
 0x406   : > { %2486 = vadd.xlane.f32.xlu1 %v2485_v16 }
 0x409   : > { %2495 = vadd.xlane.f32.xlu0 %v2494_v20 }
 0x40a   : > { %2492 = vadd.xlane.f32.xlu1 %v2491_v10 }
 0x40d   : > { %2501 = vadd.xlane.f32.xlu0 %v2500_v30 }
 0x40e   : > { %2498 = vadd.xlane.f32.xlu1 %v2497_v50 }
 0x411   : > { %2507 = vadd.xlane.f32.xlu0 %v2506_v13 }
 0x412   : > { %2504 = vadd.xlane.f32.xlu1 %v2503_v47 }
 0x41a   : > { %v2319_v26 = vpop.xlane.xlu0 %2318 }
 0x41b   : > { %v2862_v20 = vadd.f32 %v4385_v15, %v2319_v26 }
 0x41e   : > { %v2325_v0 = vpop.xlane.xlu0 %2324 }
 0x41f   : > { %v2864_v51 = vadd.f32 %v4396_v28, %v2325_v0 }
 0x421   : > { %v3287_v32 = vmul.f32 %v4550_v18, %v2864_v51 }
 0x422   : > { %v5397_v3 = vpop.xlane.xlu0 %2327 }
 0x423   : > { %v2322_v9 = vpop.xlane.xlu1 %2321  ;;  %3103 = vbcast.lane.b32.xlu1 %v4381_v5, 360  ;;  %v2865_v30 = vadd.f32 %v4412_v36, %v5397_v3  ;;  %v5954_v3 = vld [vmem:[#allocation8_spill] sm:$0xff] }
 0x424   : > { %v2863_v56 = vadd.f32 %v4393_v27, %v2322_v9  ;;  %v3285_v27 = vmul.f32 %v4546_v24, %v2862_v20 }
 0x426   : > { %v5400_v58 = vpop.xlane.xlu0 %2333  ;;  %v3286_v10 = vmul.f32 %v4552_v37, %v2863_v56  ;;  %v3288_v37 = vmul.f32 %v4560_v34, %v2865_v30 }
 0x427   : > { %v5402_v40 = vpop.xlane.xlu1 %2330  ;;  %3099 = vbcast.lane.b32.xlu0 %v4381_v5, 352  ;;  %3111 = vbcast.lane.b32.xlu1 %v4381_v5, 376  ;;  %v2867_v50 = vadd.f32 %v4428_v43, %v5400_v58  ;;  %v5952_v43 = vld [vmem:[#allocation6_spill] sm:$0xff] }
 0x428   : > { %v2866_v15 = vadd.f32 %v4407_v33, %v5402_v40 }
 0x429   : > { %v3290_v33 = vmul.f32 %v4564_v17, %v2867_v50  ;;  %v5955_v17 = vld [vmem:[#allocation62_spill] sm:$0xff] }
 0x42a   : > { %v5408_v44 = vpop.xlane.xlu0 %2339  ;;  %v3289_v24 = vmul.f32 %v4558_v31, %v2866_v15  ;;  %v5963_v15 = vld [vmem:[#allocation66_spill] sm:$0xff] }
 0x42b   : > { %v5410_v39 = vpop.xlane.xlu1 %2336  ;;  %3107 = vbcast.lane.b32.xlu0 %v4381_v5, 368  ;;  %3123 = vbcast.lane.b32.xlu1 %v3116_v22, 328  ;;  %v3152_v5 = vrot.slane %v4369_v59, %v4359_v52  ;;  %v2869_v13 = vadd.f32 %v4433_v46, %v5408_v44  ;;  %v5956_v46 = vld [vmem:[#allocation7_spill] sm:$0xff]  ;;  %v5957_v44 = vld [vmem:[#allocation65_spill] sm:$0xff] }
 0x42c   : > { %v2868_v18 = vadd.f32 %v4425_v42, %v5410_v39  ;;  %v5953_v42 = vld [vmem:[#allocation63_spill] sm:$0xff] }
 0x42d   : > { %v3292_v0 = vmul.f32 %v5953_v42, %v2869_v13  ;;  %v5966_v13 = vld [vmem:[#allocation14_spill] sm:$0xff] }
 0x42e   : > { %v5413_v23 = vpop.xlane.xlu0 %2345  ;;  %v3291_v34 = vmul.f32 %v4562_v25, %v2868_v18 }
 0x42f   : > { %v5415_v12 = vpop.xlane.xlu1 %2342  ;;  %3119 = vbcast.lane.b32.xlu0 %v3116_v22, 320  ;;  %3131 = vbcast.lane.b32.xlu1 %v3116_v22, 344  ;;  %v2871_v9 = vadd.f32 %v5954_v3, %v5413_v23  ;;  %v5960_v23 = vld [vmem:[#allocation9_spill] sm:$0xff] }
 0x430   : > { %v2870_v47 = vadd.f32 %v5952_v43, %v5415_v12  ;;  %v5958_v12 = vld [vmem:[#allocation10_spill] sm:$0xff]  ;;  %v5967_v43 = vld [vmem:[#allocation68_spill] sm:$0xff] }
 0x431   : > { %v3294_v39 = vmul.f32 %v5957_v44, %v2871_v9 }
 0x432   : > { %v5417_v53 = vpop.xlane.xlu0 %2351  ;;  %v3293_v58 = vmul.f32 %v5955_v17, %v2870_v47  ;;  %v5970_v17 = vld [vmem:[#allocation16_spill] sm:$0xff] }
 0x433   : > { %v5419_v8 = vpop.xlane.xlu1 %2348  ;;  %3127 = vbcast.lane.b32.xlu0 %v3116_v22, 336  ;;  %3139 = vbcast.lane.b32.xlu1 %v3116_v22, 360 }
 0x434   : > { %v2872_v40 = vadd.f32 %v5956_v46, %v5419_v8  ;;  %v5961_v8 = vld [vmem:[#allocation67_spill] sm:$0xff]  ;;  %v5971_v46 = vld [vmem:[#allocation70_spill] sm:$0xff] }
 0x436   : > { %v5421_v48 = vpop.xlane.xlu0 %2357 }
 0x437   : > { %v5423_v61 = vpop.xlane.xlu1 %2354  ;;  %3135 = vbcast.lane.b32.xlu0 %v3116_v22, 352  ;;  %3147 = vbcast.lane.b32.xlu1 %v3116_v22, 376 }
 0x438   : > { %v2874_v20 = vadd.f32 %v5960_v23, %v5423_v61  ;;  %v5965_v61 = vld [vmem:[#allocation69_spill] sm:$0xff]  ;;  %v5975_v23 = vld [vmem:[#allocation72_spill] sm:$0xff] }
 0x43a   : > { %v5427_v21 = vpop.xlane.xlu0 %2363 }
 0x43b   : > { %v5429_v1 = vpop.xlane.xlu1 %2360  ;;  %3143 = vbcast.lane.b32.xlu0 %v3116_v22, 368  ;;  %3159 = vbcast.lane.b32.xlu1 %v3152_v5, 328 }
 0x43e   : > { %v5431_v11 = vpop.xlane.xlu0 %2369 }
 0x43f   : > { %v5433_v6 = vpop.xlane.xlu1 %2366  ;;  %3155 = vbcast.lane.b32.xlu0 %v3152_v5, 320  ;;  %3167 = vbcast.lane.b32.xlu1 %v3152_v5, 344 }
 0x442   : > { %v5435_v57 = vpop.xlane.xlu0 %2375 }
 0x443   : > { %v5437_v7 = vpop.xlane.xlu1 %2372  ;;  %3163 = vbcast.lane.b32.xlu0 %v3152_v5, 336  ;;  %3175 = vbcast.lane.b32.xlu1 %v3152_v5, 360 }
 0x446   : > { %v5439_v55 = vpop.xlane.xlu0 %2381 }
 0x447   : > { %v5441_v52 = vpop.xlane.xlu1 %2378  ;;  %3171 = vbcast.lane.b32.xlu0 %v3152_v5, 352  ;;  %3183 = vbcast.lane.b32.xlu1 %v3152_v5, 376 }
 0x44a   : > { %v5445_v54 = vpop.xlane.xlu0 %2387 }
 0x44b   : > { %v5447_v45 = vpop.xlane.xlu1 %2384  ;;  %3179 = vbcast.lane.b32.xlu0 %v3152_v5, 368  ;;  %3195 = vbcast.lane.b32.xlu1 %v3188_v49, 328  ;;  %v2873_v5 = vadd.f32 %v5958_v12, %v5417_v53  ;;  %v5964_v53 = vld [vmem:[#allocation11_spill] sm:$0xff] }
 0x44c   : > { %v2876_v50 = vadd.f32 %v5964_v53, %v5429_v1  ;;  %v5969_v1 = vld [vmem:[#allocation71_spill] sm:$0xff]  ;;  %v5979_v53 = vld [vmem:[#allocation74_spill] sm:$0xff] }
 0x44e   : > { %v5449_v35 = vpop.xlane.xlu0 %2393  ;;  %v3299_v47 = vmul.f32 %v5967_v43, %v2876_v50  ;;  %v5982_v43 = vld [vmem:[#allocation22_spill] sm:$0xff] }
 0x44f   : > { %v5451_v16 = vpop.xlane.xlu1 %2390  ;;  %3191 = vbcast.lane.b32.xlu0 %v3188_v49, 320  ;;  %3203 = vbcast.lane.b32.xlu1 %v3188_v49, 344 }
 0x452   : > { %v5453_v60 = vpop.xlane.xlu0 %2399 }
 0x453   : > { %v5455_v4 = vpop.xlane.xlu1 %2396  ;;  %3199 = vbcast.lane.b32.xlu0 %v3188_v49, 336  ;;  %3211 = vbcast.lane.b32.xlu1 %v3188_v49, 360 }
 0x456   : > { %v5458_v59 = vpop.xlane.xlu0 %2405 }
 0x457   : > { %v5460_v19 = vpop.xlane.xlu1 %2402  ;;  %3207 = vbcast.lane.b32.xlu0 %v3188_v49, 352  ;;  %3219 = vbcast.lane.b32.xlu1 %v3188_v49, 376 }
 0x45a   : > { %v5465_v38 = vpop.xlane.xlu0 %2411 }
 0x45b   : > { %v5467_v41 = vpop.xlane.xlu1 %2408  ;;  %3215 = vbcast.lane.b32.xlu0 %v3188_v49, 368  ;;  %3417 = vperm.xlu1 %4060, %v3286_v10   ;;  %v5959_v49 = vld [vmem:[#allocation64_spill] sm:$0xff] }
 0x45c   : > { %v3295_v56 = vmul.f32 %v5959_v49, %v2872_v40  ;;  %v5974_v49 = vld [vmem:[#allocation18_spill] sm:$0xff] }
 0x45e   : > { %v5475_v63 = vpop.xlane.xlu0 %2417 }
 0x45f   : > { %v5477_v28 = vpop.xlane.xlu1 %2414  ;;  %3414 = vperm.xlu0 %4059, %v3285_v27   ;;  %3420 = vperm.xlu1 %4060, %v3287_v32   ;;  %v3296_v27 = vmul.f32 %v5961_v8, %v2873_v5  ;;  %v5962_v32 = vld [vmem:[#allocation12_spill] sm:$0xff] }
 0x460   : > { %v2875_v30 = vadd.f32 %v5962_v32, %v5421_v48  ;;  %v5968_v48 = vld [vmem:[#allocation13_spill] sm:$0xff] }
 0x461   : > { %v2878_v42 = vadd.f32 %v5968_v48, %v5433_v6  ;;  %v5973_v6 = vld [vmem:[#allocation73_spill] sm:$0xff]  ;;  %v5983_v48 = vld [vmem:[#allocation76_spill] sm:$0xff] }
 0x462   : > { %v5485_v36 = vpop.xlane.xlu0 %2423 }
 0x463   : > { %v5487_v14 = vpop.xlane.xlu1 %2420  ;;  %3426 = vperm.xlu1 %4060, %v3289_v24   ;;  %3423 = vperm.xlu0 %4059, %v3288_v37   ;;  %v3297_v37 = vmul.f32 %v5963_v15, %v2874_v20  ;;  %v3301_v40 = vmul.f32 %v5971_v46, %v2878_v42  ;;  %v5978_v15 = vld [vmem:[#allocation20_spill] sm:$0xff] }
 0x464   : > { %v5986_v46 = vld [vmem:[#allocation24_spill] sm:$0xff] }
 0x466   : > { %v5495_v31 = vpop.xlane.xlu0 %2429 }
 0x467   : > { %v5497_v26 = vpop.xlane.xlu1 %2426  ;;  %3432 = vperm.xlu1 %4060, %v3291_v34   ;;  %3429 = vperm.xlu0 %4059, %v3290_v33   ;;  %v3298_v33 = vmul.f32 %v5965_v61, %v2875_v30  ;;  %v2877_v34 = vadd.f32 %v5966_v13, %v5427_v21  ;;  %v5972_v21 = vld [vmem:[#allocation15_spill] sm:$0xff] }
 0x468   : > { %v2880_v44 = vadd.f32 %v5972_v21, %v5437_v7  ;;  %v5977_v7 = vld [vmem:[#allocation75_spill] sm:$0xff]  ;;  %v5987_v21 = vld [vmem:[#allocation78_spill] sm:$0xff] }
 0x469   : > { %v3300_v9 = vmul.f32 %v5969_v1, %v2877_v34 }
 0x46a   : > { %v5505_v25 = vpop.xlane.xlu0 %2435  ;;  %v3303_v20 = vmul.f32 %v5975_v23, %v2880_v44  ;;  %v5990_v23 = vld [vmem:[#allocation26_spill] sm:$0xff] }
 0x46b   : > { %v5507_v22 = vpop.xlane.xlu1 %2432  ;;  %3438 = vperm.xlu1 %4060, %v3293_v58   ;;  %3435 = vperm.xlu0 %4059, %v3292_v0   ;;  %v2879_v58 = vadd.f32 %v5970_v17, %v5431_v11  ;;  %v5976_v11 = vld [vmem:[#allocation17_spill] sm:$0xff] }
 0x46c   : > { %v2882_v8 = vadd.f32 %v5976_v11, %v5441_v52  ;;  %v5981_v52 = vld [vmem:[#allocation77_spill] sm:$0xff]  ;;  %v5991_v11 = vld [vmem:[#allocation80_spill] sm:$0xff] }
 0x46d   : > { %v3302_v5 = vmul.f32 %v5973_v6, %v2879_v58 }
 0x46e   : > { %v5515_v51 = vpop.xlane.xlu0 %2441  ;;  %v3305_v50 = vmul.f32 %v5979_v53, %v2882_v8  ;;  %v5994_v53 = vld [vmem:[#allocation28_spill] sm:$0xff] }
 0x46f   : > { %v5517_v10 = vpop.xlane.xlu1 %2438  ;;  %3444 = vperm.xlu1 %4060, %v3295_v56   ;;  %3441 = vperm.xlu0 %4059, %v3294_v39   ;;  %v2881_v56 = vadd.f32 %v5974_v49, %v5435_v57  ;;  %v5980_v57 = vld [vmem:[#allocation19_spill] sm:$0xff] }
 0x470   : > { %v2884_v61 = vadd.f32 %v5980_v57, %v5447_v45  ;;  %v5985_v45 = vld [vmem:[#allocation79_spill] sm:$0xff]  ;;  %v5995_v57 = vld [vmem:[#allocation82_spill] sm:$0xff] }
 0x471   : > { %v3304_v30 = vmul.f32 %v5977_v7, %v2881_v56 }
 0x472   : > { %v5525_v24 = vpop.xlane.xlu0 %2447  ;;  %v3307_v42 = vmul.f32 %v5983_v48, %v2884_v61  ;;  %v5998_v48 = vld [vmem:[#allocation30_spill] sm:$0xff] }
 0x473   : > { %v5527_v18 = vpop.xlane.xlu1 %2444  ;;  %3450 = vperm.xlu1 %4060, %v3297_v37   ;;  %3447 = vperm.xlu0 %4059, %v3296_v27   ;;  %v2883_v37 = vadd.f32 %v5978_v15, %v5439_v55  ;;  %v5984_v55 = vld [vmem:[#allocation21_spill] sm:$0xff] }
 0x474   : > { %v2886_v1 = vadd.f32 %v5984_v55, %v5451_v16  ;;  %v5989_v16 = vld [vmem:[#allocation81_spill] sm:$0xff]  ;;  %v5999_v55 = vld [vmem:[#allocation84_spill] sm:$0xff] }
 0x475   : > { %v3306_v34 = vmul.f32 %v5981_v52, %v2883_v37 }
 0x476   : > { %v5535_v0 = vpop.xlane.xlu0 %2453  ;;  %v3309_v44 = vmul.f32 %v5987_v21, %v2886_v1  ;;  %v6002_v21 = vld [vmem:[#allocation32_spill] sm:$0xff] }
 0x477   : > { %v5537_v3 = vpop.xlane.xlu1 %2450  ;;  %3456 = vperm.xlu1 %4060, %v3299_v47   ;;  %3453 = vperm.xlu0 %4059, %v3298_v33   ;;  %v2885_v47 = vadd.f32 %v5982_v43, %v5445_v54  ;;  %v5988_v54 = vld [vmem:[#allocation23_spill] sm:$0xff] }
 0x478   : > { %v2888_v6 = vadd.f32 %v5988_v54, %v5455_v4  ;;  %v5993_v4 = vld [vmem:[#allocation83_spill] sm:$0xff]  ;;  %v6003_v54 = vld [vmem:[#allocation86_spill] sm:$0xff] }
 0x479   : > { %v3308_v58 = vmul.f32 %v5985_v45, %v2885_v47 }
 0x47a   : > { %v5545_v39 = vpop.xlane.xlu0 %2459  ;;  %v3311_v8 = vmul.f32 %v5991_v11, %v2888_v6 }
 0x47b   : > { %v5547_v12 = vpop.xlane.xlu1 %2456  ;;  %3462 = vperm.xlu1 %4060, %v3301_v40   ;;  %3459 = vperm.xlu0 %4059, %v3300_v9   ;;  %v2887_v40 = vadd.f32 %v5986_v46, %v5449_v35  ;;  %v5992_v35 = vld [vmem:[#allocation25_spill] sm:$0xff] }
 0x47c   : > { %v2890_v7 = vadd.f32 %v5992_v35, %v5460_v19  ;;  %v5997_v19 = vld [vmem:[#allocation85_spill] sm:$0xff] }
 0x47d   : > { %v3310_v56 = vmul.f32 %v5989_v16, %v2887_v40 }
 0x47e   : > { %v5555_v27 = vpop.xlane.xlu0 %2465  ;;  %v3313_v61 = vmul.f32 %v5995_v57, %v2890_v7 }
 0x47f   : > { %v5557_v32 = vpop.xlane.xlu1 %2462  ;;  %3468 = vperm.xlu1 %4060, %v3303_v20   ;;  %3465 = vperm.xlu0 %4059, %v3302_v5   ;;  %v2889_v20 = vadd.f32 %v5990_v23, %v5453_v60  ;;  %v5996_v60 = vld [vmem:[#allocation27_spill] sm:$0xff] }
 0x480   : > { %v2892_v52 = vadd.f32 %v5996_v60, %v5467_v41  ;;  %v6001_v41 = vld [vmem:[#allocation87_spill] sm:$0xff] }
 0x481   : > { %v3312_v37 = vmul.f32 %v5993_v4, %v2889_v20  ;;  %v6005_v20 = vld [vmem:[#allocation34_spill] sm:$0xff] }
 0x482   : > { %v5565_v33 = vpop.xlane.xlu0 %2471  ;;  %v3315_v1 = vmul.f32 %v5999_v55, %v2892_v52  ;;  %v2897_v11 = vadd.f32 %v6005_v20, %v5485_v36 }
 0x483   : > { %v5567_v13 = vpop.xlane.xlu1 %2468  ;;  %3474 = vperm.xlu1 %4060, %v3305_v50   ;;  %3471 = vperm.xlu0 %4059, %v3304_v30   ;;  %v2891_v50 = vadd.f32 %v5994_v53, %v5458_v59  ;;  %v6000_v59 = vld [vmem:[#allocation29_spill] sm:$0xff] }
 0x484   : > { %v2894_v45 = vadd.f32 %v6000_v59, %v5477_v28  ;;  %v6012_v59 = vld [vmem:[#allocation39_spill] sm:$0xff] }
 0x485   : > { %v3314_v47 = vmul.f32 %v5997_v19, %v2891_v50  ;;  %v6007_v50 = vld [vmem:[#allocation36_spill] sm:$0xff] }
 0x486   : > { %v5575_v9 = vpop.xlane.xlu0 %2477  ;;  %v3317_v6 = vmul.f32 %v6003_v54, %v2894_v45  ;;  %v2899_v57 = vadd.f32 %v6007_v50, %v5495_v31  ;;  %v2904_v45 = vadd.f32 %v6012_v59, %v5527_v18  ;;  %v6014_v54 = vld [vmem:[#allocation41_spill] sm:$0xff]  ;;  %v6015_v18 = vld [vmem:[#allocation44_spill] sm:$0xff] }
 0x487   : > { %v5577_v17 = vpop.xlane.xlu1 %2474  ;;  %3480 = vperm.xlu1 %4060, %v3307_v42   ;;  %3477 = vperm.xlu0 %4059, %v3306_v34   ;;  %v2893_v42 = vadd.f32 %v5998_v48, %v5465_v38  ;;  %v6004_v38 = vld [vmem:[#allocation31_spill] sm:$0xff]  ;;  %v2907_v20 = vadd.f32 %v6015_v18, %v5535_v0 }
 0x488   : > { %v2896_v16 = vadd.f32 %v6004_v38, %v5487_v14  ;;  %v3320_v14 = vmul.f32 %v5395_v62, %v2897_v11 }
 0x489   : > { %v3316_v40 = vmul.f32 %v6001_v41, %v2893_v42 }
 0x48a   : > { %v5585_v5 = vpop.xlane.xlu0 %2483 }
 0x48b   : > { %v5587_v49 = vpop.xlane.xlu1 %2480  ;;  %3486 = vperm.xlu1 %4060, %v3309_v44   ;;  %3483 = vperm.xlu0 %4059, %v3308_v58   ;;  %v2895_v44 = vadd.f32 %v6002_v21, %v5475_v63  ;;  %v6006_v63 = vld [vmem:[#allocation33_spill] sm:$0xff] }
 0x48c   : > { %v2898_v7 = vadd.f32 %v6006_v63, %v5497_v26  ;;  %v6009_v26 = vld [vmem:[#allocation38_spill] sm:$0xff]  ;;  %v6017_v63 = vld [vmem:[#allocation48_spill] sm:$0xff] }
 0x48d   : > { %v3318_v28 = vmul.f32 %v5393_v29, %v2895_v44  ;;  %v6008_v29 = vld [vmem:[#allocation35_spill] sm:$0xff]  ;;  %v2901_v19 = vadd.f32 %v6009_v26, %v5505_v25 }
 0x48e   : > { %v5595_v30 = vpop.xlane.xlu0 %2489 }
 0x48f   : > { %v5597_v15 = vpop.xlane.xlu1 %2486  ;;  %3492 = vperm.xlu1 %4060, %v3311_v8   ;;  %3489 = vperm.xlu0 %4059, %v3310_v56   ;;  %v3319_v8 = vmul.f32 %v5391_v2, %v2896_v16 }
 0x492   : > { %v5605_v34 = vpop.xlane.xlu0 %2495 }
 0x493   : > { %v5607_v43 = vpop.xlane.xlu1 %2492  ;;  %3498 = vperm.xlu1 %4060, %v3313_v61   ;;  %3495 = vperm.xlu0 %4059, %v3312_v37   ;;  %v2900_v61 = vadd.f32 %v6008_v29, %v5507_v22  ;;  %v6011_v22 = vld [vmem:[#allocation40_spill] sm:$0xff] }
 0x496   : > { %v5615_v58 = vpop.xlane.xlu0 %2501 }
 0x497   : > { %v5617_v46 = vpop.xlane.xlu1 %2498  ;;  %3504 = vperm.xlu1 %4060, %v3315_v1   ;;  %3501 = vperm.xlu0 %4059, %v3314_v47   ;;  %v6010_v47 = vld [vmem:[#allocation37_spill] sm:$0xff]  ;;  %v2903_v1 = vadd.f32 %v6011_v22, %v5515_v51 }
 0x498   : > { %v2902_v62 = vadd.f32 %v6010_v47, %v5517_v10  ;;  %v6013_v10 = vld [vmem:[#allocation42_spill] sm:$0xff] }
 0x499   : > { %v2905_v44 = vadd.f32 %v6013_v10, %v5525_v24 }
 0x49a   : > { %v5625_v56 = vpop.xlane.xlu0 %2507 }
 0x49b   : > { %v5627_v23 = vpop.xlane.xlu1 %2504  ;;  %3510 = vperm.xlu1 %4060, %v3317_v6   ;;  %3507 = vperm.xlu0 %4059, %v3316_v40   ;;  %v2906_v6 = vadd.f32 %v6014_v54, %v5537_v3  ;;  %v2911_v3 = vadd.f32 %v6017_v63, %v5555_v27  ;;  %v6019_v27 = vld [vmem:[#allocation53_spill] sm:$0xff]  ;;  %v6026_v54 = vld [vmem:[#allocation43_spill] sm:$0xff] }
 0x49e   : > { %v3100_v35 = vpop.permute.xlu0 %3099 }
 0x49f   : > { %v3104_v4 = vpop.permute.xlu1 %3103  ;;  %3516 = vperm.xlu1 %4060, %v3319_v8   ;;  %3513 = vperm.xlu0 %4059, %v3318_v28   ;;  %v3321_v37 = vmul.f32 %v3100_v35, %v2898_v7  ;;  %v6016_v8 = vld [vmem:[#allocation45_spill] sm:$0xff] }
 0x4a0   : > { %v3322_v2 = vmul.f32 %v3104_v4, %v2899_v57  ;;  %v2910_v35 = vadd.f32 %v6016_v8, %v5557_v32  ;;  %v6028_v8 = vld [vmem:[#allocation57_spill] sm:$0xff] }
 0x4a2   : > { %v3108_v53 = vpop.permute.xlu0 %3107 }
 0x4a3   : > { %v3112_v36 = vpop.permute.xlu1 %3111  ;;  %3519 = vperm.xlu0 %4059, %v3320_v14   ;;  %3522 = vperm.xlu1 %4060, %v3321_v37   ;;  %v3323_v60 = vmul.f32 %v3108_v53, %v2900_v61  ;;  %v6018_v53 = vld [vmem:[#allocation47_spill] sm:$0xff] }
 0x4a4   : > { %v3324_v42 = vmul.f32 %v3112_v36, %v2901_v19  ;;  %v2912_v50 = vadd.f32 %v6018_v53, %v5567_v13 }
 0x4a6   : > { %v3120_v52 = vpop.permute.xlu0 %3119 }
 0x4a7   : > { %v3124_v48 = vpop.permute.xlu1 %3123  ;;  %3525 = vperm.xlu0 %4059, %v3322_v2   ;;  %3528 = vperm.xlu1 %4060, %v3323_v60   ;;  %v3325_v31 = vmul.f32 %v3120_v52, %v2902_v62  ;;  %v2918_v60 = vadd.f32 %v6019_v27, %v5597_v15  ;;  %v6020_v52 = vld [vmem:[#allocation56_spill] sm:$0xff]  ;;  %v6023_v15 = vld [vmem:[#allocation49_spill] sm:$0xff] }
 0x4a8   : > { %v3326_v40 = vmul.f32 %v3124_v48, %v2903_v1  ;;  %v2919_v26 = vadd.f32 %v6020_v52, %v5595_v30  ;;  %v6021_v48 = vld [vmem:[#allocation50_spill] sm:$0xff] }
 0x4a9   : > { %v6024_v30 = vld [vmem:[#allocation58_spill] sm:$0xff] }
 0x4aa   : > { %v3128_v55 = vpop.permute.xlu0 %3127 }
 0x4ab   : > { %v3132_v41 = vpop.permute.xlu1 %3131  ;;  %3531 = vperm.xlu0 %4059, %v3324_v42   ;;  %3534 = vperm.xlu1 %4060, %v3325_v31   ;;  %v3327_v25 = vmul.f32 %v3128_v55, %v2904_v45  ;;  %v2913_v42 = vadd.f32 %v6021_v48, %v5565_v33  ;;  %v6022_v31 = vld [vmem:[#allocation55_spill] sm:$0xff]  ;;  %v6025_v33 = vlaneseq }
 0x4ac   : > { %v3328_v16 = vmul.f32 %v3132_v41, %v2905_v44  ;;  %v2920_v55 = vadd.f32 %v6022_v31, %v5607_v43  ;;  %v2914_v41 = vadd.f32 %v6023_v15, %v5577_v17 }
 0x4ad   : > { %v3606_v10 = vand.u32 127, %v6025_v33 }
 0x4ae   : > { %v3136_v21 = vpop.permute.xlu0 %3135 }
 0x4af   : > { %v3140_v38 = vpop.permute.xlu1 %3139  ;;  %3537 = vperm.xlu0 %4059, %v3326_v40   ;;  %3540 = vperm.xlu1 %4060, %v3327_v25   ;;  %v3329_v51 = vmul.f32 %v3136_v21, %v2906_v6  ;;  %v2921_v40 = vadd.f32 %v6024_v30, %v5605_v34  ;;  %v2908_v6 = vadd.f32 %v6026_v54, %v5547_v12  ;;  %v3611_v18 = vadd.s32 4294967288, %v3606_v10 }
 0x4b0   : > { %v3330_v24 = vmul.f32 %v3140_v38, %v2907_v20  ;;  %v6027_v38 = vld [vmem:[#allocation52_spill] sm:$0xff]  ;;  %v3618_v34 = vadd.s32 4294967280, %v3606_v10  ;;  %v3625_v12 = vadd.s32 4294967272, %v3606_v10  ;;  %v3639_v52 = vadd.s32 4294967256, %v3606_v10 }
 0x4b2   : > { %v3144_v28 = vpop.permute.xlu0 %3143 }
 0x4b3   : > { %v5654_v11 = vpop.permute.xlu1 %3147  ;;  %3543 = vperm.xlu0 %4059, %v3328_v16   ;;  %3546 = vperm.xlu1 %4060, %v3329_v51   ;;  %v2915_v16 = vadd.f32 %v6027_v38, %v5575_v9  ;;  %v3331_v17 = vmul.f32 %v3144_v28, %v2908_v6 }
 0x4b6   : > { %v3156_v7 = vpop.permute.xlu0 %3155 }
 0x4b7   : > { %v3333_v4 = vmul.f32 %v3156_v7, %v2910_v35  ;;  %v3160_v14 = vpop.permute.xlu1 %3159  ;;  %3549 = vperm.xlu0 %4059, %v3330_v24   ;;  %v2922_v35 = vadd.f32 %v6028_v8, %v5617_v46  ;;  %v6029_v24 = vld [vmem:[#allocation46_spill] sm:$0xff]  ;;  %v3632_v46 = vadd.s32 4294967264, %v3606_v10 }
 0x4b8   : > { %v3334_v37 = vmul.f32 %v3160_v14, %v2911_v3  ;;  %v2909_v63 = vadd.f32 %v6029_v24, %v5545_v39 }
 0x4b9   : > { %3558 = vperm.xlu1 %4060, %v3333_v4   ;;  %v6030_v4 = vld [vmem:[#allocation5_spill] sm:$0xff] }
 0x4ba   : > { %v3164_v0 = vpop.permute.xlu0 %3163  ;;  %v5686_v14 = vsub.s32 %v3611_v18, %v6030_v4  ;;  %v5689_v28 = vsub.s32 %v3606_v10, %v6030_v4  ;;  %v5693_v53 = vsub.s32 %v3618_v34, %v6030_v4 }
 0x4bb   : > { %v3335_v57 = vmul.f32 %v3164_v0, %v2912_v50  ;;  %v3168_v29 = vpop.permute.xlu1 %3167  ;;  %3561 = vperm.xlu0 %4059, %v3334_v37   ;;  %v3332_v37 = vmul.f32 %v5654_v11, %v2909_v63  ;;  %v6031_v50 = vld [vmem:[#allocation51_spill] sm:$0xff]  ;;  %v6032_v0 = vld [vmem:[#allocation60_spill] sm:$0xff] }
 0x4bc   : > { %v3336_v1 = vmul.f32 %v3168_v29, %v2913_v42  ;;  %v2916_v39 = vadd.f32 %v6031_v50, %v5587_v49 }
 0x4bd   : > { %3564 = vperm.xlu1 %4060, %v3335_v57   ;;  %v2923_v57 = vadd.f32 %v6032_v0, %v5615_v58  ;;  %v3646_v58 = vadd.s32 4294967248, %v3606_v10 }
 0x4be   : > { %v3172_v61 = vpop.permute.xlu0 %3171 }
 0x4bf   : > { %v3176_v32 = vpop.permute.xlu1 %3175  ;;  %v3337_v25 = vmul.f32 %v3172_v61, %v2914_v41  ;;  %v5700_v61 = vsub.s32 %v3625_v12, %v6030_v4  ;;  %v6035_v41 = vld [vmem:[#allocation61_spill] sm:$0xff] }
 0x4c0   : > { %v3338_v20 = vmul.f32 %v3176_v32, %v2915_v16  ;;  %v2925_v30 = vadd.f32 %v6035_v41, %v5625_v56 }
 0x4c2   : > { %v3180_v36 = vpop.permute.xlu0 %3179 }
 0x4c3   : > { %v5662_v2 = vpop.permute.xlu1 %3183  ;;  %v3339_v32 = vmul.f32 %v3180_v36, %v2916_v39  ;;  %v6034_v36 = vld [vmem:[#allocation59_spill] sm:$0xff] }
 0x4c4   : > { %v2924_v48 = vadd.f32 %v6034_v36, %v5627_v23  ;;  %v5721_v23 = vsub.s32 %v3646_v58, %v6030_v4 }
 0x4c6   : > { %v3192_v19 = vpop.permute.xlu0 %3191 }
 0x4c7   : > { %v3341_v47 = vmul.f32 %v3192_v19, %v2918_v60  ;;  %v3196_v13 = vpop.permute.xlu1 %3195  ;;  %v5706_v19 = vsub.s32 %v3632_v46, %v6030_v4 }
 0x4c8   : > { %v3342_v62 = vmul.f32 %v3196_v13, %v2919_v26 }
 0x4c9   : > { %3582 = vperm.xlu0 %4059, %v3341_v47   ;;  %v6033_v47 = vld [vmem:[#allocation54_spill] sm:$0xff] }
 0x4ca   : > { %3585 = vperm.xlu1 %4060, %v3342_v62   ;;  %v3200_v22 = vpop.permute.xlu0 %3199  ;;  %v2917_v13 = vadd.f32 %v6033_v47, %v5585_v5  ;;  %v3653_v5 = vadd.s32 4294967240, %v3606_v10 }
 0x4cb   : > { %v3343_v59 = vmul.f32 %v3200_v22, %v2920_v55  ;;  %v3204_v45 = vpop.permute.xlu1 %3203 }
 0x4cc   : > { %v3344_v44 = vmul.f32 %v3204_v45, %v2921_v40  ;;  %v3340_v55 = vmul.f32 %v5662_v2, %v2917_v13 }
 0x4cd   : > { %3567 = vperm.xlu0 %4059, %v3336_v1  }
 0x4ce   : > { %3588 = vperm.xlu1 %4060, %v3343_v59   ;;  %v3208_v43 = vpop.permute.xlu0 %3207  ;;  %v5717_v59 = vsub.s32 %v3639_v52, %v6030_v4 }
 0x4cf   : > { %v3212_v21 = vpop.permute.xlu1 %3211  ;;  %v3345_v7 = vmul.f32 %v3208_v43, %v2922_v35 }
 0x4d0   : > { %v3346_v26 = vmul.f32 %v3212_v21, %v2923_v57 }
 0x4d1   : > { %3570 = vperm.xlu0 %4059, %v3337_v25  }
 0x4d2   : > { %3591 = vperm.xlu1 %4060, %v3344_v44   ;;  %v3216_v3 = vpop.permute.xlu0 %3215  ;;  %v5729_v44 = vsub.s32 %v3653_v5, %v6030_v4 }
 0x4d3   : > { %v3220_v51 = vpop.permute.xlu1 %3219  ;;  %v3347_v45 = vmul.f32 %v3216_v3, %v2924_v48 }
 0x4d4   : > { %v3348_v21 = vmul.f32 %v3220_v51, %v2925_v30 }
 0x4d5   : > { %3552 = vperm.xlu0 %4059, %v3331_v17  }
 0x4d6   : > { %3573 = vperm.xlu1 %4060, %v3338_v20  }
 0x4d7   : > { %v3418_v9 = vpop.permute.xlu1 %3417 }
 0x4d8   : > { %v3615_v11 = vrot.slane %v3418_v9, %v5686_v14 }
 0x4d9   : > { %3594 = vperm.xlu0 %4059, %v3345_v7  }
 0x4da   : > { %3555 = vperm.xlu1 %4060, %v3332_v37   ;;  %v3415_v29 = vpop.permute.xlu0 %3414 }
 0x4db   : > { %v3610_v27 = vrot.slane %v3415_v29, %v5689_v28  ;;  %v3421_v60 = vpop.permute.xlu1 %3420 }
 0x4dc   : > { %v3622_v49 = vrot.slane %v3421_v60, %v5693_v53 }
 0x4dd   : > { %v3617_v62 = vsel %vm3616_vm7, %v3615_v11, %v3610_v27  ;;  %3576 = vperm.xlu0 %4059, %v3339_v32  }
 0x4de   : > { %v3624_v42 = vsel %vm3623_vm8, %v3622_v49, %v3617_v62  ;;  %3597 = vperm.xlu1 %4060, %v3346_v26   ;;  %v3424_v31 = vpop.permute.xlu0 %3423 }
 0x4df   : > { %v3629_v22 = vrot.slane %v3424_v31, %v5700_v61  ;;  %v3427_v1 = vpop.permute.xlu1 %3426 }
 0x4e0   : > { %v3636_v15 = vrot.slane %v3427_v1, %v5706_v19 }
 0x4e1   : > { %v3631_v40 = vsel %vm3630_vm9, %v3629_v22, %v3624_v42  ;;  %3579 = vperm.xlu0 %4059, %v3340_v55  }
 0x4e2   : > { %v3638_v2 = vsel %vm3637_vm10, %v3636_v15, %v3631_v40  ;;  %3600 = vperm.xlu1 %4060, %v3347_v45   ;;  %v3430_v25 = vpop.permute.xlu0 %3429 }
 0x4e3   : > { %v3643_v33 = vrot.slane %v3430_v25, %v5717_v59  ;;  %v3433_v10 = vpop.permute.xlu1 %3432 }
 0x4e4   : > { %v3650_v43 = vrot.slane %v3433_v10, %v5721_v23 }
 0x4e5   : > { %v3645_v56 = vsel %vm3644_vm11, %v3643_v33, %v3638_v2  ;;  %3603 = vperm.xlu0 %4059, %v3348_v21  }
 0x4e6   : > { %v3652_v54 = vsel %vm3651_vm12, %v3650_v43, %v3645_v56  ;;  %v3436_v6 = vpop.permute.xlu0 %3435 }
 0x4e7   : > { %v3657_v38 = vrot.slane %v3436_v6, %v5729_v44  ;;  %v3439_v16 = vpop.permute.xlu1 %3438 }
 0x4e8   : > { %v3663_v18 = vrot.slane %v3439_v16, %v5689_v28 }
 0x4e9   : > { %v3659_v17 = vsel %vm3658_vm13, %v3657_v38, %v3652_v54 }
 0x4ea   : > { %v3442_v51 = vpop.permute.xlu0 %3441 }
 0x4eb   : > { %v3667_v20 = vrot.slane %v3442_v51, %v5686_v14  ;;  %v3445_v34 = vpop.permute.xlu1 %3444 }
 0x4ec   : > { %v3672_v8 = vrot.slane %v3445_v34, %v5693_v53 }
 0x4ed   : > { %v3668_v35 = vsel %vm3616_vm7, %v3667_v20, %v3663_v18 }
 0x4ee   : > { %v3673_v24 = vsel %vm3623_vm8, %v3672_v8, %v3668_v35  ;;  %v3448_v63 = vpop.permute.xlu0 %3447 }
 0x4ef   : > { %v3677_v3 = vrot.slane %v3448_v63, %v5700_v61  ;;  %v3451_v12 = vpop.permute.xlu1 %3450 }
 0x4f0   : > { %v3682_v7 = vrot.slane %v3451_v12, %v5706_v19 }
 0x4f1   : > { %v3678_v4 = vsel %vm3630_vm9, %v3677_v3, %v3673_v24 }
 0x4f2   : > { %v3683_v9 = vsel %vm3637_vm10, %v3682_v7, %v3678_v4  ;;  %v3454_v37 = vpop.permute.xlu0 %3453 }
 0x4f3   : > { %v3687_v46 = vrot.slane %v3454_v37, %v5717_v59  ;;  %v3457_v50 = vpop.permute.xlu1 %3456 }
 0x4f4   : > { %v3692_v39 = vrot.slane %v3457_v50, %v5721_v23 }
 0x4f5   : > { %v3688_v0 = vsel %vm3644_vm11, %v3687_v46, %v3683_v9 }
 0x4f6   : > { %v3693_v57 = vsel %vm3651_vm12, %v3692_v39, %v3688_v0  ;;  %v3460_v29 = vpop.permute.xlu0 %3459 }
 0x4f7   : > { %v3697_v32 = vrot.slane %v3460_v29, %v5729_v44  ;;  %v3463_v11 = vpop.permute.xlu1 %3462 }
 0x4f8   : > { %v3702_v26 = vrot.slane %v3463_v11, %v5689_v28 }
 0x4f9   : > { %v3698_v27 = vsel %vm3658_vm13, %v3697_v32, %v3693_v57 }
 0x4fa   : > { %v3934_v60 = vsel %vm3933_vm14, %v3698_v27, %v3659_v17  ;;  %v3466_v52 = vpop.permute.xlu0 %3465 }
 0x4fb   : > { %v3706_v49 = vrot.slane %v3466_v52, %v5686_v14  ;;  %v3469_v58 = vpop.permute.xlu1 %3468 }
 0x4fc   : > { %v3711_v47 = vrot.slane %v3469_v58, %v5693_v53 }
 0x4fd   : > { %v3707_v13 = vsel %vm3616_vm7, %v3706_v49, %v3702_v26 }
 0x4fe   : > { %v3712_v62 = vsel %vm3623_vm8, %v3711_v47, %v3707_v13  ;;  %v3472_v36 = vpop.permute.xlu0 %3471 }
 0x4ff   : > { %v3716_v48 = vrot.slane %v3472_v36, %v5700_v61  ;;  %v3475_v42 = vpop.permute.xlu1 %3474 }
 0x500   : > { %v3721_v31 = vrot.slane %v3475_v42, %v5706_v19 }
 0x501   : > { %v3717_v55 = vsel %vm3630_vm9, %v3716_v48, %v3712_v62 }
 0x502   : > { %v3722_v22 = vsel %vm3637_vm10, %v3721_v31, %v3717_v55  ;;  %v3478_v1 = vpop.permute.xlu0 %3477 }
 0x503   : > { %v3726_v5 = vrot.slane %v3478_v1, %v5717_v59  ;;  %v3481_v45 = vpop.permute.xlu1 %3480 }
 0x504   : > { %v3731_v15 = vrot.slane %v3481_v45, %v5721_v23 }
 0x505   : > { %v3727_v41 = vsel %vm3644_vm11, %v3726_v5, %v3722_v22 }
 0x506   : > { %v3732_v30 = vsel %vm3651_vm12, %v3731_v15, %v3727_v41  ;;  %v3484_v40 = vpop.permute.xlu0 %3483 }
 0x507   : > { %v3736_v2 = vrot.slane %v3484_v40, %v5729_v44  ;;  %v3487_v25 = vpop.permute.xlu1 %3486 }
 0x508   : > { %v3741_v43 = vrot.slane %v3487_v25, %v5689_v28 }
 0x509   : > { %v3737_v21 = vsel %vm3658_vm13, %v3736_v2, %v3732_v30 }
 0x50a   : > { %v3936_v33 = vsel %vm3935_vm15, %v3737_v21, %v3934_v60  ;;  %v3490_v10 = vpop.permute.xlu0 %3489 }
 0x50b   : > { %v3745_v56 = vrot.slane %v3490_v10, %v5686_v14  ;;  %v3493_v54 = vpop.permute.xlu1 %3492 }
 0x50c   : > { %v3750_v6 = vrot.slane %v3493_v54, %v5693_v53 }
 0x50d   : > { %v3746_v38 = vsel %vm3616_vm7, %v3745_v56, %v3741_v43 }
 0x50e   : > { %v3751_v16 = vsel %vm3623_vm8, %v3750_v6, %v3746_v38  ;;  %v3496_v17 = vpop.permute.xlu0 %3495 }
 0x50f   : > { %v3755_v51 = vrot.slane %v3496_v17, %v5700_v61  ;;  %v3499_v18 = vpop.permute.xlu1 %3498 }
 0x510   : > { %v3760_v20 = vrot.slane %v3499_v18, %v5706_v19 }
 0x511   : > { %v3756_v34 = vsel %vm3630_vm9, %v3755_v51, %v3751_v16 }
 0x512   : > { %v3502_v8 = vpop.permute.xlu0 %3501  ;;  %v3761_v63 = vsel %vm3637_vm10, %v3760_v20, %v3756_v34 }
 0x513   : > { %v3765_v35 = vrot.slane %v3502_v8, %v5717_v59  ;;  %v3505_v24 = vpop.permute.xlu1 %3504 }
 0x514   : > { %v3770_v3 = vrot.slane %v3505_v24, %v5721_v23 }
 0x515   : > { %v3766_v12 = vsel %vm3644_vm11, %v3765_v35, %v3761_v63 }
 0x516   : > { %v3508_v7 = vpop.permute.xlu0 %3507  ;;  %v3771_v37 = vsel %vm3651_vm12, %v3770_v3, %v3766_v12 }
 0x517   : > { %v3775_v4 = vrot.slane %v3508_v7, %v5729_v44  ;;  %v3511_v9 = vpop.permute.xlu1 %3510 }
 0x518   : > { %v3780_v1 = vrot.slane %v3511_v9, %v5689_v28 }
 0x519   : > { %v3776_v46 = vsel %vm3658_vm13, %v3775_v4, %v3771_v37 }
 0x51a   : > { %v5781_v50 = vsel %vm3937_vm0, %v3776_v46, %v3936_v33  ;;  %v3514_v39 = vpop.permute.xlu0 %3513 }
 0x51b   : > { %v3517_v0 = vpop.permute.xlu1 %3516  ;;  %v3784_v22 = vrot.slane %v3514_v39, %v5686_v14 }
 0x51c   : > { %v3789_v45 = vrot.slane %v3517_v0, %v5693_v53 }
 0x51d   : > { %v3785_v41 = vsel %vm3616_vm7, %v3784_v22, %v3780_v1 }
 0x51e   : > { %v3520_v57 = vpop.permute.xlu0 %3519  ;;  %v3790_v25 = vsel %vm3623_vm8, %v3789_v45, %v3785_v41 }
 0x51f   : > { %v3523_v29 = vpop.permute.xlu1 %3522  ;;  %v3794_v30 = vrot.slane %v3520_v57, %v5700_v61 }
 0x520   : > { %v3799_v21 = vrot.slane %v3523_v29, %v5706_v19 }
 0x521   : > { %v3795_v43 = vsel %vm3630_vm9, %v3794_v30, %v3790_v25 }
 0x522   : > { %v3526_v32 = vpop.permute.xlu0 %3525  ;;  %v3800_v51 = vsel %vm3637_vm10, %v3799_v21, %v3795_v43 }
 0x523   : > { %v3529_v11 = vpop.permute.xlu1 %3528  ;;  %v3804_v56 = vrot.slane %v3526_v32, %v5717_v59 }
 0x524   : > { %v3809_v18 = vrot.slane %v3529_v11, %v5721_v23 }
 0x525   : > { %v3805_v34 = vsel %vm3644_vm11, %v3804_v56, %v3800_v51 }
 0x526   : > { %v5783_v27 = vpop.permute.xlu0 %3531  ;;  %v3810_v46 = vsel %vm3651_vm12, %v3809_v18, %v3805_v34 }
 0x527   : > { %v3535_v60 = vpop.permute.xlu1 %3534  ;;  %v3814_v12 = vrot.slane %v5783_v27, %v5729_v44 }
 0x528   : > { %v3819_v33 = vrot.slane %v3535_v60, %v5689_v28 }
 0x52a   : > { %v3538_v52 = vpop.permute.xlu0 %3537 }
 0x52b   : > { %v3541_v26 = vpop.permute.xlu1 %3540  ;;  %v3823_v40 = vrot.slane %v3538_v52, %v5686_v14 }
 0x52c   : > { %v3828_v54 = vrot.slane %v3541_v26, %v5693_v53 }
 0x52d   : > { %v3824_v6 = vsel %vm3616_vm7, %v3823_v40, %v3819_v33 }
 0x52e   : > { %v3544_v49 = vpop.permute.xlu0 %3543  ;;  %v3829_v8 = vsel %vm3623_vm8, %v3828_v54, %v3824_v6 }
 0x52f   : > { %v3547_v58 = vpop.permute.xlu1 %3546  ;;  %v3833_v38 = vrot.slane %v3544_v49, %v5700_v61 }
 0x530   : > { %v3838_v35 = vrot.slane %v3547_v58, %v5706_v19 }
 0x531   : > { %v3834_v63 = vsel %vm3630_vm9, %v3833_v38, %v3829_v8 }
 0x532   : > { %v3550_v47 = vpop.permute.xlu0 %3549  ;;  %v3839_v32 = vsel %vm3637_vm10, %v3838_v35, %v3834_v63 }
 0x533   : > { %v3843_v7 = vrot.slane %v3550_v47, %v5717_v59 }
 0x534   : > { %v3559_v13 = vpop.permute.xlu1 %3558 }
 0x535   : > { %v3858_v24 = vrot.slane %v3559_v13, %v5689_v28  ;;  %v3844_v58 = vsel %vm3644_vm11, %v3843_v7, %v3839_v32 }
 0x536   : > { %v3562_v62 = vpop.permute.xlu0 %3561 }
 0x537   : > { %v3862_v16 = vrot.slane %v3562_v62, %v5686_v14 }
 0x538   : > { %v3565_v36 = vpop.permute.xlu1 %3564 }
 0x539   : > { %v3867_v3 = vrot.slane %v3565_v36, %v5693_v53  ;;  %v3863_v4 = vsel %vm3616_vm7, %v3862_v16, %v3858_v24 }
 0x53b   : > { %v3868_v52 = vsel %vm3623_vm8, %v3867_v3, %v3863_v4 }
 0x544   : > { %v3583_v48 = vpop.permute.xlu0 %3582 }
 0x545   : > { %v3586_v42 = vpop.permute.xlu1 %3585  ;;  %v3897_v39 = vrot.slane %v3583_v48, %v5689_v28 }
 0x546   : > { %v3901_v0 = vrot.slane %v3586_v42, %v5686_v14  ;;  %v3815_v14 = vsel %vm3658_vm13, %v3814_v12, %v3810_v46 }
 0x547   : > { %v3940_v30 = vsel %vm3939_vm1, %v3815_v14, %v5781_v50 }
 0x548   : > { %v3568_v31 = vpop.permute.xlu0 %3567  ;;  %v3902_v62 = vsel %vm3616_vm7, %v3901_v0, %v3897_v39 }
 0x549   : > { %v3589_v55 = vpop.permute.xlu1 %3588  ;;  %v3872_v9 = vrot.slane %v3568_v31, %v5700_v61 }
 0x54a   : > { %v3906_v11 = vrot.slane %v3589_v55, %v5693_v53 }
 0x54b   : > { %v3873_v47 = vsel %vm3630_vm9, %v3872_v9, %v3868_v52 }
 0x54c   : > { %v3571_v5 = vpop.permute.xlu0 %3570  ;;  %v3907_v31 = vsel %vm3623_vm8, %v3906_v11, %v3902_v62 }
 0x54d   : > { %v3592_v15 = vpop.permute.xlu1 %3591  ;;  %v3877_v57 = vrot.slane %v3571_v5, %v5706_v19 }
 0x54e   : > { %v3911_v26 = vrot.slane %v3592_v15, %v5700_v61 }
 0x54f   : > { %v3878_v36 = vsel %vm3637_vm10, %v3877_v57, %v3873_v47 }
 0x550   : > { %v3553_v2 = vpop.permute.xlu0 %3552 }
 0x551   : > { %v3574_v10 = vpop.permute.xlu1 %3573  ;;  %v3848_v27 = vrot.slane %v3553_v2, %v5721_v23 }
 0x552   : > { %v3882_v60 = vrot.slane %v3574_v10, %v5717_v59 }
 0x553   : > { %v3849_v55 = vsel %vm3651_vm12, %v3848_v27, %v3844_v58 }
 0x554   : > { %v3595_v17 = vpop.permute.xlu0 %3594  ;;  %v3883_v22 = vsel %vm3644_vm11, %v3882_v60, %v3878_v36 }
 0x555   : > { %v3556_v20 = vpop.permute.xlu1 %3555  ;;  %v3916_v53 = vrot.slane %v3595_v17, %v5706_v19  ;;  %v3912_v19 = vsel %vm3630_vm9, %v3911_v26, %v3907_v31 }
 0x556   : > { %v3853_v49 = vrot.slane %v3556_v20, %v5729_v44 }
 0x558   : > { %v3577_v37 = vpop.permute.xlu0 %3576  ;;  %v3854_v5 = vsel %vm3658_vm13, %v3853_v49, %v3849_v55 }
 0x559   : > { %v3598_v29 = vpop.permute.xlu1 %3597  ;;  %v3887_v28 = vrot.slane %v3577_v37, %v5721_v23  ;;  %v3942_v2 = vsel %vm3941_vm2, %v3854_v5, %v3940_v30 }
 0x55a   : > { %v3921_v48 = vrot.slane %v3598_v29, %v5717_v59  ;;  %v3917_v59 = vsel %vm3637_vm10, %v3916_v53, %v3912_v19 }
 0x55b   : > { %v3888_v45 = vsel %vm3651_vm12, %v3887_v28, %v3883_v22 }
 0x55c   : > { %v3580_v13 = vpop.permute.xlu0 %3579  ;;  %v3922_v40 = vsel %vm3644_vm11, %v3921_v48, %v3917_v59 }
 0x55d   : > { %v3892_v61 = vrot.slane %v3580_v13, %v5729_v44  ;;  %v3601_v42 = vpop.permute.xlu1 %3600 }
 0x55e   : > { %v3926_v1 = vrot.slane %v3601_v42, %v5721_v23 }
 0x55f   : > { %v3893_v15 = vsel %vm3658_vm13, %v3892_v61, %v3888_v45 }
 0x560   : > { %v3604_v41 = vpop.permute.xlu0 %3603  ;;  %v3927_v25 = vsel %vm3651_vm12, %v3926_v1, %v3922_v40  ;;  %v3944_v21 = vsel %vm3943_vm3, %v3893_v15, %v3942_v2 }
 0x561   : > { %v3931_v23 = vrot.slane %v3604_v41, %v5729_v44 }
 0x563   : > { %v3932_v33 = vsel %vm3658_vm13, %v3931_v23, %v3927_v25 }
 0x564   : > { %v3946_v10 = vsel %vm3945_vm5, %v3932_v33, %v3944_v21 }
 0x565   : > { %3948 = vst.msk [vmem:[%s300_s10] sm:$0xff] %vm387_vm4, %v3946_v10 }
 0x566 PF: > { %s18_s27 = sadd.s32 1, %s4211_s27  }
 0x567   : > { %p15_p4 = scmp.ge.s32.totalorder %s18_s27, 4  }
 0x569   :  { %17 = sbr.rel (!%p15_p4) target bundleno = 1 (0x1), region = 103 }

</bundles_post_ra>
